<compile_context>
chip_gen: v7x
topology: tpu7x:2x2x1
jax: 0.10.0
libtpu: 0.0.40
codegen_flags: <defaults>
</compile_context>

<pallas_src>
import functools
from math import sqrt

import jax
import jax.numpy as jnp
from jax.experimental import pallas as pl
from jax.experimental.pallas import tpu as pltpu


def _mc_ffn_kernel(x_ref, scale_ref, w1v_ref, b1v_ref, w2_ref, b2_ref,
                   o_ref, acc_ref, xd_ref, *, n_sampling, block_h):
    """One (token tile, hidden block) step of the MC-dropout gated FFN.

    acc += sum_s (SiLU(xd_s @ W1_k + b1_k) + (xd_s @ Wv_k + bv_k)) @ W2_k
    with xd_s cached in VMEM; finalize: out = acc / n_sampling + b2.
    """
    k = pl.program_id(1)

    @pl.when(k == 0)
    def _init():
        acc_ref[...] = jnp.zeros_like(acc_ref)
        # Hoisted out of the hidden (k) loop: compute all n_sampling
        # dropout-scaled bf16 activation tiles once per token tile.
        x = x_ref[...].astype(jnp.float32)
        for s in range(n_sampling):
            xd_ref[s] = (x * scale_ref[s].astype(jnp.float32)).astype(jnp.bfloat16)

    w1v = w1v_ref[...]                      # (d_model, 2*block_h) bf16 = [W1_k | Wv_k]
    w2 = w2_ref[...]                        # (block_h, d_model)   bf16
    tm = acc_ref.shape[0]
    # Hoist the bias broadcast out of the unrolled sample loop (JAX does not
    # CSE broadcast_in_dim across unrolled iterations).
    b1v = jnp.broadcast_to(b1v_ref[...].astype(jnp.float32), (tm, 2 * block_h))

    acc = acc_ref[...]
    # n_sampling is small (5) and static -> unrolled at trace time; xd tiles
    # and weight slices are read from VMEM refs, MXU accumulates in f32.
    for s in range(n_sampling):
        xd = xd_ref[s]                                          # (tm, d_model) bf16
        h = jnp.dot(xd, w1v, preferred_element_type=jnp.float32) + b1v
        h1 = h[:, :block_h]                                     # gate branch
        hv = h[:, block_h:]                                     # value branch
        hb = (h1 * jax.nn.sigmoid(h1) + hv).astype(jnp.bfloat16)
        acc = acc + jnp.dot(hb, w2, preferred_element_type=jnp.float32)
    acc_ref[...] = acc

    @pl.when(k == pl.num_programs(1) - 1)
    def _finalize():
        out = acc_ref[...] * (1.0 / n_sampling) + b2_ref[...].astype(jnp.float32)
        o_ref[...] = out.astype(o_ref.dtype)


@functools.partial(jax.jit, static_argnames=("tile_m", "block_h", "weight_buffers"))
def monte_carlo_ffn(x, scales, w1, b1, wv, bv, w2, b2, *,
                    tile_m=256, block_h=512, weight_buffers=2):
    """Monte-Carlo-dropout gated FFN.

    x:      (batch, seq, d_model)
    scales: (n_sampling, batch*seq, d_model) cumulative inverted-dropout scales
    weights stored as (in_features, out_features) so the kernel does x @ W + b.
    weight_buffers > 2 enables deeper pipelining on the weight streams (v6e).
    """
    batch, seq, d_model = x.shape
    hidden = w1.shape[1]
    n_sampling = scales.shape[0]

    assert d_model % 128 == 0, "pad d_model to a multiple of 128 before calling"
    assert hidden % 128 == 0, "pad hidden to a multiple of 128 before calling"

    # Clamp block_h to a 128-multiple divisor of hidden.
    block_h = min(block_h, hidden)
    while hidden % block_h != 0:
        block_h -= 128
    assert block_h >= 128

    n_tokens = batch * seq
    # Don't use a token tile larger than the (128-padded) token count.
    tile_m = min(tile_m, pl.cdiv(n_tokens, 128) * 128)
    n_pad = pl.cdiv(n_tokens, tile_m) * tile_m
    n_tiles = n_pad // tile_m

    x2d = x.reshape(n_tokens, d_model)
    # bf16 dropout scales: halves the dominant activation stream.
    sc = scales.reshape(n_sampling, n_tokens, d_model).astype(jnp.bfloat16)
    if n_pad != n_tokens:
        x2d = jnp.pad(x2d, ((0, n_pad - n_tokens), (0, 0)))
        sc = jnp.pad(sc, ((0, 0), (0, n_pad - n_tokens), (0, 0)))

    # bf16 matmul operands; W1/Wv fused block-wise so BlockSpec slice k is
    # exactly [W1_k | Wv_k].  Biases f32 for the epilogue.
    nb = hidden // block_h
    w1b = w1.astype(jnp.bfloat16).reshape(d_model, nb, block_h)
    wvb = wv.astype(jnp.bfloat16).reshape(d_model, nb, block_h)
    w1v = jnp.concatenate([w1b, wvb], axis=-1).reshape(d_model, 2 * hidden)
    b1b = b1.astype(jnp.float32).reshape(nb, block_h)
    bvb = bv.astype(jnp.float32).reshape(nb, block_h)
    b1v = jnp.concatenate([b1b, bvb], axis=-1).reshape(1, 2 * hidden)
    w2b = w2.astype(jnp.bfloat16)
    b2_2d = b2.reshape(1, d_model).astype(jnp.float32)

    out_itemsize = jnp.dtype(x.dtype).itemsize
    wbuf = max(2, weight_buffers)

    # VMEM working-set estimate (double-buffered inputs/outputs + scratch).
    vmem_need = (
        2 * tile_m * d_model * 4                    # x tile
        + 2 * n_sampling * tile_m * d_model * 2     # bf16 dropout scales
        + wbuf * d_model * 2 * block_h * 2          # [W1|Wv] slices
        + wbuf * block_h * d_model * 2              # W2 slices
        + wbuf * (2 * block_h + d_model) * 4        # biases
        + 2 * tile_m * d_model * out_itemsize       # output tile
        + tile_m * d_model * 4                      # f32 accumulator scratch
        + n_sampling * tile_m * d_model * 2         # bf16 xd scratch
    )
    vmem_limit = max(32 << 20, min(int(vmem_need * 1.25) + (4 << 20), 96 << 20))
    try:
        phys = int(pltpu.get_tpu_info().vmem_capacity_bytes)
        vmem_limit = max(16 << 20, min(vmem_limit, phys - (8 << 20)))
    except Exception:
        # Unknown part: stay under the smallest physical VMEM (v7x = 64 MiB).
        vmem_limit = min(vmem_limit, 56 << 20)

    grid = (n_tiles, hidden // block_h)

    # Weights are re-streamed once per token tile (their index_maps depend only
    # on k), so the estimate multiplies weight bytes by the token-tile count.
    cost = pl.CostEstimate(
        flops=int(6 * n_sampling * n_pad * d_model * hidden),
        transcendentals=int(n_sampling * n_pad * hidden),
        bytes_accessed=int(
            x2d.size * 4 + sc.size * 2
            + n_tiles * (w1v.size + w2b.size) * 2
            + n_tiles * (b1v.size + b2_2d.size) * 4
            + n_pad * d_model * out_itemsize),
    )

    def weight_spec(shape, idx):
        if weight_buffers > 2:
            return pl.BlockSpec(shape, idx, pipeline_mode=pl.Buffered(weight_buffers))
        return pl.BlockSpec(shape, idx)

    kernel = functools.partial(_mc_ffn_kernel, n_sampling=n_sampling, block_h=block_h)

    out2d = pl.pallas_call(
        kernel,
        out_shape=jax.ShapeDtypeStruct((n_pad, d_model), x.dtype),
        grid_spec=pltpu.PrefetchScalarGridSpec(
            num_scalar_prefetch=0,
            grid=grid,
            in_specs=[
                pl.BlockSpec((tile_m, d_model), lambda i, k: (i, 0)),                 # x tile
                pl.BlockSpec((n_sampling, tile_m, d_model), lambda i, k: (0, i, 0)),  # bf16 scales
                weight_spec((d_model, 2 * block_h), lambda i, k: (0, k)),             # [W1|Wv] slice
                pl.BlockSpec((1, 2 * block_h), lambda i, k: (0, k)),                  # [b1|bv] slice
                weight_spec((block_h, d_model), lambda i, k: (k, 0)),                 # W2 slice
                pl.BlockSpec((1, d_model), lambda i, k: (0, 0)),                      # b2
            ],
            out_specs=pl.BlockSpec((tile_m, d_model), lambda i, k: (i, 0)),
            scratch_shapes=[
                pltpu.VMEM((tile_m, d_model), jnp.float32),                 # f32 accumulator
                pltpu.VMEM((n_sampling, tile_m, d_model), jnp.bfloat16),    # cached xd samples
            ],
        ),
        compiler_params=pltpu.CompilerParams(
            dimension_semantics=("parallel", "arbitrary"),
            vmem_limit_bytes=int(vmem_limit),
        ),
        cost_estimate=cost,
    )(x2d, sc, w1v, b1v, w2b, b2_2d)

    return out2d[:n_tokens].reshape(batch, seq, d_model)


def make_mc_dropout_scales(key, n_sampling, shape, p):
    """Cumulative inverted-dropout scales matching the reference's x-reassignment."""
    keep_p = 1.0 - p
    cum = jnp.ones(shape, jnp.float32)
    scales = []
    for _ in range(n_sampling):
        key, sub = jax.random.split(key)
        keep = jax.random.bernoulli(sub, keep_p, shape)
        cum = cum * jnp.where(keep, 1.0 / keep_p, 0.0)
        scales.append(cum)
    return jnp.stack(scales, axis=0)  # (n_sampling, N, d_model)


def init_params(key, d_model, hidden):
    """PyTorch-Linear-style init U(-1/sqrt(fan_in), 1/sqrt(fan_in)).
    Weights stored as (in_features, out_features)."""
    ks = jax.random.split(key, 6)
    bnd1 = 1.0 / sqrt(d_model)
    bnd2 = 1.0 / sqrt(hidden)
    w1 = jax.random.uniform(ks[0], (d_model, hidden), jnp.float32, -bnd1, bnd1)
    b1 = jax.random.uniform(ks[1], (hidden,), jnp.float32, -bnd1, bnd1)
    wv = jax.random.uniform(ks[2], (d_model, hidden), jnp.float32, -bnd1, bnd1)
    bv = jax.random.uniform(ks[3], (hidden,), jnp.float32, -bnd1, bnd1)
    w2 = jax.random.uniform(ks[4], (hidden, d_model), jnp.float32, -bnd2, bnd2)
    b2 = jax.random.uniform(ks[5], (d_model,), jnp.float32, -bnd2, bnd2)
    return w1, b1, wv, bv, w2, b2


def reference_monte_carlo_ffn(x, scales, w1, b1, wv, bv, w2, b2):
    """Pure-JAX reference mirroring the kernel's bf16-scale / bf16-operand /
    f32-accumulate numerics."""
    batch, seq, d_model = x.shape
    n = scales.shape[0]
    x2d = x.reshape(-1, d_model).astype(jnp.float32)
    sc = scales.reshape(n, -1, d_model).astype(jnp.bfloat16).astype(jnp.float32)
    w1b, wvb, w2b = (w.astype(jnp.bfloat16) for w in (w1, wv, w2))
    acc = jnp.zeros((x2d.shape[0], d_model), jnp.float32)
    for s in range(n):
        xd = (x2d * sc[s]).astype(jnp.bfloat16)
        h1 = jnp.dot(xd, w1b, preferred_element_type=jnp.float32) + b1
        hv = jnp.dot(xd, wvb, preferred_element_type=jnp.float32) + bv
        h = (jax.nn.silu(h1) + hv).astype(jnp.bfloat16)
        acc = acc + jnp.dot(h, w2b, preferred_element_type=jnp.float32)
    out = acc * (1.0 / n) + b2
    return out.reshape(batch, seq, d_model).astype(x.dtype)


if __name__ == "__main__":
    key = jax.random.PRNGKey(0)
    batch, seq, d_model, hidden = 2, 64, 128, 512   # lane-aligned small shapes
    n_sampling, dropout_p = 5, 0.2                  # MonteCarloFC defaults

    k_x, k_p, k_d = jax.random.split(key, 3)
    x = jax.random.normal(k_x, (batch, seq, d_model), jnp.float32)
    params = init_params(k_p, d_model, hidden)
    scales = make_mc_dropout_scales(k_d, n_sampling, (batch * seq, d_model), dropout_p)

    out = monte_carlo_ffn(x, scales, *params)
    out = jax.block_until_ready(out)

    ref = reference_monte_carlo_ffn(x, scales, *params)
    assert out.shape == (batch, seq, d_model)
    max_err = jnp.max(jnp.abs(out - ref))
    assert jnp.allclose(out, ref, atol=1e-2, rtol=1e-2), f"mismatch vs reference (max abs err {max_err})"

    print("KERNEL_OK")
</pallas_src>

<mosaic_0001>
module attributes {stable_mosaic.version = 11 : i64} {
  func.func @_mc_ffn_kernel(%arg0: i32, %arg1: i32, %arg2: memref<128x128xf32, #tpu.memory_space<vmem>>, %arg3: memref<5x128x128xbf16, #tpu.memory_space<vmem>>, %arg4: memref<128x1024xbf16, #tpu.memory_space<vmem>>, %arg5: memref<1x1024xf32, #tpu.memory_space<vmem>>, %arg6: memref<512x128xbf16, #tpu.memory_space<vmem>>, %arg7: memref<1x128xf32, #tpu.memory_space<vmem>>, %arg8: memref<128x128xf32, #tpu.memory_space<vmem>>, %arg9: memref<128x128xf32, #tpu.memory_space<vmem>>, %arg10: memref<5x128x128xbf16, #tpu.memory_space<vmem>>) attributes {dimension_semantics = [#tpu.dimension_semantics<parallel>, #tpu.dimension_semantics<arbitrary>], iteration_bounds = array<i64: 1, 1>, scalar_prefetch = 0 : i64, scratch_operands = 2 : i64, tpu.core_type = #tpu.core_type<tc>, window_params = [{transform_indices = @transform_0, window_bounds = array<i64: 128, 128>}, {transform_indices = @transform_1, window_bounds = array<i64: 5, 128, 128>}, {transform_indices = @transform_2, window_bounds = array<i64: 128, 1024>}, {transform_indices = @transform_3, window_bounds = array<i64: 1, 1024>}, {transform_indices = @transform_4, window_bounds = array<i64: 512, 128>}, {pipeline_mode = #tpu.pipeline_mode<synchronous>, transform_indices = @transform_5, window_bounds = array<i64: 1, 128>}, {transform_indices = @transform_6, window_bounds = array<i64: 128, 128>}]} {
    %c0_i32 = arith.constant 0 : i32
    %0 = arith.cmpi eq, %arg1, %c0_i32 : i32
    %1 = arith.extui %0 : i1 to i32
    %c0_i32_0 = arith.constant 0 : i32
    %2 = arith.cmpi ne, %1, %c0_i32_0 : i32
    scf.if %2 {
      %cst_37 = arith.constant 0.000000e+00 : f32
      %93 = vector.broadcast %cst_37 : f32 to vector<128x128xf32>
      %c0_38 = arith.constant 0 : index
      %c0_39 = arith.constant 0 : index
      %94 = vector.load %arg9[%c0_38, %c0_39] : memref<128x128xf32, #tpu.memory_space<vmem>>, vector<128x128xf32>
      tpu.vector_store %arg9[%c0_38, %c0_39], %93 {strides = array<i32>} : memref<128x128xf32, #tpu.memory_space<vmem>>, vector<128x128xf32>,
      %c0_40 = arith.constant 0 : index
      %c0_41 = arith.constant 0 : index
      %95 = vector.load %arg2[%c0_40, %c0_41] : memref<128x128xf32, #tpu.memory_space<vmem>>, vector<128x128xf32>
      %c0_42 = arith.constant 0 : index
      %c0_43 = arith.constant 0 : index
      %c0_44 = arith.constant 0 : index
      %96 = vector.load %arg3[%c0_42, %c0_43, %c0_44] : memref<5x128x128xbf16, #tpu.memory_space<vmem>>, vector<1x128x128xbf16>
      %97 = vector.shape_cast %96 : vector<1x128x128xbf16> to vector<128x128xbf16>
      %98 = arith.extf %97 : vector<128x128xbf16> to vector<128x128xf32>
      %99 = arith.mulf %95, %98 : vector<128x128xf32>
      %100 = arith.truncf %99 : vector<128x128xf32> to vector<128x128xbf16>
      %c0_45 = arith.constant 0 : index
      %c0_46 = arith.constant 0 : index
      %c0_47 = arith.constant 0 : index
      %101 = vector.load %arg10[%c0_45, %c0_46, %c0_47] : memref<5x128x128xbf16, #tpu.memory_space<vmem>>, vector<1x128x128xbf16>
      %102 = vector.shape_cast %101 : vector<1x128x128xbf16> to vector<128x128xbf16>
      %103 = vector.shape_cast %100 : vector<128x128xbf16> to vector<1x128x128xbf16>
      tpu.vector_store %arg10[%c0_45, %c0_46, %c0_47], %103 {strides = array<i32>} : memref<5x128x128xbf16, #tpu.memory_space<vmem>>, vector<1x128x128xbf16>,
      %c1_48 = arith.constant 1 : index
      %c0_49 = arith.constant 0 : index
      %c0_50 = arith.constant 0 : index
      %104 = vector.load %arg3[%c1_48, %c0_49, %c0_50] : memref<5x128x128xbf16, #tpu.memory_space<vmem>>, vector<1x128x128xbf16>
      %105 = vector.shape_cast %104 : vector<1x128x128xbf16> to vector<128x128xbf16>
      %106 = arith.extf %105 : vector<128x128xbf16> to vector<128x128xf32>
      %107 = arith.mulf %95, %106 : vector<128x128xf32>
      %108 = arith.truncf %107 : vector<128x128xf32> to vector<128x128xbf16>
      %c1_51 = arith.constant 1 : index
      %c0_52 = arith.constant 0 : index
      %c0_53 = arith.constant 0 : index
      %109 = vector.load %arg10[%c1_51, %c0_52, %c0_53] : memref<5x128x128xbf16, #tpu.memory_space<vmem>>, vector<1x128x128xbf16>
      %110 = vector.shape_cast %109 : vector<1x128x128xbf16> to vector<128x128xbf16>
      %111 = vector.shape_cast %108 : vector<128x128xbf16> to vector<1x128x128xbf16>
      tpu.vector_store %arg10[%c1_51, %c0_52, %c0_53], %111 {strides = array<i32>} : memref<5x128x128xbf16, #tpu.memory_space<vmem>>, vector<1x128x128xbf16>,
      %c2_54 = arith.constant 2 : index
      %c0_55 = arith.constant 0 : index
      %c0_56 = arith.constant 0 : index
      %112 = vector.load %arg3[%c2_54, %c0_55, %c0_56] : memref<5x128x128xbf16, #tpu.memory_space<vmem>>, vector<1x128x128xbf16>
      %113 = vector.shape_cast %112 : vector<1x128x128xbf16> to vector<128x128xbf16>
      %114 = arith.extf %113 : vector<128x128xbf16> to vector<128x128xf32>
      %115 = arith.mulf %95, %114 : vector<128x128xf32>
      %116 = arith.truncf %115 : vector<128x128xf32> to vector<128x128xbf16>
      %c2_57 = arith.constant 2 : index
      %c0_58 = arith.constant 0 : index
      %c0_59 = arith.constant 0 : index
      %117 = vector.load %arg10[%c2_57, %c0_58, %c0_59] : memref<5x128x128xbf16, #tpu.memory_space<vmem>>, vector<1x128x128xbf16>
      %118 = vector.shape_cast %117 : vector<1x128x128xbf16> to vector<128x128xbf16>
      %119 = vector.shape_cast %116 : vector<128x128xbf16> to vector<1x128x128xbf16>
      tpu.vector_store %arg10[%c2_57, %c0_58, %c0_59], %119 {strides = array<i32>} : memref<5x128x128xbf16, #tpu.memory_space<vmem>>, vector<1x128x128xbf16>,
      %c3_60 = arith.constant 3 : index
      %c0_61 = arith.constant 0 : index
      %c0_62 = arith.constant 0 : index
      %120 = vector.load %arg3[%c3_60, %c0_61, %c0_62] : memref<5x128x128xbf16, #tpu.memory_space<vmem>>, vector<1x128x128xbf16>
      %121 = vector.shape_cast %120 : vector<1x128x128xbf16> to vector<128x128xbf16>
      %122 = arith.extf %121 : vector<128x128xbf16> to vector<128x128xf32>
      %123 = arith.mulf %95, %122 : vector<128x128xf32>
      %124 = arith.truncf %123 : vector<128x128xf32> to vector<128x128xbf16>
      %c3_63 = arith.constant 3 : index
      %c0_64 = arith.constant 0 : index
      %c0_65 = arith.constant 0 : index
      %125 = vector.load %arg10[%c3_63, %c0_64, %c0_65] : memref<5x128x128xbf16, #tpu.memory_space<vmem>>, vector<1x128x128xbf16>
      %126 = vector.shape_cast %125 : vector<1x128x128xbf16> to vector<128x128xbf16>
      %127 = vector.shape_cast %124 : vector<128x128xbf16> to vector<1x128x128xbf16>
      tpu.vector_store %arg10[%c3_63, %c0_64, %c0_65], %127 {strides = array<i32>} : memref<5x128x128xbf16, #tpu.memory_space<vmem>>, vector<1x128x128xbf16>,
      %c4_66 = arith.constant 4 : index
      %c0_67 = arith.constant 0 : index
      %c0_68 = arith.constant 0 : index
      %128 = vector.load %arg3[%c4_66, %c0_67, %c0_68] : memref<5x128x128xbf16, #tpu.memory_space<vmem>>, vector<1x128x128xbf16>
      %129 = vector.shape_cast %128 : vector<1x128x128xbf16> to vector<128x128xbf16>
      %130 = arith.extf %129 : vector<128x128xbf16> to vector<128x128xf32>
      %131 = arith.mulf %95, %130 : vector<128x128xf32>
      %132 = arith.truncf %131 : vector<128x128xf32> to vector<128x128xbf16>
      %c4_69 = arith.constant 4 : index
      %c0_70 = arith.constant 0 : index
      %c0_71 = arith.constant 0 : index
      %133 = vector.load %arg10[%c4_69, %c0_70, %c0_71] : memref<5x128x128xbf16, #tpu.memory_space<vmem>>, vector<1x128x128xbf16>
      %134 = vector.shape_cast %133 : vector<1x128x128xbf16> to vector<128x128xbf16>
      %135 = vector.shape_cast %132 : vector<128x128xbf16> to vector<1x128x128xbf16>
      tpu.vector_store %arg10[%c4_69, %c0_70, %c0_71], %135 {strides = array<i32>} : memref<5x128x128xbf16, #tpu.memory_space<vmem>>, vector<1x128x128xbf16>,
    } else {
    }
    %c0 = arith.constant 0 : index
    %c0_1 = arith.constant 0 : index
    %3 = vector.load %arg4[%c0, %c0_1] : memref<128x1024xbf16, #tpu.memory_space<vmem>>, vector<128x1024xbf16>
    %c0_2 = arith.constant 0 : index
    %c0_3 = arith.constant 0 : index
    %4 = vector.load %arg6[%c0_2, %c0_3] : memref<512x128xbf16, #tpu.memory_space<vmem>>, vector<512x128xbf16>
    %c0_4 = arith.constant 0 : index
    %c0_5 = arith.constant 0 : index
    %5 = vector.load %arg5[%c0_4, %c0_5] : memref<1x1024xf32, #tpu.memory_space<vmem>>, vector<1x1024xf32>
    %6 = vector.shape_cast %5 : vector<1x1024xf32> to vector<1x1024xf32>
    %7 = vector.broadcast %6 : vector<1x1024xf32> to vector<128x1024xf32>
    %c0_6 = arith.constant 0 : index
    %c0_7 = arith.constant 0 : index
    %8 = vector.load %arg9[%c0_6, %c0_7] : memref<128x128xf32, #tpu.memory_space<vmem>>, vector<128x128xf32>
    %c0_8 = arith.constant 0 : index
    %c0_9 = arith.constant 0 : index
    %c0_10 = arith.constant 0 : index
    %9 = vector.load %arg10[%c0_8, %c0_9, %c0_10] : memref<5x128x128xbf16, #tpu.memory_space<vmem>>, vector<1x128x128xbf16>
    %10 = vector.shape_cast %9 : vector<1x128x128xbf16> to vector<128x128xbf16>
    %cst = arith.constant dense<0.000000e+00> : vector<128x1024xf32>
    %11 = tpu.matmul %10, %3, %cst {dimension_numbers = #tpu.dot_dimension_numbers<[1], [0], [0], [1], [0, 0, 1, 1], [], []>} : vector<128x128xbf16>, vector<128x1024xbf16>, vector<128x1024xf32> -> vector<128x1024xf32>
    %12 = arith.addf %11, %7 : vector<128x1024xf32>
    %13 = vector.extract_strided_slice %12 {offsets = [0, 0], sizes = [128, 512], strides = [1, 1]} : vector<128x1024xf32> to vector<128x512xf32>
    %14 = vector.extract_strided_slice %12 {offsets = [0, 512], sizes = [128, 512], strides = [1, 1]} : vector<128x1024xf32> to vector<128x512xf32>
    %15 = arith.negf %13 : vector<128x512xf32>
    %16 = math.exp %15 : vector<128x512xf32>
    %cst_11 = arith.constant 1.000000e+00 : f32
    %17 = vector.broadcast %cst_11 : f32 to vector<128x512xf32>
    %18 = arith.addf %17, %16 : vector<128x512xf32>
    %19 = arith.divf %17, %18 : vector<128x512xf32>
    %20 = arith.mulf %13, %19 : vector<128x512xf32>
    %21 = arith.addf %20, %14 : vector<128x512xf32>
    %22 = arith.truncf %21 : vector<128x512xf32> to vector<128x512xbf16>
    %cst_12 = arith.constant dense<0.000000e+00> : vector<128x128xf32>
    %23 = tpu.matmul %22, %4, %cst_12 {dimension_numbers = #tpu.dot_dimension_numbers<[1], [0], [0], [1], [0, 0, 1, 1], [], []>} : vector<128x512xbf16>, vector<512x128xbf16>, vector<128x128xf32> -> vector<128x128xf32>
    %24 = arith.addf %8, %23 : vector<128x128xf32>
    %c1 = arith.constant 1 : index
    %c0_13 = arith.constant 0 : index
    %c0_14 = arith.constant 0 : index
    %25 = vector.load %arg10[%c1, %c0_13, %c0_14] : memref<5x128x128xbf16, #tpu.memory_space<vmem>>, vector<1x128x128xbf16>
    %26 = vector.shape_cast %25 : vector<1x128x128xbf16> to vector<128x128xbf16>
    %cst_15 = arith.constant dense<0.000000e+00> : vector<128x1024xf32>
    %27 = tpu.matmul %26, %3, %cst_15 {dimension_numbers = #tpu.dot_dimension_numbers<[1], [0], [0], [1], [0, 0, 1, 1], [], []>} : vector<128x128xbf16>, vector<128x1024xbf16>, vector<128x1024xf32> -> vector<128x1024xf32>
    %28 = arith.addf %27, %7 : vector<128x1024xf32>
    %29 = vector.extract_strided_slice %28 {offsets = [0, 0], sizes = [128, 512], strides = [1, 1]} : vector<128x1024xf32> to vector<128x512xf32>
    %30 = vector.extract_strided_slice %28 {offsets = [0, 512], sizes = [128, 512], strides = [1, 1]} : vector<128x1024xf32> to vector<128x512xf32>
    %31 = arith.negf %29 : vector<128x512xf32>
    %32 = math.exp %31 : vector<128x512xf32>
    %cst_16 = arith.constant 1.000000e+00 : f32
    %33 = vector.broadcast %cst_16 : f32 to vector<128x512xf32>
    %34 = arith.addf %33, %32 : vector<128x512xf32>
    %35 = arith.divf %33, %34 : vector<128x512xf32>
    %36 = arith.mulf %29, %35 : vector<128x512xf32>
    %37 = arith.addf %36, %30 : vector<128x512xf32>
    %38 = arith.truncf %37 : vector<128x512xf32> to vector<128x512xbf16>
    %cst_17 = arith.constant dense<0.000000e+00> : vector<128x128xf32>
    %39 = tpu.matmul %38, %4, %cst_17 {dimension_numbers = #tpu.dot_dimension_numbers<[1], [0], [0], [1], [0, 0, 1, 1], [], []>} : vector<128x512xbf16>, vector<512x128xbf16>, vector<128x128xf32> -> vector<128x128xf32>
    %40 = arith.addf %24, %39 : vector<128x128xf32>
    %c2 = arith.constant 2 : index
    %c0_18 = arith.constant 0 : index
    %c0_19 = arith.constant 0 : index
    %41 = vector.load %arg10[%c2, %c0_18, %c0_19] : memref<5x128x128xbf16, #tpu.memory_space<vmem>>, vector<1x128x128xbf16>
    %42 = vector.shape_cast %41 : vector<1x128x128xbf16> to vector<128x128xbf16>
    %cst_20 = arith.constant dense<0.000000e+00> : vector<128x1024xf32>
    %43 = tpu.matmul %42, %3, %cst_20 {dimension_numbers = #tpu.dot_dimension_numbers<[1], [0], [0], [1], [0, 0, 1, 1], [], []>} : vector<128x128xbf16>, vector<128x1024xbf16>, vector<128x1024xf32> -> vector<128x1024xf32>
    %44 = arith.addf %43, %7 : vector<128x1024xf32>
    %45 = vector.extract_strided_slice %44 {offsets = [0, 0], sizes = [128, 512], strides = [1, 1]} : vector<128x1024xf32> to vector<128x512xf32>
    %46 = vector.extract_strided_slice %44 {offsets = [0, 512], sizes = [128, 512], strides = [1, 1]} : vector<128x1024xf32> to vector<128x512xf32>
    %47 = arith.negf %45 : vector<128x512xf32>
    %48 = math.exp %47 : vector<128x512xf32>
    %cst_21 = arith.constant 1.000000e+00 : f32
    %49 = vector.broadcast %cst_21 : f32 to vector<128x512xf32>
    %50 = arith.addf %49, %48 : vector<128x512xf32>
    %51 = arith.divf %49, %50 : vector<128x512xf32>
    %52 = arith.mulf %45, %51 : vector<128x512xf32>
    %53 = arith.addf %52, %46 : vector<128x512xf32>
    %54 = arith.truncf %53 : vector<128x512xf32> to vector<128x512xbf16>
    %cst_22 = arith.constant dense<0.000000e+00> : vector<128x128xf32>
    %55 = tpu.matmul %54, %4, %cst_22 {dimension_numbers = #tpu.dot_dimension_numbers<[1], [0], [0], [1], [0, 0, 1, 1], [], []>} : vector<128x512xbf16>, vector<512x128xbf16>, vector<128x128xf32> -> vector<128x128xf32>
    %56 = arith.addf %40, %55 : vector<128x128xf32>
    %c3 = arith.constant 3 : index
    %c0_23 = arith.constant 0 : index
    %c0_24 = arith.constant 0 : index
    %57 = vector.load %arg10[%c3, %c0_23, %c0_24] : memref<5x128x128xbf16, #tpu.memory_space<vmem>>, vector<1x128x128xbf16>
    %58 = vector.shape_cast %57 : vector<1x128x128xbf16> to vector<128x128xbf16>
    %cst_25 = arith.constant dense<0.000000e+00> : vector<128x1024xf32>
    %59 = tpu.matmul %58, %3, %cst_25 {dimension_numbers = #tpu.dot_dimension_numbers<[1], [0], [0], [1], [0, 0, 1, 1], [], []>} : vector<128x128xbf16>, vector<128x1024xbf16>, vector<128x1024xf32> -> vector<128x1024xf32>
    %60 = arith.addf %59, %7 : vector<128x1024xf32>
    %61 = vector.extract_strided_slice %60 {offsets = [0, 0], sizes = [128, 512], strides = [1, 1]} : vector<128x1024xf32> to vector<128x512xf32>
    %62 = vector.extract_strided_slice %60 {offsets = [0, 512], sizes = [128, 512], strides = [1, 1]} : vector<128x1024xf32> to vector<128x512xf32>
    %63 = arith.negf %61 : vector<128x512xf32>
    %64 = math.exp %63 : vector<128x512xf32>
    %cst_26 = arith.constant 1.000000e+00 : f32
    %65 = vector.broadcast %cst_26 : f32 to vector<128x512xf32>
    %66 = arith.addf %65, %64 : vector<128x512xf32>
    %67 = arith.divf %65, %66 : vector<128x512xf32>
    %68 = arith.mulf %61, %67 : vector<128x512xf32>
    %69 = arith.addf %68, %62 : vector<128x512xf32>
    %70 = arith.truncf %69 : vector<128x512xf32> to vector<128x512xbf16>
    %cst_27 = arith.constant dense<0.000000e+00> : vector<128x128xf32>
    %71 = tpu.matmul %70, %4, %cst_27 {dimension_numbers = #tpu.dot_dimension_numbers<[1], [0], [0], [1], [0, 0, 1, 1], [], []>} : vector<128x512xbf16>, vector<512x128xbf16>, vector<128x128xf32> -> vector<128x128xf32>
    %72 = arith.addf %56, %71 : vector<128x128xf32>
    %c4 = arith.constant 4 : index
    %c0_28 = arith.constant 0 : index
    %c0_29 = arith.constant 0 : index
    %73 = vector.load %arg10[%c4, %c0_28, %c0_29] : memref<5x128x128xbf16, #tpu.memory_space<vmem>>, vector<1x128x128xbf16>
    %74 = vector.shape_cast %73 : vector<1x128x128xbf16> to vector<128x128xbf16>
    %cst_30 = arith.constant dense<0.000000e+00> : vector<128x1024xf32>
    %75 = tpu.matmul %74, %3, %cst_30 {dimension_numbers = #tpu.dot_dimension_numbers<[1], [0], [0], [1], [0, 0, 1, 1], [], []>} : vector<128x128xbf16>, vector<128x1024xbf16>, vector<128x1024xf32> -> vector<128x1024xf32>
    %76 = arith.addf %75, %7 : vector<128x1024xf32>
    %77 = vector.extract_strided_slice %76 {offsets = [0, 0], sizes = [128, 512], strides = [1, 1]} : vector<128x1024xf32> to vector<128x512xf32>
    %78 = vector.extract_strided_slice %76 {offsets = [0, 512], sizes = [128, 512], strides = [1, 1]} : vector<128x1024xf32> to vector<128x512xf32>
    %79 = arith.negf %77 : vector<128x512xf32>
    %80 = math.exp %79 : vector<128x512xf32>
    %cst_31 = arith.constant 1.000000e+00 : f32
    %81 = vector.broadcast %cst_31 : f32 to vector<128x512xf32>
    %82 = arith.addf %81, %80 : vector<128x512xf32>
    %83 = arith.divf %81, %82 : vector<128x512xf32>
    %84 = arith.mulf %77, %83 : vector<128x512xf32>
    %85 = arith.addf %84, %78 : vector<128x512xf32>
    %86 = arith.truncf %85 : vector<128x512xf32> to vector<128x512xbf16>
    %cst_32 = arith.constant dense<0.000000e+00> : vector<128x128xf32>
    %87 = tpu.matmul %86, %4, %cst_32 {dimension_numbers = #tpu.dot_dimension_numbers<[1], [0], [0], [1], [0, 0, 1, 1], [], []>} : vector<128x512xbf16>, vector<512x128xbf16>, vector<128x128xf32> -> vector<128x128xf32>
    %88 = arith.addf %72, %87 : vector<128x128xf32>
    %c0_33 = arith.constant 0 : index
    %c0_34 = arith.constant 0 : index
    %89 = vector.load %arg9[%c0_33, %c0_34] : memref<128x128xf32, #tpu.memory_space<vmem>>, vector<128x128xf32>
    tpu.vector_store %arg9[%c0_33, %c0_34], %88 {strides = array<i32>} : memref<128x128xf32, #tpu.memory_space<vmem>>, vector<128x128xf32>,
    %c0_i32_35 = arith.constant 0 : i32
    %90 = arith.cmpi eq, %arg1, %c0_i32_35 : i32
    %91 = arith.extui %90 : i1 to i32
    %c0_i32_36 = arith.constant 0 : i32
    %92 = arith.cmpi ne, %91, %c0_i32_36 : i32
    scf.if %92 {
      %c0_37 = arith.constant 0 : index
      %c0_38 = arith.constant 0 : index
      %93 = vector.load %arg9[%c0_37, %c0_38] : memref<128x128xf32, #tpu.memory_space<vmem>>, vector<128x128xf32>
      %cst_39 = arith.constant 2.000000e-01 : f32
      %94 = vector.broadcast %cst_39 : f32 to vector<128x128xf32>
      %95 = arith.mulf %93, %94 : vector<128x128xf32>
      %c0_40 = arith.constant 0 : index
      %c0_41 = arith.constant 0 : index
      %96 = vector.load %arg7[%c0_40, %c0_41] : memref<1x128xf32, #tpu.memory_space<vmem>>, vector<1x128xf32>
      %97 = vector.broadcast %96 : vector<1x128xf32> to vector<128x128xf32>
      %98 = arith.addf %95, %97 : vector<128x128xf32>
      %c0_42 = arith.constant 0 : index
      %c0_43 = arith.constant 0 : index
      %99 = vector.load %arg8[%c0_42, %c0_43] : memref<128x128xf32, #tpu.memory_space<vmem>>, vector<128x128xf32>
      tpu.vector_store %arg8[%c0_42, %c0_43], %98 {strides = array<i32>} : memref<128x128xf32, #tpu.memory_space<vmem>>, vector<128x128xf32>,
    } else {
    }
    return
  }
  func.func @transform_0(%arg0: i32, %arg1: i32) -> (i32, i32) {
    %c0_i32 = arith.constant 0 : i32
    %c0_i32_0 = arith.constant 0 : i32
    return %arg0, %c0_i32 : i32, i32
  }
  func.func @transform_1(%arg0: i32, %arg1: i32) -> (i32, i32, i32) {
    %c0_i32 = arith.constant 0 : i32
    %c0_i32_0 = arith.constant 0 : i32
    %c0_i32_1 = arith.constant 0 : i32
    return %c0_i32, %arg0, %c0_i32_0 : i32, i32, i32
  }
  func.func @transform_2(%arg0: i32, %arg1: i32) -> (i32, i32) {
    %c0_i32 = arith.constant 0 : i32
    %c0_i32_0 = arith.constant 0 : i32
    return %c0_i32, %arg1 : i32, i32
  }
  func.func @transform_3(%arg0: i32, %arg1: i32) -> (i32, i32) {
    %c0_i32 = arith.constant 0 : i32
    %c0_i32_0 = arith.constant 0 : i32
    return %c0_i32, %arg1 : i32, i32
  }
  func.func @transform_4(%arg0: i32, %arg1: i32) -> (i32, i32) {
    %c0_i32 = arith.constant 0 : i32
    %c0_i32_0 = arith.constant 0 : i32
    return %arg1, %c0_i32 : i32, i32
  }
  func.func @transform_5(%arg0: i32, %arg1: i32) -> (i32, i32) {
    %c0_i32 = arith.constant 0 : i32
    %c0_i32_0 = arith.constant 0 : i32
    %c0_i32_1 = arith.constant 0 : i32
    return %c0_i32, %c0_i32_0 : i32, i32
  }
  func.func @transform_6(%arg0: i32, %arg1: i32) -> (i32, i32) {
    %c0_i32 = arith.constant 0 : i32
    %c0_i32_0 = arith.constant 0 : i32
    return %arg0, %c0_i32 : i32, i32
  }
}

</mosaic_0001>

<bundles_post_ra>
// kernel: monte_carlo_ffn.1
= control target key start
LH: loop header
LB: loop body
LE: loop exit
PB: predicated region body
PF: predicated region fallthrough
CT: control target
= control target key end

     0   :  { %v16647_v8 = vmov 0   ;;  %s16640_s0 = inlined_call_operand.vmem [shape: f32[128,128], index: 0, kind: input, shape index: {}]   ;;  %s16641_s1 = inlined_call_operand.vmem [shape: bf16[5,128,128], index: 1, kind: input, shape index: {}]   ;;  %s16642_s2 = inlined_call_operand.vmem [shape: bf16[128,1024], index: 2, kind: input, shape index: {}]   ;;  %s16643_s3 = inlined_call_operand.vmem [shape: f32[1,1024], index: 3, kind: input, shape index: {}]   ;;  %s16644_s4 = inlined_call_operand.vmem [shape: bf16[512,128], index: 4, kind: input, shape index: {}]   ;;  %s16645_s5 = inlined_call_operand.vmem [shape: f32[1,128], index: 5, kind: input, shape index: {}]   ;;  %s16646_s6 = inlined_call_operand.hbm [shape: f32[128,128], index: 6, kind: output, shape index: {}]  }
   0x1   :  { %v389_v0 = vld [vmem:[%s16642_s2] sm:$0xff]  ;;  %v390_v2 = vld [vmem:[%s16642_s2 + $0x8] sm:$0xff]  ;;  %935 = vmatprep.mubr.bf16.mxu0 %v16647_v8  ;;  %1048 = vmatprep.mubr.bf16.mxu1 %v16647_v8 }
   0x2   :  { %v393_v1 = vld [vmem:[%s16642_s2 + $0x20] sm:$0xff]  ;;  %v394_v4 = vld [vmem:[%s16642_s2 + $0x28] sm:$0xff] }
   0x3   :  { %v10167_v3 = vcombine.high %v389_v0, %v393_v1  ;;  %v10172_v5 = vcombine.low %v389_v0, %v393_v1  ;;  %v397_v6 = vld [vmem:[%s16642_s2 + $0x40] sm:$0xff]  ;;  %v10182_v9 = vcombine.high %v390_v2, %v394_v4  ;;  %v10184_v10 = vcombine.low %v390_v2, %v394_v4  ;;  %v398_v12 = vld [vmem:[%s16642_s2 + $0x48] sm:$0xff] }
   0x4   :  { %v401_v7 = vld [vmem:[%s16642_s2 + $0x60] sm:$0xff]  ;;  %v402_v13 = vld [vmem:[%s16642_s2 + $0x68] sm:$0xff] }
   0x5   :  { %16993 = vst [vmem:[#allocation7_spill] sm:$0xff] %v10167_v3  ;;  %16994 = vst [vmem:[#allocation8_spill] sm:$0xff] %v10172_v5  ;;  %v10186_v11 = vcombine.high %v397_v6, %v401_v7  ;;  %v405_v14 = vld [vmem:[%s16642_s2 + $0x80] sm:$0xff]  ;;  %903 = vmatprep.subr.bf16.mxu0 %v10167_v3  ;;  %v10198_v15 = vcombine.high %v398_v12, %v402_v13  ;;  %v406_v17 = vld [vmem:[%s16642_s2 + $0x88] sm:$0xff]  ;;  %1016 = vmatprep.subr.bf16.mxu1 %v10182_v9 }
   0x6   :  { %16995 = vst [vmem:[#allocation9_spill] sm:$0xff] %v10182_v9  ;;  %16996 = vst [vmem:[#allocation10_spill] sm:$0xff] %v10184_v10  ;;  %v409_v16 = vld [vmem:[%s16642_s2 + $0xa0] sm:$0xff]  ;;  %v410_v18 = vld [vmem:[%s16642_s2 + $0xa8] sm:$0xff]  ;;  %904 = vmatpush1.bf16.msra.mxu0 %v10172_v5  ;;  %v10211_v19 = vcombine.low %v397_v6, %v401_v7  ;;  %1017 = vmatpush1.bf16.msra.mxu1 %v10184_v10  ;;  %v10215_v20 = vcombine.low %v398_v12, %v402_v13 }
   0x7   :  { %16997 = vst [vmem:[#allocation11_spill] sm:$0xff] %v10186_v11  ;;  %16998 = vst [vmem:[#allocation12_spill] sm:$0xff] %v10198_v15  ;;  %905 = vmatprep.subr.bf16.mxu0 %v10186_v11  ;;  %v10217_v21 = vcombine.high %v405_v14, %v409_v16  ;;  %1018 = vmatprep.subr.bf16.mxu1 %v10198_v15  ;;  %v10220_v22 = vcombine.high %v406_v17, %v410_v18  ;;  %v413_v23 = vld [vmem:[%s16642_s2 + $0xc0] sm:$0xff]  ;;  %v414_v25 = vld [vmem:[%s16642_s2 + $0xc8] sm:$0xff] }
   0x8   :  { %16999 = vst [vmem:[#allocation13_spill] sm:$0xff] %v10211_v19  ;;  %17000 = vst [vmem:[#allocation14_spill] sm:$0xff] %v10215_v20  ;;  %v417_v24 = vld [vmem:[%s16642_s2 + $0xe0] sm:$0xff]  ;;  %v418_v26 = vld [vmem:[%s16642_s2 + $0xe8] sm:$0xff]  ;;  %v10235_v27 = vcombine.low %v405_v14, %v409_v16  ;;  %v10239_v28 = vcombine.low %v406_v17, %v410_v18 }
   0x9   :  { %17001 = vst [vmem:[#allocation15_spill] sm:$0xff] %v10217_v21  ;;  %17002 = vst [vmem:[#allocation16_spill] sm:$0xff] %v10220_v22  ;;  %v10241_v29 = vcombine.high %v413_v23, %v417_v24  ;;  %v10244_v30 = vcombine.high %v414_v25, %v418_v26  ;;  %v421_v31 = vld [vmem:[%s16642_s2 + $0x100] sm:$0xff]  ;;  %v422_v33 = vld [vmem:[%s16642_s2 + $0x108] sm:$0xff]  ;;  %v10259_v35 = vcombine.low %v413_v23, %v417_v24 }
   0xa   :  { %906 = vmatpush1.bf16.msra.mxu0 %v10211_v19  ;;  %17003 = vst [vmem:[#allocation17_spill] sm:$0xff] %v10235_v27  ;;  %1019 = vmatpush1.bf16.msra.mxu1 %v10215_v20  ;;  %17004 = vst [vmem:[#allocation18_spill] sm:$0xff] %v10239_v28  ;;  %v425_v32 = vld [vmem:[%s16642_s2 + $0x120] sm:$0xff]  ;;  %v426_v34 = vld [vmem:[%s16642_s2 + $0x128] sm:$0xff]  ;;  %v10263_v36 = vcombine.low %v414_v25, %v418_v26 }
   0xb   :  { %907 = vmatprep.subr.bf16.mxu0 %v10217_v21  ;;  %17005 = vst [vmem:[#allocation19_spill] sm:$0xff] %v10241_v29  ;;  %1020 = vmatprep.subr.bf16.mxu1 %v10220_v22  ;;  %17006 = vst [vmem:[#allocation20_spill] sm:$0xff] %v10244_v30  ;;  %v10265_v37 = vcombine.high %v421_v31, %v425_v32  ;;  %v10268_v38 = vcombine.high %v422_v33, %v426_v34  ;;  %v429_v39 = vld [vmem:[%s16642_s2 + $0x140] sm:$0xff]  ;;  %v430_v41 = vld [vmem:[%s16642_s2 + $0x148] sm:$0xff] }
   0xc   :  { %17007 = vst [vmem:[#allocation21_spill] sm:$0xff] %v10259_v35  ;;  %17008 = vst [vmem:[#allocation22_spill] sm:$0xff] %v10263_v36  ;;  %v433_v40 = vld [vmem:[%s16642_s2 + $0x160] sm:$0xff]  ;;  %v434_v42 = vld [vmem:[%s16642_s2 + $0x168] sm:$0xff]  ;;  %v10283_v43 = vcombine.low %v421_v31, %v425_v32  ;;  %v10287_v44 = vcombine.low %v422_v33, %v426_v34 }
   0xd   :  { %17009 = vst [vmem:[#allocation23_spill] sm:$0xff] %v10265_v37  ;;  %17010 = vst [vmem:[#allocation24_spill] sm:$0xff] %v10268_v38  ;;  %v10289_v45 = vcombine.high %v429_v39, %v433_v40  ;;  %v10292_v46 = vcombine.high %v430_v41, %v434_v42  ;;  %v437_v47 = vld [vmem:[%s16642_s2 + $0x180] sm:$0xff]  ;;  %v438_v49 = vld [vmem:[%s16642_s2 + $0x188] sm:$0xff]  ;;  %v10307_v51 = vcombine.low %v429_v39, %v433_v40 }
   0xe   :  { %908 = vmatpush1.bf16.msra.mxu0 %v10235_v27  ;;  %1021 = vmatpush1.bf16.msra.mxu1 %v10239_v28  ;;  %17011 = vst [vmem:[#allocation25_spill] sm:$0xff] %v10283_v43  ;;  %17012 = vst [vmem:[#allocation26_spill] sm:$0xff] %v10287_v44  ;;  %v441_v48 = vld [vmem:[%s16642_s2 + $0x1a0] sm:$0xff]  ;;  %v442_v50 = vld [vmem:[%s16642_s2 + $0x1a8] sm:$0xff]  ;;  %v10314_v53 = vcombine.low %v430_v41, %v434_v42 }
   0xf   :  { %909 = vmatprep.subr.bf16.mxu0 %v10241_v29  ;;  %1022 = vmatprep.subr.bf16.mxu1 %v10244_v30  ;;  %17013 = vst [vmem:[#allocation27_spill] sm:$0xff] %v10289_v45  ;;  %17014 = vst [vmem:[#allocation28_spill] sm:$0xff] %v10292_v46  ;;  %v7749_v52 = vld [vmem:[%s16641_s1] sm:$0xff]   ;;  %v10316_v54 = vcombine.high %v437_v47, %v441_v48  ;;  %v10319_v55 = vcombine.high %v438_v49, %v442_v50  ;;  %v446_v58 = vld [vmem:[%s16642_s2 + $0x1c8] sm:$0xff] }
  0x10   :  { %17015 = vst [vmem:[#allocation29_spill] sm:$0xff] %v10307_v51  ;;  %17016 = vst [vmem:[#allocation30_spill] sm:$0xff] %v10314_v53  ;;  %v445_v56 = vld [vmem:[%s16642_s2 + $0x1c0] sm:$0xff]  ;;  %v450_v59 = vld [vmem:[%s16642_s2 + $0x1e8] sm:$0xff]  ;;  %v7750_v60 = vunpack.c.l.bf16 %v7749_v52  ;;  %v7751_v61 = vunpack.c.h.bf16 %v7749_v52  ;;  %v10334_v62 = vcombine.low %v437_v47, %v441_v48  ;;  %v10344_v1 = vcombine.low %v438_v49, %v442_v50 }
  0x11   :  { %17017 = vst [vmem:[#allocation31_spill] sm:$0xff] %v10316_v54  ;;  %17018 = vst [vmem:[#allocation32_spill] sm:$0xff] %v10319_v55  ;;  %v449_v57 = vld [vmem:[%s16642_s2 + $0x1e0] sm:$0xff]  ;;  %v46_v0 = vld [vmem:[%s16640_s0 + $0x8] sm:$0xff]  ;;  %v10349_v4 = vcombine.high %v446_v58, %v450_v59  ;;  %v10371_v23 = vcombine.low %v446_v58, %v450_v59 }
  0x12   :  { %910 = vmatpush1.bf16.msra.mxu0 %v10259_v35  ;;  %1023 = vmatpush1.bf16.msra.mxu1 %v10263_v36  ;;  %17019 = vst [vmem:[#allocation33_spill] sm:$0xff] %v10334_v62  ;;  %v45_v63 = vld [vmem:[%s16640_s0] sm:$0xff]  ;;  %17020 = vst [vmem:[#allocation34_spill] sm:$0xff] %v10344_v1  ;;  %v10346_v2 = vcombine.high %v445_v56, %v449_v57  ;;  %v391_v6 = vld [vmem:[%s16642_s2 + $0x10] sm:$0xff]  ;;  %v94_v13 = vmul.f32 %v7751_v61, %v46_v0 }
  0x13   :  { %911 = vmatprep.subr.bf16.mxu0 %v10265_v37  ;;  %1024 = vmatprep.subr.bf16.mxu1 %v10268_v38  ;;  %17022 = vst [vmem:[#allocation36_spill] sm:$0xff] %v10349_v4  ;;  %v395_v7 = vld [vmem:[%s16642_s2 + $0x30] sm:$0xff]  ;;  %v93_v12 = vmul.f32 %v7750_v60, %v45_v63  ;;  %v392_v14 = vld [vmem:[%s16642_s2 + $0x18] sm:$0xff]  ;;  %v10364_v17 = vcombine.low %v445_v56, %v449_v57  ;;  %v7908_v18 = vld [vmem:[%s16641_s1 + $0x8] sm:$0xff]  }
  0x14   :  { %17021 = vst [vmem:[#allocation35_spill] sm:$0xff] %v10346_v2  ;;  %v396_v16 = vld [vmem:[%s16642_s2 + $0x38] sm:$0xff]  ;;  %17024 = vst [vmem:[#allocation38_spill] sm:$0xff] %v10371_v23  ;;  %v10373_v24 = vcombine.high %v391_v6, %v395_v7  ;;  %v47_v31 = vld [vmem:[%s16640_s0 + $0x10] sm:$0xff]  ;;  %v7754_v32 = vunpack.c.l.bf16 %v7908_v18  ;;  %v7755_v33 = vunpack.c.h.bf16 %v7908_v18  ;;  %v10390_v40 = vcombine.low %v391_v6, %v395_v7 }
  0x15   :  { %17023 = vst [vmem:[#allocation37_spill] sm:$0xff] %v10364_v17  ;;  %v10376_v25 = vcombine.high %v392_v14, %v396_v16  ;;  %v10378_v26 = vpack.c.bf16 %v94_v13, %v93_v12  ;;  %v399_v34 = vld [vmem:[%s16642_s2 + $0x50] sm:$0xff]  ;;  %v48_v41 = vld [vmem:[%s16640_s0 + $0x18] sm:$0xff]  ;;  %v10403_v48 = vcombine.low %v392_v14, %v396_v16  ;;  %v49_v13 = vld [vmem:[%s16640_s0 + $0x20] sm:$0xff] }
  0x16   :  { %912 = vmatpush1.bf16.msra.mxu0 %v10283_v43  ;;  %1025 = vmatpush1.bf16.msra.mxu1 %v10287_v44  ;;  %17025 = vst [vmem:[#allocation39_spill] sm:$0xff] %v10373_v24  ;;  %v403_v39 = vld [vmem:[%s16642_s2 + $0x70] sm:$0xff]  ;;  %17027 = vst [vmem:[#allocation41_spill] sm:$0xff] %v10390_v40  ;;  %v400_v42 = vld [vmem:[%s16642_s2 + $0x58] sm:$0xff]  ;;  %v95_v59 = vmul.f32 %v7754_v32, %v47_v31  ;;  %v96_v60 = vmul.f32 %v7755_v33, %v48_v41 }
  0x17   :  { %913 = vmatprep.subr.bf16.mxu0 %v10289_v45  ;;  %1026 = vmatprep.subr.bf16.mxu1 %v10292_v46  ;;  %17026 = vst [vmem:[#allocation40_spill] sm:$0xff] %v10376_v25  ;;  %v404_v47 = vld [vmem:[%s16642_s2 + $0x78] sm:$0xff]  ;;  %17028 = vst [vmem:[#allocation42_spill] sm:$0xff] %v10403_v48  ;;  %v407_v49 = vld [vmem:[%s16642_s2 + $0x90] sm:$0xff]  ;;  %v10409_v50 = vcombine.high %v399_v34, %v403_v39  ;;  %v10428_v63 = vcombine.low %v399_v34, %v403_v39 }
  0x18   :  { %v7909_v52 = vld [vmem:[%s16641_s1 + $0x10] sm:$0xff]   ;;  %v408_v57 = vld [vmem:[%s16642_s2 + $0x98] sm:$0xff]  ;;  %v10424_v61 = vcombine.high %v400_v42, %v404_v47  ;;  %v10432_v0 = vcombine.low %v400_v42, %v404_v47  ;;  %v50_v14 = vld [vmem:[%s16640_s0 + $0x28] sm:$0xff]  ;;  %v10458_v32 = vpack.c.bf16 %v96_v60, %v95_v59 }
  0x19   :  { %17029 = vst [vmem:[#allocation43_spill] sm:$0xff] %v10409_v50  ;;  %v411_v56 = vld [vmem:[%s16642_s2 + $0xb0] sm:$0xff]  ;;  %v412_v58 = vld [vmem:[%s16642_s2 + $0xb8] sm:$0xff]  ;;  %17031 = vst [vmem:[#allocation45_spill] sm:$0xff] %v10428_v63  ;;  %v7758_v33 = vunpack.c.l.bf16 %v7909_v52  ;;  %v7759_v34 = vunpack.c.h.bf16 %v7909_v52 }
  0x1a   :  { %914 = vmatpush1.bf16.msra.mxu0 %v10307_v51  ;;  %1027 = vmatpush1.bf16.msra.mxu1 %v10314_v53  ;;  %17030 = vst [vmem:[#allocation44_spill] sm:$0xff] %v10424_v61  ;;  %17032 = vst [vmem:[#allocation46_spill] sm:$0xff] %v10432_v0  ;;  %v10434_v6 = vcombine.high %v407_v49, %v411_v56  ;;  %v415_v7 = vld [vmem:[%s16642_s2 + $0xd0] sm:$0xff]  ;;  %v10450_v16 = vcombine.high %v408_v57, %v412_v58  ;;  %v416_v18 = vld [vmem:[%s16642_s2 + $0xd8] sm:$0xff] }
  0x1b   :  { %915 = vmatprep.subr.bf16.mxu0 %v10316_v54  ;;  %1028 = vmatprep.subr.bf16.mxu1 %v10319_v55  ;;  %v419_v12 = vld [vmem:[%s16642_s2 + $0xf0] sm:$0xff]  ;;  %v420_v31 = vld [vmem:[%s16642_s2 + $0xf8] sm:$0xff]  ;;  %v10464_v39 = vcombine.low %v407_v49, %v411_v56  ;;  %v10473_v47 = vcombine.low %v408_v57, %v412_v58  ;;  %v97_v60 = vmul.f32 %v7758_v33, %v49_v13  ;;  %v17039_v58 = vmov 0  }
  0x1c   :  { %17033 = vst [vmem:[#allocation47_spill] sm:$0xff] %v10434_v6  ;;  %17034 = vst [vmem:[#allocation48_spill] sm:$0xff] %v10450_v16  ;;  %v423_v41 = vld [vmem:[%s16642_s2 + $0x110] sm:$0xff]  ;;  %v7910_v52 = vld [vmem:[%s16641_s1 + $0x18] sm:$0xff]   ;;  %v10478_v59 = vcombine.high %v415_v7, %v419_v12  ;;  %v10487_v57 = vcombine.high %v416_v18, %v420_v31 }
  0x1d   :  { %17035 = vst [vmem:[#allocation49_spill] sm:$0xff] %v10464_v39  ;;  %v427_v42 = vld [vmem:[%s16642_s2 + $0x130] sm:$0xff]  ;;  %17036 = vst [vmem:[#allocation50_spill] sm:$0xff] %v10473_v47  ;;  %v424_v49 = vld [vmem:[%s16642_s2 + $0x118] sm:$0xff] }
  0x1e   :  { %916 = vmatpush1.bf16.msra.mxu0 %v10334_v62  ;;  %1029 = vmatpush1.bf16.msra.mxu1 %v10344_v1  ;;  %17037 = vst [vmem:[#allocation51_spill] sm:$0xff] %v10478_v59  ;;  %v428_v56 = vld [vmem:[%s16642_s2 + $0x138] sm:$0xff]  ;;  %17038 = vst [vmem:[#allocation52_spill] sm:$0xff] %v10487_v57  ;;  %v435_v13 = vld [vmem:[%s16642_s2 + $0x170] sm:$0xff] }
  0x1f   :  { %917 = vmatprep.subr.bf16.mxu0 %v10346_v2  ;;  %1030 = vmatprep.subr.bf16.mxu1 %v10349_v4  ;;  %v52_v33 = vld [vmem:[%s16640_s0 + $0x38] sm:$0xff] }
  0x22   :  { %918 = vmatpush1.bf16.msra.mxu0 %v10364_v17  ;;  %1031 = vmatpush1.bf16.msra.mxu1 %v10371_v23 }
  0x23   :  { %1129 = vmatprep.subr.bf16.mxu0 %v10373_v24  ;;  %1242 = vmatprep.subr.bf16.mxu1 %v10376_v25 }
  0x25   :  { %936 = vmatmul.mubr.bf16.vlgmr.msra.gmra.mrb[0].mxu0 %v10378_v26  ;;  %1049 = vmatmul.mubr.bf16.vlgmr.msra.gmra.mrb[0].mxu1 %v10378_v26 }
  0x26   :  { %1130 = vmatpush1.bf16.msra.mxu0 %v10390_v40  ;;  %1243 = vmatpush1.bf16.msra.mxu1 %v10403_v48 }
  0x27   :  { %945 = vmatprep.mubr.bf16.mxu0 %v16647_v8  ;;  %1058 = vmatprep.mubr.bf16.mxu1 %v16647_v8  ;;  %v98_v8 = vmul.f32 %v7759_v34, %v50_v14  ;;  %v51_v14 = vld [vmem:[%s16640_s0 + $0x30] sm:$0xff]  ;;  %v432_v34 = vld [vmem:[%s16642_s2 + $0x158] sm:$0xff] }
  0x28   :  { %1131 = vmatprep.subr.bf16.mxu0 %v10409_v50  ;;  %1244 = vmatprep.subr.bf16.mxu1 %v10424_v61 }
  0x2a   :  { %1132 = vmatpush1.bf16.msra.mxu0 %v10428_v63  ;;  %1245 = vmatpush1.bf16.msra.mxu1 %v10432_v0  ;;  %v7763_v0 = vunpack.c.h.bf16 %v7910_v52  ;;  %v10519_v63 = vcombine.high %v424_v49, %v428_v56 }
  0x2b   :  { %1133 = vmatprep.subr.bf16.mxu0 %v10434_v6  ;;  %1246 = vmatprep.subr.bf16.mxu1 %v10450_v16  ;;  %v10493_v16 = vcombine.low %v415_v7, %v419_v12  ;;  %v431_v6 = vld [vmem:[%s16642_s2 + $0x150] sm:$0xff]  ;;  %v10509_v7 = vcombine.low %v416_v18, %v420_v31  ;;  %v10511_v12 = vcombine.high %v423_v41, %v427_v42 }
  0x2c   :  { %17043 = vst [vmem:[#allocation56_spill] sm:$0xff] %v10519_v63  ;;  %v10525_v18 = vcombine.low %v423_v41, %v427_v42  ;;  %v439_v31 = vld [vmem:[%s16642_s2 + $0x190] sm:$0xff]  ;;  %v10540_v41 = vcombine.high %v431_v6, %v435_v13  ;;  %v440_v42 = vld [vmem:[%s16642_s2 + $0x198] sm:$0xff] }
  0x2d   :  { %946 = vmatmul.mubr.bf16.gmra.mrb[4].mxu0 %v10458_v32  ;;  %1059 = vmatmul.mubr.bf16.gmra.mrb[4].mxu1 %v10458_v32  ;;  %17040 = vst [vmem:[#allocation53_spill] sm:$0xff] %v10493_v16  ;;  %17041 = vst [vmem:[#allocation54_spill] sm:$0xff] %v10509_v7 }
  0x2e   :  { %955 = vmatprep.mubr.bf16.mxu0 %v17039_v58  ;;  %1068 = vmatprep.mubr.bf16.mxu1 %v17039_v58  ;;  %17042 = vst [vmem:[#allocation55_spill] sm:$0xff] %v10511_v12  ;;  %17044 = vst [vmem:[#allocation57_spill] sm:$0xff] %v10525_v18 }
  0x2f   :  { %1134 = vmatpush1.bf16.msra.mxu0 %v10464_v39  ;;  %1247 = vmatpush1.bf16.msra.mxu1 %v10473_v47  ;;  %v10516_v39 = vpack.c.bf16 %v98_v8, %v97_v60  ;;  %v7762_v47 = vunpack.c.l.bf16 %v7910_v52  ;;  %v443_v8 = vld [vmem:[%s16642_s2 + $0x1b0] sm:$0xff]  ;;  %v7911_v52 = vld [vmem:[%s16641_s1 + $0x20] sm:$0xff]   ;;  %v10538_v60 = vcombine.low %v424_v49, %v428_v56  ;;  %17046 = vst [vmem:[#allocation59_spill] sm:$0xff] %v10540_v41 }
  0x30   :  { %1135 = vmatprep.subr.bf16.mxu0 %v10478_v59  ;;  %1248 = vmatprep.subr.bf16.mxu1 %v10487_v57  ;;  %v436_v59 = vld [vmem:[%s16642_s2 + $0x178] sm:$0xff]  ;;  %v100_v57 = vmul.f32 %v7763_v0, %v52_v33  ;;  %v10556_v49 = vcombine.low %v431_v6, %v435_v13  ;;  %v447_v56 = vld [vmem:[%s16642_s2 + $0x1d0] sm:$0xff]  ;;  %v10574_v13 = vcombine.high %v439_v31, %v443_v8  ;;  %v7767_v50 = vunpack.c.h.bf16 %v7911_v52 }
  0x31   :  { %17045 = vst [vmem:[#allocation58_spill] sm:$0xff] %v10538_v60  ;;  %v10550_v61 = vcombine.high %v432_v34, %v436_v59  ;;  %v451_v0 = vld [vmem:[%s16642_s2 + $0x1f0] sm:$0xff]  ;;  %v10572_v6 = vcombine.low %v432_v34, %v436_v59  ;;  %v448_v33 = vld [vmem:[%s16642_s2 + $0x1d8] sm:$0xff]  ;;  %v10588_v59 = vcombine.low %v439_v31, %v443_v8 }
  0x32   :  { %17048 = vst [vmem:[#allocation61_spill] sm:$0xff] %v10556_v49  ;;  %17050 = vst [vmem:[#allocation63_spill] sm:$0xff] %v10574_v13 }
  0x33   :  { %1136 = vmatpush1.bf16.msra.mxu0 %v10493_v16  ;;  %1249 = vmatpush1.bf16.msra.mxu1 %v10509_v7  ;;  %v444_v16 = vld [vmem:[%s16642_s2 + $0x1b8] sm:$0xff]  ;;  %v99_v7 = vmul.f32 %v7762_v47, %v51_v14  ;;  %17047 = vst [vmem:[#allocation60_spill] sm:$0xff] %v10550_v61  ;;  %v53_v47 = vld [vmem:[%s16640_s0 + $0x40] sm:$0xff]  ;;  %v54_v14 = vld [vmem:[%s16640_s0 + $0x48] sm:$0xff] }
  0x34   :  { %1137 = vmatprep.subr.bf16.mxu0 %v10511_v12  ;;  %1250 = vmatprep.subr.bf16.mxu1 %v10519_v63  ;;  %17049 = vst [vmem:[#allocation62_spill] sm:$0xff] %v10572_v6  ;;  %v7766_v12 = vunpack.c.l.bf16 %v7911_v52  ;;  %17052 = vst [vmem:[#allocation65_spill] sm:$0xff] %v10588_v59 }
  0x35   :  { %956 = vmatmul.mubr.bf16.gmra.mrb[8].mxu0 %v10516_v39  ;;  %1069 = vmatmul.mubr.bf16.gmra.mrb[8].mxu1 %v10516_v39  ;;  %v10582_v63 = vpack.c.bf16 %v100_v57, %v99_v7 }
  0x36   :  { %965 = vmatprep.mubr.bf16.mxu0 %v17039_v58  ;;  %1078 = vmatprep.mubr.bf16.mxu1 %v17039_v58 }
  0x37   :  { %1138 = vmatpush1.bf16.msra.mxu0 %v10525_v18  ;;  %1251 = vmatpush1.bf16.msra.mxu1 %v10538_v60  ;;  %v452_v18 = vld [vmem:[%s16642_s2 + $0x1f8] sm:$0xff]  ;;  %v10585_v60 = vcombine.high %v440_v42, %v444_v16 }
  0x38   :  { %1139 = vmatprep.subr.bf16.mxu0 %v10540_v41  ;;  %1252 = vmatprep.subr.bf16.mxu1 %v10550_v61 }
  0x39   :  { %17051 = vst [vmem:[#allocation64_spill] sm:$0xff] %v10585_v60 }
  0x3b   :  { %1140 = vmatpush1.bf16.msra.mxu0 %v10556_v49 }
  0x3c   :  { %11 = vsyncpa [#allocation5], 0  ;;  %1253 = vmatpush1.bf16.msra.mxu1 %v10572_v6  ;;  %1141 = vmatprep.subr.bf16.mxu0 %v10574_v13  ;;  %v10592_v34 = vcombine.low %v440_v42, %v444_v16  ;;  %v10594_v41 = vcombine.high %v447_v56, %v451_v0  ;;  %v101_v57 = vmul.f32 %v7766_v12, %v53_v47  ;;  %v7912_v31 = vld [vmem:[%s16641_s1 + $0x28] sm:$0xff]   ;;  %v55_v47 = vld [vmem:[%s16640_s0 + $0x50] sm:$0xff] }
  0x3d   :  { %966 = vmatmul.mubr.bf16.gmra.mrb[12].mxu0 %v10582_v63  ;;  %v102_v7 = vmul.f32 %v7767_v50, %v54_v14  ;;  %1254 = vmatprep.subr.bf16.mxu1 %v10585_v60  ;;  %v10598_v52 = vcombine.high %v448_v33, %v452_v18  ;;  %v10607_v16 = vcombine.low %v447_v56, %v451_v0  ;;  %v7770_v8 = vunpack.c.l.bf16 %v7912_v31  ;;  %v56_v56 = vld [vmem:[%s16640_s0 + $0x58] sm:$0xff]  ;;  %v7913_v14 = vld [vmem:[%s16641_s1 + $0x30] sm:$0xff]  }
  0x3e   :  { %17053 = vst [vmem:[#allocation66_spill] sm:$0xff] %v10592_v34  ;;  %17054 = vst [vmem:[#allocation67_spill] sm:$0xff] %v10594_v41  ;;  %1079 = vmatmul.mubr.bf16.gmra.mrb[12].mxu1 %v10582_v63  ;;  %975 = vmatprep.mubr.bf16.mxu0 %v17039_v58  ;;  %v10611_v50 = vcombine.low %v448_v33, %v452_v18  ;;  %v7771_v42 = vunpack.c.h.bf16 %v7912_v31  ;;  %v57_v31 = vld [vmem:[%s16640_s0 + $0x60] sm:$0xff] }
  0x3f   :  { %17055 = vst [vmem:[#allocation68_spill] sm:$0xff] %v10598_v52  ;;  %1088 = vmatprep.mubr.bf16.mxu1 %v17039_v58  ;;  %1142 = vmatpush1.bf16.msra.mxu0 %v10588_v59  ;;  %17056 = vst [vmem:[#allocation69_spill] sm:$0xff] %v10607_v16  ;;  %v113_v12 = vpack.c.bf16 %v102_v7, %v101_v57  ;;  %v103_v18 = vmul.f32 %v7770_v8, %v55_v47  ;;  %v7774_v57 = vunpack.c.l.bf16 %v7913_v14  ;;  %v58_v8 = vld [vmem:[%s16640_s0 + $0x68] sm:$0xff] }
  0x40   :  { %1255 = vmatpush1.bf16.msra.mxu1 %v10592_v34  ;;  %1143 = vmatprep.subr.bf16.mxu0 %v10594_v41  ;;  %17057 = vst [vmem:[#allocation70_spill] sm:$0xff] %v10611_v50  ;;  %v104_v0 = vmul.f32 %v7771_v42, %v56_v56  ;;  %v7775_v7 = vunpack.c.h.bf16 %v7913_v14  ;;  %v7914_v56 = vld [vmem:[%s16641_s1 + $0x38] sm:$0xff]  }
  0x41   :  { %1256 = vmatprep.subr.bf16.mxu1 %v10598_v52  ;;  %v105_v42 = vmul.f32 %v7774_v57, %v57_v31  ;;  %v7779_v14 = vunpack.c.h.bf16 %v7914_v56  ;;  %v60_v57 = vld [vmem:[%s16640_s0 + $0x78] sm:$0xff] }
  0x42   :  { %v114_v33 = vpack.c.bf16 %v104_v0, %v103_v18  ;;  %v106_v47 = vmul.f32 %v7775_v7, %v58_v8  ;;  %v7778_v0 = vunpack.c.l.bf16 %v7914_v56  ;;  %v8600_v56 = vld [vmem:[%s16644_s4 + $0xd0] sm:$0xff]  }
  0x43   :  { %1144 = vmatpush1.bf16.msra.mxu0 %v10607_v16  ;;  %v108_v31 = vmul.f32 %v7779_v14, %v60_v57  ;;  %v8603_v14 = vld [vmem:[%s16644_s4 + $0x58] sm:$0xff]  }
  0x44   :  { %1257 = vmatpush1.bf16.msra.mxu1 %v10611_v50  ;;  %v115_v18 = vpack.c.bf16 %v106_v47, %v105_v42  ;;  %v59_v50 = vld [vmem:[%s16640_s0 + $0x70] sm:$0xff]  ;;  %v8598_v42 = vld [vmem:[%s16644_s4 + $0x88] sm:$0xff]   ;;  %v8604_v57 = vld [vmem:[%s16644_s4 + $0xd8] sm:$0xff]  }
  0x45   :  { %976 = vmatmul.mubr.bf16.gmra.mrb[16].mxu0 %v113_v12  ;;  %v107_v7 = vmul.f32 %v7778_v0, %v59_v50  ;;  %v8595_v50 = vld [vmem:[%s16644_s4 + $0x48] sm:$0xff]   ;;  %v8599_v47 = vld [vmem:[%s16644_s4 + $0x50] sm:$0xff]  }
  0x46   :  { %1089 = vmatmul.mubr.bf16.gmra.mrb[16].mxu1 %v113_v12  ;;  %985 = vmatprep.mubr.bf16.mxu0 %v17039_v58  ;;  %v8602_v0 = vld [vmem:[%s16644_s4 + $0x90] sm:$0xff]  }
  0x47   :  { %1098 = vmatprep.mubr.bf16.mxu1 %v17039_v58  ;;  %v116_v8 = vpack.c.bf16 %v108_v31, %v107_v7  ;;  %v8605_v7 = vld [vmem:[%s16644_s4 + $0x18] sm:$0xff]  }
  0x48   :  { %v8606_v31 = vld [vmem:[%s16644_s4 + $0x98] sm:$0xff]  }
  0x4d   :  { %986 = vmatmul.mubr.bf16.gmra.mrb[20].mxu0 %v114_v33 }
  0x4e   :  { %1099 = vmatmul.mubr.bf16.gmra.mrb[20].mxu1 %v114_v33  ;;  %995 = vmatprep.mubr.bf16.mxu0 %v17039_v58 }
  0x4f   :  { %1108 = vmatprep.mubr.bf16.mxu1 %v17039_v58 }
  0x55   :  { %996 = vmatmul.mubr.bf16.gmra.mrb[24].mxu0 %v115_v18 }
  0x56   :  { %1109 = vmatmul.mubr.bf16.gmra.mrb[24].mxu1 %v115_v18  ;;  %1005 = vmatprep.mubr.bf16.mxu0 %v17039_v58 }
  0x57   :  { %1118 = vmatprep.mubr.bf16.mxu1 %v17039_v58 }
  0x5d   :  { %1006 = vmatmul.mubr.bf16.gmra.mrb[28].mxu0 %v116_v8 }
  0x5e   :  { %1119 = vmatmul.mubr.bf16.gmra.mrb[28].mxu1 %v116_v8  ;;  %1161 = vmatprep.mubr.bf16.mxu0 %v17039_v58 }
  0x5f   :  { %1274 = vmatprep.mubr.bf16.mxu1 %v17039_v58 }
  0x65   :  { %1162 = vmatmul.mubr.bf16.vlgmr.msra.gmra.mrb[32].mxu0 %v10378_v26 }
  0x66   :  { %1275 = vmatmul.mubr.bf16.vlgmr.msra.gmra.mrb[32].mxu1 %v10378_v26  ;;  %1171 = vmatprep.mubr.bf16.mxu0 %v17039_v58  ;;  %v8591_v26 = vld [vmem:[%s16644_s4 + $0x40] sm:$0xff]  }
  0x67   :  { %1284 = vmatprep.mubr.bf16.mxu1 %v17039_v58  ;;  %7947 = vmatprep.subr.bf16.mxu0 %v8591_v26  ;;  %v8608_v26 = vld [vmem:[%s16644_s4 + $0xe0] sm:$0xff]  }
  0x6d   :  { %1172 = vmatmul.mubr.bf16.gmra.mrb[36].mxu0 %v10458_v32 }
  0x6e   :  { %1285 = vmatmul.mubr.bf16.gmra.mrb[36].mxu1 %v10458_v32  ;;  %1181 = vmatprep.mubr.bf16.mxu0 %v17039_v58  ;;  %v8593_v32 = vld [vmem:[%s16644_s4] sm:$0xff]  }
  0x6f   :  { %1294 = vmatprep.mubr.bf16.mxu1 %v17039_v58  ;;  %7948 = vmatpush3.bf16.msra.mxu0 %v8593_v32  ;;  %v8610_v32 = vld [vmem:[%s16644_s4 + $0xa0] sm:$0xff]  }
  0x70   :  { %7949 = vmatprep.subr.bf16.mxu0 %v8595_v50 }
  0x75   :  { %1182 = vmatmul.mubr.bf16.gmra.mrb[40].mxu0 %v10516_v39 }
  0x76   :  { %1295 = vmatmul.mubr.bf16.gmra.mrb[40].mxu1 %v10516_v39  ;;  %1191 = vmatprep.mubr.bf16.mxu0 %v17039_v58  ;;  %v8594_v39 = vld [vmem:[%s16644_s4 + $0x80] sm:$0xff]  }
  0x77   :  { %1304 = vmatprep.mubr.bf16.mxu1 %v17039_v58 }
  0x7d   :  { %1192 = vmatmul.mubr.bf16.gmra.mrb[44].mxu0 %v10582_v63 }
  0x7e   :  { %1305 = vmatmul.mubr.bf16.gmra.mrb[44].mxu1 %v10582_v63  ;;  %1201 = vmatprep.mubr.bf16.mxu0 %v17039_v58  ;;  %v8592_v63 = vld [vmem:[%s16644_s4 + $0xc0] sm:$0xff]  }
  0x7f   :  { %1314 = vmatprep.mubr.bf16.mxu1 %v17039_v58  ;;  %8011 = vmatprep.subr.bf16.mxu1 %v8592_v63  ;;  %v8609_v63 = vld [vmem:[%s16644_s4 + $0x20] sm:$0xff]  }
  0x80   :  { %8012 = vmatpush3.bf16.msra.mxu1 %v8594_v39  ;;  %v519_v39 = vlaneseq }
  0x82   :  { %v10730_v50 = vshrl.u32 %v519_v39, 7  ;;  %v8620_v39 = vld [vmem:[%s16644_s4 + $0xf8] sm:$0xff]  }
  0x84   :  { %v537_v60 = vsub.s32 4, %v10730_v50 }
  0x85   :  { %1202 = vmatmul.mubr.bf16.gmra.mrb[48].mxu0 %v113_v12 }
  0x86   :  { %1315 = vmatmul.mubr.bf16.gmra.mrb[48].mxu1 %v113_v12  ;;  %1211 = vmatprep.mubr.bf16.mxu0 %v17039_v58  ;;  %v8596_v12 = vld [vmem:[%s16644_s4 + $0xc8] sm:$0xff]  }
  0x87   :  { %1324 = vmatprep.mubr.bf16.mxu1 %v17039_v58  ;;  %8013 = vmatprep.subr.bf16.mxu1 %v8596_v12  ;;  %v8611_v12 = vld [vmem:[%s16644_s4 + $0x68] sm:$0xff]  }
  0x88   :  { %8014 = vmatpush3.bf16.msra.mxu1 %v8598_v42  ;;  %v8613_v42 = vld [vmem:[%s16644_s4 + $0x28] sm:$0xff]  }
  0x89   :  { %8015 = vmatprep.subr.bf16.mxu1 %v8600_v56  ;;  %v521_v56 = vsub.s32 0, %v10730_v50 }
  0x8c   :  { %8016 = vmatpush3.bf16.msra.mxu1 %v8602_v0  ;;  %v8616_v0 = vld [vmem:[%s16644_s4 + $0xf0] sm:$0xff]  }
  0x8d   :  { %1212 = vmatmul.mubr.bf16.gmra.mrb[52].mxu0 %v114_v33  ;;  %8017 = vmatprep.subr.bf16.mxu1 %v8604_v57  ;;  %v529_v57 = vsub.s32 2, %v10730_v50 }
  0x8e   :  { %1325 = vmatmul.mubr.bf16.gmra.mrb[52].mxu1 %v114_v33  ;;  %1221 = vmatprep.mubr.bf16.mxu0 %v17039_v58  ;;  %v8597_v33 = vld [vmem:[%s16644_s4 + $0x8] sm:$0xff]  }
  0x8f   :  { %1334 = vmatprep.mubr.bf16.mxu1 %v17039_v58  ;;  %7950 = vmatpush3.bf16.msra.mxu0 %v8597_v33  ;;  %v8612_v33 = vld [vmem:[%s16644_s4 + $0xe8] sm:$0xff]  }
  0x90   :  { %7951 = vmatprep.subr.bf16.mxu0 %v8599_v47  ;;  %8018 = vmatpush3.bf16.msra.mxu1 %v8606_v31  ;;  %v8614_v47 = vld [vmem:[%s16644_s4 + $0xa8] sm:$0xff]   ;;  %v8617_v31 = vld [vmem:[%s16644_s4 + $0x30] sm:$0xff]  }
  0x91   :  { %8019 = vmatprep.subr.bf16.mxu1 %v8608_v26  ;;  %v533_v26 = vsub.s32 3, %v10730_v50 }
  0x94   :  { %8020 = vmatpush3.bf16.msra.mxu1 %v8610_v32  ;;  %v8619_v32 = vld [vmem:[%s16644_s4 + $0x78] sm:$0xff]  }
  0x95   :  { %1222 = vmatmul.mubr.bf16.gmra.mrb[56].mxu0 %v115_v18  ;;  %8021 = vmatprep.subr.bf16.mxu1 %v8612_v33 }
  0x96   :  { %1335 = vmatmul.mubr.bf16.gmra.mrb[56].mxu1 %v115_v18  ;;  %1231 = vmatprep.mubr.bf16.mxu0 %v17039_v58  ;;  %v8601_v18 = vld [vmem:[%s16644_s4 + $0x10] sm:$0xff]  }
  0x97   :  { %1344 = vmatprep.mubr.bf16.mxu1 %v17039_v58  ;;  %7952 = vmatpush3.bf16.msra.mxu0 %v8601_v18  ;;  %v8615_v18 = vld [vmem:[%s16644_s4 + $0x70] sm:$0xff]  }
  0x98   :  { %7953 = vmatprep.subr.bf16.mxu0 %v8603_v14  ;;  %8022 = vmatpush3.bf16.msra.mxu1 %v8614_v47  ;;  %v10754_v14 = vld [vmem:[%s16643_s3] sm:$0xff]  ;;  %v8622_v47 = vld [vmem:[%s16644_s4 + $0xb8] sm:$0xff]  }
  0x99   :  { %8023 = vmatprep.subr.bf16.mxu1 %v8616_v0 }
  0x9b   :  { %7954 = vmatpush3.bf16.msra.mxu0 %v8605_v7  ;;  %v525_v7 = vsub.s32 1, %v10730_v50 }
  0x9d   :  { %1232 = vmatmul.mubr.bf16.gmra.mrb[60].mxu0 %v116_v8  ;;  %v10778_v33 = vrot.slane %v10754_v14, %v525_v7 }
  0x9e   :  { %1345 = vmatmul.mubr.bf16.gmra.mrb[60].mxu1 %v116_v8  ;;  %v8607_v8 = vld [vmem:[%s16644_s4 + $0x60] sm:$0xff]  }
  0x9f   :  { %7955 = vmatprep.subr.bf16.mxu0 %v8607_v8  ;;  %v8618_v8 = vld [vmem:[%s16644_s4 + $0xb0] sm:$0xff]   ;;  %17060 = vst [vmem:[#allocation73_spill] sm:$0xff] %v10778_v33 }
  0xa0   :  { %7956 = vmatpush3.bf16.msra.mxu0 %v8609_v63  ;;  %8024 = vmatpush3.bf16.msra.mxu1 %v8618_v8  ;;  %v10766_v63 = vrot.slane %v10754_v14, %v521_v56  ;;  %v10787_v56 = vrot.slane %v10754_v14, %v533_v26 }
  0xa1   :  { %7957 = vmatprep.subr.bf16.mxu0 %v8611_v12  ;;  %v10775_v12 = vrot.slane %v10754_v14, %v529_v57  ;;  %8025 = vmatprep.subr.bf16.mxu1 %v8620_v39 }
  0xa2   :  { %17058 = vst [vmem:[#allocation71_spill] sm:$0xff] %v10766_v63  ;;  %17061 = vst [vmem:[#allocation74_spill] sm:$0xff] %v10787_v56 }
  0xa3   :  { %17059 = vst [vmem:[#allocation72_spill] sm:$0xff] %v10775_v12 }
  0xa4   :  { %7958 = vmatpush3.bf16.msra.mxu0 %v8613_v42  ;;  %v8621_v42 = vld [vmem:[%s16644_s4 + $0x38] sm:$0xff]   ;;  %8026 = vmatpush3.bf16.msra.mxu1 %v8622_v47 }
  0xa5   :  { %7959 = vmatprep.subr.bf16.mxu0 %v8615_v18  ;;  %2423 = vmatprep.subr.bf16.mxu1 %v10182_v9 }
  0xa8   :  { %7960 = vmatpush3.bf16.msra.mxu0 %v8617_v31 }
  0xa9   :  { %7961 = vmatprep.subr.bf16.mxu0 %v8619_v32 }
  0xac   :  { %7962 = vmatpush3.bf16.msra.mxu0 %v8621_v42 }
  0xad   :  { %2310 = vmatprep.subr.bf16.mxu0 %v10167_v3 }
  0xf8   :  { %v937_v18 = vpop.f32.mrb[0].mxu0  ;;  %v1050_v57 = vpop.f32.mrb[0].mxu1 }
  0xf9   :  { %v10790_v0 = vadd.f32 %v937_v18, %v10766_v63  ;;  %v939_v7 = vpop.f32.mrb[1].mxu0  ;;  %v10795_v31 = vadd.f32 %v1050_v57, %v10775_v12  ;;  %v1052_v26 = vpop.f32.mrb[1].mxu1 }
  0xfa   :  { %v10798_v8 = vadd.f32 %v939_v7, %v10778_v33  ;;  %v941_v32 = vpop.f32.mrb[2].mxu0  ;;  %v10802_v42 = vadd.f32 %v1052_v26, %v10787_v56  ;;  %v1054_v18 = vpop.f32.mrb[2].mxu1 }
  0xfb   :  { %v7395_v39 = vmul.f32 -1.442695, %v10790_v0  ;;  %v10805_v47 = vadd.f32 %v941_v32, %v10766_v63  ;;  %v943_v3 = vpop.f32.mrb[3].mxu0  ;;  %v7397_v9 = vmul.f32 -1.442695, %v10795_v31  ;;  %v10810_v16 = vadd.f32 %v1054_v18, %v10775_v12  ;;  %v1056_v52 = vpop.f32.mrb[3].mxu1 }
  0xfc   :  { %v7396_v57 = vmul.f32 -1.442695, %v10798_v8  ;;  %v10813_v7 = vadd.f32 %v943_v3, %v10778_v33  ;;  %v7398_v26 = vmul.f32 -1.442695, %v10802_v42  ;;  %v10818_v32 = vadd.f32 %v1056_v52, %v10787_v56 }
  0xfd   :  { %8623 = vpow2.f32 %v7395_v39  ;;  %v7399_v41 = vmul.f32 -1.442695, %v10805_v47  ;;  %v7401_v34 = vmul.f32 -1.442695, %v10810_v16  ;;  %v545_v52 = vsub.s32 6, %v10730_v50 }
  0xfe   :  { %8625 = vpow2.f32 %v7397_v9  ;;  %v7400_v59 = vmul.f32 -1.442695, %v10813_v7  ;;  %v7402_v18 = vmul.f32 -1.442695, %v10818_v32  ;;  %v541_v9 = vsub.s32 5, %v10730_v50 }
  0xff   :  { %8627 = vpow2.f32 %v7396_v57 }
 0x100   :  { %8629 = vpow2.f32 %v7398_v26  ;;  %v947_v3 = vpop.f32.mrb[4].mxu0  ;;  %v1060_v13 = vpop.f32.mrb[4].mxu1 }
 0x101   :  { %8631 = vpow2.f32 %v7399_v41  ;;  %v10825_v39 = vadd.f32 %v947_v3, %v10766_v63  ;;  %v949_v6 = vpop.f32.mrb[5].mxu0  ;;  %v10830_v57 = vadd.f32 %v1060_v13, %v10775_v12  ;;  %v1062_v49 = vpop.f32.mrb[5].mxu1  ;;  %v549_v41 = vsub.s32 7, %v10730_v50 }
 0x102   :  { %8633 = vpow2.f32 %v7401_v34  ;;  %v10833_v26 = vadd.f32 %v949_v6, %v10778_v33  ;;  %v951_v61 = vpop.f32.mrb[6].mxu0  ;;  %v10838_v48 = vadd.f32 %v1062_v49, %v10787_v56  ;;  %v1064_v34 = vpop.f32.mrb[6].mxu1 }
 0x103   :  { %8635 = vpow2.f32 %v7400_v59  ;;  %v7403_v3 = vmul.f32 -1.442695, %v10825_v39  ;;  %v10841_v40 = vadd.f32 %v951_v61, %v10766_v63  ;;  %v953_v58 = vpop.f32.mrb[7].mxu0  ;;  %v7405_v13 = vmul.f32 -1.442695, %v10830_v57  ;;  %v1066_v50 = vpop.f32.mrb[7].mxu1 }
 0x104   :  { %8637 = vpow2.f32 %v7402_v18  ;;  %v7404_v6 = vmul.f32 -1.442695, %v10833_v26  ;;  %v10846_v25 = vadd.f32 %v1064_v34, %v10775_v12  ;;  %v7406_v59 = vmul.f32 -1.442695, %v10838_v48 }
 0x105   :  { %8639 = vpow2.f32 %v7403_v3  ;;  %v7407_v49 = vmul.f32 -1.442695, %v10841_v40  ;;  %v10851_v24 = vadd.f32 %v953_v58, %v10778_v33  ;;  %v10854_v61 = vadd.f32 %v1066_v50, %v10787_v56 }
 0x106   :  { %8641 = vpow2.f32 %v7405_v13  ;;  %v10857_v18 = vrot.slane %v10754_v14, %v537_v60  ;;  %v10860_v34 = vrot.slane %v10754_v14, %v545_v52  ;;  %v10863_v3 = vrot.slane %v10754_v14, %v541_v9 }
 0x107   :  { %v8624_v23 = vpop.eup %8623  ;;  %8643 = vpow2.f32 %v7404_v6  ;;  %v10866_v17 = vrot.slane %v10754_v14, %v549_v41  ;;  %v10869_v13 = vmul.f32 -1.442695, %v10846_v25  ;;  %v10872_v60 = vmul.f32 -1.442695, %v10851_v24 }
 0x108   :  { %v8626_v58 = vpop.eup %8625  ;;  %v1547_v4 = vadd.f32 1.0, %v8624_v23  ;;  %8645 = vpow2.f32 %v7406_v59  ;;  %v957_v50 = vpop.f32.mrb[8].mxu0  ;;  %v10875_v52 = vmul.f32 -1.442695, %v10854_v61 }
 0x109   :  { %v8628_v6 = vpop.eup %8627  ;;  %v1549_v2 = vadd.f32 1.0, %v8626_v58  ;;  %8647 = vpow2.f32 %v7407_v49  ;;  %v10878_v9 = vadd.f32 %v957_v50, %v10766_v63  ;;  %v1070_v14 = vpop.f32.mrb[8].mxu1 }
 0x10a   :  { %v959_v41 = vpop.f32.mrb[9].mxu0  ;;  %v8630_v23 = vpop.eup %8629  ;;  %8649 = vrcp.f32 %v1547_v4  ;;  %v1548_v59 = vadd.f32 1.0, %v8628_v6  ;;  %v10881_v1 = vadd.f32 %v1070_v14, %v10775_v12 }
 0x10b   :  { %v10884_v62 = vadd.f32 %v959_v41, %v10778_v33  ;;  %v1072_v55 = vpop.f32.mrb[9].mxu1  ;;  %v961_v58 = vpop.f32.mrb[10].mxu0  ;;  %8651 = vrcp.f32 %v1549_v2  ;;  %v1550_v54 = vadd.f32 1.0, %v8630_v23  ;;  %v10887_v53 = vmul.f32 -1.442695, %v10878_v9 }
 0x10c   :  { %v8632_v49 = vpop.eup %8631  ;;  %v10890_v50 = vadd.f32 %v1072_v55, %v10787_v56  ;;  %v1074_v51 = vpop.f32.mrb[10].mxu1  ;;  %8653 = vrcp.f32 %v1548_v59  ;;  %v10893_v46 = vmul.f32 -1.442695, %v10881_v1  ;;  %v10902_v55 = vadd.f32 %v961_v58, %v10766_v63 }
 0x10d   :  { %v963_v4 = vpop.f32.mrb[11].mxu0  ;;  %v8634_v6 = vpop.eup %8633  ;;  %v1551_v14 = vadd.f32 1.0, %v8632_v49  ;;  %v10896_v41 = vmul.f32 -1.442695, %v10884_v62  ;;  %8655 = vrcp.f32 %v1550_v54  ;;  %v10905_v49 = vadd.f32 %v1074_v51, %v10775_v12 }
 0x10e   :  { %v1076_v45 = vpop.f32.mrb[11].mxu1  ;;  %v8636_v2 = vpop.eup %8635  ;;  %v1553_v23 = vadd.f32 1.0, %v8634_v6  ;;  %v10899_v44 = vmul.f32 -1.442695, %v10890_v50  ;;  %v10908_v38 = vadd.f32 %v963_v4, %v10778_v33  ;;  %v10911_v54 = vmul.f32 -1.442695, %v10902_v55 }
 0x10f   :  { %v8638_v43 = vpop.eup %8637  ;;  %8657 = vrcp.f32 %v1551_v14  ;;  %v1552_v59 = vadd.f32 1.0, %v8636_v2  ;;  %v10914_v6 = vadd.f32 %v1076_v45, %v10787_v56  ;;  %v10917_v14 = vmul.f32 -1.442695, %v10905_v49 }
 0x110   :  { %v8640_v37 = vpop.eup %8639  ;;  %8659 = vrcp.f32 %v1553_v23  ;;  %v1554_v36 = vadd.f32 1.0, %v8638_v43  ;;  %v10920_v51 = vmul.f32 -1.442695, %v10908_v38  ;;  %v967_v4 = vpop.f32.mrb[12].mxu0 }
 0x111   :  { %v8642_v58 = vpop.eup %8641  ;;  %8661 = vrcp.f32 %v1552_v59  ;;  %v1555_v35 = vadd.f32 1.0, %v8640_v37  ;;  %v10923_v43 = vmul.f32 -1.442695, %v10914_v6  ;;  %v10926_v30 = vadd.f32 %v967_v4, %v10766_v63  ;;  %v1080_v45 = vpop.f32.mrb[12].mxu1 }
 0x112   :  { %v8644_v2 = vpop.eup %8643  ;;  %8663 = vrcp.f32 %v1554_v36  ;;  %v1557_v23 = vadd.f32 1.0, %v8642_v58  ;;  %v969_v29 = vpop.f32.mrb[13].mxu0  ;;  %v10929_v28 = vadd.f32 %v1080_v45, %v10775_v12 }
 0x113   :  { %v8646_v59 = vpop.eup %8645  ;;  %8665 = vrcp.f32 %v1555_v35  ;;  %v1556_v37 = vadd.f32 1.0, %v8644_v2  ;;  %v10932_v27 = vadd.f32 %v969_v29, %v10778_v33  ;;  %v1082_v22 = vpop.f32.mrb[13].mxu1  ;;  %v10935_v20 = vmul.f32 -1.442695, %v10926_v30 }
 0x114   :  { %v971_v36 = vpop.f32.mrb[14].mxu0  ;;  %v8648_v58 = vpop.eup %8647  ;;  %8667 = vrcp.f32 %v1557_v23  ;;  %v1558_v21 = vadd.f32 1.0, %v8646_v59  ;;  %v10938_v4 = vadd.f32 %v1082_v22, %v10787_v56  ;;  %v10941_v15 = vmul.f32 -1.442695, %v10929_v28 }
 0x115   :  { %17062 = vst [vmem:[#allocation75_spill] sm:$0xff] %v10932_v27  ;;  %v1084_v19 = vpop.f32.mrb[14].mxu1  ;;  %v973_v35 = vpop.f32.mrb[15].mxu0  ;;  %8669 = vrcp.f32 %v1556_v37  ;;  %v1559_v45 = vadd.f32 1.0, %v8648_v58  ;;  %v10944_v29 = vmul.f32 -1.442695, %v10932_v27  ;;  %v10953_v10 = vadd.f32 %v971_v36, %v10766_v63 }
 0x116   :  { %17063 = vst [vmem:[#allocation76_spill] sm:$0xff] %v10938_v4  ;;  %v8650_v2 = vpop.eup %8649  ;;  %v1086_v11 = vpop.f32.mrb[15].mxu1  ;;  %8671 = vrcp.f32 %v1558_v21  ;;  %v10950_v22 = vmul.f32 -1.442695, %v10938_v4  ;;  %v10959_v5 = vadd.f32 %v1084_v19, %v10775_v12  ;;  %v10962_v27 = vadd.f32 %v973_v35, %v10778_v33 }
 0x117   :  { %v8652_v23 = vpop.eup %8651  ;;  %v10947_v59 = vmul.f32 %v8650_v2, %v10790_v0  ;;  %17064 = vst [vmem:[#allocation77_spill] sm:$0xff] %v10953_v10  ;;  %8673 = vrcp.f32 %v1559_v45  ;;  %v10969_v36 = vmul.f32 -1.442695, %v10953_v10  ;;  %v10972_v2 = vadd.f32 %v1086_v11, %v10787_v56 }
 0x118   :  { %v8654_v37 = vpop.eup %8653  ;;  %v10956_v58 = vmul.f32 %v8652_v23, %v10795_v31  ;;  %17065 = vst [vmem:[#allocation78_spill] sm:$0xff] %v10959_v5  ;;  %17066 = vst [vmem:[#allocation79_spill] sm:$0xff] %v10962_v27  ;;  %8675 = vpow2.f32 %v10869_v13  ;;  %v10979_v19 = vmul.f32 -1.442695, %v10959_v5  ;;  %v977_v35 = vpop.f32.mrb[16].mxu0 }
 0x119   :  { %v8656_v0 = vpop.eup %8655  ;;  %v10965_v21 = vmul.f32 %v8654_v37, %v10798_v8  ;;  %17067 = vst [vmem:[#allocation80_spill] sm:$0xff] %v10972_v2  ;;  %8677 = vpow2.f32 %v10872_v60  ;;  %v10982_v8 = vmul.f32 -1.442695, %v10962_v27  ;;  %v10989_v11 = vmul.f32 -1.442695, %v10972_v2  ;;  %v1090_v60 = vpop.f32.mrb[16].mxu1 }
 0x11a   :  { %v8658_v31 = vpop.eup %8657  ;;  %v10975_v45 = vmul.f32 %v8656_v0, %v10802_v42  ;;  %8679 = vpow2.f32 %v10875_v52  ;;  %v10992_v42 = vadd.f32 %v977_v35, %v10766_v63  ;;  %v979_v37 = vpop.f32.mrb[17].mxu0  ;;  %v10999_v27 = vadd.f32 %v1090_v60, %v10775_v12 }
 0x11b   :  { %v8660_v13 = vpop.eup %8659  ;;  %v10985_v23 = vmul.f32 %v8658_v31, %v10805_v47  ;;  %8681 = vpow2.f32 %v10887_v53  ;;  %v11002_v47 = vadd.f32 %v979_v37, %v10778_v33  ;;  %v1092_v52 = vpop.f32.mrb[17].mxu1 }
 0x11c   :  { %17068 = vst [vmem:[#allocation81_spill] sm:$0xff] %v10992_v42  ;;  %v8662_v0 = vpop.eup %8661  ;;  %v10995_v5 = vmul.f32 %v8660_v13, %v10810_v16  ;;  %17069 = vst [vmem:[#allocation82_spill] sm:$0xff] %v10999_v27  ;;  %v981_v31 = vpop.f32.mrb[18].mxu0  ;;  %8683 = vpow2.f32 %v10893_v46  ;;  %v11009_v10 = vmul.f32 -1.442695, %v10992_v42  ;;  %v11012_v16 = vadd.f32 %v1092_v52, %v10787_v56 }
 0x11d   :  { %17070 = vst [vmem:[#allocation83_spill] sm:$0xff] %v11002_v47  ;;  %v8664_v2 = vpop.eup %8663  ;;  %v11005_v35 = vmul.f32 %v8662_v0, %v10813_v7  ;;  %v1094_v53 = vpop.f32.mrb[18].mxu1  ;;  %8685 = vpow2.f32 %v10896_v41  ;;  %v11019_v4 = vmul.f32 -1.442695, %v10999_v27  ;;  %v11022_v7 = vmul.f32 -1.442695, %v11002_v47 }
 0x11e   :  { %17071 = vst [vmem:[#allocation84_spill] sm:$0xff] %v11012_v16  ;;  %v983_v13 = vpop.f32.mrb[19].mxu0  ;;  %v8666_v60 = vpop.eup %8665  ;;  %v11015_v37 = vmul.f32 %v8664_v2, %v10818_v32  ;;  %8687 = vpow2.f32 %v10899_v44  ;;  %v11029_v52 = vmul.f32 -1.442695, %v11012_v16  ;;  %v11032_v32 = vadd.f32 %v981_v31, %v10766_v63 }
 0x11f   :  { %v1096_v46 = vpop.f32.mrb[19].mxu1  ;;  %v8668_v0 = vpop.eup %8667  ;;  %v11025_v42 = vmul.f32 %v8666_v60, %v10825_v39  ;;  %8689 = vpow2.f32 %v10911_v54  ;;  %v11039_v47 = vadd.f32 %v1094_v53, %v10775_v12  ;;  %v11042_v39 = vadd.f32 %v983_v13, %v10778_v33 }
 0x120   :  { %17072 = vst [vmem:[#allocation85_spill] sm:$0xff] %v11032_v32  ;;  %v8670_v41 = vpop.eup %8669  ;;  %v11035_v2 = vmul.f32 %v8668_v0, %v10830_v57  ;;  %8691 = vpow2.f32 %v10917_v14  ;;  %v11049_v31 = vmul.f32 -1.442695, %v11032_v32  ;;  %v11052_v57 = vadd.f32 %v1096_v46, %v10787_v56  ;;  %v987_v13 = vpop.f32.mrb[20].mxu0 }
 0x121   :  { %17073 = vst [vmem:[#allocation86_spill] sm:$0xff] %v11039_v47  ;;  %17074 = vst [vmem:[#allocation87_spill] sm:$0xff] %v11042_v39  ;;  %v8672_v60 = vpop.eup %8671  ;;  %v11045_v44 = vmul.f32 %v8670_v41, %v10833_v26  ;;  %8693 = vpow2.f32 %v10920_v51  ;;  %v11059_v53 = vmul.f32 -1.442695, %v11039_v47  ;;  %v11062_v26 = vmul.f32 -1.442695, %v11042_v39 }
 0x122   :  { %17075 = vst [vmem:[#allocation88_spill] sm:$0xff] %v11052_v57  ;;  %v8674_v0 = vpop.eup %8673  ;;  %v11055_v54 = vmul.f32 %v8672_v60, %v10838_v48  ;;  %8695 = vpow2.f32 %v10923_v43  ;;  %v11069_v46 = vmul.f32 -1.442695, %v11052_v57  ;;  %v11072_v48 = vadd.f32 %v987_v13, %v10766_v63  ;;  %v1100_v51 = vpop.f32.mrb[20].mxu1 }
 0x123   :  { %v8676_v14 = vpop.eup %8675  ;;  %v11065_v41 = vmul.f32 %v8674_v0, %v10841_v40  ;;  %v989_v60 = vpop.f32.mrb[21].mxu0  ;;  %8697 = vpow2.f32 %v10935_v20  ;;  %v11076_v39 = vadd.f32 %v1100_v51, %v10775_v12 }
 0x124   :  { %17076 = vst [vmem:[#allocation89_spill] sm:$0xff] %v11055_v54  ;;  %17078 = vst [vmem:[#allocation91_spill] sm:$0xff] %v11069_v46  ;;  %v8678_v47 = vpop.eup %8677  ;;  %v1561_v32 = vadd.f32 1.0, %v8676_v14  ;;  %v11079_v40 = vadd.f32 %v989_v60, %v10778_v33  ;;  %v1102_v0 = vpop.f32.mrb[21].mxu1  ;;  %8699 = vpow2.f32 %v10941_v15  ;;  %v11083_v13 = vmul.f32 -1.442695, %v11072_v48 }
 0x125   :  { %17077 = vst [vmem:[#allocation90_spill] sm:$0xff] %v11065_v41  ;;  %17079 = vst [vmem:[#allocation92_spill] sm:$0xff] %v11072_v48  ;;  %v991_v43 = vpop.f32.mrb[22].mxu0  ;;  %v8680_v16 = vpop.eup %8679  ;;  %v1560_v57 = vadd.f32 1.0, %v8678_v47  ;;  %v11086_v27 = vadd.f32 %v1102_v0, %v10787_v56  ;;  %v11089_v60 = vmul.f32 -1.442695, %v11076_v39 }
 0x126   :  { %17080 = vst [vmem:[#allocation93_spill] sm:$0xff] %v11076_v39  ;;  %17081 = vst [vmem:[#allocation94_spill] sm:$0xff] %v11079_v40  ;;  %v1104_v14 = vpop.f32.mrb[22].mxu1  ;;  %v993_v20 = vpop.f32.mrb[23].mxu0  ;;  %8701 = vrcp.f32 %v1561_v32  ;;  %v1562_v51 = vadd.f32 1.0, %v8680_v16  ;;  %v11098_v0 = vadd.f32 %v991_v43, %v10766_v63 }
 0x127   :  { %17082 = vst [vmem:[#allocation95_spill] sm:$0xff] %v11083_v13  ;;  %17083 = vst [vmem:[#allocation96_spill] sm:$0xff] %v11086_v27  ;;  %v8682_v46 = vpop.eup %8681  ;;  %v11092_v41 = vmul.f32 -1.442695, %v11079_v40  ;;  %v1106_v47 = vpop.f32.mrb[23].mxu1  ;;  %8703 = vrcp.f32 %v1560_v57  ;;  %v11101_v16 = vadd.f32 %v1104_v14, %v10775_v12  ;;  %v11104_v39 = vadd.f32 %v993_v20, %v10778_v33 }
 0x128   :  { %17084 = vst [vmem:[#allocation97_spill] sm:$0xff] %v11089_v60  ;;  %v8684_v54 = vpop.eup %8683  ;;  %v1563_v15 = vadd.f32 1.0, %v8682_v46  ;;  %v11095_v48 = vmul.f32 -1.442695, %v11086_v27  ;;  %17087 = vst [vmem:[#allocation100_spill] sm:$0xff] %v11098_v0  ;;  %8705 = vrcp.f32 %v1562_v51  ;;  %v11110_v46 = vadd.f32 %v1106_v47, %v10787_v56  ;;  %v997_v20 = vpop.f32.mrb[24].mxu0 }
 0x129   :  { %17085 = vst [vmem:[#allocation98_spill] sm:$0xff] %v11092_v41  ;;  %v8686_v13 = vpop.eup %8685  ;;  %v1565_v32 = vadd.f32 1.0, %v8684_v54  ;;  %17088 = vst [vmem:[#allocation101_spill] sm:$0xff] %v11101_v16  ;;  %v11107_v57 = vmul.f32 -1.442695, %v11098_v0  ;;  %v11122_v0 = vadd.f32 %v997_v20, %v10766_v63  ;;  %v1110_v47 = vpop.f32.mrb[24].mxu1 }
 0x12a   :  { %17086 = vst [vmem:[#allocation99_spill] sm:$0xff] %v11095_v48  ;;  %17089 = vst [vmem:[#allocation102_spill] sm:$0xff] %v11104_v39  ;;  %v8688_v40 = vpop.eup %8687  ;;  %8707 = vrcp.f32 %v1563_v15  ;;  %v1564_v41 = vadd.f32 1.0, %v8686_v13  ;;  %v11113_v54 = vmul.f32 -1.442695, %v11101_v16  ;;  %v11125_v16 = vadd.f32 %v1110_v47, %v10775_v12 }
 0x12b   :  { %17090 = vst [vmem:[#allocation103_spill] sm:$0xff] %v11107_v57  ;;  %17091 = vst [vmem:[#allocation104_spill] sm:$0xff] %v11110_v46  ;;  %v8690_v43 = vpop.eup %8689  ;;  %8709 = vrcp.f32 %v1565_v32  ;;  %v1566_v27 = vadd.f32 1.0, %v8688_v40  ;;  %v11116_v14 = vmul.f32 -1.442695, %v11104_v39  ;;  %v999_v57 = vpop.f32.mrb[25].mxu0 }
 0x12c   :  { %17092 = vst [vmem:[#allocation105_spill] sm:$0xff] %v11113_v54  ;;  %v8692_v51 = vpop.eup %8691  ;;  %8711 = vrcp.f32 %v1564_v41  ;;  %v1567_v15 = vadd.f32 1.0, %v8690_v43  ;;  %v11119_v13 = vmul.f32 -1.442695, %v11110_v46  ;;  %17095 = vst [vmem:[#allocation108_spill] sm:$0xff] %v11122_v0  ;;  %v11128_v39 = vadd.f32 %v999_v57, %v10778_v33  ;;  %v1001_v41 = vpop.f32.mrb[26].mxu0 }
 0x12d   :  { %17093 = vst [vmem:[#allocation106_spill] sm:$0xff] %v11116_v14  ;;  %v8694_v32 = vpop.eup %8693  ;;  %8713 = vrcp.f32 %v1566_v27  ;;  %v1569_v40 = vadd.f32 1.0, %v8692_v51  ;;  %17096 = vst [vmem:[#allocation109_spill] sm:$0xff] %v11125_v16  ;;  %v1112_v14 = vpop.f32.mrb[25].mxu1  ;;  %v11137_v48 = vmul.f32 -1.442695, %v11125_v16 }
 0x12e   :  { %17094 = vst [vmem:[#allocation107_spill] sm:$0xff] %v11119_v13  ;;  %17097 = vst [vmem:[#allocation110_spill] sm:$0xff] %v11128_v39  ;;  %v8696_v43 = vpop.eup %8695  ;;  %8715 = vrcp.f32 %v1567_v15  ;;  %v1568_v46 = vadd.f32 1.0, %v8694_v32  ;;  %v11131_v13 = vmul.f32 -1.442695, %v11122_v0  ;;  %v11134_v20 = vadd.f32 %v1112_v14, %v10787_v56  ;;  %v1114_v54 = vpop.f32.mrb[26].mxu1 }
 0x12f   :  { %v1003_v27 = vpop.f32.mrb[27].mxu0  ;;  %v8698_v51 = vpop.eup %8697  ;;  %8717 = vrcp.f32 %v1569_v40  ;;  %v1570_v47 = vadd.f32 1.0, %v8696_v43  ;;  %v11140_v57 = vmul.f32 -1.442695, %v11128_v39  ;;  %v11146_v14 = vadd.f32 %v1001_v41, %v10766_v63 }
 0x130   :  { %17098 = vst [vmem:[#allocation111_spill] sm:$0xff] %v11131_v13  ;;  %17099 = vst [vmem:[#allocation112_spill] sm:$0xff] %v11134_v20  ;;  %v1116_v60 = vpop.f32.mrb[27].mxu1  ;;  %v8700_v15 = vpop.eup %8699  ;;  %8719 = vrcp.f32 %v1568_v46  ;;  %v1571_v32 = vadd.f32 1.0, %v8698_v51  ;;  %v11143_v0 = vmul.f32 -1.442695, %v11134_v20  ;;  %v11149_v43 = vadd.f32 %v1114_v54, %v10775_v12 }
 0x131   :  { %17100 = vst [vmem:[#allocation113_spill] sm:$0xff] %v11140_v57  ;;  %17101 = vst [vmem:[#allocation114_spill] sm:$0xff] %v11146_v14  ;;  %v8702_v13 = vpop.eup %8701  ;;  %8721 = vrcp.f32 %v1570_v47  ;;  %v1573_v40 = vadd.f32 1.0, %v8700_v15  ;;  %v11152_v16 = vadd.f32 %v1003_v27, %v10778_v33  ;;  %v11158_v46 = vmul.f32 -1.442695, %v11146_v14 }
 0x132   :  { %17102 = vst [vmem:[#allocation115_spill] sm:$0xff] %v11149_v43  ;;  %v8704_v39 = vpop.eup %8703  ;;  %v11155_v57 = vmul.f32 %v8702_v13, %v10846_v25  ;;  %8723 = vrcp.f32 %v1571_v32  ;;  %v11161_v41 = vadd.f32 %v1116_v60, %v10787_v56  ;;  %v11167_v54 = vmul.f32 -1.442695, %v11149_v43  ;;  %v1007_v25 = vpop.f32.mrb[28].mxu0 }
 0x133   :  { %17103 = vst [vmem:[#allocation116_spill] sm:$0xff] %v11152_v16  ;;  %v8706_v51 = vpop.eup %8705  ;;  %v11164_v47 = vmul.f32 %v8704_v39, %v10851_v24  ;;  %8725 = vrcp.f32 %v1573_v40  ;;  %v11170_v27 = vmul.f32 -1.442695, %v11152_v16  ;;  %v11180_v24 = vadd.f32 %v1007_v25, %v10766_v63  ;;  %v1120_v39 = vpop.f32.mrb[28].mxu1 }
 0x134   :  { %17104 = vst [vmem:[#allocation117_spill] sm:$0xff] %v11161_v41  ;;  %v8708_v13 = vpop.eup %8707  ;;  %v11173_v15 = vmul.f32 %v8706_v51, %v10854_v61  ;;  %8727 = vpow2.f32 %v10944_v29  ;;  %v11177_v60 = vmul.f32 -1.442695, %v11161_v41  ;;  %v1009_v32 = vpop.f32.mrb[29].mxu0  ;;  %v11187_v16 = vadd.f32 %v1120_v39, %v10775_v12 }
 0x135   :  { %17105 = vst [vmem:[#allocation118_spill] sm:$0xff] %v11180_v24  ;;  %v8710_v40 = vpop.eup %8709  ;;  %v11183_v43 = vmul.f32 %v8708_v13, %v10878_v9  ;;  %8729 = vpow2.f32 %v10950_v22  ;;  %v11190_v61 = vadd.f32 %v1009_v32, %v10778_v33  ;;  %v1122_v29 = vpop.f32.mrb[29].mxu1  ;;  %v11197_v14 = vmul.f32 -1.442695, %v11180_v24 }
 0x136   :  { %17106 = vst [vmem:[#allocation119_spill] sm:$0xff] %v11187_v16  ;;  %v1011_v51 = vpop.f32.mrb[30].mxu0  ;;  %v8712_v41 = vpop.eup %8711  ;;  %v11193_v25 = vmul.f32 %v8710_v40, %v10881_v1  ;;  %8731 = vpow2.f32 %v10969_v36  ;;  %v11200_v9 = vadd.f32 %v1122_v29, %v10787_v56  ;;  %v11207_v20 = vmul.f32 -1.442695, %v11187_v16 }
 0x137   :  { %17107 = vst [vmem:[#allocation120_spill] sm:$0xff] %v11190_v61  ;;  %v1124_v22 = vpop.f32.mrb[30].mxu1  ;;  %v1013_v13 = vpop.f32.mrb[31].mxu0  ;;  %v11203_v32 = vmul.f32 %v8712_v41, %v10884_v62  ;;  %8733 = vpow2.f32 %v10979_v19  ;;  %v11210_v1 = vmul.f32 -1.442695, %v11190_v61  ;;  %v11220_v62 = vadd.f32 %v1011_v51, %v10766_v63 }
 0x138   :  { %17108 = vst [vmem:[#allocation121_spill] sm:$0xff] %v11200_v9  ;;  %v8714_v39 = vpop.eup %8713  ;;  %v1126_v36 = vpop.f32.mrb[31].mxu1  ;;  %8735 = vpow2.f32 %v10982_v8  ;;  %v11217_v29 = vmul.f32 -1.442695, %v11200_v9  ;;  %v11227_v61 = vadd.f32 %v1124_v22, %v10775_v12 }
 0x139   :  { %v8716_v40 = vpop.eup %8715  ;;  %v11213_v24 = vmul.f32 %v8714_v39, %v10890_v50  ;;  %17109 = vst [vmem:[#allocation122_spill] sm:$0xff] %v11220_v62  ;;  %8737 = vpow2.f32 %v10989_v11  ;;  %v11230_v50 = vadd.f32 %v1013_v13, %v10778_v33  ;;  %v11237_v51 = vmul.f32 -1.442695, %v11220_v62  ;;  %v1163_v13 = vpop.f32.mrb[32].mxu0 }
 0x13a   :  { %v8718_v19 = vpop.eup %8717  ;;  %v11223_v41 = vmul.f32 %v8716_v40, %v10902_v55  ;;  %17110 = vst [vmem:[#allocation123_spill] sm:$0xff] %v11227_v61  ;;  %8739 = vpow2.f32 %v11009_v10  ;;  %v11240_v55 = vadd.f32 %v1126_v36, %v10787_v56  ;;  %v11247_v22 = vmul.f32 -1.442695, %v11227_v61 }
 0x13b   :  { %17111 = vst [vmem:[#allocation124_spill] sm:$0xff] %v11230_v50  ;;  %v8720_v39 = vpop.eup %8719  ;;  %v11233_v8 = vmul.f32 %v8718_v19, %v10905_v49  ;;  %8741 = vpow2.f32 %v11019_v4  ;;  %v11250_v49 = vmul.f32 -1.442695, %v11230_v50  ;;  %v1165_v4 = vpop.f32.mrb[33].mxu0 }
 0x13c   :  { %17112 = vst [vmem:[#allocation125_spill] sm:$0xff] %v11240_v55  ;;  %v8722_v40 = vpop.eup %8721  ;;  %v11243_v11 = vmul.f32 %v8720_v39, %v10908_v38  ;;  %8743 = vpow2.f32 %v11022_v7  ;;  %v11257_v36 = vmul.f32 -1.442695, %v11240_v55  ;;  %v1164_v38 = vadd.f32 %v1163_v13, %v10857_v18  ;;  %v1276_v39 = vpop.f32.mrb[32].mxu1 }
 0x13d   :  { %v8724_v10 = vpop.eup %8723  ;;  %v11253_v19 = vmul.f32 %v8722_v40, %v10914_v6  ;;  %8745 = vpow2.f32 %v11029_v52  ;;  %v1277_v12 = vadd.f32 %v1276_v39, %v10860_v34  ;;  %v1166_v6 = vadd.f32 %v1165_v4, %v10863_v3  ;;  %v1278_v40 = vpop.f32.mrb[33].mxu1 }
 0x13e   :  { %17113 = vst [vmem:[#allocation126_spill] sm:$0xff] %v11257_v36  ;;  %v8726_v56 = vpop.eup %8725  ;;  %v11261_v33 = vmul.f32 %v8724_v10, %v10926_v30  ;;  %v1167_v63 = vpop.f32.mrb[34].mxu0  ;;  %8747 = vpow2.f32 %v11049_v31  ;;  %v11271_v13 = vadd.f32 %v10947_v59, %v1164_v38  ;;  %v1279_v30 = vadd.f32 %v1278_v40, %v10866_v17  ;;  %v17146_v36 = vld [vmem:[#allocation111_spill] sm:$0xff] }
 0x13f   :  { %v8728_v7 = vpop.eup %8727  ;;  %v11267_v55 = vmul.f32 %v8726_v56, %v10929_v28  ;;  %v1280_v10 = vpop.f32.mrb[34].mxu1  ;;  %8749 = vpow2.f32 %v11059_v53  ;;  %v11276_v39 = vadd.f32 %v10956_v58, %v1277_v12  ;;  %v11279_v4 = vadd.f32 %v10965_v21, %v1166_v6 }
 0x140   :  { %v1169_v50 = vpop.f32.mrb[35].mxu0  ;;  %v8730_v52 = vpop.eup %8729  ;;  %v1572_v61 = vadd.f32 1.0, %v8728_v7  ;;  %8751 = vpow2.f32 %v11062_v26  ;;  %v11283_v59 = vadd.f32 %v10975_v45, %v1279_v30  ;;  %v1168_v38 = vadd.f32 %v1167_v63, %v10857_v18 }
 0x141   :  { %v1282_v28 = vpop.f32.mrb[35].mxu1  ;;  %v8732_v56 = vpop.eup %8731  ;;  %v1574_v31 = vadd.f32 1.0, %v8730_v52  ;;  %v1281_v53 = vadd.f32 %v1280_v10, %v10860_v34  ;;  %v1170_v12 = vadd.f32 %v1169_v50, %v10863_v3 }
 0x142   :  { %v8734_v40 = vpop.eup %8733  ;;  %8753 = vrcp.f32 %v1572_v61  ;;  %v1575_v7 = vadd.f32 1.0, %v8732_v56  ;;  %v11289_v6 = vadd.f32 %v10985_v23, %v1168_v38  ;;  %v1283_v26 = vadd.f32 %v1282_v28, %v10866_v17  ;;  %v1173_v30 = vpop.f32.mrb[36].mxu0 }
 0x143   :  { %v8736_v58 = vpop.eup %8735  ;;  %8755 = vrcp.f32 %v1574_v31  ;;  %v1577_v21 = vadd.f32 1.0, %v8734_v40  ;;  %v11293_v63 = vadd.f32 %v10995_v5, %v1281_v53  ;;  %v1808_v61 = vadd.f32 %v11005_v35, %v1170_v12  ;;  %v1286_v31 = vpop.f32.mrb[36].mxu1 }
 0x144   :  { %v8738_v52 = vpop.eup %8737  ;;  %8757 = vrcp.f32 %v1575_v7  ;;  %v1576_v45 = vadd.f32 1.0, %v8736_v58  ;;  %v1867_v56 = vpack.c.bf16 %v11289_v6, %v11271_v13  ;;  %v1810_v23 = vadd.f32 %v11015_v37, %v1283_v26  ;;  %v1175_v38 = vpop.f32.mrb[37].mxu0 }
 0x145   :  { %v8740_v10 = vpop.eup %8739  ;;  %8759 = vrcp.f32 %v1577_v21  ;;  %v1578_v50 = vadd.f32 1.0, %v8738_v52  ;;  %v1869_v5 = vpack.c.bf16 %v11293_v63, %v11276_v39  ;;  %v1174_v7 = vadd.f32 %v1173_v30, %v10857_v18  ;;  %v1288_v35 = vpop.f32.mrb[37].mxu1 }
 0x146   :  { %v8742_v28 = vpop.eup %8741  ;;  %8761 = vrcp.f32 %v1576_v45  ;;  %v1579_v40 = vadd.f32 1.0, %v8740_v10  ;;  %v1177_v53 = vpop.f32.mrb[38].mxu0  ;;  %v1287_v21 = vadd.f32 %v1286_v31, %v10860_v34  ;;  %v1176_v13 = vadd.f32 %v1175_v38, %v10863_v3 }
 0x147   :  { %v8744_v12 = vpop.eup %8743  ;;  %8763 = vrcp.f32 %v1578_v50  ;;  %v1581_v58 = vadd.f32 1.0, %v8742_v28  ;;  %v1290_v37 = vpop.f32.mrb[38].mxu1  ;;  %v11305_v45 = vadd.f32 %v11025_v42, %v1174_v7  ;;  %v1289_v39 = vadd.f32 %v1288_v35, %v10866_v17 }
 0x148   :  { %v1179_v6 = vpop.f32.mrb[39].mxu0  ;;  %v8746_v26 = vpop.eup %8745  ;;  %8765 = vrcp.f32 %v1579_v40  ;;  %v1580_v52 = vadd.f32 1.0, %v8744_v12  ;;  %v11309_v50 = vadd.f32 %v11035_v2, %v1287_v21  ;;  %v11312_v31 = vadd.f32 %v11045_v44, %v1176_v13  ;;  %v17114_v40 = vld [vmem:[#allocation89_spill] sm:$0xff]  ;;  %v17115_v44 = vld [vmem:[#allocation90_spill] sm:$0xff] }
 0x149   :  { %v1292_v63 = vpop.f32.mrb[39].mxu1  ;;  %v8748_v30 = vpop.eup %8747  ;;  %8767 = vrcp.f32 %v1581_v58  ;;  %v1582_v10 = vadd.f32 1.0, %v8746_v26  ;;  %v11315_v12 = vadd.f32 %v17114_v40, %v1289_v39  ;;  %v1178_v42 = vadd.f32 %v1177_v53, %v10857_v18  ;;  %v17116_v40 = vld [vmem:[#allocation75_spill] sm:$0xff] }
 0x14a   :  { %v8750_v38 = vpop.eup %8749  ;;  %8769 = vrcp.f32 %v1580_v52  ;;  %v1583_v28 = vadd.f32 1.0, %v8748_v30  ;;  %v1291_v58 = vadd.f32 %v1290_v37, %v10860_v34  ;;  %v1868_v26 = vpack.c.bf16 %v1808_v61, %v11279_v4  ;;  %v1183_v30 = vpop.f32.mrb[40].mxu0 }
 0x14b   :  { %v8752_v7 = vpop.eup %8751  ;;  %8771 = vrcp.f32 %v1582_v10  ;;  %v1585_v35 = vadd.f32 1.0, %v8750_v38  ;;  %v11321_v13 = vadd.f32 %v17115_v44, %v1178_v42  ;;  %v1870_v52 = vpack.c.bf16 %v1810_v23, %v11283_v59  ;;  %v1296_v61 = vpop.f32.mrb[40].mxu1  ;;  %v17117_v38 = vld [vmem:[#allocation76_spill] sm:$0xff] }
 0x14c   :  { %v8754_v2 = vpop.eup %8753  ;;  %8773 = vrcp.f32 %v1583_v28  ;;  %v1584_v21 = vadd.f32 1.0, %v8752_v7  ;;  %v11328_v53 = vadd.f32 %v11155_v57, %v1291_v58  ;;  %2123 = vmatprep.mubr.bf16.mxu0 %v1868_v26  ;;  %v1180_v4 = vadd.f32 %v1179_v6, %v10863_v3  ;;  %v1185_v37 = vpop.f32.mrb[41].mxu0  ;;  %v17119_v6 = vld [vmem:[#allocation91_spill] sm:$0xff] }
 0x14d   :  { %v8756_v39 = vpop.eup %8755  ;;  %v11325_v62 = vmul.f32 %v8754_v2, %v17116_v40  ;;  %8775 = vrcp.f32 %v1585_v35  ;;  %2220 = vmatprep.mubr.bf16.mxu1 %v1870_v52  ;;  %v1293_v59 = vadd.f32 %v1292_v63, %v10866_v17  ;;  %2124 = vmatmul.mubr.bf16.vlgmr.msra.gmra.mrb[64].mxu0 %v1867_v56  ;;  %v1184_v23 = vadd.f32 %v1183_v30, %v10857_v18  ;;  %v1298_v42 = vpop.f32.mrb[41].mxu1  ;;  %v17118_v35 = vld [vmem:[#allocation77_spill] sm:$0xff]  ;;  %v17120_v2 = vld [vmem:[#allocation8_spill] sm:$0xff]  ;;  %v17121_v52 = vld [vmem:[#allocation78_spill] sm:$0xff] }
 0x14e   :  { %v8758_v10 = vpop.eup %8757  ;;  %v11332_v28 = vmul.f32 %v8756_v39, %v17117_v38  ;;  %8777 = vrcp.f32 %v1584_v21  ;;  %v1187_v7 = vpop.f32.mrb[42].mxu0  ;;  %v1816_v26 = vadd.f32 %v11164_v47, %v1180_v4  ;;  %2221 = vmatmul.mubr.bf16.vlgmr.msra.gmra.mrb[64].mxu1 %v1869_v5  ;;  %2311 = vmatpush1.bf16.msra.mxu0 %v17120_v2  ;;  %v1297_v21 = vadd.f32 %v1296_v61, %v10860_v34  ;;  %v17122_v39 = vld [vmem:[#allocation95_spill] sm:$0xff]  ;;  %v17138_v2 = vld [vmem:[#allocation105_spill] sm:$0xff] }
 0x14f   :  { %v8760_v57 = vpop.eup %8759  ;;  %v11337_v58 = vmul.f32 %v8758_v10, %v17118_v35  ;;  %8779 = vpow2.f32 %v17119_v6  ;;  %v1300_v44 = vpop.f32.mrb[42].mxu1  ;;  %v1818_v40 = vadd.f32 %v11173_v15, %v1293_v59  ;;  %v17123_v10 = vld [vmem:[#allocation10_spill] sm:$0xff]  ;;  %v11350_v38 = vadd.f32 %v11183_v43, %v1184_v23  ;;  %v17124_v5 = vld [vmem:[#allocation11_spill] sm:$0xff]  ;;  %v17126_v6 = vld [vmem:[#allocation97_spill] sm:$0xff] }
 0x150   :  { %v1189_v63 = vpop.f32.mrb[43].mxu0  ;;  %v8762_v56 = vpop.eup %8761  ;;  %v11344_v30 = vmul.f32 %v8760_v57, %v17121_v52  ;;  %8781 = vpow2.f32 %v17122_v39  ;;  %2424 = vmatpush1.bf16.msra.mxu1 %v17123_v10  ;;  %2312 = vmatprep.subr.bf16.mxu0 %v17124_v5  ;;  %v17125_v61 = vld [vmem:[#allocation79_spill] sm:$0xff]  ;;  %v11358_v57 = vadd.f32 %v11193_v25, %v1297_v21  ;;  %v1186_v52 = vadd.f32 %v1185_v37, %v10863_v3  ;;  %v17127_v15 = vld [vmem:[#allocation12_spill] sm:$0xff]  ;;  %v17129_v23 = vld [vmem:[#allocation98_spill] sm:$0xff] }
 0x151   :  { %v1302_v47 = vpop.f32.mrb[43].mxu1  ;;  %v8764_v4 = vpop.eup %8763  ;;  %v11354_v35 = vmul.f32 %v8762_v56, %v17125_v61  ;;  %8783 = vpow2.f32 %v17126_v6  ;;  %2425 = vmatprep.subr.bf16.mxu1 %v17127_v15  ;;  %v17128_v39 = vld [vmem:[#allocation80_spill] sm:$0xff]  ;;  %v1299_v5 = vadd.f32 %v1298_v42, %v10866_v17  ;;  %v1188_v56 = vadd.f32 %v1187_v7, %v10857_v18  ;;  %v17130_v10 = vld [vmem:[#allocation81_spill] sm:$0xff]  ;;  %v17131_v25 = vld [vmem:[#allocation99_spill] sm:$0xff] }
 0x152   :  { %v8766_v59 = vpop.eup %8765  ;;  %v11363_v43 = vmul.f32 %v8764_v4, %v17128_v39  ;;  %8785 = vpow2.f32 %v17129_v23  ;;  %v11373_v37 = vadd.f32 %v11203_v32, %v1186_v52  ;;  %v1301_v21 = vadd.f32 %v1300_v44, %v10860_v34  ;;  %v17132_v15 = vld [vmem:[#allocation13_spill] sm:$0xff]  ;;  %v17133_v39 = vld [vmem:[#allocation82_spill] sm:$0xff]  ;;  %v17134_v42 = vld [vmem:[#allocation103_spill] sm:$0xff]  ;;  %v1193_v32 = vpop.f32.mrb[44].mxu0 }
 0x153   :  { %v8768_v61 = vpop.eup %8767  ;;  %v11369_v6 = vmul.f32 %v8766_v59, %v17130_v10  ;;  %8787 = vpow2.f32 %v17131_v25  ;;  %2313 = vmatpush1.bf16.msra.mxu0 %v17132_v15  ;;  %v11382_v7 = vadd.f32 %v11213_v24, %v1299_v5  ;;  %v11385_v10 = vadd.f32 %v11223_v41, %v1188_v56  ;;  %v17135_v59 = vld [vmem:[#allocation14_spill] sm:$0xff]  ;;  %v17136_v52 = vld [vmem:[#allocation15_spill] sm:$0xff]  ;;  %v1306_v5 = vpop.f32.mrb[44].mxu1  ;;  %v17139_v41 = vld [vmem:[#allocation16_spill] sm:$0xff] }
 0x154   :  { %v8770_v4 = vpop.eup %8769  ;;  %v11378_v23 = vmul.f32 %v8768_v61, %v17133_v39  ;;  %8789 = vpow2.f32 %v17134_v42  ;;  %2426 = vmatpush1.bf16.msra.mxu1 %v17135_v59  ;;  %2314 = vmatprep.subr.bf16.mxu0 %v17136_v52  ;;  %v17137_v25 = vld [vmem:[#allocation83_spill] sm:$0xff]  ;;  %v11394_v61 = vadd.f32 %v11233_v8, %v1301_v21  ;;  %v1872_v24 = vpack.c.bf16 %v1816_v26, %v11312_v31  ;;  %v1195_v39 = vpop.f32.mrb[45].mxu0  ;;  %v17140_v42 = vld [vmem:[#allocation84_spill] sm:$0xff]  ;;  %v17141_v52 = vld [vmem:[#allocation106_spill] sm:$0xff] }
 0x155   :  { %v8772_v44 = vpop.eup %8771  ;;  %v11390_v15 = vmul.f32 %v8770_v4, %v17137_v25  ;;  %8791 = vpow2.f32 %v17138_v2  ;;  %2427 = vmatprep.subr.bf16.mxu1 %v17139_v41  ;;  %v1874_v4 = vpack.c.bf16 %v1818_v40, %v11315_v12  ;;  %v1190_v25 = vadd.f32 %v1189_v63, %v10863_v3  ;;  %v1308_v2 = vpop.f32.mrb[45].mxu1  ;;  %v17142_v21 = vld [vmem:[#allocation85_spill] sm:$0xff]  ;;  %v17143_v31 = vld [vmem:[#allocation107_spill] sm:$0xff]  ;;  %v17145_v40 = vld [vmem:[#allocation86_spill] sm:$0xff] }
 0x156   :  { %v8774_v56 = vpop.eup %8773  ;;  %v11399_v59 = vmul.f32 %v8772_v44, %v17140_v42  ;;  %8793 = vpow2.f32 %v17141_v52  ;;  %v1197_v9 = vpop.f32.mrb[46].mxu0  ;;  %2131 = vmatprep.mubr.bf16.mxu0 %v1872_v24  ;;  %v1303_v26 = vadd.f32 %v1302_v47, %v10866_v17  ;;  %v1871_v44 = vpack.c.bf16 %v11321_v13, %v11305_v45  ;;  %v17144_v12 = vld [vmem:[#allocation17_spill] sm:$0xff]  ;;  %v17147_v45 = vld [vmem:[#allocation18_spill] sm:$0xff] }
 0x157   :  { %v8776_v8 = vpop.eup %8775  ;;  %v11405_v16 = vmul.f32 %v8774_v56, %v17142_v21  ;;  %8795 = vpow2.f32 %v17143_v31  ;;  %v1310_v42 = vpop.f32.mrb[46].mxu1  ;;  %2315 = vmatpush1.bf16.msra.mxu0 %v17144_v12  ;;  %2228 = vmatprep.mubr.bf16.mxu1 %v1874_v4  ;;  %v1824_v56 = vadd.f32 %v11243_v11, %v1190_v25  ;;  %v1873_v47 = vpack.c.bf16 %v11328_v53, %v11309_v50  ;;  %v17148_v21 = vld [vmem:[#allocation87_spill] sm:$0xff]  ;;  %v17150_v50 = vld [vmem:[#allocation113_spill] sm:$0xff] }
 0x158   :  { %v11411_v52 = vpop.f32.mrb[47].mxu0  ;;  %v8778_v63 = vpop.eup %8777  ;;  %v11415_v41 = vmul.f32 %v8776_v8, %v17145_v40  ;;  %8797 = vpow2.f32 %v17146_v36  ;;  %2428 = vmatpush1.bf16.msra.mxu1 %v17147_v45  ;;  %v1826_v8 = vadd.f32 %v11253_v19, %v1303_v26  ;;  %2132 = vmatmul.mubr.bf16.gmra.mrb[68].mxu0 %v1871_v44  ;;  %v1194_v36 = vadd.f32 %v1193_v32, %v10857_v18  ;;  %v17149_v4 = vld [vmem:[#allocation19_spill] sm:$0xff]  ;;  %v17152_v26 = vld [vmem:[#allocation21_spill] sm:$0xff] }
 0x159   :  { %v11421_v24 = vpop.f32.mrb[47].mxu1  ;;  %v8780_v13 = vpop.eup %8779  ;;  %v11425_v31 = vmul.f32 %v8778_v63, %v17148_v21  ;;  %8799 = vpow2.f32 %v11137_v48  ;;  %2316 = vmatprep.subr.bf16.mxu0 %v17149_v4  ;;  %2229 = vmatmul.mubr.bf16.gmra.mrb[68].mxu1 %v1873_v47  ;;  %v1307_v53 = vadd.f32 %v1306_v5, %v10860_v34  ;;  %v1196_v40 = vadd.f32 %v1195_v39, %v10863_v3  ;;  %v17151_v63 = vld [vmem:[#allocation20_spill] sm:$0xff] }
 0x15a   :  { %v8782_v11 = vpop.eup %8781  ;;  %v1586_v25 = vadd.f32 1.0, %v8780_v13  ;;  %8801 = vpow2.f32 %v17150_v50  ;;  %2429 = vmatprep.subr.bf16.mxu1 %v17151_v63  ;;  %v11437_v19 = vadd.f32 %v11261_v33, %v1194_v36  ;;  %v1309_v32 = vadd.f32 %v1308_v2, %v10866_v17  ;;  %v1203_v13 = vpop.f32.mrb[48].mxu0 }
 0x15b   :  { %v8784_v21 = vpop.eup %8783  ;;  %v1587_v48 = vadd.f32 1.0, %v8782_v11  ;;  %8803 = vpow2.f32 %v11143_v0  ;;  %2317 = vmatpush1.bf16.msra.mxu0 %v17152_v26  ;;  %v11442_v5 = vadd.f32 %v11267_v55, %v1307_v53  ;;  %v11445_v39 = vadd.f32 %v11325_v62, %v1196_v40  ;;  %v17153_v11 = vld [vmem:[#allocation22_spill] sm:$0xff]  ;;  %v17154_v0 = vld [vmem:[#allocation23_spill] sm:$0xff]  ;;  %v1316_v50 = vpop.f32.mrb[48].mxu1  ;;  %v17155_v55 = vld [vmem:[#allocation24_spill] sm:$0xff] }
 0x15c   :  { %v8786_v44 = vpop.eup %8785  ;;  %8805 = vrcp.f32 %v1586_v25  ;;  %v1589_v47 = vadd.f32 1.0, %v8784_v21  ;;  %2430 = vmatpush1.bf16.msra.mxu1 %v17153_v11  ;;  %2318 = vmatprep.subr.bf16.mxu0 %v17154_v0  ;;  %v11450_v2 = vadd.f32 %v11332_v28, %v1309_v32  ;;  %v1198_v25 = vadd.f32 %v1197_v9, %v10857_v18  ;;  %v1205_v21 = vpop.f32.mrb[49].mxu0 }
 0x15d   :  { %v8788_v33 = vpop.eup %8787  ;;  %8807 = vrcp.f32 %v1587_v48  ;;  %v1588_v36 = vadd.f32 1.0, %v8786_v44  ;;  %2431 = vmatprep.subr.bf16.mxu1 %v17155_v55  ;;  %v1311_v40 = vadd.f32 %v1310_v42, %v10860_v34  ;;  %v1876_v11 = vpack.c.bf16 %v1824_v56, %v11373_v37  ;;  %v1318_v0 = vpop.f32.mrb[49].mxu1 }
 0x15e   :  { %v8790_v53 = vpop.eup %8789  ;;  %8809 = vrcp.f32 %v1589_v47  ;;  %v1590_v62 = vadd.f32 1.0, %v8788_v33  ;;  %v11456_v26 = vpop.f32.mrb[50].mxu0  ;;  %v11459_v32 = vadd.f32 %v11337_v58, %v1198_v25  ;;  %v1878_v9 = vpack.c.bf16 %v1826_v8, %v11382_v7  ;;  %v17156_v47 = vld [vmem:[#allocation25_spill] sm:$0xff] }
 0x15f   :  { %v8792_v48 = vpop.eup %8791  ;;  %8811 = vrcp.f32 %v1588_v36  ;;  %v1591_v28 = vadd.f32 1.0, %v8790_v53  ;;  %v11462_v44 = vpop.f32.mrb[50].mxu1  ;;  %2319 = vmatpush1.bf16.msra.mxu0 %v17156_v47  ;;  %v11468_v56 = vadd.f32 %v11344_v30, %v1311_v40  ;;  %2139 = vmatprep.mubr.bf16.mxu0 %v1876_v11  ;;  %v1200_v33 = vadd.f32 %v11411_v52, %v10863_v3  ;;  %v17157_v36 = vld [vmem:[#allocation26_spill] sm:$0xff]  ;;  %v17158_v30 = vld [vmem:[#allocation27_spill] sm:$0xff] }
 0x160   :  { %v11464_v55 = vpop.f32.mrb[51].mxu0  ;;  %v8794_v42 = vpop.eup %8793  ;;  %8813 = vrcp.f32 %v1590_v62  ;;  %v1593_v37 = vadd.f32 1.0, %v8792_v48  ;;  %2432 = vmatpush1.bf16.msra.mxu1 %v17157_v36  ;;  %2236 = vmatprep.mubr.bf16.mxu1 %v1878_v9  ;;  %v1313_v25 = vadd.f32 %v11421_v24, %v10866_v17  ;;  %v1875_v53 = vpack.c.bf16 %v11385_v10, %v11350_v38  ;;  %v17159_v48 = vld [vmem:[#allocation28_spill] sm:$0xff] }
 0x161   :  { %v11472_v58 = vpop.f32.mrb[51].mxu1  ;;  %v8796_v7 = vpop.eup %8795  ;;  %8815 = vrcp.f32 %v1591_v28  ;;  %v1592_v8 = vadd.f32 1.0, %v8794_v42  ;;  %2320 = vmatprep.subr.bf16.mxu0 %v17158_v30  ;;  %v1832_v52 = vadd.f32 %v11354_v35, %v1200_v33  ;;  %v1877_v40 = vpack.c.bf16 %v11394_v61, %v11358_v57  ;;  %2433 = vmatprep.subr.bf16.mxu1 %v17159_v48  ;;  %v17160_v57 = vld [vmem:[#allocation29_spill] sm:$0xff] }
 0x162   :  { %v8798_v11 = vpop.eup %8797  ;;  %8817 = vrcp.f32 %v1593_v37  ;;  %v1594_v62 = vadd.f32 1.0, %v8796_v7  ;;  %v1834_v24 = vadd.f32 %v11363_v43, %v1313_v25  ;;  %2140 = vmatmul.mubr.bf16.gmra.mrb[72].mxu0 %v1875_v53  ;;  %v1204_v38 = vadd.f32 %v1203_v13, %v10857_v18  ;;  %v11488_v33 = vpop.f32.mrb[52].mxu0  ;;  %v17161_v53 = vld [vmem:[#allocation30_spill] sm:$0xff] }
 0x163   :  { %v8800_v28 = vpop.eup %8799  ;;  %8819 = vrcp.f32 %v1592_v8  ;;  %v1595_v9 = vadd.f32 1.0, %v8798_v11  ;;  %2237 = vmatmul.mubr.bf16.gmra.mrb[72].mxu1 %v1877_v40  ;;  %v1317_v37 = vadd.f32 %v1316_v50, %v10860_v34  ;;  %v1206_v35 = vadd.f32 %v1205_v21, %v10863_v3  ;;  %2321 = vmatpush1.bf16.msra.mxu0 %v17160_v57  ;;  %v11495_v8 = vpop.f32.mrb[52].mxu1  ;;  %v17162_v50 = vld [vmem:[#allocation31_spill] sm:$0xff] }
 0x164   :  { %v8802_v10 = vpop.eup %8801  ;;  %8821 = vrcp.f32 %v1594_v62  ;;  %v1597_v42 = vadd.f32 1.0, %v8800_v28  ;;  %v11492_v43 = vadd.f32 %v11369_v6, %v1204_v38  ;;  %v1319_v13 = vadd.f32 %v1318_v0, %v10866_v17  ;;  %v11497_v25 = vpop.f32.mrb[53].mxu0  ;;  %2434 = vmatpush1.bf16.msra.mxu1 %v17161_v53  ;;  %2322 = vmatprep.subr.bf16.mxu0 %v17162_v50  ;;  %v17163_v28 = vld [vmem:[#allocation32_spill] sm:$0xff] }
 0x165   :  { %v8804_v61 = vpop.eup %8803  ;;  %8823 = vrcp.f32 %v1595_v9  ;;  %v1596_v7 = vadd.f32 1.0, %v8802_v10  ;;  %v11502_v62 = vadd.f32 %v11378_v23, %v1317_v37  ;;  %v11505_v40 = vadd.f32 %v11390_v15, %v1206_v35  ;;  %v11507_v6 = vpop.f32.mrb[53].mxu1  ;;  %2435 = vmatprep.subr.bf16.mxu1 %v17163_v28  ;;  %v17164_v38 = vld [vmem:[#allocation88_spill] sm:$0xff] }
 0x166   :  { %v8806_v21 = vpop.eup %8805  ;;  %8825 = vrcp.f32 %v1597_v42  ;;  %v1598_v11 = vadd.f32 1.0, %v8804_v61  ;;  %v11509_v0 = vpop.f32.mrb[54].mxu0  ;;  %v11514_v50 = vadd.f32 %v11399_v59, %v1319_v13  ;;  %v1208_v23 = vadd.f32 %v11456_v26, %v10857_v18  ;;  %v17165_v35 = vld [vmem:[#allocation92_spill] sm:$0xff]  ;;  %v17166_v59 = vld [vmem:[#allocation33_spill] sm:$0xff] }
 0x167   :  { %v8808_v9 = vpop.eup %8807  ;;  %v1778_v10 = vmul.f32 %v8806_v21, %v17164_v38  ;;  %8827 = vrcp.f32 %v1596_v7  ;;  %v11518_v42 = vpop.f32.mrb[54].mxu1  ;;  %v1321_v28 = vadd.f32 %v11462_v44, %v10860_v34  ;;  %v1880_v21 = vpack.c.bf16 %v1832_v52, %v11445_v39  ;;  %2323 = vmatpush1.bf16.msra.mxu0 %v17166_v59  ;;  %v17167_v38 = vld [vmem:[#allocation93_spill] sm:$0xff]  ;;  %v17170_v39 = vld [vmem:[#allocation94_spill] sm:$0xff] }
 0x168   :  { %v11520_v15 = vpop.f32.mrb[55].mxu0  ;;  %v8810_v37 = vpop.eup %8809  ;;  %v1779_v61 = vmul.f32 %v8808_v9, %v17165_v35  ;;  %8829 = vrcp.f32 %v1598_v11  ;;  %v11532_v53 = vadd.f32 %v11405_v16, %v1208_v23  ;;  %v1882_v9 = vpack.c.bf16 %v1834_v24, %v11450_v2  ;;  %v17168_v11 = vld [vmem:[#allocation34_spill] sm:$0xff]  ;;  %v17169_v35 = vld [vmem:[#allocation35_spill] sm:$0xff]  ;;  %v17171_v16 = vld [vmem:[#allocation36_spill] sm:$0xff] }
 0x169   :  { %v11526_v7 = vpop.f32.mrb[55].mxu1  ;;  %v8812_v13 = vpop.eup %8811  ;;  %v1781_v26 = vmul.f32 %v8810_v37, %v17167_v38  ;;  %8831 = vpow2.f32 %v11158_v46  ;;  %2436 = vmatpush1.bf16.msra.mxu1 %v17168_v11  ;;  %2324 = vmatprep.subr.bf16.mxu0 %v17169_v35  ;;  %v11540_v59 = vadd.f32 %v11415_v41, %v1321_v28  ;;  %v1210_v46 = vadd.f32 %v11464_v55, %v10863_v3  ;;  %v17172_v2 = vld [vmem:[#allocation96_spill] sm:$0xff] }
 0x16a   :  { %v8814_v44 = vpop.eup %8813  ;;  %v1780_v52 = vmul.f32 %v8812_v13, %v17170_v39  ;;  %8833 = vpow2.f32 %v11167_v54  ;;  %2147 = vmatprep.mubr.bf16.mxu0 %v1880_v21  ;;  %2437 = vmatprep.subr.bf16.mxu1 %v17171_v16  ;;  %v1323_v37 = vadd.f32 %v11472_v58, %v10866_v17  ;;  %v1879_v54 = vpack.c.bf16 %v11459_v32, %v11437_v19  ;;  %v17173_v28 = vld [vmem:[#allocation100_spill] sm:$0xff]  ;;  %v11556_v38 = vpop.f32.mrb[56].mxu0  ;;  %v17176_v39 = vld [vmem:[#allocation38_spill] sm:$0xff] }
 0x16b   :  { %v8816_v23 = vpop.eup %8815  ;;  %v1782_v24 = vmul.f32 %v8814_v44, %v17172_v2  ;;  %8835 = vpow2.f32 %v11170_v27  ;;  %2244 = vmatprep.mubr.bf16.mxu1 %v1882_v9  ;;  %v1840_v55 = vadd.f32 %v11425_v31, %v1210_v46  ;;  %v1881_v13 = vpack.c.bf16 %v11468_v56, %v11442_v5  ;;  %v17174_v27 = vld [vmem:[#allocation37_spill] sm:$0xff]  ;;  %v11565_v31 = vpop.f32.mrb[57].mxu0  ;;  %v17177_v56 = vld [vmem:[#allocation102_spill] sm:$0xff]  ;;  %v17178_v2 = vld [vmem:[#allocation39_spill] sm:$0xff] }
 0x16c   :  { %v8818_v41 = vpop.eup %8817  ;;  %v1783_v21 = vmul.f32 %v8816_v23, %v17173_v28  ;;  %8837 = vpow2.f32 %v11177_v60  ;;  %2325 = vmatpush1.bf16.msra.mxu0 %v17174_v27  ;;  %v17175_v44 = vld [vmem:[#allocation101_spill] sm:$0xff]  ;;  %v1842_v19 = vadd.f32 %v1778_v10, %v1323_v37  ;;  %v1214_v32 = vadd.f32 %v11488_v33, %v10857_v18  ;;  %v11563_v60 = vpop.f32.mrb[56].mxu1 }
 0x16d   :  { %v8820_v9 = vpop.eup %8819  ;;  %v1785_v58 = vmul.f32 %v8818_v41, %v17175_v44  ;;  %8839 = vpow2.f32 %v11197_v14  ;;  %2148 = vmatmul.mubr.bf16.gmra.mrb[76].mxu0 %v1879_v54  ;;  %2438 = vmatpush1.bf16.msra.mxu1 %v17176_v39  ;;  %v1327_v14 = vadd.f32 %v11495_v8, %v10860_v34  ;;  %v1216_v10 = vadd.f32 %v11497_v25, %v10863_v3  ;;  %v11574_v23 = vpop.f32.mrb[57].mxu1  ;;  %v17179_v54 = vld [vmem:[#allocation104_spill] sm:$0xff] }
 0x16e   :  { %v8822_v5 = vpop.eup %8821  ;;  %v1784_v46 = vmul.f32 %v8820_v9, %v17177_v56  ;;  %8841 = vpow2.f32 %v11207_v20  ;;  %2245 = vmatmul.mubr.bf16.gmra.mrb[76].mxu1 %v1881_v13  ;;  %v11576_v33 = vpop.f32.mrb[58].mxu0  ;;  %2536 = vmatprep.subr.bf16.mxu0 %v17178_v2  ;;  %v11581_v28 = vadd.f32 %v1779_v61, %v1214_v32  ;;  %v1329_v20 = vadd.f32 %v11507_v6, %v10866_v17  ;;  %v17180_v25 = vld [vmem:[#allocation40_spill] sm:$0xff]  ;;  %v17182_v32 = vld [vmem:[#allocation109_spill] sm:$0xff] }
 0x16f   :  { %v8824_v37 = vpop.eup %8823  ;;  %v1786_v41 = vmul.f32 %v8822_v5, %v17179_v54  ;;  %8843 = vpow2.f32 %v11210_v1  ;;  %v11585_v8 = vpop.f32.mrb[58].mxu1  ;;  %2649 = vmatprep.subr.bf16.mxu1 %v17180_v25  ;;  %v17181_v44 = vld [vmem:[#allocation108_spill] sm:$0xff]  ;;  %v11592_v2 = vadd.f32 %v1781_v26, %v1327_v14  ;;  %v11594_v5 = vadd.f32 %v1780_v52, %v1216_v10 }
 0x170   :  { %v11587_v13 = vpop.f32.mrb[59].mxu0  ;;  %v8826_v9 = vpop.eup %8825  ;;  %v1787_v56 = vmul.f32 %v8824_v37, %v17181_v44  ;;  %8845 = vpow2.f32 %v11217_v29  ;;  %v11600_v54 = vadd.f32 %v1782_v24, %v1329_v20  ;;  %v1218_v25 = vadd.f32 %v11509_v0, %v10857_v18  ;;  %v17183_v37 = vld [vmem:[#allocation110_spill] sm:$0xff]  ;;  %v17184_v14 = vld [vmem:[#allocation112_spill] sm:$0xff] }
 0x171   :  { %v11596_v1 = vpop.f32.mrb[59].mxu1  ;;  %v8828_v61 = vpop.eup %8827  ;;  %v1789_v6 = vmul.f32 %v8826_v9, %v17182_v32  ;;  %8847 = vpow2.f32 %v11237_v51  ;;  %v1331_v29 = vadd.f32 %v11518_v42, %v10860_v34  ;;  %v1884_v26 = vpack.c.bf16 %v1840_v55, %v11505_v40  ;;  %v17185_v9 = vld [vmem:[#allocation126_spill] sm:$0xff] }
 0x172   :  { %v8830_v39 = vpop.eup %8829  ;;  %v1788_v44 = vmul.f32 %v8828_v61, %v17183_v37  ;;  %8849 = vpow2.f32 %v11247_v22  ;;  %v11611_v51 = vadd.f32 %v1783_v21, %v1218_v25  ;;  %v1886_v24 = vpack.c.bf16 %v1842_v19, %v11514_v50  ;;  %v11619_v40 = vpop.f32.mrb[60].mxu0 }
 0x173   :  { %v8832_v52 = vpop.eup %8831  ;;  %v1790_v10 = vmul.f32 %v8830_v39, %v17184_v14  ;;  %8851 = vpow2.f32 %v11250_v49  ;;  %v11615_v61 = vadd.f32 %v1785_v58, %v1331_v29  ;;  %2155 = vmatprep.mubr.bf16.mxu0 %v1884_v26  ;;  %v1220_v22 = vadd.f32 %v11520_v15, %v10863_v3  ;;  %v11627_v58 = vpop.f32.mrb[60].mxu1 }
 0x174   :  { %v8834_v0 = vpop.eup %8833  ;;  %v1599_v20 = vadd.f32 1.0, %v8832_v52  ;;  %8853 = vpow2.f32 %v17185_v9  ;;  %2252 = vmatprep.mubr.bf16.mxu1 %v1886_v24  ;;  %v1333_v49 = vadd.f32 %v11526_v7, %v10866_v17  ;;  %v1883_v50 = vpack.c.bf16 %v11532_v53, %v11492_v43  ;;  %v11629_v19 = vpop.f32.mrb[61].mxu0 }
 0x175   :  { %v8836_v42 = vpop.eup %8835  ;;  %v1601_v55 = vadd.f32 1.0, %v8834_v0  ;;  %v1885_v21 = vpack.c.bf16 %v11540_v59, %v11502_v62  ;;  %v1848_v25 = vadd.f32 %v1784_v46, %v1220_v22  ;;  %v1224_v32 = vadd.f32 %v11556_v38, %v10857_v18  ;;  %v11633_v37 = vpop.f32.mrb[61].mxu1 }
 0x176   :  { %v8838_v39 = vpop.eup %8837  ;;  %8855 = vrcp.f32 %v1599_v20  ;;  %v1600_v15 = vadd.f32 1.0, %v8836_v42  ;;  %v11635_v7 = vpop.f32.mrb[62].mxu0  ;;  %v1850_v53 = vadd.f32 %v1786_v41, %v1333_v49  ;;  %2156 = vmatmul.mubr.bf16.gmra.mrb[80].mxu0 %v1883_v50  ;;  %v1337_v62 = vadd.f32 %v11563_v60, %v10860_v34 }
 0x177   :  { %v8840_v29 = vpop.eup %8839  ;;  %8857 = vrcp.f32 %v1601_v55  ;;  %v1602_v43 = vadd.f32 1.0, %v8838_v39  ;;  %2253 = vmatmul.mubr.bf16.gmra.mrb[80].mxu1 %v1885_v21  ;;  %v11639_v59 = vpop.f32.mrb[62].mxu1  ;;  %v11643_v52 = vadd.f32 %v1787_v56, %v1224_v32  ;;  %v1226_v14 = vadd.f32 %v11565_v31, %v10863_v3 }
 0x178   :  { %v11641_v26 = vpop.f32.mrb[63].mxu0  ;;  %v8842_v46 = vpop.eup %8841  ;;  %8859 = vrcp.f32 %v1600_v15  ;;  %v1603_v38 = vadd.f32 1.0, %v8840_v29  ;;  %v11649_v20 = vadd.f32 %v1789_v6, %v1337_v62  ;;  %v1339_v60 = vadd.f32 %v11574_v23, %v10866_v17 }
 0x179   :  { %v11647_v24 = vpop.f32.mrb[63].mxu1  ;;  %v8844_v41 = vpop.eup %8843  ;;  %8861 = vrcp.f32 %v1602_v43  ;;  %v1605_v0 = vadd.f32 1.0, %v8842_v46  ;;  %v11653_v42 = vadd.f32 %v1788_v44, %v1226_v14  ;;  %v1888_v21 = vpack.c.bf16 %v1848_v25, %v11594_v5 }
 0x17a   :  { %v8846_v9 = vpop.eup %8845  ;;  %8863 = vrcp.f32 %v1603_v38  ;;  %v1604_v22 = vadd.f32 1.0, %v8844_v41  ;;  %v11655_v49 = vadd.f32 %v1790_v10, %v1339_v60  ;;  %v1890_v6 = vpack.c.bf16 %v1850_v53, %v11600_v54  ;;  %v17186_v53 = vld [vmem:[#allocation114_spill] sm:$0xff]  ;;  %v17188_v38 = vld [vmem:[#allocation116_spill] sm:$0xff]  ;;  %v17189_v60 = vld [vmem:[#allocation117_spill] sm:$0xff] }
 0x17b   :  { %v8848_v56 = vpop.eup %8847  ;;  %8865 = vrcp.f32 %v1605_v0  ;;  %v1606_v55 = vadd.f32 1.0, %v8846_v9  ;;  %2163 = vmatprep.mubr.bf16.mxu0 %v1888_v21  ;;  %v1887_v44 = vpack.c.bf16 %v11611_v51, %v11581_v28  ;;  %v1889_v10 = vpack.c.bf16 %v11615_v61, %v11592_v2  ;;  %v17187_v51 = vld [vmem:[#allocation115_spill] sm:$0xff] }
 0x17c   :  { %v8850_v31 = vpop.eup %8849  ;;  %8867 = vrcp.f32 %v1604_v22  ;;  %v1607_v50 = vadd.f32 1.0, %v8848_v56  ;;  %2260 = vmatprep.mubr.bf16.mxu1 %v1890_v6  ;;  %v1228_v5 = vadd.f32 %v11576_v33, %v10857_v18  ;;  %v1341_v25 = vadd.f32 %v11585_v8, %v10860_v34 }
 0x17d   :  { %v8852_v39 = vpop.eup %8851  ;;  %8869 = vrcp.f32 %v1606_v55  ;;  %v1609_v23 = vadd.f32 1.0, %v8850_v31  ;;  %v1230_v28 = vadd.f32 %v11587_v13, %v10863_v3  ;;  %v1343_v33 = vadd.f32 %v11596_v1, %v10866_v17  ;;  %v17190_v55 = vld [vmem:[#allocation118_spill] sm:$0xff] }
 0x17e   :  { %v8854_v15 = vpop.eup %8853  ;;  %8871 = vrcp.f32 %v1607_v50  ;;  %v1608_v32 = vadd.f32 1.0, %v8852_v39  ;;  %2164 = vmatmul.mubr.bf16.gmra.mrb[84].mxu0 %v1887_v44  ;;  %v1234_v8 = vadd.f32 %v11619_v40, %v10857_v18  ;;  %v1347_v13 = vadd.f32 %v11627_v58, %v10860_v34  ;;  %v17191_v39 = vld [vmem:[#allocation119_spill] sm:$0xff]  ;;  %v17192_v58 = vld [vmem:[#allocation120_spill] sm:$0xff] }
 0x17f   :  { %8873 = vrcp.f32 %v1609_v23  ;;  %v1610_v29 = vadd.f32 1.0, %v8854_v15  ;;  %2261 = vmatmul.mubr.bf16.gmra.mrb[84].mxu1 %v1889_v10  ;;  %v1236_v1 = vadd.f32 %v11629_v19, %v10863_v3  ;;  %v1349_v15 = vadd.f32 %v11633_v37, %v10866_v17 }
 0x180   :  { %v8856_v54 = vpop.eup %8855  ;;  %8875 = vrcp.f32 %v1608_v32 }
 0x181   :  { %v8858_v43 = vpop.eup %8857  ;;  %v1791_v62 = vmul.f32 %v8856_v54, %v17186_v53  ;;  %8877 = vrcp.f32 %v1610_v29  ;;  %v1351_v53 = vadd.f32 %v11639_v59, %v10860_v34 }
 0x182   :  { %v8860_v2 = vpop.eup %8859  ;;  %v1793_v61 = vmul.f32 %v8858_v43, %v17187_v51  ;;  %v1240_v51 = vadd.f32 %v11641_v26, %v10863_v3 }
 0x183   :  { %v8862_v46 = vpop.eup %8861  ;;  %v1792_v14 = vmul.f32 %v8860_v2, %v17188_v38  ;;  %v1855_v41 = vadd.f32 %v1791_v62, %v1228_v5  ;;  %v1238_v5 = vadd.f32 %v11635_v7, %v10857_v18  ;;  %v17196_v38 = vld [vmem:[#allocation124_spill] sm:$0xff] }
 0x184   :  { %v8864_v0 = vpop.eup %8863  ;;  %v1794_v9 = vmul.f32 %v8862_v46, %v17189_v60  ;;  %v1857_v22 = vadd.f32 %v1793_v61, %v1341_v25  ;;  %v17195_v61 = vld [vmem:[#allocation123_spill] sm:$0xff]  ;;  %v1353_v46 = vadd.f32 %v11647_v24, %v10866_v17 }
 0x185   :  { %v8866_v56 = vpop.eup %8865  ;;  %v1795_v31 = vmul.f32 %v8864_v0, %v17190_v55  ;;  %v1856_v50 = vadd.f32 %v1792_v14, %v1230_v28  ;;  %v1891_v21 = vpack.c.bf16 %v1855_v41, %v11643_v52  ;;  %v17193_v52 = vld [vmem:[#allocation121_spill] sm:$0xff]  ;;  %v7915_v41 = vld [vmem:[%s16641_s1 + $0x40] sm:$0xff]  }
 0x186   :  { %v8868_v6 = vpop.eup %8867  ;;  %v1797_v23 = vmul.f32 %v8866_v56, %v17191_v39  ;;  %v1858_v40 = vadd.f32 %v1794_v9, %v1343_v33  ;;  %v1893_v32 = vpack.c.bf16 %v1857_v22, %v11649_v20  ;;  %v17194_v20 = vld [vmem:[#allocation122_spill] sm:$0xff]  ;;  %v7782_v56 = vunpack.c.l.bf16 %v7915_v41 }
 0x187   :  { %v8870_v44 = vpop.eup %8869  ;;  %v1796_v10 = vmul.f32 %v8868_v6, %v17192_v58  ;;  %v1859_v29 = vadd.f32 %v1795_v31, %v1234_v8  ;;  %v1892_v19 = vpack.c.bf16 %v1856_v50, %v11653_v42  ;;  %v17197_v8 = vld [vmem:[#allocation125_spill] sm:$0xff]  ;;  %v7783_v55 = vunpack.c.h.bf16 %v7915_v41  ;;  %v9903_v50 = vld [vmem:[%s16640_s0] sm:$0xff] }
 0x188   :  { %v8872_v54 = vpop.eup %8871  ;;  %v1798_v25 = vmul.f32 %v8870_v44, %v17193_v52  ;;  %v1861_v43 = vadd.f32 %v1797_v23, %v1347_v13  ;;  %v1894_v37 = vpack.c.bf16 %v1858_v40, %v11655_v49  ;;  %v17198_v39 = vmov 0   ;;  %v7916_v23 = vld [vmem:[%s16641_s1 + $0x48] sm:$0xff]   ;;  %v9905_v44 = vld [vmem:[%s16640_s0 + $0x10] sm:$0xff]  ;;  %v17201_v52 = vld [vmem:[#allocation43_spill] sm:$0xff] }
 0x189   :  { %v8874_v62 = vpop.eup %8873  ;;  %v1799_v28 = vmul.f32 %v8872_v54, %v17194_v20  ;;  %v1860_v2 = vadd.f32 %v1796_v10, %v1236_v1  ;;  %2171 = vmatprep.mubr.bf16.mxu0 %v1892_v19  ;;  %v158_v1 = vmul.f32 %v9903_v50, %v7782_v56  ;;  %v9906_v10 = vld [vmem:[%s16640_s0 + $0x18] sm:$0xff]  ;;  %v7917_v19 = vld [vmem:[%s16641_s1 + $0x50] sm:$0xff]  }
 0x18a   :  { %v8876_v7 = vpop.eup %8875  ;;  %v1801_v42 = vmul.f32 %v8874_v62, %v17195_v61  ;;  %v1862_v33 = vadd.f32 %v1798_v25, %v1349_v15  ;;  %2268 = vmatprep.mubr.bf16.mxu1 %v1894_v37  ;;  %2172 = vmatmul.mubr.bf16.gmra.mrb[88].mxu0 %v1891_v21  ;;  %v9904_v21 = vld [vmem:[%s16640_s0 + $0x8] sm:$0xff]  ;;  %v7786_v15 = vunpack.c.l.bf16 %v7916_v23  ;;  %v17200_v54 = vld [vmem:[#allocation42_spill] sm:$0xff]  ;;  %v7791_v37 = vunpack.c.h.bf16 %v7917_v19  ;;  %v17203_v62 = vld [vmem:[#allocation45_spill] sm:$0xff] }
 0x18b   :  { %v8878_v59 = vpop.eup %8877  ;;  %v1800_v49 = vmul.f32 %v8876_v7, %v17196_v38  ;;  %v1863_v14 = vadd.f32 %v1799_v28, %v1238_v5  ;;  %2269 = vmatmul.mubr.bf16.gmra.mrb[88].mxu1 %v1893_v32  ;;  %v159_v6 = vmul.f32 %v9904_v21, %v7783_v55  ;;  %v7787_v32 = vunpack.c.h.bf16 %v7916_v23  ;;  %v17199_v5 = vld [vmem:[#allocation41_spill] sm:$0xff]  ;;  %v17204_v20 = vld [vmem:[#allocation46_spill] sm:$0xff]  ;;  %v17205_v28 = vld [vmem:[#allocation47_spill] sm:$0xff] }
 0x18c   :  { %v1802_v26 = vmul.f32 %v8878_v59, %v17197_v8  ;;  %v1865_v0 = vadd.f32 %v1801_v42, %v1351_v53  ;;  %v160_v58 = vmul.f32 %v9905_v44, %v7786_v15  ;;  %v7790_v53 = vunpack.c.l.bf16 %v7917_v19  ;;  %v9908_v61 = vld [vmem:[%s16640_s0 + $0x28] sm:$0xff]  ;;  %v17208_v59 = vld [vmem:[#allocation50_spill] sm:$0xff]  ;;  %v17209_v38 = vld [vmem:[#allocation51_spill] sm:$0xff] }
 0x18d   :  { %v1864_v60 = vadd.f32 %v1800_v49, %v1240_v51  ;;  %v1895_v9 = vpack.c.bf16 %v1863_v14, %v1859_v29  ;;  %v11717_v40 = vpack.c.bf16 %v159_v6, %v158_v1  ;;  %v161_v29 = vmul.f32 %v9906_v10, %v7787_v32  ;;  %v9907_v51 = vld [vmem:[%s16640_s0 + $0x20] sm:$0xff]  ;;  %v17210_v8 = vld [vmem:[#allocation52_spill] sm:$0xff]  ;;  %v17216_v50 = vld [vmem:[#allocation58_spill] sm:$0xff] }
 0x18e   :  { %v1866_v22 = vadd.f32 %v1802_v26, %v1353_v46  ;;  %v1897_v13 = vpack.c.bf16 %v1865_v0, %v1861_v43  ;;  %v17202_v43 = vld [vmem:[#allocation44_spill] sm:$0xff]  ;;  %v162_v7 = vmul.f32 %v9907_v51, %v7790_v53  ;;  %v163_v42 = vmul.f32 %v9908_v61, %v7791_v37  ;;  %v17207_v46 = vld [vmem:[#allocation49_spill] sm:$0xff]  ;;  %v17212_v0 = vld [vmem:[#allocation54_spill] sm:$0xff] }
 0x18f   :  { %v1896_v24 = vpack.c.bf16 %v1864_v60, %v1860_v2  ;;  %v11735_v25 = vpack.c.bf16 %v161_v29, %v160_v58  ;;  %v17206_v2 = vld [vmem:[#allocation48_spill] sm:$0xff]  ;;  %v17211_v26 = vld [vmem:[#allocation53_spill] sm:$0xff]  ;;  %v17213_v60 = vld [vmem:[#allocation55_spill] sm:$0xff] }
 0x190   :  { %v1898_v31 = vpack.c.bf16 %v1866_v22, %v1862_v33  ;;  %v7918_v33 = vld [vmem:[%s16641_s1 + $0x58] sm:$0xff]   ;;  %v11758_v49 = vpack.c.bf16 %v163_v42, %v162_v7  ;;  %v17214_v55 = vld [vmem:[#allocation56_spill] sm:$0xff]  ;;  %v17217_v1 = vld [vmem:[#allocation59_spill] sm:$0xff] }
 0x191   :  { %2179 = vmatprep.mubr.bf16.mxu0 %v1896_v24  ;;  %v7794_v14 = vunpack.c.l.bf16 %v7918_v33  ;;  %v7795_v41 = vunpack.c.h.bf16 %v7918_v33  ;;  %v7919_v24 = vld [vmem:[%s16641_s1 + $0x60] sm:$0xff]   ;;  %v17218_v15 = vld [vmem:[#allocation60_spill] sm:$0xff]  ;;  %v17219_v32 = vld [vmem:[#allocation61_spill] sm:$0xff] }
 0x192   :  { %2276 = vmatprep.mubr.bf16.mxu1 %v1898_v31  ;;  %2180 = vmatmul.mubr.bf16.gmra.mrb[92].mxu0 %v1895_v9  ;;  %v9909_v9 = vld [vmem:[%s16640_s0 + $0x30] sm:$0xff]  ;;  %v7798_v6 = vunpack.c.l.bf16 %v7919_v24  ;;  %v7799_v23 = vunpack.c.h.bf16 %v7919_v24  ;;  %v17220_v44 = vld [vmem:[#allocation62_spill] sm:$0xff]  ;;  %v17221_v58 = vld [vmem:[#allocation63_spill] sm:$0xff] }
 0x193   :  { %2277 = vmatmul.mubr.bf16.gmra.mrb[92].mxu1 %v1897_v13  ;;  %2342 = vmatprep.mubr.bf16.mxu0 %v17198_v39  ;;  %v164_v22 = vmul.f32 %v9909_v9, %v7794_v14  ;;  %v9910_v13 = vld [vmem:[%s16640_s0 + $0x38] sm:$0xff]  ;;  %v17215_v31 = vld [vmem:[#allocation57_spill] sm:$0xff]  ;;  %v9911_v10 = vld [vmem:[%s16640_s0 + $0x40] sm:$0xff] }
 0x194   :  { %2455 = vmatprep.mubr.bf16.mxu1 %v17198_v39  ;;  %v165_v56 = vmul.f32 %v9910_v13, %v7795_v41  ;;  %v166_v29 = vmul.f32 %v9911_v10, %v7798_v6  ;;  %v9912_v19 = vld [vmem:[%s16640_s0 + $0x48] sm:$0xff]  ;;  %v17223_v7 = vld [vmem:[#allocation65_spill] sm:$0xff]  ;;  %v17224_v61 = vld [vmem:[#allocation66_spill] sm:$0xff] }
 0x195   :  { %v167_v53 = vmul.f32 %v9912_v19, %v7799_v23  ;;  %v17222_v37 = vld [vmem:[#allocation64_spill] sm:$0xff]  ;;  %v17225_v42 = vld [vmem:[#allocation67_spill] sm:$0xff]  ;;  %v17228_v13 = vld [vmem:[#allocation70_spill] sm:$0xff] }
 0x196   :  { %v11781_v21 = vpack.c.bf16 %v165_v56, %v164_v22  ;;  %v7920_v51 = vld [vmem:[%s16641_s1 + $0x68] sm:$0xff]   ;;  %v17227_v22 = vld [vmem:[#allocation69_spill] sm:$0xff]  ;;  %v9913_v56 = vld [vmem:[%s16644_s4 + $0x40] sm:$0xff]  }
 0x197   :  { %v11804_v33 = vpack.c.bf16 %v167_v53, %v166_v29  ;;  %v7802_v14 = vunpack.c.l.bf16 %v7920_v51  ;;  %v7803_v41 = vunpack.c.h.bf16 %v7920_v51  ;;  %v17226_v9 = vld [vmem:[#allocation68_spill] sm:$0xff]  ;;  %v9914_v24 = vld [vmem:[%s16640_s0 + $0x50] sm:$0xff]  ;;  %v9915_v23 = vld [vmem:[%s16640_s0 + $0x58] sm:$0xff] }
 0x198   :  { %v9916_v29 = vld [vmem:[%s16644_s4 + $0xc0] sm:$0xff]   ;;  %v7921_v19 = vld [vmem:[%s16641_s1 + $0x70] sm:$0xff]  }
 0x199   :  { %v168_v6 = vmul.f32 %v9914_v24, %v7802_v14  ;;  %v169_v10 = vmul.f32 %v9915_v23, %v7803_v41  ;;  %v7806_v51 = vunpack.c.l.bf16 %v7921_v19  ;;  %v7807_v14 = vunpack.c.h.bf16 %v7921_v19  ;;  %v9917_v41 = vld [vmem:[%s16640_s0 + $0x60] sm:$0xff]  ;;  %v9918_v24 = vld [vmem:[%s16640_s0 + $0x68] sm:$0xff] }
 0x19a   :  { %2343 = vmatmul.mubr.bf16.vlgmr.msra.gmra.mrb[96].mxu0 %v11717_v40 }
 0x19b   :  { %2456 = vmatmul.mubr.bf16.vlgmr.msra.gmra.mrb[96].mxu1 %v11717_v40  ;;  %2537 = vmatpush1.bf16.msra.mxu0 %v17199_v5  ;;  %v11828_v53 = vpack.c.bf16 %v169_v10, %v168_v6  ;;  %v171_v23 = vmul.f32 %v9918_v24, %v7807_v14  ;;  %v7922_v6 = vld [vmem:[%s16641_s1 + $0x78] sm:$0xff]  }
 0x19c   :  { %2650 = vmatpush1.bf16.msra.mxu1 %v17200_v54  ;;  %2352 = vmatprep.mubr.bf16.mxu0 %v17198_v39  ;;  %v7811_v19 = vunpack.c.h.bf16 %v7922_v6 }
 0x19d   :  { %2465 = vmatprep.mubr.bf16.mxu1 %v17198_v39  ;;  %2538 = vmatprep.subr.bf16.mxu0 %v17201_v52 }
 0x19e   :  { %2651 = vmatprep.subr.bf16.mxu1 %v17202_v43 }
 0x19f   :  { %2539 = vmatpush1.bf16.msra.mxu0 %v17203_v62 }
 0x1a0   :  { %2652 = vmatpush1.bf16.msra.mxu1 %v17204_v20  ;;  %2540 = vmatprep.subr.bf16.mxu0 %v17205_v28 }
 0x1a1   :  { %2653 = vmatprep.subr.bf16.mxu1 %v17206_v2 }
 0x1a2   :  { %2353 = vmatmul.mubr.bf16.gmra.mrb[100].mxu0 %v11735_v25 }
 0x1a3   :  { %2466 = vmatmul.mubr.bf16.gmra.mrb[100].mxu1 %v11735_v25  ;;  %2362 = vmatprep.mubr.bf16.mxu0 %v17198_v39 }
 0x1a4   :  { %2475 = vmatprep.mubr.bf16.mxu1 %v17198_v39  ;;  %2541 = vmatpush1.bf16.msra.mxu0 %v17207_v46 }
 0x1a5   :  { %2654 = vmatpush1.bf16.msra.mxu1 %v17208_v59  ;;  %2542 = vmatprep.subr.bf16.mxu0 %v17209_v38 }
 0x1a6   :  { %2655 = vmatprep.subr.bf16.mxu1 %v17210_v8 }
 0x1a8   :  { %2543 = vmatpush1.bf16.msra.mxu0 %v17211_v26 }
 0x1a9   :  { %2656 = vmatpush1.bf16.msra.mxu1 %v17212_v0  ;;  %2544 = vmatprep.subr.bf16.mxu0 %v17213_v60 }
 0x1aa   :  { %2363 = vmatmul.mubr.bf16.gmra.mrb[104].mxu0 %v11758_v49  ;;  %2657 = vmatprep.subr.bf16.mxu1 %v17214_v55 }
 0x1ab   :  { %2476 = vmatmul.mubr.bf16.gmra.mrb[104].mxu1 %v11758_v49  ;;  %2372 = vmatprep.mubr.bf16.mxu0 %v17198_v39 }
 0x1ac   :  { %2485 = vmatprep.mubr.bf16.mxu1 %v17198_v39  ;;  %2545 = vmatpush1.bf16.msra.mxu0 %v17215_v31 }
 0x1ad   :  { %2658 = vmatpush1.bf16.msra.mxu1 %v17216_v50  ;;  %2546 = vmatprep.subr.bf16.mxu0 %v17217_v1 }
 0x1ae   :  { %2659 = vmatprep.subr.bf16.mxu1 %v17218_v15 }
 0x1b0   :  { %2547 = vmatpush1.bf16.msra.mxu0 %v17219_v32 }
 0x1b1   :  { %2660 = vmatpush1.bf16.msra.mxu1 %v17220_v44  ;;  %2548 = vmatprep.subr.bf16.mxu0 %v17221_v58 }
 0x1b2   :  { %2373 = vmatmul.mubr.bf16.gmra.mrb[108].mxu0 %v11781_v21  ;;  %2661 = vmatprep.subr.bf16.mxu1 %v17222_v37 }
 0x1b3   :  { %2486 = vmatmul.mubr.bf16.gmra.mrb[108].mxu1 %v11781_v21  ;;  %2382 = vmatprep.mubr.bf16.mxu0 %v17198_v39 }
 0x1b4   :  { %2495 = vmatprep.mubr.bf16.mxu1 %v17198_v39  ;;  %2549 = vmatpush1.bf16.msra.mxu0 %v17223_v7 }
 0x1b5   :  { %2662 = vmatpush1.bf16.msra.mxu1 %v17224_v61  ;;  %2550 = vmatprep.subr.bf16.mxu0 %v17225_v42 }
 0x1b6   :  { %2663 = vmatprep.subr.bf16.mxu1 %v17226_v9 }
 0x1b8   :  { %2551 = vmatpush1.bf16.msra.mxu0 %v17227_v22 }
 0x1b9   :  { %2664 = vmatpush1.bf16.msra.mxu1 %v17228_v13  ;;  %8075 = vmatprep.subr.bf16.mxu0 %v9913_v56  ;;  %v170_v56 = vmul.f32 %v9917_v41, %v7806_v51  ;;  %v9919_v51 = vld [vmem:[%s16640_s0 + $0x70] sm:$0xff]  ;;  %v9920_v41 = vld [vmem:[%s16640_s0 + $0x78] sm:$0xff] }
 0x1ba   :  { %2383 = vmatmul.mubr.bf16.gmra.mrb[112].mxu0 %v11804_v33  ;;  %8139 = vmatprep.subr.bf16.mxu1 %v9916_v29  ;;  %v7810_v29 = vunpack.c.l.bf16 %v7922_v6  ;;  %v173_v24 = vmul.f32 %v9920_v41, %v7811_v19  ;;  %v9922_v6 = vld [vmem:[%s16644_s4 + $0x80] sm:$0xff]   ;;  %v9925_v19 = vld [vmem:[%s16644_s4 + $0x8] sm:$0xff]   ;;  %v9928_v41 = vld [vmem:[%s16644_s4 + $0xd0] sm:$0xff]  }
 0x1bb   :  { %2496 = vmatmul.mubr.bf16.gmra.mrb[112].mxu1 %v11804_v33  ;;  %2392 = vmatprep.mubr.bf16.mxu0 %v17198_v39  ;;  %v11843_v10 = vpack.c.bf16 %v171_v23, %v170_v56  ;;  %v9921_v23 = vld [vmem:[%s16644_s4] sm:$0xff]  }
 0x1bc   :  { %2505 = vmatprep.mubr.bf16.mxu1 %v17198_v39  ;;  %v172_v14 = vmul.f32 %v9919_v51, %v7810_v29  ;;  %v9923_v29 = vld [vmem:[%s16644_s4 + $0x48] sm:$0xff]  }
 0x1bd   :  { %v9926_v51 = vld [vmem:[%s16644_s4 + $0x88] sm:$0xff]  }
 0x1be   :  { %v11855_v56 = vpack.c.bf16 %v173_v24, %v172_v14  ;;  %v9927_v14 = vld [vmem:[%s16644_s4 + $0x50] sm:$0xff]  }
 0x1bf   :  { %v9929_v24 = vld [vmem:[%s16644_s4 + $0x10] sm:$0xff]  }
 0x1c2   :  { %2393 = vmatmul.mubr.bf16.gmra.mrb[116].mxu0 %v11828_v53 }
 0x1c3   :  { %2506 = vmatmul.mubr.bf16.gmra.mrb[116].mxu1 %v11828_v53  ;;  %2402 = vmatprep.mubr.bf16.mxu0 %v17198_v39 }
 0x1c4   :  { %2515 = vmatprep.mubr.bf16.mxu1 %v17198_v39 }
 0x1ca   :  { %2403 = vmatmul.mubr.bf16.gmra.mrb[120].mxu0 %v11843_v10 }
 0x1cb   :  { %2516 = vmatmul.mubr.bf16.gmra.mrb[120].mxu1 %v11843_v10  ;;  %2412 = vmatprep.mubr.bf16.mxu0 %v17198_v39 }
 0x1cc   :  { %2525 = vmatprep.mubr.bf16.mxu1 %v17198_v39 }
 0x1d2   :  { %2413 = vmatmul.mubr.bf16.gmra.mrb[124].mxu0 %v11855_v56 }
 0x1d3   :  { %2526 = vmatmul.mubr.bf16.gmra.mrb[124].mxu1 %v11855_v56  ;;  %2568 = vmatprep.mubr.bf16.mxu0 %v17198_v39 }
 0x1d4   :  { %2681 = vmatprep.mubr.bf16.mxu1 %v17198_v39 }
 0x1da   :  { %2569 = vmatmul.mubr.bf16.vlgmr.msra.gmra.mrb[128].mxu0 %v11717_v40 }
 0x1db   :  { %2682 = vmatmul.mubr.bf16.vlgmr.msra.gmra.mrb[128].mxu1 %v11717_v40  ;;  %2578 = vmatprep.mubr.bf16.mxu0 %v17198_v39  ;;  %v9924_v40 = vld [vmem:[%s16644_s4 + $0xc8] sm:$0xff]  }
 0x1dc   :  { %2691 = vmatprep.mubr.bf16.mxu1 %v17198_v39  ;;  %8076 = vmatpush3.bf16.msra.mxu0 %v9921_v23  ;;  %v9930_v23 = vld [vmem:[%s16644_s4 + $0x90] sm:$0xff]  }
 0x1dd   :  { %8140 = vmatpush3.bf16.msra.mxu1 %v9922_v6  ;;  %8077 = vmatprep.subr.bf16.mxu0 %v9923_v29  ;;  %v9931_v6 = vld [vmem:[%s16644_s4 + $0x58] sm:$0xff]  }
 0x1de   :  { %8141 = vmatprep.subr.bf16.mxu1 %v9924_v40  ;;  %v9933_v29 = vld [vmem:[%s16644_s4 + $0x18] sm:$0xff]  }
 0x1df   :  { %v9934_v40 = vld [vmem:[%s16644_s4 + $0x98] sm:$0xff]  }
 0x1e0   :  { %8078 = vmatpush3.bf16.msra.mxu0 %v9925_v19  ;;  %v9935_v19 = vld [vmem:[%s16644_s4 + $0x60] sm:$0xff]  }
 0x1e1   :  { %8142 = vmatpush3.bf16.msra.mxu1 %v9926_v51  ;;  %8079 = vmatprep.subr.bf16.mxu0 %v9927_v14  ;;  %v9936_v51 = vld [vmem:[%s16644_s4 + $0xe0] sm:$0xff]  }
 0x1e2   :  { %2579 = vmatmul.mubr.bf16.gmra.mrb[132].mxu0 %v11735_v25  ;;  %8143 = vmatprep.subr.bf16.mxu1 %v9928_v41  ;;  %v9937_v14 = vld [vmem:[%s16644_s4 + $0x20] sm:$0xff]  }
 0x1e3   :  { %2692 = vmatmul.mubr.bf16.gmra.mrb[132].mxu1 %v11735_v25  ;;  %2588 = vmatprep.mubr.bf16.mxu0 %v17198_v39  ;;  %v9932_v25 = vld [vmem:[%s16644_s4 + $0xd8] sm:$0xff]   ;;  %v9938_v41 = vld [vmem:[%s16644_s4 + $0xa0] sm:$0xff]  }
 0x1e4   :  { %2701 = vmatprep.mubr.bf16.mxu1 %v17198_v39  ;;  %8080 = vmatpush3.bf16.msra.mxu0 %v9929_v24  ;;  %v9939_v24 = vld [vmem:[%s16644_s4 + $0x68] sm:$0xff]  }
 0x1e5   :  { %8144 = vmatpush3.bf16.msra.mxu1 %v9930_v23  ;;  %8081 = vmatprep.subr.bf16.mxu0 %v9931_v6  ;;  %v9941_v23 = vld [vmem:[%s16644_s4 + $0x28] sm:$0xff]  }
 0x1e6   :  { %8145 = vmatprep.subr.bf16.mxu1 %v9932_v25  ;;  %v9942_v6 = vld [vmem:[%s16644_s4 + $0xa8] sm:$0xff]   ;;  %v9943_v25 = vld [vmem:[%s16644_s4 + $0x70] sm:$0xff]  }
 0x1e8   :  { %8082 = vmatpush3.bf16.msra.mxu0 %v9933_v29  ;;  %v9944_v29 = vld [vmem:[%s16644_s4 + $0xf0] sm:$0xff]  }
 0x1e9   :  { %8146 = vmatpush3.bf16.msra.mxu1 %v9934_v40  ;;  %8083 = vmatprep.subr.bf16.mxu0 %v9935_v19  ;;  %v9945_v40 = vld [vmem:[%s16644_s4 + $0x30] sm:$0xff]  }
 0x1ea   :  { %2589 = vmatmul.mubr.bf16.gmra.mrb[136].mxu0 %v11758_v49  ;;  %8147 = vmatprep.subr.bf16.mxu1 %v9936_v51  ;;  %v9946_v19 = vld [vmem:[%s16644_s4 + $0xb0] sm:$0xff]   ;;  %v9947_v51 = vld [vmem:[%s16644_s4 + $0x78] sm:$0xff]  }
 0x1eb   :  { %2702 = vmatmul.mubr.bf16.gmra.mrb[136].mxu1 %v11758_v49  ;;  %2598 = vmatprep.mubr.bf16.mxu0 %v17198_v39  ;;  %v9940_v49 = vld [vmem:[%s16644_s4 + $0xe8] sm:$0xff]  }
 0x1ec   :  { %2711 = vmatprep.mubr.bf16.mxu1 %v17198_v39  ;;  %8084 = vmatpush3.bf16.msra.mxu0 %v9937_v14  ;;  %v9949_v14 = vld [vmem:[%s16644_s4 + $0x38] sm:$0xff]  }
 0x1ed   :  { %8148 = vmatpush3.bf16.msra.mxu1 %v9938_v41  ;;  %8085 = vmatprep.subr.bf16.mxu0 %v9939_v24  ;;  %v9950_v41 = vld [vmem:[%s16644_s4 + $0xb8] sm:$0xff]   ;;  %v17229_v24 = vld [vmem:[#allocation7_spill] sm:$0xff] }
 0x1ee   :  { %8149 = vmatprep.subr.bf16.mxu1 %v9940_v49  ;;  %v17230_v49 = vld [vmem:[#allocation9_spill] sm:$0xff] }
 0x1f0   :  { %8086 = vmatpush3.bf16.msra.mxu0 %v9941_v23 }
 0x1f1   :  { %8150 = vmatpush3.bf16.msra.mxu1 %v9942_v6  ;;  %8087 = vmatprep.subr.bf16.mxu0 %v9943_v25 }
 0x1f2   :  { %2599 = vmatmul.mubr.bf16.gmra.mrb[140].mxu0 %v11781_v21  ;;  %8151 = vmatprep.subr.bf16.mxu1 %v9944_v29 }
 0x1f3   :  { %2712 = vmatmul.mubr.bf16.gmra.mrb[140].mxu1 %v11781_v21  ;;  %2608 = vmatprep.mubr.bf16.mxu0 %v17198_v39  ;;  %v9948_v21 = vld [vmem:[%s16644_s4 + $0xf8] sm:$0xff]  }
 0x1f4   :  { %2721 = vmatprep.mubr.bf16.mxu1 %v17198_v39  ;;  %8088 = vmatpush3.bf16.msra.mxu0 %v9945_v40 }
 0x1f5   :  { %8152 = vmatpush3.bf16.msra.mxu1 %v9946_v19  ;;  %8089 = vmatprep.subr.bf16.mxu0 %v9947_v51 }
 0x1f6   :  { %8153 = vmatprep.subr.bf16.mxu1 %v9948_v21 }
 0x1f8   :  { %8090 = vmatpush3.bf16.msra.mxu0 %v9949_v14 }
 0x1f9   :  { %8154 = vmatpush3.bf16.msra.mxu1 %v9950_v41  ;;  %3525 = vmatprep.subr.bf16.mxu0 %v17229_v24 }
 0x1fa   :  { %2609 = vmatmul.mubr.bf16.gmra.mrb[144].mxu0 %v11804_v33  ;;  %3638 = vmatprep.subr.bf16.mxu1 %v17230_v49 }
 0x1fb   :  { %2722 = vmatmul.mubr.bf16.gmra.mrb[144].mxu1 %v11804_v33  ;;  %2618 = vmatprep.mubr.bf16.mxu0 %v17198_v39 }
 0x1fc   :  { %2731 = vmatprep.mubr.bf16.mxu1 %v17198_v39 }
 0x202   :  { %2619 = vmatmul.mubr.bf16.gmra.mrb[148].mxu0 %v11828_v53 }
 0x203   :  { %2732 = vmatmul.mubr.bf16.gmra.mrb[148].mxu1 %v11828_v53  ;;  %2628 = vmatprep.mubr.bf16.mxu0 %v17198_v39 }
 0x204   :  { %2741 = vmatprep.mubr.bf16.mxu1 %v17198_v39 }
 0x20a   :  { %2629 = vmatmul.mubr.bf16.gmra.mrb[152].mxu0 %v11843_v10 }
 0x20b   :  { %2742 = vmatmul.mubr.bf16.gmra.mrb[152].mxu1 %v11843_v10  ;;  %2638 = vmatprep.mubr.bf16.mxu0 %v17198_v39 }
 0x20c   :  { %2751 = vmatprep.mubr.bf16.mxu1 %v17198_v39 }
 0x212   :  { %2639 = vmatmul.mubr.bf16.gmra.mrb[156].mxu0 %v11855_v56 }
 0x213   :  { %2752 = vmatmul.mubr.bf16.gmra.mrb[156].mxu1 %v11855_v56 }
 0x220   :  { %v7963_v33 = vpop.f32.mrb[64].mxu0 }
 0x221   :  { %v8027_v23 = vpop.f32.mrb[64].mxu1  ;;  %v7964_v6 = vpop.f32.mrb[65].mxu0 }
 0x222   :  { %v7965_v53 = vadd.f32 %v7964_v6, %v7963_v33  ;;  %v8028_v25 = vpop.f32.mrb[65].mxu1  ;;  %v7966_v29 = vpop.f32.mrb[66].mxu0 }
 0x223   :  { %v8029_v40 = vadd.f32 %v8028_v25, %v8027_v23  ;;  %v8030_v19 = vpop.f32.mrb[66].mxu1  ;;  %v7967_v51 = vpop.f32.mrb[67].mxu0 }
 0x224   :  { %v7968_v21 = vadd.f32 %v7967_v51, %v7966_v29  ;;  %v8031_v14 = vpop.f32.mrb[67].mxu1 }
 0x225   :  { %v11983_v10 = vadd.f32 %v8029_v40, %v7965_v53  ;;  %v8032_v41 = vadd.f32 %v8031_v14, %v8030_v19 }
 0x227   :  { %17231 = vst [vmem:[#allocation89_spill] sm:$0xff] %v11983_v10  ;;  %v11985_v49 = vadd.f32 %v8032_v41, %v7968_v21 }
 0x229   :  { %17232 = vst [vmem:[#allocation90_spill] sm:$0xff] %v11985_v49 }
 0x22b   :  { %v7969_v24 = vpop.f32.mrb[68].mxu0 }
 0x22c   :  { %v8033_v13 = vpop.f32.mrb[68].mxu1  ;;  %v7970_v22 = vpop.f32.mrb[69].mxu0 }
 0x22d   :  { %v7971_v56 = vadd.f32 %v7970_v22, %v7969_v24  ;;  %v8034_v9 = vpop.f32.mrb[69].mxu1  ;;  %v7972_v42 = vpop.f32.mrb[70].mxu0 }
 0x22e   :  { %v8035_v61 = vadd.f32 %v8034_v9, %v8033_v13  ;;  %v8036_v33 = vpop.f32.mrb[70].mxu1  ;;  %v7973_v6 = vpop.f32.mrb[71].mxu0 }
 0x22f   :  { %v7974_v7 = vadd.f32 %v7973_v6, %v7972_v42  ;;  %v8037_v23 = vpop.f32.mrb[71].mxu1 }
 0x230   :  { %v11987_v25 = vadd.f32 %v8035_v61, %v7971_v56  ;;  %v8038_v29 = vadd.f32 %v8037_v23, %v8036_v33 }
 0x232   :  { %17233 = vst [vmem:[#allocation75_spill] sm:$0xff] %v11987_v25  ;;  %v11989_v51 = vadd.f32 %v8038_v29, %v7974_v7 }
 0x234   :  { %17234 = vst [vmem:[#allocation76_spill] sm:$0xff] %v11989_v51 }
 0x235   :  { %v7975_v53 = vpop.f32.mrb[72].mxu0 }
 0x236   :  { %v8039_v40 = vpop.f32.mrb[72].mxu1  ;;  %v7976_v19 = vpop.f32.mrb[73].mxu0 }
 0x237   :  { %v7977_v21 = vadd.f32 %v7976_v19, %v7975_v53  ;;  %v8040_v14 = vpop.f32.mrb[73].mxu1  ;;  %v7978_v41 = vpop.f32.mrb[74].mxu0 }
 0x238   :  { %v8041_v49 = vadd.f32 %v8040_v14, %v8039_v40  ;;  %v8042_v22 = vpop.f32.mrb[74].mxu1  ;;  %v7979_v24 = vpop.f32.mrb[75].mxu0 }
 0x239   :  { %v7980_v10 = vadd.f32 %v7979_v24, %v7978_v41  ;;  %v8043_v9 = vpop.f32.mrb[75].mxu1 }
 0x23a   :  { %v11991_v13 = vadd.f32 %v8041_v49, %v7977_v21  ;;  %v8044_v42 = vadd.f32 %v8043_v9, %v8042_v22 }
 0x23c   :  { %17235 = vst [vmem:[#allocation77_spill] sm:$0xff] %v11991_v13  ;;  %v11993_v6 = vadd.f32 %v8044_v42, %v7980_v10 }
 0x23e   :  { %17236 = vst [vmem:[#allocation91_spill] sm:$0xff] %v11993_v6 }
 0x240   :  { %v7981_v61 = vpop.f32.mrb[76].mxu0 }
 0x241   :  { %v8045_v56 = vpop.f32.mrb[76].mxu1  ;;  %v7982_v7 = vpop.f32.mrb[77].mxu0 }
 0x242   :  { %v7983_v33 = vadd.f32 %v7982_v7, %v7981_v61  ;;  %v8046_v23 = vpop.f32.mrb[77].mxu1  ;;  %v7984_v29 = vpop.f32.mrb[78].mxu0 }
 0x243   :  { %v8047_v51 = vadd.f32 %v8046_v23, %v8045_v56  ;;  %v8048_v53 = vpop.f32.mrb[78].mxu1  ;;  %v7985_v19 = vpop.f32.mrb[79].mxu0 }
 0x244   :  { %v7986_v25 = vadd.f32 %v7985_v19, %v7984_v29  ;;  %v8049_v40 = vpop.f32.mrb[79].mxu1 }
 0x245   :  { %v11995_v14 = vadd.f32 %v8047_v51, %v7983_v33  ;;  %v8050_v41 = vadd.f32 %v8049_v40, %v8048_v53 }
 0x247   :  { %17237 = vst [vmem:[#allocation78_spill] sm:$0xff] %v11995_v14  ;;  %v11997_v24 = vadd.f32 %v8050_v41, %v7986_v25 }
 0x249   :  { %17238 = vst [vmem:[#allocation95_spill] sm:$0xff] %v11997_v24  ;;  %v7987_v49 = vpop.f32.mrb[80].mxu0 }
 0x24a   :  { %v8051_v21 = vpop.f32.mrb[80].mxu1  ;;  %v7988_v10 = vpop.f32.mrb[81].mxu0 }
 0x24b   :  { %v8052_v22 = vpop.f32.mrb[81].mxu1  ;;  %v7989_v9 = vadd.f32 %v7988_v10, %v7987_v49  ;;  %v7990_v6 = vpop.f32.mrb[82].mxu0 }
 0x24c   :  { %v8053_v42 = vadd.f32 %v8052_v22, %v8051_v21  ;;  %v8054_v61 = vpop.f32.mrb[82].mxu1  ;;  %v7991_v7 = vpop.f32.mrb[83].mxu0 }
 0x24d   :  { %v8055_v13 = vpop.f32.mrb[83].mxu1  ;;  %v7992_v23 = vadd.f32 %v7991_v7, %v7990_v6 }
 0x24e   :  { %v11999_v56 = vadd.f32 %v8053_v42, %v7989_v9  ;;  %v8056_v29 = vadd.f32 %v8055_v13, %v8054_v61 }
 0x250   :  { %17239 = vst [vmem:[#allocation79_spill] sm:$0xff] %v11999_v56  ;;  %v12001_v19 = vadd.f32 %v8056_v29, %v7992_v23 }
 0x251   :  { %v7993_v51 = vpop.f32.mrb[84].mxu0 }
 0x252   :  { %17240 = vst [vmem:[#allocation97_spill] sm:$0xff] %v12001_v19  ;;  %v8057_v33 = vpop.f32.mrb[84].mxu1  ;;  %v7994_v25 = vpop.f32.mrb[85].mxu0 }
 0x253   :  { %v8058_v53 = vpop.f32.mrb[85].mxu1  ;;  %v7995_v40 = vadd.f32 %v7994_v25, %v7993_v51  ;;  %v7996_v24 = vpop.f32.mrb[86].mxu0 }
 0x254   :  { %v8059_v41 = vadd.f32 %v8058_v53, %v8057_v33  ;;  %v8060_v14 = vpop.f32.mrb[86].mxu1  ;;  %v7997_v49 = vpop.f32.mrb[87].mxu0 }
 0x255   :  { %v8061_v21 = vpop.f32.mrb[87].mxu1  ;;  %v7998_v22 = vadd.f32 %v7997_v49, %v7996_v24 }
 0x256   :  { %v12003_v10 = vadd.f32 %v8059_v41, %v7995_v40  ;;  %v8062_v37 = vadd.f32 %v8061_v21, %v8060_v14 }
 0x258   :  { %17241 = vst [vmem:[#allocation80_spill] sm:$0xff] %v12003_v10  ;;  %v12005_v9 = vadd.f32 %v8062_v37, %v7998_v22 }
 0x25a   :  { %17242 = vst [vmem:[#allocation98_spill] sm:$0xff] %v12005_v9 }
 0x25d   :  { %v7999_v6 = vpop.f32.mrb[88].mxu0 }
 0x25e   :  { %v8063_v13 = vpop.f32.mrb[88].mxu1  ;;  %v8000_v42 = vpop.f32.mrb[89].mxu0 }
 0x25f   :  { %v8001_v61 = vadd.f32 %v8000_v42, %v7999_v6  ;;  %v8064_v7 = vpop.f32.mrb[89].mxu1  ;;  %v8002_v23 = vpop.f32.mrb[90].mxu0 }
 0x260   :  { %v8065_v29 = vadd.f32 %v8064_v7, %v8063_v13  ;;  %v8066_v19 = vpop.f32.mrb[90].mxu1  ;;  %v8003_v51 = vpop.f32.mrb[91].mxu0 }
 0x261   :  { %v8004_v33 = vadd.f32 %v8003_v51, %v8002_v23  ;;  %v8067_v25 = vpop.f32.mrb[91].mxu1 }
 0x262   :  { %v12007_v53 = vadd.f32 %v8065_v29, %v8001_v61  ;;  %v8068_v56 = vadd.f32 %v8067_v25, %v8066_v19  ;;  %v17247_v19 = vld [vmem:[#allocation71_spill] sm:$0xff]  ;;  %v17248_v25 = vld [vmem:[#allocation72_spill] sm:$0xff] }
 0x264   :  { %17243 = vst [vmem:[#allocation81_spill] sm:$0xff] %v12007_v53  ;;  %v12009_v40 = vadd.f32 %v8068_v56, %v8004_v33 }
 0x265   :  { %v8005_v24 = vpop.f32.mrb[92].mxu0 }
 0x266   :  { %17244 = vst [vmem:[#allocation99_spill] sm:$0xff] %v12009_v40  ;;  %v8069_v14 = vpop.f32.mrb[92].mxu1  ;;  %v8006_v37 = vpop.f32.mrb[93].mxu0 }
 0x267   :  { %v8007_v41 = vadd.f32 %v8006_v37, %v8005_v24  ;;  %v8070_v49 = vpop.f32.mrb[93].mxu1  ;;  %v8008_v21 = vpop.f32.mrb[94].mxu0  ;;  %v17249_v37 = vld [vmem:[#allocation73_spill] sm:$0xff] }
 0x268   :  { %v8071_v22 = vadd.f32 %v8070_v49, %v8069_v14  ;;  %v8072_v6 = vpop.f32.mrb[94].mxu1  ;;  %v8009_v42 = vpop.f32.mrb[95].mxu0 }
 0x269   :  { %v8010_v9 = vadd.f32 %v8009_v42, %v8008_v21  ;;  %v8073_v13 = vpop.f32.mrb[95].mxu1 }
 0x26a   :  { %v12011_v7 = vadd.f32 %v8071_v22, %v8007_v41  ;;  %v8074_v23 = vadd.f32 %v8073_v13, %v8072_v6  ;;  %v17250_v22 = vld [vmem:[#allocation74_spill] sm:$0xff] }
 0x26c   :  { %17245 = vst [vmem:[#allocation82_spill] sm:$0xff] %v12011_v7  ;;  %v12013_v51 = vadd.f32 %v8074_v23, %v8010_v9 }
 0x26d   :  { %v2344_v61 = vpop.f32.mrb[96].mxu0 }
 0x26e   :  { %17246 = vst [vmem:[#allocation103_spill] sm:$0xff] %v12013_v51  ;;  %v12016_v56 = vadd.f32 %v2344_v61, %v17247_v19  ;;  %v2457_v29 = vpop.f32.mrb[96].mxu1  ;;  %v2346_v33 = vpop.f32.mrb[97].mxu0 }
 0x26f   :  { %v12019_v24 = vadd.f32 %v2457_v29, %v17248_v25  ;;  %v12022_v14 = vadd.f32 %v2346_v33, %v17249_v37  ;;  %v2459_v49 = vpop.f32.mrb[97].mxu1  ;;  %v2348_v21 = vpop.f32.mrb[98].mxu0 }
 0x270   :  { %v7491_v41 = vmul.f32 -1.442695, %v12016_v56  ;;  %v12026_v6 = vadd.f32 %v2459_v49, %v17250_v22  ;;  %v12029_v9 = vadd.f32 %v2348_v21, %v17247_v19  ;;  %v2461_v42 = vpop.f32.mrb[98].mxu1  ;;  %v2350_v13 = vpop.f32.mrb[99].mxu0 }
 0x271   :  { %v7493_v23 = vmul.f32 -1.442695, %v12019_v24  ;;  %v7492_v61 = vmul.f32 -1.442695, %v12022_v14  ;;  %v12034_v29 = vadd.f32 %v2461_v42, %v17248_v25  ;;  %v12037_v33 = vadd.f32 %v2350_v13, %v17249_v37  ;;  %v2463_v51 = vpop.f32.mrb[99].mxu1 }
 0x272   :  { %8879 = vpow2.f32 %v7491_v41  ;;  %v7494_v49 = vmul.f32 -1.442695, %v12026_v6  ;;  %v7495_v7 = vmul.f32 -1.442695, %v12029_v9  ;;  %v12042_v21 = vadd.f32 %v2463_v51, %v17250_v22 }
 0x273   :  { %8881 = vpow2.f32 %v7493_v23  ;;  %v7497_v40 = vmul.f32 -1.442695, %v12034_v29  ;;  %v7496_v53 = vmul.f32 -1.442695, %v12037_v33 }
 0x274   :  { %8883 = vpow2.f32 %v7492_v61  ;;  %v7498_v42 = vmul.f32 -1.442695, %v12042_v21 }
 0x275   :  { %8885 = vpow2.f32 %v7494_v49  ;;  %v2354_v13 = vpop.f32.mrb[100].mxu0 }
 0x276   :  { %8887 = vpow2.f32 %v7495_v7  ;;  %v12048_v41 = vadd.f32 %v2354_v13, %v17247_v19  ;;  %v2467_v10 = vpop.f32.mrb[100].mxu1  ;;  %v2356_v58 = vpop.f32.mrb[101].mxu0 }
 0x277   :  { %8889 = vpow2.f32 %v7497_v40  ;;  %v12051_v51 = vadd.f32 %v2467_v10, %v17248_v25  ;;  %v12054_v23 = vadd.f32 %v2356_v58, %v17249_v37  ;;  %v2469_v61 = vpop.f32.mrb[101].mxu1  ;;  %v2358_v44 = vpop.f32.mrb[102].mxu0 }
 0x278   :  { %8891 = vpow2.f32 %v7496_v53  ;;  %v7499_v49 = vmul.f32 -1.442695, %v12048_v41  ;;  %v12058_v32 = vadd.f32 %v2469_v61, %v17250_v22  ;;  %v12061_v7 = vadd.f32 %v2358_v44, %v17247_v19  ;;  %v2471_v13 = vpop.f32.mrb[102].mxu1  ;;  %v2360_v15 = vpop.f32.mrb[103].mxu0 }
 0x279   :  { %8893 = vpow2.f32 %v7498_v42  ;;  %v7501_v10 = vmul.f32 -1.442695, %v12051_v51  ;;  %v7500_v40 = vmul.f32 -1.442695, %v12054_v23  ;;  %v12066_v58 = vadd.f32 %v2471_v13, %v17248_v25  ;;  %v2473_v1 = vpop.f32.mrb[103].mxu1 }
 0x27a   :  { %8895 = vpow2.f32 %v7499_v49  ;;  %v7502_v53 = vmul.f32 -1.442695, %v12058_v32  ;;  %v7503_v61 = vmul.f32 -1.442695, %v12061_v7  ;;  %v12071_v50 = vadd.f32 %v2360_v15, %v17249_v37 }
 0x27b   :  { %8897 = vpow2.f32 %v7501_v10  ;;  %v12074_v44 = vadd.f32 %v2473_v1, %v17250_v22  ;;  %v12077_v13 = vmul.f32 -1.442695, %v12066_v58 }
 0x27c   :  { %v8880_v42 = vpop.eup %8879  ;;  %8899 = vpow2.f32 %v7500_v40  ;;  %v12080_v49 = vmul.f32 -1.442695, %v12071_v50 }
 0x27d   :  { %v8882_v31 = vpop.eup %8881  ;;  %v2954_v55 = vadd.f32 1.0, %v8880_v42  ;;  %8901 = vpow2.f32 %v7502_v53  ;;  %v2364_v60 = vpop.f32.mrb[104].mxu0  ;;  %v12083_v15 = vmul.f32 -1.442695, %v12074_v44 }
 0x27e   :  { %v8884_v0 = vpop.eup %8883  ;;  %v2956_v26 = vadd.f32 1.0, %v8882_v31  ;;  %8903 = vpow2.f32 %v7503_v61  ;;  %v12086_v1 = vadd.f32 %v2364_v60, %v17247_v19  ;;  %v2477_v10 = vpop.f32.mrb[104].mxu1 }
 0x27f   :  { %v2366_v40 = vpop.f32.mrb[105].mxu0  ;;  %v8886_v42 = vpop.eup %8885  ;;  %8905 = vrcp.f32 %v2954_v55  ;;  %v2955_v53 = vadd.f32 1.0, %v8884_v0  ;;  %v12089_v8 = vadd.f32 %v2477_v10, %v17248_v25 }
 0x280   :  { %v12092_v38 = vadd.f32 %v2366_v40, %v17249_v37  ;;  %v2479_v59 = vpop.f32.mrb[105].mxu1  ;;  %v2368_v31 = vpop.f32.mrb[106].mxu0  ;;  %8907 = vrcp.f32 %v2956_v26  ;;  %v2957_v46 = vadd.f32 1.0, %v8886_v42  ;;  %v12095_v2 = vmul.f32 -1.442695, %v12086_v1 }
 0x281   :  { %v8888_v61 = vpop.eup %8887  ;;  %v12098_v60 = vadd.f32 %v2479_v59, %v17250_v22  ;;  %v2481_v28 = vpop.f32.mrb[106].mxu1  ;;  %8909 = vrcp.f32 %v2955_v53  ;;  %v12101_v20 = vmul.f32 -1.442695, %v12089_v8  ;;  %v12110_v59 = vadd.f32 %v2368_v31, %v17247_v19 }
 0x282   :  { %v2370_v55 = vpop.f32.mrb[107].mxu0  ;;  %v8890_v0 = vpop.eup %8889  ;;  %v2958_v10 = vadd.f32 1.0, %v8888_v61  ;;  %v12104_v40 = vmul.f32 -1.442695, %v12092_v38  ;;  %8911 = vrcp.f32 %v2957_v46  ;;  %v12113_v61 = vadd.f32 %v2481_v28, %v17248_v25 }
 0x283   :  { %v2483_v62 = vpop.f32.mrb[107].mxu1  ;;  %v8892_v26 = vpop.eup %8891  ;;  %v2960_v42 = vadd.f32 1.0, %v8890_v0  ;;  %v12107_v43 = vmul.f32 -1.442695, %v12098_v60  ;;  %v12116_v54 = vadd.f32 %v2370_v55, %v17249_v37  ;;  %v12119_v46 = vmul.f32 -1.442695, %v12110_v59 }
 0x284   :  { %v8894_v52 = vpop.eup %8893  ;;  %8913 = vrcp.f32 %v2958_v10  ;;  %v2959_v53 = vadd.f32 1.0, %v8892_v26  ;;  %v12122_v0 = vadd.f32 %v2483_v62, %v17250_v22  ;;  %v12125_v10 = vmul.f32 -1.442695, %v12113_v61 }
 0x285   :  { %v8896_v5 = vpop.eup %8895  ;;  %8915 = vrcp.f32 %v2960_v42  ;;  %v2961_v39 = vadd.f32 1.0, %v8894_v52  ;;  %v12128_v28 = vmul.f32 -1.442695, %v12116_v54  ;;  %v2374_v55 = vpop.f32.mrb[108].mxu0 }
 0x286   :  { %v8898_v31 = vpop.eup %8897  ;;  %8917 = vrcp.f32 %v2959_v53  ;;  %v2962_v27 = vadd.f32 1.0, %v8896_v5  ;;  %v12131_v52 = vmul.f32 -1.442695, %v12122_v0  ;;  %v12134_v16 = vadd.f32 %v2374_v55, %v17247_v19  ;;  %v2487_v62 = vpop.f32.mrb[108].mxu1 }
 0x287   :  { %v8900_v26 = vpop.eup %8899  ;;  %8919 = vrcp.f32 %v2961_v39  ;;  %v2964_v42 = vadd.f32 1.0, %v8898_v31  ;;  %v2376_v35 = vpop.f32.mrb[109].mxu0  ;;  %v12137_v11 = vadd.f32 %v2487_v62, %v17248_v25 }
 0x288   :  { %v8902_v53 = vpop.eup %8901  ;;  %8921 = vrcp.f32 %v2962_v27  ;;  %v2963_v5 = vadd.f32 1.0, %v8900_v26  ;;  %v12140_v57 = vadd.f32 %v2376_v35, %v17249_v37  ;;  %v2489_v48 = vpop.f32.mrb[109].mxu1  ;;  %v12143_v36 = vmul.f32 -1.442695, %v12134_v16 }
 0x289   :  { %v2378_v39 = vpop.f32.mrb[110].mxu0  ;;  %v8904_v31 = vpop.eup %8903  ;;  %8923 = vrcp.f32 %v2964_v42  ;;  %v2965_v30 = vadd.f32 1.0, %v8902_v53  ;;  %v12146_v55 = vadd.f32 %v2489_v48, %v17250_v22  ;;  %v12149_v63 = vmul.f32 -1.442695, %v12137_v11 }
 0x28a   :  { %17251 = vst [vmem:[#allocation83_spill] sm:$0xff] %v12140_v57  ;;  %v2491_v47 = vpop.f32.mrb[110].mxu1  ;;  %v2380_v27 = vpop.f32.mrb[111].mxu0  ;;  %8925 = vrcp.f32 %v2963_v5  ;;  %v2966_v62 = vadd.f32 1.0, %v8904_v31  ;;  %v12152_v35 = vmul.f32 -1.442695, %v12140_v57  ;;  %v12161_v45 = vadd.f32 %v2378_v39, %v17247_v19 }
 0x28b   :  { %17252 = vst [vmem:[#allocation105_spill] sm:$0xff] %v12146_v55  ;;  %v8906_v26 = vpop.eup %8905  ;;  %v2493_v4 = vpop.f32.mrb[111].mxu1  ;;  %8927 = vrcp.f32 %v2965_v30  ;;  %v12158_v48 = vmul.f32 -1.442695, %v12146_v55  ;;  %v12167_v12 = vadd.f32 %v2491_v47, %v17248_v25  ;;  %v12170_v57 = vadd.f32 %v2380_v27, %v17249_v37 }
 0x28c   :  { %v8908_v42 = vpop.eup %8907  ;;  %v12155_v53 = vmul.f32 %v8906_v26, %v12016_v56  ;;  %17253 = vst [vmem:[#allocation84_spill] sm:$0xff] %v12161_v45  ;;  %8929 = vrcp.f32 %v2966_v62  ;;  %v12177_v39 = vmul.f32 -1.442695, %v12161_v45  ;;  %v12180_v26 = vadd.f32 %v2493_v4, %v17250_v22 }
 0x28d   :  { %v8910_v5 = vpop.eup %8909  ;;  %v12164_v31 = vmul.f32 %v8908_v42, %v12019_v24  ;;  %17254 = vst [vmem:[#allocation106_spill] sm:$0xff] %v12167_v12  ;;  %17255 = vst [vmem:[#allocation85_spill] sm:$0xff] %v12170_v57  ;;  %8931 = vpow2.f32 %v12077_v13  ;;  %v12187_v47 = vmul.f32 -1.442695, %v12167_v12  ;;  %v2384_v27 = vpop.f32.mrb[112].mxu0 }
 0x28e   :  { %v8912_v56 = vpop.eup %8911  ;;  %v12173_v30 = vmul.f32 %v8910_v5, %v12022_v14  ;;  %17256 = vst [vmem:[#allocation107_spill] sm:$0xff] %v12180_v26  ;;  %8933 = vpow2.f32 %v12080_v49  ;;  %v12190_v14 = vmul.f32 -1.442695, %v12170_v57  ;;  %v12197_v4 = vmul.f32 -1.442695, %v12180_v26  ;;  %v2497_v49 = vpop.f32.mrb[112].mxu1 }
 0x28f   :  { %v8914_v24 = vpop.eup %8913  ;;  %v12183_v62 = vmul.f32 %v8912_v56, %v12026_v6  ;;  %8935 = vpow2.f32 %v12083_v15  ;;  %v12200_v6 = vadd.f32 %v2384_v27, %v17247_v19  ;;  %v2386_v5 = vpop.f32.mrb[113].mxu0  ;;  %v12207_v57 = vadd.f32 %v2497_v49, %v17248_v25 }
 0x290   :  { %v8916_v13 = vpop.eup %8915  ;;  %v12193_v42 = vmul.f32 %v8914_v24, %v12029_v9  ;;  %8937 = vpow2.f32 %v12095_v2  ;;  %v12210_v9 = vadd.f32 %v2386_v5, %v17249_v37  ;;  %v2499_v15 = vpop.f32.mrb[113].mxu1 }
 0x291   :  { %17257 = vst [vmem:[#allocation86_spill] sm:$0xff] %v12200_v6  ;;  %v8918_v56 = vpop.eup %8917  ;;  %v12203_v12 = vmul.f32 %v8916_v13, %v12034_v29  ;;  %17258 = vst [vmem:[#allocation111_spill] sm:$0xff] %v12207_v57  ;;  %v2388_v24 = vpop.f32.mrb[114].mxu0  ;;  %8939 = vpow2.f32 %v12101_v20  ;;  %v12217_v45 = vmul.f32 -1.442695, %v12200_v6  ;;  %v12220_v29 = vadd.f32 %v2499_v15, %v17250_v22 }
 0x292   :  { %17259 = vst [vmem:[#allocation87_spill] sm:$0xff] %v12210_v9  ;;  %v8920_v26 = vpop.eup %8919  ;;  %v12213_v27 = vmul.f32 %v8918_v56, %v12037_v33  ;;  %v2501_v2 = vpop.f32.mrb[114].mxu1  ;;  %8941 = vpow2.f32 %v12104_v40  ;;  %v12227_v55 = vmul.f32 -1.442695, %v12207_v57  ;;  %v12230_v33 = vmul.f32 -1.442695, %v12210_v9 }
 0x293   :  { %17260 = vst [vmem:[#allocation113_spill] sm:$0xff] %v12220_v29  ;;  %v2390_v13 = vpop.f32.mrb[115].mxu0  ;;  %v8922_v49 = vpop.eup %8921  ;;  %v12223_v5 = vmul.f32 %v8920_v26, %v12042_v21  ;;  %8943 = vpow2.f32 %v12107_v43  ;;  %v12237_v15 = vmul.f32 -1.442695, %v12220_v29  ;;  %v12240_v21 = vadd.f32 %v2388_v24, %v17247_v19 }
 0x294   :  { %v2503_v20 = vpop.f32.mrb[115].mxu1  ;;  %v8924_v56 = vpop.eup %8923  ;;  %v12233_v6 = vmul.f32 %v8922_v49, %v12048_v41  ;;  %8945 = vpow2.f32 %v12119_v46  ;;  %v12247_v9 = vadd.f32 %v2501_v2, %v17248_v25  ;;  %v12250_v41 = vadd.f32 %v2390_v13, %v17249_v37 }
 0x295   :  { %17261 = vst [vmem:[#allocation88_spill] sm:$0xff] %v12240_v21  ;;  %v8926_v40 = vpop.eup %8925  ;;  %v12243_v26 = vmul.f32 %v8924_v56, %v12051_v51  ;;  %8947 = vpow2.f32 %v12125_v10  ;;  %v12257_v24 = vmul.f32 -1.442695, %v12240_v21  ;;  %v12260_v51 = vadd.f32 %v2503_v20, %v17250_v22  ;;  %v2394_v13 = vpop.f32.mrb[116].mxu0 }
 0x296   :  { %17262 = vst [vmem:[#allocation92_spill] sm:$0xff] %v12247_v9  ;;  %17263 = vst [vmem:[#allocation93_spill] sm:$0xff] %v12250_v41  ;;  %v8928_v49 = vpop.eup %8927  ;;  %v12253_v43 = vmul.f32 %v8926_v40, %v12054_v23  ;;  %8949 = vpow2.f32 %v12128_v28  ;;  %v12267_v2 = vmul.f32 -1.442695, %v12247_v9  ;;  %v12270_v23 = vmul.f32 -1.442695, %v12250_v41 }
 0x297   :  { %17264 = vst [vmem:[#allocation94_spill] sm:$0xff] %v12260_v51  ;;  %v8930_v56 = vpop.eup %8929  ;;  %v12263_v46 = vmul.f32 %v8928_v49, %v12058_v32  ;;  %8951 = vpow2.f32 %v12131_v52  ;;  %v12277_v20 = vmul.f32 -1.442695, %v12260_v51  ;;  %v12280_v32 = vadd.f32 %v2394_v13, %v17247_v19  ;;  %v2507_v28 = vpop.f32.mrb[116].mxu1 }
 0x298   :  { %v8932_v10 = vpop.eup %8931  ;;  %v12273_v40 = vmul.f32 %v8930_v56, %v12061_v7  ;;  %v2396_v49 = vpop.f32.mrb[117].mxu0  ;;  %8953 = vpow2.f32 %v12143_v36  ;;  %v12284_v41 = vadd.f32 %v2507_v28, %v17248_v25 }
 0x299   :  { %17265 = vst [vmem:[#allocation96_spill] sm:$0xff] %v12263_v46  ;;  %17267 = vst [vmem:[#allocation101_spill] sm:$0xff] %v12277_v20  ;;  %v8934_v9 = vpop.eup %8933  ;;  %v2968_v21 = vadd.f32 1.0, %v8932_v10  ;;  %v12287_v7 = vadd.f32 %v2396_v49, %v17249_v37  ;;  %v2509_v56 = vpop.f32.mrb[117].mxu1  ;;  %8955 = vpow2.f32 %v12149_v63  ;;  %v12291_v13 = vmul.f32 -1.442695, %v12280_v32 }
 0x29a   :  { %17266 = vst [vmem:[#allocation100_spill] sm:$0xff] %v12273_v40  ;;  %17268 = vst [vmem:[#allocation102_spill] sm:$0xff] %v12280_v32  ;;  %v2398_v52 = vpop.f32.mrb[118].mxu0  ;;  %v8936_v29 = vpop.eup %8935  ;;  %v2967_v51 = vadd.f32 1.0, %v8934_v9  ;;  %v12294_v57 = vadd.f32 %v2509_v56, %v17250_v22  ;;  %v12297_v49 = vmul.f32 -1.442695, %v12284_v41 }
 0x29b   :  { %17269 = vst [vmem:[#allocation104_spill] sm:$0xff] %v12284_v41  ;;  %17270 = vst [vmem:[#allocation108_spill] sm:$0xff] %v12287_v7  ;;  %v2511_v10 = vpop.f32.mrb[118].mxu1  ;;  %v2400_v36 = vpop.f32.mrb[119].mxu0  ;;  %8957 = vrcp.f32 %v2968_v21  ;;  %v2969_v28 = vadd.f32 1.0, %v8936_v29  ;;  %v12306_v56 = vadd.f32 %v2398_v52, %v17247_v19 }
 0x29c   :  { %17271 = vst [vmem:[#allocation109_spill] sm:$0xff] %v12291_v13  ;;  %17272 = vst [vmem:[#allocation110_spill] sm:$0xff] %v12294_v57  ;;  %v8938_v20 = vpop.eup %8937  ;;  %v12300_v40 = vmul.f32 -1.442695, %v12287_v7  ;;  %v2513_v9 = vpop.f32.mrb[119].mxu1  ;;  %8959 = vrcp.f32 %v2967_v51  ;;  %v12309_v29 = vadd.f32 %v2511_v10, %v17248_v25  ;;  %v12312_v41 = vadd.f32 %v2400_v36, %v17249_v37 }
 0x29d   :  { %17273 = vst [vmem:[#allocation112_spill] sm:$0xff] %v12297_v49  ;;  %v8940_v46 = vpop.eup %8939  ;;  %v2970_v63 = vadd.f32 1.0, %v8938_v20  ;;  %v12303_v32 = vmul.f32 -1.442695, %v12294_v57  ;;  %17276 = vst [vmem:[#allocation115_spill] sm:$0xff] %v12306_v56  ;;  %8961 = vrcp.f32 %v2969_v28  ;;  %v12318_v20 = vadd.f32 %v2513_v9, %v17250_v22  ;;  %v2404_v36 = vpop.f32.mrb[120].mxu0 }
 0x29e   :  { %17274 = vst [vmem:[#allocation126_spill] sm:$0xff] %v12300_v40  ;;  %v8942_v13 = vpop.eup %8941  ;;  %v2972_v21 = vadd.f32 1.0, %v8940_v46  ;;  %17277 = vst [vmem:[#allocation116_spill] sm:$0xff] %v12309_v29  ;;  %v12315_v51 = vmul.f32 -1.442695, %v12306_v56  ;;  %v12330_v56 = vadd.f32 %v2404_v36, %v17247_v19  ;;  %v2517_v9 = vpop.f32.mrb[120].mxu1 }
 0x29f   :  { %17275 = vst [vmem:[#allocation114_spill] sm:$0xff] %v12303_v32  ;;  %17278 = vst [vmem:[#allocation117_spill] sm:$0xff] %v12312_v41  ;;  %v8944_v7 = vpop.eup %8943  ;;  %8963 = vrcp.f32 %v2970_v63  ;;  %v2971_v40 = vadd.f32 1.0, %v8942_v13  ;;  %v12321_v46 = vmul.f32 -1.442695, %v12309_v29  ;;  %v12333_v29 = vadd.f32 %v2517_v9, %v17248_v25 }
 0x2a0   :  { %17279 = vst [vmem:[#allocation118_spill] sm:$0xff] %v12315_v51  ;;  %17280 = vst [vmem:[#allocation119_spill] sm:$0xff] %v12318_v20  ;;  %v8946_v52 = vpop.eup %8945  ;;  %8965 = vrcp.f32 %v2972_v21  ;;  %v2973_v57 = vadd.f32 1.0, %v8944_v7  ;;  %v12324_v10 = vmul.f32 -1.442695, %v12312_v41  ;;  %v2406_v51 = vpop.f32.mrb[121].mxu0 }
 0x2a1   :  { %17281 = vst [vmem:[#allocation120_spill] sm:$0xff] %v12321_v46  ;;  %v8948_v28 = vpop.eup %8947  ;;  %8967 = vrcp.f32 %v2971_v40  ;;  %v2974_v63 = vadd.f32 1.0, %v8946_v52  ;;  %v12327_v13 = vmul.f32 -1.442695, %v12318_v20  ;;  %17284 = vst [vmem:[#allocation123_spill] sm:$0xff] %v12330_v56  ;;  %v12336_v41 = vadd.f32 %v2406_v51, %v17249_v37  ;;  %v2408_v40 = vpop.f32.mrb[122].mxu0 }
 0x2a2   :  { %17282 = vst [vmem:[#allocation121_spill] sm:$0xff] %v12324_v10  ;;  %v8950_v21 = vpop.eup %8949  ;;  %8969 = vrcp.f32 %v2973_v57  ;;  %v2976_v7 = vadd.f32 1.0, %v8948_v28  ;;  %17285 = vst [vmem:[#allocation124_spill] sm:$0xff] %v12333_v29  ;;  %v2519_v10 = vpop.f32.mrb[121].mxu1  ;;  %v12345_v32 = vmul.f32 -1.442695, %v12333_v29 }
 0x2a3   :  { %17283 = vst [vmem:[#allocation122_spill] sm:$0xff] %v12327_v13  ;;  %17286 = vst [vmem:[#allocation125_spill] sm:$0xff] %v12336_v41  ;;  %v8952_v52 = vpop.eup %8951  ;;  %8971 = vrcp.f32 %v2974_v63  ;;  %v2975_v20 = vadd.f32 1.0, %v8950_v21  ;;  %v12339_v13 = vmul.f32 -1.442695, %v12330_v56  ;;  %v12342_v36 = vadd.f32 %v2519_v10, %v17250_v22  ;;  %v2521_v46 = vpop.f32.mrb[122].mxu1 }
 0x2a4   :  { %v2410_v57 = vpop.f32.mrb[123].mxu0  ;;  %v8954_v28 = vpop.eup %8953  ;;  %8973 = vrcp.f32 %v2976_v7  ;;  %v2977_v9 = vadd.f32 1.0, %v8952_v52  ;;  %v12348_v51 = vmul.f32 -1.442695, %v12336_v41  ;;  %v12354_v10 = vadd.f32 %v2408_v40, %v17247_v19 }
 0x2a5   :  { %17287 = vst [vmem:[#allocation127_spill] sm:$0xff] %v12339_v13  ;;  %17288 = vst [vmem:[#allocation128_spill] sm:$0xff] %v12342_v36  ;;  %v2523_v49 = vpop.f32.mrb[123].mxu1  ;;  %v8956_v63 = vpop.eup %8955  ;;  %8975 = vrcp.f32 %v2975_v20  ;;  %v2978_v21 = vadd.f32 1.0, %v8954_v28  ;;  %v12351_v56 = vmul.f32 -1.442695, %v12342_v36  ;;  %v12357_v52 = vadd.f32 %v2521_v46, %v17248_v25 }
 0x2a6   :  { %17289 = vst [vmem:[#allocation129_spill] sm:$0xff] %v12348_v51  ;;  %17290 = vst [vmem:[#allocation130_spill] sm:$0xff] %v12354_v10  ;;  %v8958_v13 = vpop.eup %8957  ;;  %8977 = vrcp.f32 %v2977_v9  ;;  %v2980_v7 = vadd.f32 1.0, %v8956_v63  ;;  %v12360_v29 = vadd.f32 %v2410_v57, %v17249_v37  ;;  %v12366_v20 = vmul.f32 -1.442695, %v12354_v10 }
 0x2a7   :  { %17291 = vst [vmem:[#allocation131_spill] sm:$0xff] %v12357_v52  ;;  %v8960_v41 = vpop.eup %8959  ;;  %v12363_v51 = vmul.f32 %v8958_v13, %v12066_v58  ;;  %8979 = vrcp.f32 %v2978_v21  ;;  %v12369_v40 = vadd.f32 %v2523_v49, %v17250_v22  ;;  %v12375_v46 = vmul.f32 -1.442695, %v12357_v52  ;;  %v2414_v58 = vpop.f32.mrb[124].mxu0 }
 0x2a8   :  { %17292 = vst [vmem:[#allocation132_spill] sm:$0xff] %v12360_v29  ;;  %v8962_v28 = vpop.eup %8961  ;;  %v12372_v9 = vmul.f32 %v8960_v41, %v12071_v50  ;;  %8981 = vrcp.f32 %v2980_v7  ;;  %v12378_v57 = vmul.f32 -1.442695, %v12360_v29  ;;  %v12388_v50 = vadd.f32 %v2414_v58, %v17247_v19  ;;  %v2527_v41 = vpop.f32.mrb[124].mxu1 }
 0x2a9   :  { %17293 = vst [vmem:[#allocation133_spill] sm:$0xff] %v12369_v40  ;;  %v8964_v13 = vpop.eup %8963  ;;  %v12381_v63 = vmul.f32 %v8962_v28, %v12074_v44  ;;  %8983 = vpow2.f32 %v12152_v35  ;;  %v12385_v49 = vmul.f32 -1.442695, %v12369_v40  ;;  %v2416_v21 = vpop.f32.mrb[125].mxu0  ;;  %v12395_v29 = vadd.f32 %v2527_v41, %v17248_v25 }
 0x2aa   :  { %17294 = vst [vmem:[#allocation134_spill] sm:$0xff] %v12388_v50  ;;  %v8966_v7 = vpop.eup %8965  ;;  %v12391_v52 = vmul.f32 %v8964_v13, %v12086_v1  ;;  %8985 = vpow2.f32 %v12158_v48  ;;  %v12398_v44 = vadd.f32 %v2416_v21, %v17249_v37  ;;  %v2529_v35 = vpop.f32.mrb[125].mxu1  ;;  %v12405_v10 = vmul.f32 -1.442695, %v12388_v50 }
 0x2ab   :  { %17295 = vst [vmem:[#allocation135_spill] sm:$0xff] %v12395_v29  ;;  %v2418_v28 = vpop.f32.mrb[126].mxu0  ;;  %v8968_v40 = vpop.eup %8967  ;;  %v12401_v58 = vmul.f32 %v8966_v7, %v12089_v8  ;;  %8987 = vpow2.f32 %v12177_v39  ;;  %v12408_v1 = vadd.f32 %v2529_v35, %v17250_v22  ;;  %v12415_v36 = vmul.f32 -1.442695, %v12395_v29 }
 0x2ac   :  { %17296 = vst [vmem:[#allocation136_spill] sm:$0xff] %v12398_v44  ;;  %v2531_v48 = vpop.f32.mrb[126].mxu1  ;;  %v2420_v13 = vpop.f32.mrb[127].mxu0  ;;  %v12411_v21 = vmul.f32 %v8968_v40, %v12092_v38  ;;  %8989 = vpow2.f32 %v12187_v47  ;;  %v12418_v8 = vmul.f32 -1.442695, %v12398_v44  ;;  %v12428_v38 = vadd.f32 %v2418_v28, %v17247_v19 }
 0x2ad   :  { %17297 = vst [vmem:[#allocation137_spill] sm:$0xff] %v12408_v1  ;;  %v8970_v41 = vpop.eup %8969  ;;  %v2533_v39 = vpop.f32.mrb[127].mxu1  ;;  %8991 = vpow2.f32 %v12190_v14  ;;  %v12425_v35 = vmul.f32 -1.442695, %v12408_v1  ;;  %v12435_v44 = vadd.f32 %v2531_v48, %v17248_v25 }
 0x2ae   :  { %v8972_v7 = vpop.eup %8971  ;;  %v12421_v50 = vmul.f32 %v8970_v41, %v12098_v60  ;;  %17298 = vst [vmem:[#allocation138_spill] sm:$0xff] %v12428_v38  ;;  %8993 = vpow2.f32 %v12197_v4  ;;  %v12438_v60 = vadd.f32 %v2420_v13, %v17249_v37  ;;  %v12445_v28 = vmul.f32 -1.442695, %v12428_v38  ;;  %v2570_v13 = vpop.f32.mrb[128].mxu0 }
 0x2af   :  { %v8974_v47 = vpop.eup %8973  ;;  %v12431_v40 = vmul.f32 %v8972_v7, %v12110_v59  ;;  %17299 = vst [vmem:[#allocation139_spill] sm:$0xff] %v12435_v44  ;;  %8995 = vpow2.f32 %v12217_v45  ;;  %v12448_v59 = vadd.f32 %v2533_v39, %v17250_v22  ;;  %v12455_v48 = vmul.f32 -1.442695, %v12435_v44 }
 0x2b0   :  { %17300 = vst [vmem:[#allocation140_spill] sm:$0xff] %v12438_v60  ;;  %v8976_v41 = vpop.eup %8975  ;;  %v12441_v14 = vmul.f32 %v8974_v47, %v12113_v61  ;;  %8997 = vpow2.f32 %v12227_v55  ;;  %v12458_v61 = vmul.f32 -1.442695, %v12438_v60  ;;  %v2572_v55 = vpop.f32.mrb[129].mxu0 }
 0x2b1   :  { %17301 = vst [vmem:[#allocation141_spill] sm:$0xff] %v12448_v59  ;;  %v8978_v7 = vpop.eup %8977  ;;  %v12451_v4 = vmul.f32 %v8976_v41, %v12116_v54  ;;  %8999 = vpow2.f32 %v12230_v33  ;;  %v12465_v39 = vmul.f32 -1.442695, %v12448_v59  ;;  %v2571_v54 = vadd.f32 %v2570_v13, %v10857_v18  ;;  %v2683_v41 = vpop.f32.mrb[128].mxu1 }
 0x2b2   :  { %v8980_v45 = vpop.eup %8979  ;;  %v12461_v47 = vmul.f32 %v8978_v7, %v12122_v0  ;;  %9001 = vpow2.f32 %v12237_v15  ;;  %v2684_v25 = vadd.f32 %v2683_v41, %v10860_v34  ;;  %v2573_v0 = vadd.f32 %v2572_v55, %v10863_v3  ;;  %v2685_v7 = vpop.f32.mrb[129].mxu1 }
 0x2b3   :  { %17302 = vst [vmem:[#allocation142_spill] sm:$0xff] %v12465_v39  ;;  %v8982_v22 = vpop.eup %8981  ;;  %v12469_v37 = vmul.f32 %v8980_v45, %v12134_v16  ;;  %v2574_v19 = vpop.f32.mrb[130].mxu0  ;;  %9003 = vpow2.f32 %v12257_v24  ;;  %v12479_v13 = vadd.f32 %v12155_v53, %v2571_v54  ;;  %v2686_v16 = vadd.f32 %v2685_v7, %v10866_v17  ;;  %v17335_v39 = vld [vmem:[#allocation127_spill] sm:$0xff] }
 0x2b4   :  { %v8984_v33 = vpop.eup %8983  ;;  %v12475_v59 = vmul.f32 %v8982_v22, %v12137_v11  ;;  %v2687_v45 = vpop.f32.mrb[130].mxu1  ;;  %9005 = vpow2.f32 %v12267_v2  ;;  %v12484_v41 = vadd.f32 %v12164_v31, %v2684_v25  ;;  %v12487_v55 = vadd.f32 %v12173_v30, %v2573_v0 }
 0x2b5   :  { %v2576_v60 = vpop.f32.mrb[131].mxu0  ;;  %v8986_v15 = vpop.eup %8985  ;;  %v2979_v44 = vadd.f32 1.0, %v8984_v33  ;;  %9007 = vpow2.f32 %v12270_v23  ;;  %v12491_v53 = vadd.f32 %v12183_v62, %v2686_v16  ;;  %v2575_v54 = vadd.f32 %v2574_v19, %v10857_v18 }
 0x2b6   :  { %v2689_v11 = vpop.f32.mrb[131].mxu1  ;;  %v8988_v22 = vpop.eup %8987  ;;  %v2981_v24 = vadd.f32 1.0, %v8986_v15  ;;  %v2688_v2 = vadd.f32 %v2687_v45, %v10860_v34  ;;  %v2577_v25 = vadd.f32 %v2576_v60, %v10863_v3 }
 0x2b7   :  { %v8990_v7 = vpop.eup %8989  ;;  %9009 = vrcp.f32 %v2979_v44  ;;  %v2982_v33 = vadd.f32 1.0, %v8988_v22  ;;  %v12497_v0 = vadd.f32 %v12193_v42, %v2575_v54  ;;  %v2690_v23 = vadd.f32 %v2689_v11, %v10866_v17  ;;  %v2580_v16 = vpop.f32.mrb[132].mxu0 }
 0x2b8   :  { %v8992_v31 = vpop.eup %8991  ;;  %9011 = vrcp.f32 %v2981_v24  ;;  %v2984_v30 = vadd.f32 1.0, %v8990_v7  ;;  %v12501_v19 = vadd.f32 %v12203_v12, %v2688_v2  ;;  %v3215_v44 = vadd.f32 %v12213_v27, %v2577_v25  ;;  %v2693_v24 = vpop.f32.mrb[132].mxu1 }
 0x2b9   :  { %v8994_v15 = vpop.eup %8993  ;;  %9013 = vrcp.f32 %v2982_v33  ;;  %v2983_v62 = vadd.f32 1.0, %v8992_v31  ;;  %v3274_v22 = vpack.c.bf16 %v12497_v0, %v12479_v13  ;;  %v3217_v42 = vadd.f32 %v12223_v5, %v2690_v23  ;;  %v2582_v54 = vpop.f32.mrb[133].mxu0 }
 0x2ba   :  { %v8996_v45 = vpop.eup %8995  ;;  %9015 = vrcp.f32 %v2984_v30  ;;  %v2985_v60 = vadd.f32 1.0, %v8994_v15  ;;  %v3276_v12 = vpack.c.bf16 %v12501_v19, %v12484_v41  ;;  %v2581_v33 = vadd.f32 %v2580_v16, %v10857_v18  ;;  %v2695_v27 = vpop.f32.mrb[133].mxu1 }
 0x2bb   :  { %v8998_v11 = vpop.eup %8997  ;;  %9017 = vrcp.f32 %v2983_v62  ;;  %v2986_v7 = vadd.f32 1.0, %v8996_v45  ;;  %v2584_v2 = vpop.f32.mrb[134].mxu0  ;;  %v2694_v30 = vadd.f32 %v2693_v24, %v10860_v34  ;;  %v2583_v13 = vadd.f32 %v2582_v54, %v10863_v3 }
 0x2bc   :  { %v9000_v25 = vpop.eup %8999  ;;  %9019 = vrcp.f32 %v2985_v60  ;;  %v2988_v31 = vadd.f32 1.0, %v8998_v11  ;;  %v2697_v5 = vpop.f32.mrb[134].mxu1  ;;  %v12513_v62 = vadd.f32 %v12233_v6, %v2581_v33  ;;  %v2696_v41 = vadd.f32 %v2695_v27, %v10866_v17 }
 0x2bd   :  { %v2586_v0 = vpop.f32.mrb[135].mxu0  ;;  %v9002_v23 = vpop.eup %9001  ;;  %9021 = vrcp.f32 %v2986_v7  ;;  %v2987_v15 = vadd.f32 1.0, %v9000_v25  ;;  %v12517_v60 = vadd.f32 %v12243_v26, %v2694_v30  ;;  %v12520_v24 = vadd.f32 %v12253_v43, %v2583_v13  ;;  %v17303_v7 = vld [vmem:[#allocation96_spill] sm:$0xff] }
 0x2be   :  { %v2699_v19 = vpop.f32.mrb[135].mxu1  ;;  %v9004_v16 = vpop.eup %9003  ;;  %9023 = vrcp.f32 %v2988_v31  ;;  %v2989_v45 = vadd.f32 1.0, %v9002_v23  ;;  %v12523_v25 = vadd.f32 %v17303_v7, %v2696_v41  ;;  %v2585_v6 = vadd.f32 %v2584_v2, %v10857_v18  ;;  %v17304_v43 = vld [vmem:[#allocation100_spill] sm:$0xff]  ;;  %v17305_v7 = vld [vmem:[#allocation83_spill] sm:$0xff] }
 0x2bf   :  { %v9006_v54 = vpop.eup %9005  ;;  %9025 = vrcp.f32 %v2987_v15  ;;  %v2990_v11 = vadd.f32 1.0, %v9004_v16  ;;  %v2698_v31 = vadd.f32 %v2697_v5, %v10860_v34  ;;  %v3275_v23 = vpack.c.bf16 %v3215_v44, %v12487_v55  ;;  %v2590_v16 = vpop.f32.mrb[136].mxu0 }
 0x2c0   :  { %v9008_v33 = vpop.eup %9007  ;;  %9027 = vrcp.f32 %v2989_v45  ;;  %v2992_v27 = vadd.f32 1.0, %v9006_v54  ;;  %v12529_v13 = vadd.f32 %v17304_v43, %v2585_v6  ;;  %v3277_v15 = vpack.c.bf16 %v3217_v42, %v12491_v53  ;;  %v2703_v44 = vpop.f32.mrb[136].mxu1  ;;  %v17306_v54 = vld [vmem:[#allocation105_spill] sm:$0xff] }
 0x2c1   :  { %v9010_v26 = vpop.eup %9009  ;;  %9029 = vrcp.f32 %v2990_v11  ;;  %v2991_v30 = vadd.f32 1.0, %v9008_v33  ;;  %v12536_v2 = vadd.f32 %v12363_v51, %v2698_v31  ;;  %3338 = vmatprep.mubr.bf16.mxu0 %v3275_v23  ;;  %v2587_v55 = vadd.f32 %v2586_v0, %v10863_v3  ;;  %v2592_v5 = vpop.f32.mrb[137].mxu0  ;;  %v17308_v0 = vld [vmem:[#allocation101_spill] sm:$0xff] }
 0x2c2   :  { %v9012_v41 = vpop.eup %9011  ;;  %v12533_v38 = vmul.f32 %v9010_v26, %v17305_v7  ;;  %9031 = vrcp.f32 %v2992_v27  ;;  %3435 = vmatprep.mubr.bf16.mxu1 %v3277_v15  ;;  %v2700_v53 = vadd.f32 %v2699_v19, %v10866_v17  ;;  %3339 = vmatmul.mubr.bf16.vlgmr.msra.gmra.mrb[160].mxu0 %v3274_v22  ;;  %v2591_v42 = vadd.f32 %v2590_v16, %v10857_v18  ;;  %v2705_v6 = vpop.f32.mrb[137].mxu1  ;;  %v17307_v27 = vld [vmem:[#allocation84_spill] sm:$0xff]  ;;  %v17310_v15 = vld [vmem:[#allocation106_spill] sm:$0xff] }
 0x2c3   :  { %v9014_v45 = vpop.eup %9013  ;;  %v12540_v11 = vmul.f32 %v9012_v41, %v17306_v54  ;;  %9033 = vrcp.f32 %v2991_v30  ;;  %v2594_v33 = vpop.f32.mrb[138].mxu0  ;;  %v3223_v23 = vadd.f32 %v12372_v9, %v2587_v55  ;;  %3436 = vmatmul.mubr.bf16.vlgmr.msra.gmra.mrb[160].mxu1 %v3276_v12  ;;  %v17309_v26 = vld [vmem:[#allocation8_spill] sm:$0xff]  ;;  %v2704_v30 = vadd.f32 %v2703_v44, %v10860_v34  ;;  %v17311_v41 = vld [vmem:[#allocation109_spill] sm:$0xff]  ;;  %v17313_v12 = vld [vmem:[#allocation11_spill] sm:$0xff] }
 0x2c4   :  { %v9016_v51 = vpop.eup %9015  ;;  %v12545_v31 = vmul.f32 %v9014_v45, %v17307_v27  ;;  %9035 = vpow2.f32 %v17308_v0  ;;  %3526 = vmatpush1.bf16.msra.mxu0 %v17309_v26  ;;  %v2707_v43 = vpop.f32.mrb[138].mxu1  ;;  %v3225_v7 = vadd.f32 %v12381_v63, %v2700_v53  ;;  %v17312_v45 = vld [vmem:[#allocation10_spill] sm:$0xff]  ;;  %v12558_v54 = vadd.f32 %v12391_v52, %v2591_v42  ;;  %v17314_v44 = vld [vmem:[#allocation85_spill] sm:$0xff]  ;;  %v17315_v0 = vld [vmem:[#allocation112_spill] sm:$0xff] }
 0x2c5   :  { %v2596_v19 = vpop.f32.mrb[139].mxu0  ;;  %v9018_v22 = vpop.eup %9017  ;;  %v12552_v16 = vmul.f32 %v9016_v51, %v17310_v15  ;;  %9037 = vpow2.f32 %v17311_v41  ;;  %3639 = vmatpush1.bf16.msra.mxu1 %v17312_v45  ;;  %3527 = vmatprep.subr.bf16.mxu0 %v17313_v12  ;;  %v12566_v51 = vadd.f32 %v12401_v58, %v2704_v30  ;;  %v2593_v15 = vadd.f32 %v2592_v5, %v10863_v3  ;;  %v17316_v63 = vld [vmem:[#allocation12_spill] sm:$0xff]  ;;  %v17317_v41 = vld [vmem:[#allocation107_spill] sm:$0xff]  ;;  %v17318_v42 = vld [vmem:[#allocation126_spill] sm:$0xff] }
 0x2c6   :  { %v2709_v9 = vpop.f32.mrb[139].mxu1  ;;  %v9020_v55 = vpop.eup %9019  ;;  %v12562_v27 = vmul.f32 %v9018_v22, %v17314_v44  ;;  %9039 = vpow2.f32 %v17315_v0  ;;  %3640 = vmatprep.subr.bf16.mxu1 %v17316_v63  ;;  %v2706_v12 = vadd.f32 %v2705_v6, %v10866_v17  ;;  %v2595_v22 = vadd.f32 %v2594_v33, %v10857_v18  ;;  %v17319_v45 = vld [vmem:[#allocation86_spill] sm:$0xff]  ;;  %v17321_v63 = vld [vmem:[#allocation13_spill] sm:$0xff]  ;;  %v17327_v26 = vld [vmem:[#allocation120_spill] sm:$0xff] }
 0x2c7   :  { %v9022_v53 = vpop.eup %9021  ;;  %v12571_v52 = vmul.f32 %v9020_v55, %v17317_v41  ;;  %9041 = vpow2.f32 %v17318_v42  ;;  %v17320_v58 = vld [vmem:[#allocation114_spill] sm:$0xff]  ;;  %v12581_v5 = vadd.f32 %v12411_v21, %v2593_v15  ;;  %v2708_v30 = vadd.f32 %v2707_v43, %v10860_v34  ;;  %v17322_v41 = vld [vmem:[#allocation111_spill] sm:$0xff]  ;;  %v2600_v21 = vpop.f32.mrb[140].mxu0 }
 0x2c8   :  { %v9024_v44 = vpop.eup %9023  ;;  %v12577_v0 = vmul.f32 %v9022_v53, %v17319_v45  ;;  %9043 = vpow2.f32 %v17320_v58  ;;  %3528 = vmatpush1.bf16.msra.mxu0 %v17321_v63  ;;  %v17323_v6 = vld [vmem:[#allocation118_spill] sm:$0xff]  ;;  %v12590_v33 = vadd.f32 %v12421_v50, %v2706_v12  ;;  %v12593_v45 = vadd.f32 %v12431_v40, %v2595_v22  ;;  %v17325_v15 = vld [vmem:[#allocation15_spill] sm:$0xff]  ;;  %v2713_v12 = vpop.f32.mrb[140].mxu1  ;;  %v17328_v40 = vld [vmem:[#allocation16_spill] sm:$0xff] }
 0x2c9   :  { %v9026_v55 = vpop.eup %9025  ;;  %v12586_v42 = vmul.f32 %v9024_v44, %v17322_v41  ;;  %9045 = vpow2.f32 %v17323_v6  ;;  %v17324_v53 = vld [vmem:[#allocation14_spill] sm:$0xff]  ;;  %3529 = vmatprep.subr.bf16.mxu0 %v17325_v15  ;;  %v17326_v58 = vld [vmem:[#allocation87_spill] sm:$0xff]  ;;  %v12602_v44 = vadd.f32 %v12441_v14, %v2708_v30  ;;  %v3279_v50 = vpack.c.bf16 %v3223_v23, %v12520_v24  ;;  %v2602_v41 = vpop.f32.mrb[141].mxu0  ;;  %v17329_v6 = vld [vmem:[#allocation113_spill] sm:$0xff] }
 0x2ca   :  { %3641 = vmatpush1.bf16.msra.mxu1 %v17324_v53  ;;  %v9028_v43 = vpop.eup %9027  ;;  %v12598_v63 = vmul.f32 %v9026_v55, %v17326_v58  ;;  %9047 = vpow2.f32 %v17327_v26  ;;  %v17330_v15 = vld [vmem:[#allocation121_spill] sm:$0xff]  ;;  %v3281_v55 = vpack.c.bf16 %v3225_v7, %v12523_v25  ;;  %v2597_v58 = vadd.f32 %v2596_v19, %v10863_v3  ;;  %v2715_v26 = vpop.f32.mrb[141].mxu1  ;;  %v17331_v30 = vld [vmem:[#allocation88_spill] sm:$0xff]  ;;  %v17332_v24 = vld [vmem:[#allocation122_spill] sm:$0xff] }
 0x2cb   :  { %3642 = vmatprep.subr.bf16.mxu1 %v17328_v40  ;;  %v9030_v22 = vpop.eup %9029  ;;  %v12607_v53 = vmul.f32 %v9028_v43, %v17329_v6  ;;  %9049 = vpow2.f32 %v17330_v15  ;;  %v2604_v1 = vpop.f32.mrb[142].mxu0  ;;  %3346 = vmatprep.mubr.bf16.mxu0 %v3279_v50  ;;  %v2710_v23 = vadd.f32 %v2709_v9, %v10866_v17  ;;  %v3278_v43 = vpack.c.bf16 %v12529_v13, %v12513_v62  ;;  %v17333_v25 = vld [vmem:[#allocation17_spill] sm:$0xff]  ;;  %v17334_v7 = vld [vmem:[#allocation92_spill] sm:$0xff]  ;;  %v17336_v62 = vld [vmem:[#allocation18_spill] sm:$0xff] }
 0x2cc   :  { %v9032_v14 = vpop.eup %9031  ;;  %v12613_v29 = vmul.f32 %v9030_v22, %v17331_v30  ;;  %9051 = vpow2.f32 %v17332_v24  ;;  %v2717_v6 = vpop.f32.mrb[142].mxu1  ;;  %3530 = vmatpush1.bf16.msra.mxu0 %v17333_v25  ;;  %3443 = vmatprep.mubr.bf16.mxu1 %v3281_v55  ;;  %v3231_v22 = vadd.f32 %v12451_v4, %v2597_v58  ;;  %v3280_v9 = vpack.c.bf16 %v12536_v2, %v12517_v60  ;;  %v17337_v30 = vld [vmem:[#allocation93_spill] sm:$0xff]  ;;  %v17338_v55 = vld [vmem:[#allocation19_spill] sm:$0xff] }
 0x2cd   :  { %v12619_v15 = vpop.f32.mrb[143].mxu0  ;;  %v9034_v19 = vpop.eup %9033  ;;  %v12623_v40 = vmul.f32 %v9032_v14, %v17334_v7  ;;  %9053 = vpow2.f32 %v17335_v39  ;;  %v3233_v14 = vadd.f32 %v12461_v47, %v2710_v23  ;;  %3347 = vmatmul.mubr.bf16.gmra.mrb[164].mxu0 %v3278_v43  ;;  %v2601_v39 = vadd.f32 %v2600_v21, %v10857_v18  ;;  %3531 = vmatprep.subr.bf16.mxu0 %v17338_v55  ;;  %v17339_v60 = vld [vmem:[#allocation129_spill] sm:$0xff] }
 0x2ce   :  { %v12629_v50 = vpop.f32.mrb[143].mxu1  ;;  %3643 = vmatpush1.bf16.msra.mxu1 %v17336_v62  ;;  %v9036_v13 = vpop.eup %9035  ;;  %v12633_v24 = vmul.f32 %v9034_v19, %v17337_v30  ;;  %9055 = vpow2.f32 %v12345_v32  ;;  %v2714_v2 = vadd.f32 %v2713_v12, %v10860_v34  ;;  %v2603_v7 = vadd.f32 %v2602_v41, %v10863_v3  ;;  %v17340_v19 = vld [vmem:[#allocation20_spill] sm:$0xff]  ;;  %v17341_v23 = vld [vmem:[#allocation21_spill] sm:$0xff] }
 0x2cf   :  { %v9038_v4 = vpop.eup %9037  ;;  %v2993_v58 = vadd.f32 1.0, %v9036_v13  ;;  %9057 = vpow2.f32 %v17339_v60  ;;  %3444 = vmatmul.mubr.bf16.gmra.mrb[164].mxu1 %v3280_v9  ;;  %3644 = vmatprep.subr.bf16.mxu1 %v17340_v19  ;;  %v12645_v47 = vadd.f32 %v12469_v37, %v2601_v39  ;;  %v2716_v21 = vadd.f32 %v2715_v26, %v10866_v17  ;;  %v2610_v13 = vpop.f32.mrb[144].mxu0 }
 0x2d0   :  { %v9040_v30 = vpop.eup %9039  ;;  %v2994_v32 = vadd.f32 1.0, %v9038_v4  ;;  %9059 = vpow2.f32 %v12351_v56  ;;  %3532 = vmatpush1.bf16.msra.mxu0 %v17341_v23  ;;  %v12650_v12 = vadd.f32 %v12475_v59, %v2714_v2  ;;  %v12653_v41 = vadd.f32 %v12533_v38, %v2603_v7  ;;  %v17342_v4 = vld [vmem:[#allocation22_spill] sm:$0xff]  ;;  %v17343_v56 = vld [vmem:[#allocation23_spill] sm:$0xff]  ;;  %v2723_v60 = vpop.f32.mrb[144].mxu1  ;;  %v17344_v59 = vld [vmem:[#allocation24_spill] sm:$0xff] }
 0x2d1   :  { %v9042_v43 = vpop.eup %9041  ;;  %9061 = vrcp.f32 %v2993_v58  ;;  %v2996_v9 = vadd.f32 1.0, %v9040_v30  ;;  %3533 = vmatprep.subr.bf16.mxu0 %v17343_v56  ;;  %v12658_v26 = vadd.f32 %v12540_v11, %v2716_v21  ;;  %v2605_v58 = vadd.f32 %v2604_v1, %v10857_v18  ;;  %v2612_v30 = vpop.f32.mrb[145].mxu0 }
 0x2d2   :  { %3645 = vmatpush1.bf16.msra.mxu1 %v17342_v4  ;;  %v9044_v37 = vpop.eup %9043  ;;  %9063 = vrcp.f32 %v2994_v32  ;;  %v2995_v39 = vadd.f32 1.0, %v9042_v43  ;;  %v2718_v7 = vadd.f32 %v2717_v6, %v10860_v34  ;;  %v3283_v4 = vpack.c.bf16 %v3231_v22, %v12581_v5  ;;  %v2725_v56 = vpop.f32.mrb[145].mxu1 }
 0x2d3   :  { %3646 = vmatprep.subr.bf16.mxu1 %v17344_v59  ;;  %v9046_v2 = vpop.eup %9045  ;;  %9065 = vrcp.f32 %v2996_v9  ;;  %v2997_v38 = vadd.f32 1.0, %v9044_v37  ;;  %v12664_v23 = vpop.f32.mrb[146].mxu0  ;;  %v12667_v21 = vadd.f32 %v12545_v31, %v2605_v58  ;;  %v3285_v1 = vpack.c.bf16 %v3233_v14, %v12590_v33  ;;  %v17345_v9 = vld [vmem:[#allocation25_spill] sm:$0xff] }
 0x2d4   :  { %v9048_v32 = vpop.eup %9047  ;;  %9067 = vrcp.f32 %v2995_v39  ;;  %v2998_v11 = vadd.f32 1.0, %v9046_v2  ;;  %v12670_v43 = vpop.f32.mrb[146].mxu1  ;;  %3534 = vmatpush1.bf16.msra.mxu0 %v17345_v9  ;;  %v12676_v22 = vadd.f32 %v12552_v16, %v2718_v7  ;;  %3354 = vmatprep.mubr.bf16.mxu0 %v3283_v4  ;;  %v2607_v37 = vadd.f32 %v12619_v15, %v10863_v3  ;;  %v17346_v39 = vld [vmem:[#allocation26_spill] sm:$0xff]  ;;  %v17347_v16 = vld [vmem:[#allocation27_spill] sm:$0xff] }
 0x2d5   :  { %v12672_v59 = vpop.f32.mrb[147].mxu0  ;;  %v9050_v6 = vpop.eup %9049  ;;  %9069 = vrcp.f32 %v2997_v38  ;;  %v3000_v5 = vadd.f32 1.0, %v9048_v32  ;;  %3451 = vmatprep.mubr.bf16.mxu1 %v3285_v1  ;;  %v2720_v58 = vadd.f32 %v12629_v50, %v10866_v17  ;;  %v3282_v2 = vpack.c.bf16 %v12593_v45, %v12558_v54  ;;  %3535 = vmatprep.subr.bf16.mxu0 %v17347_v16  ;;  %v17348_v32 = vld [vmem:[#allocation28_spill] sm:$0xff] }
 0x2d6   :  { %v12680_v31 = vpop.f32.mrb[147].mxu1  ;;  %3647 = vmatpush1.bf16.msra.mxu1 %v17346_v39  ;;  %v9052_v33 = vpop.eup %9051  ;;  %9071 = vrcp.f32 %v2998_v11  ;;  %v2999_v14 = vadd.f32 1.0, %v9050_v6  ;;  %v3239_v15 = vadd.f32 %v12562_v27, %v2607_v37  ;;  %v3284_v7 = vpack.c.bf16 %v12602_v44, %v12566_v51  ;;  %v17349_v51 = vld [vmem:[#allocation29_spill] sm:$0xff] }
 0x2d7   :  { %v9054_v4 = vpop.eup %9053  ;;  %9073 = vrcp.f32 %v3000_v5  ;;  %v3001_v38 = vadd.f32 1.0, %v9052_v33  ;;  %3648 = vmatprep.subr.bf16.mxu1 %v17348_v32  ;;  %v3241_v50 = vadd.f32 %v12571_v52, %v2720_v58  ;;  %3355 = vmatmul.mubr.bf16.gmra.mrb[168].mxu0 %v3282_v2  ;;  %v2611_v54 = vadd.f32 %v2610_v13, %v10857_v18  ;;  %v12696_v37 = vpop.f32.mrb[148].mxu0  ;;  %v17350_v2 = vld [vmem:[#allocation30_spill] sm:$0xff] }
 0x2d8   :  { %v9056_v11 = vpop.eup %9055  ;;  %9075 = vrcp.f32 %v2999_v14  ;;  %v3002_v1 = vadd.f32 1.0, %v9054_v4  ;;  %3452 = vmatmul.mubr.bf16.gmra.mrb[168].mxu1 %v3284_v7  ;;  %v2724_v5 = vadd.f32 %v2723_v60, %v10860_v34  ;;  %v2613_v27 = vadd.f32 %v2612_v30, %v10863_v3  ;;  %3536 = vmatpush1.bf16.msra.mxu0 %v17349_v51  ;;  %v12703_v14 = vpop.f32.mrb[148].mxu1  ;;  %v17351_v60 = vld [vmem:[#allocation31_spill] sm:$0xff] }
 0x2d9   :  { %v9058_v45 = vpop.eup %9057  ;;  %9077 = vrcp.f32 %v3001_v38  ;;  %v3004_v6 = vadd.f32 1.0, %v9056_v11  ;;  %v12700_v52 = vadd.f32 %v12577_v0, %v2611_v54  ;;  %v2726_v13 = vadd.f32 %v2725_v56, %v10866_v17  ;;  %v12705_v58 = vpop.f32.mrb[149].mxu0  ;;  %3537 = vmatprep.subr.bf16.mxu0 %v17351_v60  ;;  %v17352_v11 = vld [vmem:[#allocation32_spill] sm:$0xff]  ;;  %v17353_v54 = vld [vmem:[#allocation94_spill] sm:$0xff] }
 0x2da   :  { %v9060_v44 = vpop.eup %9059  ;;  %9079 = vrcp.f32 %v3002_v1  ;;  %v3003_v33 = vadd.f32 1.0, %v9058_v45  ;;  %3649 = vmatpush1.bf16.msra.mxu1 %v17350_v2  ;;  %v12710_v38 = vadd.f32 %v12586_v42, %v2724_v5  ;;  %v12713_v7 = vadd.f32 %v12598_v63, %v2613_v27  ;;  %v12715_v0 = vpop.f32.mrb[149].mxu1  ;;  %v17354_v27 = vld [vmem:[#allocation102_spill] sm:$0xff] }
 0x2db   :  { %v9062_v30 = vpop.eup %9061  ;;  %9081 = vrcp.f32 %v3004_v6  ;;  %v3005_v4 = vadd.f32 1.0, %v9060_v44  ;;  %v12717_v56 = vpop.f32.mrb[150].mxu0  ;;  %3650 = vmatprep.subr.bf16.mxu1 %v17352_v11  ;;  %v12722_v60 = vadd.f32 %v12607_v53, %v2726_v13  ;;  %v2615_v42 = vadd.f32 %v12664_v23, %v10857_v18  ;;  %v17355_v53 = vld [vmem:[#allocation33_spill] sm:$0xff] }
 0x2dc   :  { %v9064_v1 = vpop.eup %9063  ;;  %v3185_v45 = vmul.f32 %v9062_v30, %v17353_v54  ;;  %9083 = vrcp.f32 %v3003_v33  ;;  %v12726_v6 = vpop.f32.mrb[150].mxu1  ;;  %v2728_v11 = vadd.f32 %v12670_v43, %v10860_v34  ;;  %v3287_v30 = vpack.c.bf16 %v3239_v15, %v12653_v41  ;;  %3538 = vmatpush1.bf16.msra.mxu0 %v17355_v53  ;;  %v17356_v54 = vld [vmem:[#allocation104_spill] sm:$0xff] }
 0x2dd   :  { %v12728_v63 = vpop.f32.mrb[151].mxu0  ;;  %v9066_v5 = vpop.eup %9065  ;;  %v3186_v44 = vmul.f32 %v9064_v1, %v17354_v27  ;;  %9085 = vrcp.f32 %v3005_v4  ;;  %v12740_v2 = vadd.f32 %v12613_v29, %v2615_v42  ;;  %v3289_v1 = vpack.c.bf16 %v3241_v50, %v12658_v26  ;;  %v17357_v4 = vld [vmem:[#allocation34_spill] sm:$0xff]  ;;  %v17358_v27 = vld [vmem:[#allocation35_spill] sm:$0xff]  ;;  %v17359_v41 = vld [vmem:[#allocation108_spill] sm:$0xff] }
 0x2de   :  { %v12734_v33 = vpop.f32.mrb[151].mxu1  ;;  %v9068_v13 = vpop.eup %9067  ;;  %v3188_v23 = vmul.f32 %v9066_v5, %v17356_v54  ;;  %9087 = vpow2.f32 %v12366_v20  ;;  %3651 = vmatpush1.bf16.msra.mxu1 %v17357_v4  ;;  %3539 = vmatprep.subr.bf16.mxu0 %v17358_v27  ;;  %v12748_v53 = vadd.f32 %v12623_v40, %v2728_v11  ;;  %v2617_v20 = vadd.f32 %v12672_v59, %v10863_v3  ;;  %v17360_v29 = vld [vmem:[#allocation36_spill] sm:$0xff]  ;;  %v17361_v26 = vld [vmem:[#allocation110_spill] sm:$0xff]  ;;  %v17362_v11 = vld [vmem:[#allocation115_spill] sm:$0xff] }
 0x2df   :  { %v9070_v43 = vpop.eup %9069  ;;  %v3187_v15 = vmul.f32 %v9068_v13, %v17359_v41  ;;  %9089 = vpow2.f32 %v12375_v46  ;;  %3362 = vmatprep.mubr.bf16.mxu0 %v3287_v30  ;;  %3652 = vmatprep.subr.bf16.mxu1 %v17360_v29  ;;  %v2730_v5 = vadd.f32 %v12680_v31, %v10866_v17  ;;  %v3286_v46 = vpack.c.bf16 %v12667_v21, %v12645_v47  ;;  %v12764_v54 = vpop.f32.mrb[152].mxu0  ;;  %v17365_v41 = vld [vmem:[#allocation38_spill] sm:$0xff] }
 0x2e0   :  { %v9072_v42 = vpop.eup %9071  ;;  %v3189_v50 = vmul.f32 %v9070_v43, %v17361_v26  ;;  %9091 = vpow2.f32 %v12378_v57  ;;  %3459 = vmatprep.mubr.bf16.mxu1 %v3289_v1  ;;  %v3247_v59 = vadd.f32 %v12633_v24, %v2617_v20  ;;  %v3288_v13 = vpack.c.bf16 %v12676_v22, %v12650_v12  ;;  %v17363_v57 = vld [vmem:[#allocation37_spill] sm:$0xff]  ;;  %v17364_v43 = vld [vmem:[#allocation116_spill] sm:$0xff]  ;;  %v12773_v24 = vpop.f32.mrb[153].mxu0  ;;  %v17367_v26 = vld [vmem:[#allocation39_spill] sm:$0xff] }
 0x2e1   :  { %v9074_v40 = vpop.eup %9073  ;;  %v3190_v30 = vmul.f32 %v9072_v42, %v17362_v11  ;;  %9093 = vpow2.f32 %v12385_v49  ;;  %3540 = vmatpush1.bf16.msra.mxu0 %v17363_v57  ;;  %v3249_v47 = vadd.f32 %v3185_v45, %v2730_v5  ;;  %v2621_v21 = vadd.f32 %v12696_v37, %v10857_v18  ;;  %v12771_v49 = vpop.f32.mrb[152].mxu1  ;;  %v17366_v22 = vld [vmem:[#allocation117_spill] sm:$0xff] }
 0x2e2   :  { %v9076_v1 = vpop.eup %9075  ;;  %v3192_v31 = vmul.f32 %v9074_v40, %v17364_v43  ;;  %9095 = vpow2.f32 %v12405_v10  ;;  %3363 = vmatmul.mubr.bf16.gmra.mrb[172].mxu0 %v3286_v46  ;;  %3653 = vmatpush1.bf16.msra.mxu1 %v17365_v41  ;;  %v2734_v10 = vadd.f32 %v12703_v14, %v10860_v34  ;;  %v2623_v45 = vadd.f32 %v12705_v58, %v10863_v3  ;;  %v12782_v42 = vpop.f32.mrb[153].mxu1  ;;  %v17368_v46 = vld [vmem:[#allocation119_spill] sm:$0xff]  ;;  %v17369_v58 = vld [vmem:[#allocation40_spill] sm:$0xff] }
 0x2e3   :  { %v9078_v12 = vpop.eup %9077  ;;  %v3191_v20 = vmul.f32 %v9076_v1, %v17366_v22  ;;  %9097 = vpow2.f32 %v12415_v36  ;;  %3460 = vmatmul.mubr.bf16.gmra.mrb[172].mxu1 %v3288_v13  ;;  %v12784_v37 = vpop.f32.mrb[154].mxu0  ;;  %3751 = vmatprep.subr.bf16.mxu0 %v17367_v26  ;;  %v12789_v11 = vadd.f32 %v3186_v44, %v2621_v21  ;;  %v2736_v36 = vadd.f32 %v12715_v0, %v10866_v17  ;;  %v17370_v43 = vld [vmem:[#allocation123_spill] sm:$0xff]  ;;  %v17371_v21 = vld [vmem:[#allocation124_spill] sm:$0xff] }
 0x2e4   :  { %v9080_v5 = vpop.eup %9079  ;;  %v3193_v40 = vmul.f32 %v9078_v12, %v17368_v46  ;;  %9099 = vpow2.f32 %v12418_v8  ;;  %v12793_v14 = vpop.f32.mrb[154].mxu1  ;;  %3864 = vmatprep.subr.bf16.mxu1 %v17369_v58  ;;  %v12800_v26 = vadd.f32 %v3188_v23, %v2734_v10  ;;  %v12802_v12 = vadd.f32 %v3187_v15, %v2623_v45  ;;  %v17373_v10 = vld [vmem:[#allocation128_spill] sm:$0xff] }
 0x2e5   :  { %v12795_v13 = vpop.f32.mrb[155].mxu0  ;;  %v9082_v1 = vpop.eup %9081  ;;  %v3194_v22 = vmul.f32 %v9080_v5, %v17370_v43  ;;  %9101 = vpow2.f32 %v12425_v35  ;;  %v12808_v46 = vadd.f32 %v3189_v50, %v2736_v36  ;;  %v2625_v58 = vadd.f32 %v12717_v56, %v10857_v18  ;;  %v17372_v5 = vld [vmem:[#allocation125_spill] sm:$0xff] }
 0x2e6   :  { %v12804_v8 = vpop.f32.mrb[155].mxu1  ;;  %v9084_v44 = vpop.eup %9083  ;;  %v3196_v0 = vmul.f32 %v9082_v1, %v17371_v21  ;;  %9103 = vpow2.f32 %v12445_v28  ;;  %v2738_v35 = vadd.f32 %v12726_v6, %v10860_v34  ;;  %v3291_v23 = vpack.c.bf16 %v3247_v59, %v12713_v7  ;;  %v17374_v1 = vld [vmem:[#allocation142_spill] sm:$0xff] }
 0x2e7   :  { %v9086_v41 = vpop.eup %9085  ;;  %v3195_v43 = vmul.f32 %v9084_v44, %v17372_v5  ;;  %9105 = vpow2.f32 %v12455_v48  ;;  %v12819_v28 = vadd.f32 %v3190_v30, %v2625_v58  ;;  %v3293_v50 = vpack.c.bf16 %v3249_v47, %v12722_v60  ;;  %v12827_v7 = vpop.f32.mrb[156].mxu0 }
 0x2e8   :  { %v9088_v15 = vpop.eup %9087  ;;  %v3197_v45 = vmul.f32 %v9086_v41, %v17373_v10  ;;  %9107 = vpow2.f32 %v12458_v61  ;;  %v12823_v44 = vadd.f32 %v3192_v31, %v2738_v35  ;;  %3370 = vmatprep.mubr.bf16.mxu0 %v3291_v23  ;;  %v2627_v48 = vadd.f32 %v12728_v63, %v10863_v3  ;;  %v12835_v31 = vpop.f32.mrb[156].mxu1 }
 0x2e9   :  { %v9090_v56 = vpop.eup %9089  ;;  %v3006_v36 = vadd.f32 1.0, %v9088_v15  ;;  %9109 = vpow2.f32 %v17374_v1  ;;  %3467 = vmatprep.mubr.bf16.mxu1 %v3293_v50  ;;  %v2740_v61 = vadd.f32 %v12734_v33, %v10866_v17  ;;  %v3290_v60 = vpack.c.bf16 %v12740_v2, %v12700_v52  ;;  %v12837_v47 = vpop.f32.mrb[157].mxu0 }
 0x2ea   :  { %v9092_v6 = vpop.eup %9091  ;;  %v3008_v59 = vadd.f32 1.0, %v9090_v56  ;;  %v3292_v30 = vpack.c.bf16 %v12748_v53, %v12710_v38  ;;  %v3255_v58 = vadd.f32 %v3191_v20, %v2627_v48  ;;  %v2631_v21 = vadd.f32 %v12764_v54, %v10857_v18  ;;  %v12841_v5 = vpop.f32.mrb[157].mxu1 }
 0x2eb   :  { %v9094_v41 = vpop.eup %9093  ;;  %9111 = vrcp.f32 %v3006_v36  ;;  %v3007_v63 = vadd.f32 1.0, %v9092_v6  ;;  %v12843_v33 = vpop.f32.mrb[158].mxu0  ;;  %v3257_v2 = vadd.f32 %v3193_v40, %v2740_v61  ;;  %3371 = vmatmul.mubr.bf16.gmra.mrb[176].mxu0 %v3290_v60  ;;  %v2744_v38 = vadd.f32 %v12771_v49, %v10860_v34 }
 0x2ec   :  { %v9096_v35 = vpop.eup %9095  ;;  %9113 = vrcp.f32 %v3008_v59  ;;  %v3009_v52 = vadd.f32 1.0, %v9094_v41  ;;  %3468 = vmatmul.mubr.bf16.gmra.mrb[176].mxu1 %v3292_v30  ;;  %v12847_v53 = vpop.f32.mrb[158].mxu1  ;;  %v12851_v15 = vadd.f32 %v3194_v22, %v2631_v21  ;;  %v2633_v10 = vadd.f32 %v12773_v24, %v10863_v3 }
 0x2ed   :  { %v12849_v23 = vpop.f32.mrb[159].mxu0  ;;  %v9098_v20 = vpop.eup %9097  ;;  %9115 = vrcp.f32 %v3007_v63  ;;  %v3010_v54 = vadd.f32 1.0, %v9096_v35  ;;  %v12857_v36 = vadd.f32 %v3196_v0, %v2744_v38  ;;  %v2746_v49 = vadd.f32 %v12782_v42, %v10866_v17 }
 0x2ee   :  { %v12855_v50 = vpop.f32.mrb[159].mxu1  ;;  %v9100_v40 = vpop.eup %9099  ;;  %9117 = vrcp.f32 %v3009_v52  ;;  %v3012_v56 = vadd.f32 1.0, %v9098_v20  ;;  %v12861_v6 = vadd.f32 %v3195_v43, %v2633_v10  ;;  %v3295_v30 = vpack.c.bf16 %v3255_v58, %v12802_v12 }
 0x2ef   :  { %v9102_v1 = vpop.eup %9101  ;;  %9119 = vrcp.f32 %v3010_v54  ;;  %v3011_v48 = vadd.f32 1.0, %v9100_v40  ;;  %v12863_v61 = vadd.f32 %v3197_v45, %v2746_v49  ;;  %v3297_v0 = vpack.c.bf16 %v3257_v2, %v12808_v46  ;;  %v17375_v2 = vld [vmem:[#allocation130_spill] sm:$0xff]  ;;  %v17377_v54 = vld [vmem:[#allocation132_spill] sm:$0xff]  ;;  %v17378_v49 = vld [vmem:[#allocation133_spill] sm:$0xff] }
 0x2f0   :  { %v9104_v22 = vpop.eup %9103  ;;  %9121 = vrcp.f32 %v3012_v56  ;;  %v3013_v59 = vadd.f32 1.0, %v9102_v1  ;;  %3378 = vmatprep.mubr.bf16.mxu0 %v3295_v30  ;;  %v3294_v43 = vpack.c.bf16 %v12819_v28, %v12789_v11  ;;  %v3296_v45 = vpack.c.bf16 %v12823_v44, %v12800_v26  ;;  %v17376_v28 = vld [vmem:[#allocation131_spill] sm:$0xff] }
 0x2f1   :  { %v9106_v24 = vpop.eup %9105  ;;  %9123 = vrcp.f32 %v3011_v48  ;;  %v3014_v60 = vadd.f32 1.0, %v9104_v22  ;;  %3475 = vmatprep.mubr.bf16.mxu1 %v3297_v0  ;;  %v2635_v12 = vadd.f32 %v12784_v37, %v10857_v18  ;;  %v2748_v58 = vadd.f32 %v12793_v14, %v10860_v34 }
 0x2f2   :  { %v9108_v41 = vpop.eup %9107  ;;  %9125 = vrcp.f32 %v3013_v59  ;;  %v3016_v42 = vadd.f32 1.0, %v9106_v24  ;;  %v2637_v11 = vadd.f32 %v12795_v13, %v10863_v3  ;;  %v2750_v37 = vadd.f32 %v12804_v8, %v10866_v17  ;;  %v17379_v59 = vld [vmem:[#allocation134_spill] sm:$0xff] }
 0x2f3   :  { %v9110_v63 = vpop.eup %9109  ;;  %9127 = vrcp.f32 %v3014_v60  ;;  %v3015_v21 = vadd.f32 1.0, %v9108_v41  ;;  %3379 = vmatmul.mubr.bf16.gmra.mrb[180].mxu0 %v3294_v43  ;;  %v2641_v14 = vadd.f32 %v12827_v7, %v10857_v18  ;;  %v2754_v13 = vadd.f32 %v12835_v31, %v10860_v34  ;;  %v17380_v41 = vld [vmem:[#allocation135_spill] sm:$0xff]  ;;  %v17381_v31 = vld [vmem:[#allocation136_spill] sm:$0xff] }
 0x2f4   :  { %9129 = vrcp.f32 %v3016_v42  ;;  %v3017_v35 = vadd.f32 1.0, %v9110_v63  ;;  %3476 = vmatmul.mubr.bf16.gmra.mrb[180].mxu1 %v3296_v45  ;;  %v2643_v8 = vadd.f32 %v12837_v47, %v10863_v3  ;;  %v2756_v63 = vadd.f32 %v12841_v5, %v10866_v17 }
 0x2f5   :  { %v9112_v46 = vpop.eup %9111  ;;  %9131 = vrcp.f32 %v3015_v21 }
 0x2f6   :  { %v9114_v52 = vpop.eup %9113  ;;  %v3198_v38 = vmul.f32 %v9112_v46, %v17375_v2  ;;  %9133 = vrcp.f32 %v3017_v35  ;;  %v2758_v2 = vadd.f32 %v12847_v53, %v10860_v34 }
 0x2f7   :  { %v9116_v26 = vpop.eup %9115  ;;  %v3200_v44 = vmul.f32 %v9114_v52, %v17376_v28  ;;  %v2647_v28 = vadd.f32 %v12849_v23, %v10863_v3 }
 0x2f8   :  { %v9118_v20 = vpop.eup %9117  ;;  %v3199_v10 = vmul.f32 %v9116_v26, %v17377_v54  ;;  %v3262_v40 = vadd.f32 %v3198_v38, %v2635_v12  ;;  %v2645_v12 = vadd.f32 %v12843_v33, %v10857_v18  ;;  %v17385_v54 = vld [vmem:[#allocation140_spill] sm:$0xff] }
 0x2f9   :  { %v9120_v56 = vpop.eup %9119  ;;  %v3201_v1 = vmul.f32 %v9118_v20, %v17378_v49  ;;  %v3264_v48 = vadd.f32 %v3200_v44, %v2748_v58  ;;  %v17384_v44 = vld [vmem:[#allocation139_spill] sm:$0xff]  ;;  %v2760_v20 = vadd.f32 %v12855_v50, %v10866_v17 }
 0x2fa   :  { %v9122_v22 = vpop.eup %9121  ;;  %v3202_v24 = vmul.f32 %v9120_v56, %v17379_v59  ;;  %v3263_v60 = vadd.f32 %v3199_v10, %v2637_v11  ;;  %v3298_v30 = vpack.c.bf16 %v3262_v40, %v12851_v15  ;;  %v17382_v15 = vld [vmem:[#allocation137_spill] sm:$0xff]  ;;  %v7923_v40 = vld [vmem:[%s16641_s1 + $0x80] sm:$0xff]  }
 0x2fb   :  { %v9124_v0 = vpop.eup %9123  ;;  %v3204_v42 = vmul.f32 %v9122_v22, %v17380_v41  ;;  %v3265_v7 = vadd.f32 %v3201_v1, %v2750_v37  ;;  %v3300_v21 = vpack.c.bf16 %v3264_v48, %v12857_v36  ;;  %v17383_v36 = vld [vmem:[#allocation138_spill] sm:$0xff]  ;;  %v7814_v22 = vunpack.c.l.bf16 %v7923_v40 }
 0x2fc   :  { %v9126_v43 = vpop.eup %9125  ;;  %v3203_v45 = vmul.f32 %v9124_v0, %v17381_v31  ;;  %v3266_v35 = vadd.f32 %v3202_v24, %v2641_v14  ;;  %v3299_v47 = vpack.c.bf16 %v3263_v60, %v12861_v6  ;;  %v17386_v14 = vld [vmem:[#allocation141_spill] sm:$0xff]  ;;  %v7815_v59 = vunpack.c.h.bf16 %v7923_v40  ;;  %v9951_v60 = vld [vmem:[%s16640_s0] sm:$0xff] }
 0x2fd   :  { %v9128_v46 = vpop.eup %9127  ;;  %v3205_v58 = vmul.f32 %v9126_v43, %v17382_v15  ;;  %v3268_v52 = vadd.f32 %v3204_v42, %v2754_v13  ;;  %v3301_v5 = vpack.c.bf16 %v3265_v7, %v12863_v61  ;;  %v17387_v41 = vmov 0   ;;  %v7924_v42 = vld [vmem:[%s16641_s1 + $0x88] sm:$0xff]   ;;  %v9953_v43 = vld [vmem:[%s16640_s0 + $0x10] sm:$0xff]  ;;  %v17390_v15 = vld [vmem:[#allocation43_spill] sm:$0xff] }
 0x2fe   :  { %v9130_v38 = vpop.eup %9129  ;;  %v3206_v11 = vmul.f32 %v9128_v46, %v17383_v36  ;;  %v3267_v26 = vadd.f32 %v3203_v45, %v2643_v8  ;;  %3386 = vmatprep.mubr.bf16.mxu0 %v3299_v47  ;;  %v224_v8 = vmul.f32 %v9951_v60, %v7814_v22  ;;  %v9954_v45 = vld [vmem:[%s16640_s0 + $0x18] sm:$0xff]  ;;  %v7925_v47 = vld [vmem:[%s16641_s1 + $0x90] sm:$0xff]  }
 0x2ff   :  { %v9132_v33 = vpop.eup %9131  ;;  %v3208_v6 = vmul.f32 %v9130_v38, %v17384_v44  ;;  %v3269_v37 = vadd.f32 %v3205_v58, %v2756_v63  ;;  %3483 = vmatprep.mubr.bf16.mxu1 %v3301_v5  ;;  %3387 = vmatmul.mubr.bf16.gmra.mrb[184].mxu0 %v3298_v30  ;;  %v9952_v30 = vld [vmem:[%s16640_s0 + $0x8] sm:$0xff]  ;;  %v7818_v63 = vunpack.c.l.bf16 %v7924_v42  ;;  %v17389_v46 = vld [vmem:[#allocation42_spill] sm:$0xff]  ;;  %v7823_v5 = vunpack.c.h.bf16 %v7925_v47  ;;  %v17392_v38 = vld [vmem:[#allocation45_spill] sm:$0xff] }
 0x300   :  { %v9134_v53 = vpop.eup %9133  ;;  %v3207_v61 = vmul.f32 %v9132_v33, %v17385_v54  ;;  %v3270_v10 = vadd.f32 %v3206_v11, %v2645_v12  ;;  %3484 = vmatmul.mubr.bf16.gmra.mrb[184].mxu1 %v3300_v21  ;;  %v225_v0 = vmul.f32 %v9952_v30, %v7815_v59  ;;  %v7819_v21 = vunpack.c.h.bf16 %v7924_v42  ;;  %v17388_v12 = vld [vmem:[#allocation41_spill] sm:$0xff]  ;;  %v17393_v36 = vld [vmem:[#allocation46_spill] sm:$0xff]  ;;  %v17394_v11 = vld [vmem:[#allocation47_spill] sm:$0xff] }
 0x301   :  { %v3209_v23 = vmul.f32 %v9134_v53, %v17386_v14  ;;  %v3272_v56 = vadd.f32 %v3208_v6, %v2758_v2  ;;  %v226_v31 = vmul.f32 %v9953_v43, %v7818_v63  ;;  %v7822_v2 = vunpack.c.l.bf16 %v7925_v47  ;;  %v9956_v44 = vld [vmem:[%s16640_s0 + $0x28] sm:$0xff]  ;;  %v17397_v53 = vld [vmem:[#allocation50_spill] sm:$0xff]  ;;  %v17398_v54 = vld [vmem:[#allocation51_spill] sm:$0xff] }
 0x302   :  { %v3271_v49 = vadd.f32 %v3207_v61, %v2647_v28  ;;  %v3302_v1 = vpack.c.bf16 %v3270_v10, %v3266_v35  ;;  %v12925_v7 = vpack.c.bf16 %v225_v0, %v224_v8  ;;  %v227_v35 = vmul.f32 %v9954_v45, %v7819_v21  ;;  %v9955_v28 = vld [vmem:[%s16640_s0 + $0x20] sm:$0xff]  ;;  %v17399_v14 = vld [vmem:[#allocation52_spill] sm:$0xff]  ;;  %v17405_v60 = vld [vmem:[#allocation58_spill] sm:$0xff] }
 0x303   :  { %v3273_v48 = vadd.f32 %v3209_v23, %v2760_v20  ;;  %v3304_v13 = vpack.c.bf16 %v3272_v56, %v3268_v52  ;;  %v17391_v52 = vld [vmem:[#allocation44_spill] sm:$0xff]  ;;  %v228_v33 = vmul.f32 %v9955_v28, %v7822_v2  ;;  %v229_v6 = vmul.f32 %v9956_v44, %v7823_v5  ;;  %v17396_v20 = vld [vmem:[#allocation49_spill] sm:$0xff]  ;;  %v17401_v56 = vld [vmem:[#allocation54_spill] sm:$0xff] }
 0x304   :  { %v3303_v50 = vpack.c.bf16 %v3271_v49, %v3267_v26  ;;  %v12943_v58 = vpack.c.bf16 %v227_v35, %v226_v31  ;;  %v17395_v26 = vld [vmem:[#allocation48_spill] sm:$0xff]  ;;  %v17400_v23 = vld [vmem:[#allocation53_spill] sm:$0xff]  ;;  %v17402_v49 = vld [vmem:[#allocation55_spill] sm:$0xff] }
 0x305   :  { %v3305_v24 = vpack.c.bf16 %v3273_v48, %v3269_v37  ;;  %v7926_v37 = vld [vmem:[%s16641_s1 + $0x98] sm:$0xff]   ;;  %v12966_v61 = vpack.c.bf16 %v229_v6, %v228_v33  ;;  %v17403_v59 = vld [vmem:[#allocation56_spill] sm:$0xff]  ;;  %v17406_v8 = vld [vmem:[#allocation59_spill] sm:$0xff] }
 0x306   :  { %3394 = vmatprep.mubr.bf16.mxu0 %v3303_v50  ;;  %v7826_v10 = vunpack.c.l.bf16 %v7926_v37  ;;  %v7827_v40 = vunpack.c.h.bf16 %v7926_v37  ;;  %v7927_v50 = vld [vmem:[%s16641_s1 + $0xa0] sm:$0xff]   ;;  %v17407_v63 = vld [vmem:[#allocation60_spill] sm:$0xff]  ;;  %v17408_v21 = vld [vmem:[#allocation61_spill] sm:$0xff] }
 0x307   :  { %3491 = vmatprep.mubr.bf16.mxu1 %v3305_v24  ;;  %3395 = vmatmul.mubr.bf16.gmra.mrb[188].mxu0 %v3302_v1  ;;  %v9957_v1 = vld [vmem:[%s16640_s0 + $0x30] sm:$0xff]  ;;  %v7830_v0 = vunpack.c.l.bf16 %v7927_v50  ;;  %v7831_v42 = vunpack.c.h.bf16 %v7927_v50  ;;  %v17409_v43 = vld [vmem:[#allocation62_spill] sm:$0xff]  ;;  %v17410_v31 = vld [vmem:[#allocation63_spill] sm:$0xff] }
 0x308   :  { %3492 = vmatmul.mubr.bf16.gmra.mrb[188].mxu1 %v3304_v13  ;;  %3557 = vmatprep.mubr.bf16.mxu0 %v17387_v41  ;;  %v230_v48 = vmul.f32 %v9957_v1, %v7826_v10  ;;  %v9958_v13 = vld [vmem:[%s16640_s0 + $0x38] sm:$0xff]  ;;  %v17404_v24 = vld [vmem:[#allocation57_spill] sm:$0xff]  ;;  %v9959_v45 = vld [vmem:[%s16640_s0 + $0x40] sm:$0xff] }
 0x309   :  { %3670 = vmatprep.mubr.bf16.mxu1 %v17387_v41  ;;  %v231_v22 = vmul.f32 %v9958_v13, %v7827_v40  ;;  %v232_v35 = vmul.f32 %v9959_v45, %v7830_v0  ;;  %v9960_v47 = vld [vmem:[%s16640_s0 + $0x48] sm:$0xff]  ;;  %v17412_v33 = vld [vmem:[#allocation65_spill] sm:$0xff]  ;;  %v17413_v44 = vld [vmem:[#allocation66_spill] sm:$0xff] }
 0x30a   :  { %v233_v2 = vmul.f32 %v9960_v47, %v7831_v42  ;;  %v17411_v5 = vld [vmem:[#allocation64_spill] sm:$0xff]  ;;  %v17414_v6 = vld [vmem:[#allocation67_spill] sm:$0xff]  ;;  %v17417_v13 = vld [vmem:[#allocation70_spill] sm:$0xff] }
 0x30b   :  { %v12989_v30 = vpack.c.bf16 %v231_v22, %v230_v48  ;;  %v7928_v28 = vld [vmem:[%s16641_s1 + $0xa8] sm:$0xff]   ;;  %v17416_v48 = vld [vmem:[#allocation69_spill] sm:$0xff]  ;;  %v9961_v22 = vld [vmem:[%s16644_s4 + $0x40] sm:$0xff]  }
 0x30c   :  { %v13012_v37 = vpack.c.bf16 %v233_v2, %v232_v35  ;;  %v7834_v10 = vunpack.c.l.bf16 %v7928_v28  ;;  %v7835_v40 = vunpack.c.h.bf16 %v7928_v28  ;;  %v17415_v1 = vld [vmem:[#allocation68_spill] sm:$0xff]  ;;  %v9962_v50 = vld [vmem:[%s16640_s0 + $0x50] sm:$0xff]  ;;  %v9963_v42 = vld [vmem:[%s16640_s0 + $0x58] sm:$0xff] }
 0x30d   :  { %v9964_v35 = vld [vmem:[%s16644_s4 + $0xc0] sm:$0xff]   ;;  %v7929_v47 = vld [vmem:[%s16641_s1 + $0xb0] sm:$0xff]  }
 0x30e   :  { %v234_v0 = vmul.f32 %v9962_v50, %v7834_v10  ;;  %v235_v45 = vmul.f32 %v9963_v42, %v7835_v40  ;;  %v7838_v28 = vunpack.c.l.bf16 %v7929_v47  ;;  %v7839_v10 = vunpack.c.h.bf16 %v7929_v47  ;;  %v9965_v40 = vld [vmem:[%s16640_s0 + $0x60] sm:$0xff]  ;;  %v9966_v50 = vld [vmem:[%s16640_s0 + $0x68] sm:$0xff] }
 0x30f   :  { %3558 = vmatmul.mubr.bf16.vlgmr.msra.gmra.mrb[192].mxu0 %v12925_v7 }
 0x310   :  { %3671 = vmatmul.mubr.bf16.vlgmr.msra.gmra.mrb[192].mxu1 %v12925_v7  ;;  %3752 = vmatpush1.bf16.msra.mxu0 %v17388_v12  ;;  %v13036_v2 = vpack.c.bf16 %v235_v45, %v234_v0  ;;  %v237_v42 = vmul.f32 %v9966_v50, %v7839_v10  ;;  %v7930_v0 = vld [vmem:[%s16641_s1 + $0xb8] sm:$0xff]  }
 0x311   :  { %3865 = vmatpush1.bf16.msra.mxu1 %v17389_v46  ;;  %3567 = vmatprep.mubr.bf16.mxu0 %v17387_v41  ;;  %v7843_v47 = vunpack.c.h.bf16 %v7930_v0 }
 0x312   :  { %3680 = vmatprep.mubr.bf16.mxu1 %v17387_v41  ;;  %3753 = vmatprep.subr.bf16.mxu0 %v17390_v15 }
 0x313   :  { %3866 = vmatprep.subr.bf16.mxu1 %v17391_v52 }
 0x314   :  { %3754 = vmatpush1.bf16.msra.mxu0 %v17392_v38 }
 0x315   :  { %3867 = vmatpush1.bf16.msra.mxu1 %v17393_v36  ;;  %3755 = vmatprep.subr.bf16.mxu0 %v17394_v11 }
 0x316   :  { %3868 = vmatprep.subr.bf16.mxu1 %v17395_v26 }
 0x317   :  { %3568 = vmatmul.mubr.bf16.gmra.mrb[196].mxu0 %v12943_v58 }
 0x318   :  { %3681 = vmatmul.mubr.bf16.gmra.mrb[196].mxu1 %v12943_v58  ;;  %3577 = vmatprep.mubr.bf16.mxu0 %v17387_v41 }
 0x319   :  { %3690 = vmatprep.mubr.bf16.mxu1 %v17387_v41  ;;  %3756 = vmatpush1.bf16.msra.mxu0 %v17396_v20 }
 0x31a   :  { %3869 = vmatpush1.bf16.msra.mxu1 %v17397_v53  ;;  %3757 = vmatprep.subr.bf16.mxu0 %v17398_v54 }
 0x31b   :  { %3870 = vmatprep.subr.bf16.mxu1 %v17399_v14 }
 0x31d   :  { %3758 = vmatpush1.bf16.msra.mxu0 %v17400_v23 }
 0x31e   :  { %3871 = vmatpush1.bf16.msra.mxu1 %v17401_v56  ;;  %3759 = vmatprep.subr.bf16.mxu0 %v17402_v49 }
 0x31f   :  { %3578 = vmatmul.mubr.bf16.gmra.mrb[200].mxu0 %v12966_v61  ;;  %3872 = vmatprep.subr.bf16.mxu1 %v17403_v59 }
 0x320   :  { %3691 = vmatmul.mubr.bf16.gmra.mrb[200].mxu1 %v12966_v61  ;;  %3587 = vmatprep.mubr.bf16.mxu0 %v17387_v41 }
 0x321   :  { %3700 = vmatprep.mubr.bf16.mxu1 %v17387_v41  ;;  %3760 = vmatpush1.bf16.msra.mxu0 %v17404_v24 }
 0x322   :  { %3873 = vmatpush1.bf16.msra.mxu1 %v17405_v60  ;;  %3761 = vmatprep.subr.bf16.mxu0 %v17406_v8 }
 0x323   :  { %3874 = vmatprep.subr.bf16.mxu1 %v17407_v63 }
 0x325   :  { %3762 = vmatpush1.bf16.msra.mxu0 %v17408_v21 }
 0x326   :  { %3875 = vmatpush1.bf16.msra.mxu1 %v17409_v43  ;;  %3763 = vmatprep.subr.bf16.mxu0 %v17410_v31 }
 0x327   :  { %3588 = vmatmul.mubr.bf16.gmra.mrb[204].mxu0 %v12989_v30  ;;  %3876 = vmatprep.subr.bf16.mxu1 %v17411_v5 }
 0x328   :  { %3701 = vmatmul.mubr.bf16.gmra.mrb[204].mxu1 %v12989_v30  ;;  %3597 = vmatprep.mubr.bf16.mxu0 %v17387_v41 }
 0x329   :  { %3710 = vmatprep.mubr.bf16.mxu1 %v17387_v41  ;;  %3764 = vmatpush1.bf16.msra.mxu0 %v17412_v33 }
 0x32a   :  { %3877 = vmatpush1.bf16.msra.mxu1 %v17413_v44  ;;  %3765 = vmatprep.subr.bf16.mxu0 %v17414_v6 }
 0x32b   :  { %3878 = vmatprep.subr.bf16.mxu1 %v17415_v1 }
 0x32d   :  { %3766 = vmatpush1.bf16.msra.mxu0 %v17416_v48  ;;  %v17422_v48 = vld [vmem:[#allocation90_spill] sm:$0xff] }
 0x32e   :  { %3879 = vmatpush1.bf16.msra.mxu1 %v17417_v13  ;;  %8203 = vmatprep.subr.bf16.mxu0 %v9961_v22  ;;  %v236_v22 = vmul.f32 %v9965_v40, %v7838_v28  ;;  %v9967_v28 = vld [vmem:[%s16640_s0 + $0x70] sm:$0xff]  ;;  %v9968_v40 = vld [vmem:[%s16640_s0 + $0x78] sm:$0xff] }
 0x32f   :  { %3598 = vmatmul.mubr.bf16.gmra.mrb[208].mxu0 %v13012_v37  ;;  %8267 = vmatprep.subr.bf16.mxu1 %v9964_v35  ;;  %v7842_v35 = vunpack.c.l.bf16 %v7930_v0  ;;  %v239_v50 = vmul.f32 %v9968_v40, %v7843_v47  ;;  %v9970_v0 = vld [vmem:[%s16644_s4 + $0x80] sm:$0xff]   ;;  %v9973_v47 = vld [vmem:[%s16644_s4 + $0x8] sm:$0xff]   ;;  %v9976_v40 = vld [vmem:[%s16644_s4 + $0xd0] sm:$0xff]  }
 0x330   :  { %3711 = vmatmul.mubr.bf16.gmra.mrb[208].mxu1 %v13012_v37  ;;  %3607 = vmatprep.mubr.bf16.mxu0 %v17387_v41  ;;  %v13051_v45 = vpack.c.bf16 %v237_v42, %v236_v22  ;;  %v9969_v42 = vld [vmem:[%s16644_s4] sm:$0xff]  }
 0x331   :  { %3720 = vmatprep.mubr.bf16.mxu1 %v17387_v41  ;;  %v238_v10 = vmul.f32 %v9967_v28, %v7842_v35  ;;  %v9971_v35 = vld [vmem:[%s16644_s4 + $0x48] sm:$0xff]  }
 0x332   :  { %v9974_v28 = vld [vmem:[%s16644_s4 + $0x88] sm:$0xff]  }
 0x333   :  { %v13063_v22 = vpack.c.bf16 %v239_v50, %v238_v10  ;;  %v9975_v10 = vld [vmem:[%s16644_s4 + $0x50] sm:$0xff]  }
 0x334   :  { %v9977_v50 = vld [vmem:[%s16644_s4 + $0x10] sm:$0xff]  }
 0x337   :  { %3608 = vmatmul.mubr.bf16.gmra.mrb[212].mxu0 %v13036_v2 }
 0x338   :  { %3721 = vmatmul.mubr.bf16.gmra.mrb[212].mxu1 %v13036_v2  ;;  %3617 = vmatprep.mubr.bf16.mxu0 %v17387_v41 }
 0x339   :  { %3730 = vmatprep.mubr.bf16.mxu1 %v17387_v41 }
 0x33f   :  { %3618 = vmatmul.mubr.bf16.gmra.mrb[216].mxu0 %v13051_v45 }
 0x340   :  { %3731 = vmatmul.mubr.bf16.gmra.mrb[216].mxu1 %v13051_v45  ;;  %3627 = vmatprep.mubr.bf16.mxu0 %v17387_v41 }
 0x341   :  { %3740 = vmatprep.mubr.bf16.mxu1 %v17387_v41 }
 0x347   :  { %3628 = vmatmul.mubr.bf16.gmra.mrb[220].mxu0 %v13063_v22 }
 0x348   :  { %3741 = vmatmul.mubr.bf16.gmra.mrb[220].mxu1 %v13063_v22  ;;  %3783 = vmatprep.mubr.bf16.mxu0 %v17387_v41 }
 0x349   :  { %3896 = vmatprep.mubr.bf16.mxu1 %v17387_v41 }
 0x34f   :  { %3784 = vmatmul.mubr.bf16.vlgmr.msra.gmra.mrb[224].mxu0 %v12925_v7 }
 0x350   :  { %3897 = vmatmul.mubr.bf16.vlgmr.msra.gmra.mrb[224].mxu1 %v12925_v7  ;;  %3793 = vmatprep.mubr.bf16.mxu0 %v17387_v41  ;;  %v9972_v7 = vld [vmem:[%s16644_s4 + $0xc8] sm:$0xff]  }
 0x351   :  { %3906 = vmatprep.mubr.bf16.mxu1 %v17387_v41  ;;  %8204 = vmatpush3.bf16.msra.mxu0 %v9969_v42  ;;  %v9978_v42 = vld [vmem:[%s16644_s4 + $0x90] sm:$0xff]  }
 0x352   :  { %8268 = vmatpush3.bf16.msra.mxu1 %v9970_v0  ;;  %8205 = vmatprep.subr.bf16.mxu0 %v9971_v35  ;;  %v9979_v0 = vld [vmem:[%s16644_s4 + $0x58] sm:$0xff]  }
 0x353   :  { %8269 = vmatprep.subr.bf16.mxu1 %v9972_v7  ;;  %v9981_v35 = vld [vmem:[%s16644_s4 + $0x18] sm:$0xff]  }
 0x354   :  { %v9982_v7 = vld [vmem:[%s16644_s4 + $0x98] sm:$0xff]  }
 0x355   :  { %8206 = vmatpush3.bf16.msra.mxu0 %v9973_v47  ;;  %v9983_v47 = vld [vmem:[%s16644_s4 + $0x60] sm:$0xff]  }
 0x356   :  { %8270 = vmatpush3.bf16.msra.mxu1 %v9974_v28  ;;  %8207 = vmatprep.subr.bf16.mxu0 %v9975_v10  ;;  %v9984_v28 = vld [vmem:[%s16644_s4 + $0xe0] sm:$0xff]  }
 0x357   :  { %3794 = vmatmul.mubr.bf16.gmra.mrb[228].mxu0 %v12943_v58  ;;  %8271 = vmatprep.subr.bf16.mxu1 %v9976_v40  ;;  %v9985_v10 = vld [vmem:[%s16644_s4 + $0x20] sm:$0xff]  }
 0x358   :  { %3907 = vmatmul.mubr.bf16.gmra.mrb[228].mxu1 %v12943_v58  ;;  %3803 = vmatprep.mubr.bf16.mxu0 %v17387_v41  ;;  %v9980_v58 = vld [vmem:[%s16644_s4 + $0xd8] sm:$0xff]   ;;  %v9986_v40 = vld [vmem:[%s16644_s4 + $0xa0] sm:$0xff]  }
 0x359   :  { %3916 = vmatprep.mubr.bf16.mxu1 %v17387_v41  ;;  %8208 = vmatpush3.bf16.msra.mxu0 %v9977_v50  ;;  %v9987_v50 = vld [vmem:[%s16644_s4 + $0x68] sm:$0xff]  }
 0x35a   :  { %8272 = vmatpush3.bf16.msra.mxu1 %v9978_v42  ;;  %8209 = vmatprep.subr.bf16.mxu0 %v9979_v0  ;;  %v9989_v42 = vld [vmem:[%s16644_s4 + $0x28] sm:$0xff]  }
 0x35b   :  { %8273 = vmatprep.subr.bf16.mxu1 %v9980_v58  ;;  %v9990_v0 = vld [vmem:[%s16644_s4 + $0xa8] sm:$0xff]   ;;  %v9991_v58 = vld [vmem:[%s16644_s4 + $0x70] sm:$0xff]  }
 0x35d   :  { %8210 = vmatpush3.bf16.msra.mxu0 %v9981_v35  ;;  %v9992_v35 = vld [vmem:[%s16644_s4 + $0xf0] sm:$0xff]  }
 0x35e   :  { %8274 = vmatpush3.bf16.msra.mxu1 %v9982_v7  ;;  %8211 = vmatprep.subr.bf16.mxu0 %v9983_v47  ;;  %v9993_v7 = vld [vmem:[%s16644_s4 + $0x30] sm:$0xff]  }
 0x35f   :  { %3804 = vmatmul.mubr.bf16.gmra.mrb[232].mxu0 %v12966_v61  ;;  %8275 = vmatprep.subr.bf16.mxu1 %v9984_v28  ;;  %v9994_v47 = vld [vmem:[%s16644_s4 + $0xb0] sm:$0xff]   ;;  %v9995_v28 = vld [vmem:[%s16644_s4 + $0x78] sm:$0xff]  }
 0x360   :  { %3917 = vmatmul.mubr.bf16.gmra.mrb[232].mxu1 %v12966_v61  ;;  %3813 = vmatprep.mubr.bf16.mxu0 %v17387_v41  ;;  %v9988_v61 = vld [vmem:[%s16644_s4 + $0xe8] sm:$0xff]  }
 0x361   :  { %3926 = vmatprep.mubr.bf16.mxu1 %v17387_v41  ;;  %8212 = vmatpush3.bf16.msra.mxu0 %v9985_v10  ;;  %v9997_v10 = vld [vmem:[%s16644_s4 + $0x38] sm:$0xff]  }
 0x362   :  { %8276 = vmatpush3.bf16.msra.mxu1 %v9986_v40  ;;  %8213 = vmatprep.subr.bf16.mxu0 %v9987_v50  ;;  %v9998_v40 = vld [vmem:[%s16644_s4 + $0xb8] sm:$0xff]   ;;  %v17418_v50 = vld [vmem:[#allocation7_spill] sm:$0xff] }
 0x363   :  { %8277 = vmatprep.subr.bf16.mxu1 %v9988_v61  ;;  %v17419_v61 = vld [vmem:[#allocation9_spill] sm:$0xff] }
 0x365   :  { %8214 = vmatpush3.bf16.msra.mxu0 %v9989_v42 }
 0x366   :  { %8278 = vmatpush3.bf16.msra.mxu1 %v9990_v0  ;;  %8215 = vmatprep.subr.bf16.mxu0 %v9991_v58 }
 0x367   :  { %3814 = vmatmul.mubr.bf16.gmra.mrb[236].mxu0 %v12989_v30  ;;  %8279 = vmatprep.subr.bf16.mxu1 %v9992_v35 }
 0x368   :  { %3927 = vmatmul.mubr.bf16.gmra.mrb[236].mxu1 %v12989_v30  ;;  %3823 = vmatprep.mubr.bf16.mxu0 %v17387_v41  ;;  %v9996_v30 = vld [vmem:[%s16644_s4 + $0xf8] sm:$0xff]  }
 0x369   :  { %3936 = vmatprep.mubr.bf16.mxu1 %v17387_v41  ;;  %8216 = vmatpush3.bf16.msra.mxu0 %v9993_v7 }
 0x36a   :  { %8280 = vmatpush3.bf16.msra.mxu1 %v9994_v47  ;;  %8217 = vmatprep.subr.bf16.mxu0 %v9995_v28 }
 0x36b   :  { %8281 = vmatprep.subr.bf16.mxu1 %v9996_v30 }
 0x36d   :  { %8218 = vmatpush3.bf16.msra.mxu0 %v9997_v10 }
 0x36e   :  { %8282 = vmatpush3.bf16.msra.mxu1 %v9998_v40  ;;  %4740 = vmatprep.subr.bf16.mxu0 %v17418_v50  ;;  %v17420_v50 = vld [vmem:[#allocation89_spill] sm:$0xff] }
 0x36f   :  { %3824 = vmatmul.mubr.bf16.gmra.mrb[240].mxu0 %v13012_v37  ;;  %4853 = vmatprep.subr.bf16.mxu1 %v17419_v61 }
 0x370   :  { %3937 = vmatmul.mubr.bf16.gmra.mrb[240].mxu1 %v13012_v37  ;;  %3833 = vmatprep.mubr.bf16.mxu0 %v17387_v41 }
 0x371   :  { %3946 = vmatprep.mubr.bf16.mxu1 %v17387_v41 }
 0x377   :  { %3834 = vmatmul.mubr.bf16.gmra.mrb[244].mxu0 %v13036_v2 }
 0x378   :  { %3947 = vmatmul.mubr.bf16.gmra.mrb[244].mxu1 %v13036_v2  ;;  %3843 = vmatprep.mubr.bf16.mxu0 %v17387_v41 }
 0x379   :  { %3956 = vmatprep.mubr.bf16.mxu1 %v17387_v41 }
 0x37f   :  { %3844 = vmatmul.mubr.bf16.gmra.mrb[248].mxu0 %v13051_v45 }
 0x380   :  { %3957 = vmatmul.mubr.bf16.gmra.mrb[248].mxu1 %v13051_v45  ;;  %3853 = vmatprep.mubr.bf16.mxu0 %v17387_v41 }
 0x381   :  { %3966 = vmatprep.mubr.bf16.mxu1 %v17387_v41 }
 0x387   :  { %3854 = vmatmul.mubr.bf16.gmra.mrb[252].mxu0 %v13063_v22 }
 0x388   :  { %3967 = vmatmul.mubr.bf16.gmra.mrb[252].mxu1 %v13063_v22 }
 0x395   :  { %v8091_v37 = vpop.f32.mrb[160].mxu0 }
 0x396   :  { %v8155_v42 = vpop.f32.mrb[160].mxu1  ;;  %v8092_v0 = vpop.f32.mrb[161].mxu0 }
 0x397   :  { %v8093_v2 = vadd.f32 %v8092_v0, %v8091_v37  ;;  %v8156_v58 = vpop.f32.mrb[161].mxu1  ;;  %v8094_v35 = vpop.f32.mrb[162].mxu0 }
 0x398   :  { %v8157_v7 = vadd.f32 %v8156_v58, %v8155_v42  ;;  %v8158_v47 = vpop.f32.mrb[162].mxu1  ;;  %v8095_v28 = vpop.f32.mrb[163].mxu0 }
 0x399   :  { %v8096_v30 = vadd.f32 %v8095_v28, %v8094_v35  ;;  %v8159_v10 = vpop.f32.mrb[163].mxu1 }
 0x39a   :  { %v3438_v45 = vadd.f32 %v8157_v7, %v8093_v2  ;;  %v8160_v40 = vadd.f32 %v8159_v10, %v8158_v47  ;;  %v17426_v10 = vld [vmem:[#allocation76_spill] sm:$0xff] }
 0x39c   :  { %v3441_v61 = vadd.f32 %v8160_v40, %v8096_v30  ;;  %v13192_v13 = vadd.f32 %v3438_v45, %v17420_v50  ;;  %v17424_v30 = vld [vmem:[#allocation75_spill] sm:$0xff] }
 0x39e   :  { %17421 = vst [vmem:[#allocation96_spill] sm:$0xff] %v13192_v13  ;;  %v13195_v1 = vadd.f32 %v3441_v61, %v17422_v48 }
 0x3a0   :  { %17423 = vst [vmem:[#allocation100_spill] sm:$0xff] %v13195_v1  ;;  %v8097_v22 = vpop.f32.mrb[164].mxu0 }
 0x3a1   :  { %v8098_v44 = vpop.f32.mrb[165].mxu0 }
 0x3a2   :  { %v8161_v6 = vpop.f32.mrb[164].mxu1  ;;  %v8099_v37 = vadd.f32 %v8098_v44, %v8097_v22  ;;  %v8100_v33 = vpop.f32.mrb[166].mxu0 }
 0x3a3   :  { %v8162_v0 = vpop.f32.mrb[165].mxu1  ;;  %v8101_v5 = vpop.f32.mrb[167].mxu0 }
 0x3a4   :  { %v8163_v42 = vadd.f32 %v8162_v0, %v8161_v6  ;;  %v8164_v58 = vpop.f32.mrb[166].mxu1  ;;  %v8102_v35 = vadd.f32 %v8101_v5, %v8100_v33 }
 0x3a5   :  { %v8165_v28 = vpop.f32.mrb[167].mxu1 }
 0x3a6   :  { %v3446_v2 = vadd.f32 %v8163_v42, %v8099_v37  ;;  %v8166_v7 = vadd.f32 %v8165_v28, %v8164_v58 }
 0x3a8   :  { %v3449_v47 = vadd.f32 %v8166_v7, %v8102_v35  ;;  %v13198_v50 = vadd.f32 %v3446_v2, %v17424_v30  ;;  %v17428_v35 = vld [vmem:[#allocation77_spill] sm:$0xff]  ;;  %v17430_v2 = vld [vmem:[#allocation91_spill] sm:$0xff] }
 0x3aa   :  { %17425 = vst [vmem:[#allocation83_spill] sm:$0xff] %v13198_v50  ;;  %v13201_v48 = vadd.f32 %v3449_v47, %v17426_v10  ;;  %v8103_v61 = vpop.f32.mrb[168].mxu0 }
 0x3ab   :  { %v8167_v45 = vpop.f32.mrb[168].mxu1  ;;  %v8104_v40 = vpop.f32.mrb[169].mxu0 }
 0x3ac   :  { %17427 = vst [vmem:[#allocation105_spill] sm:$0xff] %v13201_v48  ;;  %v8105_v44 = vadd.f32 %v8104_v40, %v8103_v61  ;;  %v8168_v22 = vpop.f32.mrb[169].mxu1  ;;  %v8106_v1 = vpop.f32.mrb[170].mxu0 }
 0x3ad   :  { %v8169_v6 = vadd.f32 %v8168_v22, %v8167_v45  ;;  %v8170_v0 = vpop.f32.mrb[170].mxu1  ;;  %v8107_v13 = vpop.f32.mrb[171].mxu0 }
 0x3ae   :  { %v8108_v5 = vadd.f32 %v8107_v13, %v8106_v1  ;;  %v8171_v33 = vpop.f32.mrb[171].mxu1 }
 0x3af   :  { %v3454_v37 = vadd.f32 %v8169_v6, %v8105_v44  ;;  %v8172_v42 = vadd.f32 %v8171_v33, %v8170_v0 }
 0x3b1   :  { %v3457_v58 = vadd.f32 %v8172_v42, %v8108_v5  ;;  %v13204_v28 = vadd.f32 %v3454_v37, %v17428_v35  ;;  %v17432_v5 = vld [vmem:[#allocation78_spill] sm:$0xff]  ;;  %v17434_v37 = vld [vmem:[#allocation95_spill] sm:$0xff] }
 0x3b3   :  { %17429 = vst [vmem:[#allocation84_spill] sm:$0xff] %v13204_v28  ;;  %v13207_v7 = vadd.f32 %v3457_v58, %v17430_v2 }
 0x3b5   :  { %17431 = vst [vmem:[#allocation101_spill] sm:$0xff] %v13207_v7  ;;  %v8109_v47 = vpop.f32.mrb[172].mxu0 }
 0x3b6   :  { %v8173_v30 = vpop.f32.mrb[172].mxu1  ;;  %v8110_v10 = vpop.f32.mrb[173].mxu0 }
 0x3b7   :  { %v8111_v61 = vadd.f32 %v8110_v10, %v8109_v47  ;;  %v8174_v40 = vpop.f32.mrb[173].mxu1  ;;  %v8112_v48 = vpop.f32.mrb[174].mxu0 }
 0x3b8   :  { %v8175_v45 = vadd.f32 %v8174_v40, %v8173_v30  ;;  %v8176_v22 = vpop.f32.mrb[174].mxu1  ;;  %v8113_v50 = vpop.f32.mrb[175].mxu0 }
 0x3b9   :  { %v8114_v1 = vadd.f32 %v8113_v50, %v8112_v48  ;;  %v8177_v13 = vpop.f32.mrb[175].mxu1 }
 0x3ba   :  { %v3462_v44 = vadd.f32 %v8175_v45, %v8111_v61  ;;  %v8178_v6 = vadd.f32 %v8177_v13, %v8176_v22 }
 0x3bc   :  { %v3465_v0 = vadd.f32 %v8178_v6, %v8114_v1  ;;  %v13210_v33 = vadd.f32 %v3462_v44, %v17432_v5  ;;  %v17436_v1 = vld [vmem:[#allocation79_spill] sm:$0xff]  ;;  %v17438_v44 = vld [vmem:[#allocation97_spill] sm:$0xff] }
 0x3be   :  { %17433 = vst [vmem:[#allocation106_spill] sm:$0xff] %v13210_v33  ;;  %v13213_v42 = vadd.f32 %v3465_v0, %v17434_v37  ;;  %v8115_v58 = vpop.f32.mrb[176].mxu0 }
 0x3bf   :  { %v8179_v35 = vpop.f32.mrb[176].mxu1  ;;  %v8116_v2 = vpop.f32.mrb[177].mxu0 }
 0x3c0   :  { %17435 = vst [vmem:[#allocation109_spill] sm:$0xff] %v13213_v42  ;;  %v8180_v47 = vpop.f32.mrb[177].mxu1  ;;  %v8117_v10 = vadd.f32 %v8116_v2, %v8115_v58  ;;  %v8118_v30 = vpop.f32.mrb[178].mxu0 }
 0x3c1   :  { %v8181_v7 = vadd.f32 %v8180_v47, %v8179_v35  ;;  %v8182_v40 = vpop.f32.mrb[178].mxu1  ;;  %v8119_v28 = vpop.f32.mrb[179].mxu0 }
 0x3c2   :  { %v8183_v50 = vpop.f32.mrb[179].mxu1  ;;  %v8120_v61 = vadd.f32 %v8119_v28, %v8118_v30 }
 0x3c3   :  { %v3470_v48 = vadd.f32 %v8181_v7, %v8117_v10  ;;  %v8184_v45 = vadd.f32 %v8183_v50, %v8182_v40  ;;  %v17440_v40 = vld [vmem:[#allocation80_spill] sm:$0xff] }
 0x3c5   :  { %v3473_v22 = vadd.f32 %v8184_v45, %v8120_v61  ;;  %v13216_v13 = vadd.f32 %v3470_v48, %v17436_v1  ;;  %v17442_v48 = vld [vmem:[#allocation98_spill] sm:$0xff] }
 0x3c6   :  { %v8121_v0 = vpop.f32.mrb[180].mxu0 }
 0x3c7   :  { %17437 = vst [vmem:[#allocation85_spill] sm:$0xff] %v13216_v13  ;;  %v13219_v6 = vadd.f32 %v3473_v22, %v17438_v44  ;;  %v8185_v5 = vpop.f32.mrb[180].mxu1  ;;  %v8122_v37 = vpop.f32.mrb[181].mxu0 }
 0x3c8   :  { %v8186_v42 = vpop.f32.mrb[181].mxu1  ;;  %v8123_v58 = vadd.f32 %v8122_v37, %v8121_v0  ;;  %v8124_v2 = vpop.f32.mrb[182].mxu0 }
 0x3c9   :  { %17439 = vst [vmem:[#allocation112_spill] sm:$0xff] %v13219_v6  ;;  %v8187_v35 = vadd.f32 %v8186_v42, %v8185_v5  ;;  %v8188_v47 = vpop.f32.mrb[182].mxu1  ;;  %v8125_v33 = vpop.f32.mrb[183].mxu0 }
 0x3ca   :  { %v8189_v31 = vpop.f32.mrb[183].mxu1  ;;  %v8126_v28 = vadd.f32 %v8125_v33, %v8124_v2  ;;  %v17444_v2 = vld [vmem:[#allocation81_spill] sm:$0xff] }
 0x3cb   :  { %v3478_v7 = vadd.f32 %v8187_v35, %v8123_v58  ;;  %v8190_v10 = vadd.f32 %v8189_v31, %v8188_v47 }
 0x3cd   :  { %v3481_v30 = vadd.f32 %v8190_v10, %v8126_v28  ;;  %v13222_v50 = vadd.f32 %v3478_v7, %v17440_v40 }
 0x3cf   :  { %17441 = vst [vmem:[#allocation107_spill] sm:$0xff] %v13222_v50  ;;  %v13225_v61 = vadd.f32 %v3481_v30, %v17442_v48  ;;  %v17446_v30 = vld [vmem:[#allocation99_spill] sm:$0xff] }
 0x3d1   :  { %17443 = vst [vmem:[#allocation126_spill] sm:$0xff] %v13225_v61 }
 0x3d2   :  { %v8127_v45 = vpop.f32.mrb[184].mxu0 }
 0x3d3   :  { %v8191_v22 = vpop.f32.mrb[184].mxu1  ;;  %v8128_v1 = vpop.f32.mrb[185].mxu0 }
 0x3d4   :  { %v8129_v44 = vadd.f32 %v8128_v1, %v8127_v45  ;;  %v8192_v0 = vpop.f32.mrb[185].mxu1  ;;  %v8130_v42 = vpop.f32.mrb[186].mxu0 }
 0x3d5   :  { %v8193_v5 = vadd.f32 %v8192_v0, %v8191_v22  ;;  %v8194_v37 = vpop.f32.mrb[186].mxu1  ;;  %v8131_v6 = vpop.f32.mrb[187].mxu0 }
 0x3d6   :  { %v8132_v13 = vadd.f32 %v8131_v6, %v8130_v42  ;;  %v8195_v58 = vpop.f32.mrb[187].mxu1 }
 0x3d7   :  { %v3486_v33 = vadd.f32 %v8193_v5, %v8129_v44  ;;  %v8196_v31 = vadd.f32 %v8195_v58, %v8194_v37  ;;  %v17448_v37 = vld [vmem:[#allocation82_spill] sm:$0xff] }
 0x3d9   :  { %v3489_v35 = vadd.f32 %v8196_v31, %v8132_v13  ;;  %v13228_v47 = vadd.f32 %v3486_v33, %v17444_v2  ;;  %v17450_v31 = vld [vmem:[#allocation71_spill] sm:$0xff] }
 0x3da   :  { %v8133_v7 = vpop.f32.mrb[188].mxu0 }
 0x3db   :  { %17445 = vst [vmem:[#allocation86_spill] sm:$0xff] %v13228_v47  ;;  %v8197_v28 = vpop.f32.mrb[188].mxu1  ;;  %v8134_v10 = vpop.f32.mrb[189].mxu0  ;;  %v13231_v40 = vadd.f32 %v3489_v35, %v17446_v30 }
 0x3dc   :  { %v8135_v48 = vadd.f32 %v8134_v10, %v8133_v7  ;;  %v8198_v45 = vpop.f32.mrb[189].mxu1  ;;  %v8136_v1 = vpop.f32.mrb[190].mxu0  ;;  %v17451_v7 = vld [vmem:[#allocation103_spill] sm:$0xff] }
 0x3dd   :  { %17447 = vst [vmem:[#allocation114_spill] sm:$0xff] %v13231_v40  ;;  %v8199_v22 = vadd.f32 %v8198_v45, %v8197_v28  ;;  %v8200_v0 = vpop.f32.mrb[190].mxu1  ;;  %v8137_v61 = vpop.f32.mrb[191].mxu0  ;;  %v17453_v28 = vld [vmem:[#allocation72_spill] sm:$0xff] }
 0x3de   :  { %v8138_v6 = vadd.f32 %v8137_v61, %v8136_v1  ;;  %v8201_v42 = vpop.f32.mrb[191].mxu1  ;;  %v17454_v61 = vld [vmem:[#allocation73_spill] sm:$0xff] }
 0x3df   :  { %v3494_v44 = vadd.f32 %v8199_v22, %v8135_v48  ;;  %v8202_v5 = vadd.f32 %v8201_v42, %v8200_v0 }
 0x3e1   :  { %v3497_v13 = vadd.f32 %v8202_v5, %v8138_v6  ;;  %v13234_v58 = vadd.f32 %v3494_v44, %v17448_v37  ;;  %v17455_v6 = vld [vmem:[#allocation74_spill] sm:$0xff] }
 0x3e2   :  { %v3559_v33 = vpop.f32.mrb[192].mxu0 }
 0x3e3   :  { %17449 = vst [vmem:[#allocation111_spill] sm:$0xff] %v13234_v58  ;;  %v13237_v2 = vadd.f32 %v3559_v33, %v17450_v31  ;;  %v3672_v35 = vpop.f32.mrb[192].mxu1  ;;  %v3561_v30 = vpop.f32.mrb[193].mxu0  ;;  %v13240_v10 = vadd.f32 %v3497_v13, %v17451_v7 }
 0x3e4   :  { %v13243_v45 = vadd.f32 %v3672_v35, %v17453_v28  ;;  %v13246_v1 = vadd.f32 %v3561_v30, %v17454_v61  ;;  %v3674_v48 = vpop.f32.mrb[193].mxu1  ;;  %v3563_v22 = vpop.f32.mrb[194].mxu0 }
 0x3e5   :  { %17452 = vst [vmem:[#allocation118_spill] sm:$0xff] %v13240_v10  ;;  %v7555_v0 = vmul.f32 -1.442695, %v13237_v2  ;;  %v13250_v42 = vadd.f32 %v3674_v48, %v17455_v6  ;;  %v13253_v44 = vadd.f32 %v3563_v22, %v17450_v31  ;;  %v3676_v5 = vpop.f32.mrb[194].mxu1  ;;  %v3565_v37 = vpop.f32.mrb[195].mxu0 }
 0x3e6   :  { %v7557_v13 = vmul.f32 -1.442695, %v13243_v45  ;;  %v7556_v33 = vmul.f32 -1.442695, %v13246_v1  ;;  %v13258_v35 = vadd.f32 %v3676_v5, %v17453_v28  ;;  %v13261_v30 = vadd.f32 %v3565_v37, %v17454_v61  ;;  %v3678_v7 = vpop.f32.mrb[195].mxu1 }
 0x3e7   :  { %9135 = vpow2.f32 %v7555_v0  ;;  %v7558_v48 = vmul.f32 -1.442695, %v13250_v42  ;;  %v7559_v10 = vmul.f32 -1.442695, %v13253_v44  ;;  %v13266_v22 = vadd.f32 %v3678_v7, %v17455_v6 }
 0x3e8   :  { %9137 = vpow2.f32 %v7557_v13  ;;  %v7561_v58 = vmul.f32 -1.442695, %v13258_v35  ;;  %v7560_v40 = vmul.f32 -1.442695, %v13261_v30 }
 0x3e9   :  { %9139 = vpow2.f32 %v7556_v33  ;;  %v7562_v5 = vmul.f32 -1.442695, %v13266_v22 }
 0x3ea   :  { %9141 = vpow2.f32 %v7558_v48  ;;  %v3569_v37 = vpop.f32.mrb[196].mxu0 }
 0x3eb   :  { %9143 = vpow2.f32 %v7559_v10  ;;  %v13272_v0 = vadd.f32 %v3569_v37, %v17450_v31  ;;  %v3682_v47 = vpop.f32.mrb[196].mxu1  ;;  %v3571_v50 = vpop.f32.mrb[197].mxu0 }
 0x3ec   :  { %9145 = vpow2.f32 %v7561_v58  ;;  %v13275_v7 = vadd.f32 %v3682_v47, %v17453_v28  ;;  %v13278_v13 = vadd.f32 %v3571_v50, %v17454_v61  ;;  %v3684_v33 = vpop.f32.mrb[197].mxu1  ;;  %v3573_v43 = vpop.f32.mrb[198].mxu0 }
 0x3ed   :  { %9147 = vpow2.f32 %v7560_v40  ;;  %v7563_v48 = vmul.f32 -1.442695, %v13272_v0  ;;  %v13282_v21 = vadd.f32 %v3684_v33, %v17455_v6  ;;  %v13285_v10 = vadd.f32 %v3573_v43, %v17450_v31  ;;  %v3686_v37 = vpop.f32.mrb[198].mxu1  ;;  %v3575_v63 = vpop.f32.mrb[199].mxu0 }
 0x3ee   :  { %9149 = vpow2.f32 %v7562_v5  ;;  %v7565_v47 = vmul.f32 -1.442695, %v13275_v7  ;;  %v7564_v58 = vmul.f32 -1.442695, %v13278_v13  ;;  %v13290_v50 = vadd.f32 %v3686_v37, %v17453_v28  ;;  %v3688_v8 = vpop.f32.mrb[199].mxu1 }
 0x3ef   :  { %9151 = vpow2.f32 %v7563_v48  ;;  %v7566_v40 = vmul.f32 -1.442695, %v13282_v21  ;;  %v7567_v33 = vmul.f32 -1.442695, %v13285_v10  ;;  %v13295_v60 = vadd.f32 %v3575_v63, %v17454_v61 }
 0x3f0   :  { %9153 = vpow2.f32 %v7565_v47  ;;  %v13298_v43 = vadd.f32 %v3688_v8, %v17455_v6  ;;  %v13301_v37 = vmul.f32 -1.442695, %v13290_v50 }
 0x3f1   :  { %v9136_v5 = vpop.eup %9135  ;;  %9155 = vpow2.f32 %v7564_v58  ;;  %v13304_v48 = vmul.f32 -1.442695, %v13295_v60 }
 0x3f2   :  { %v9138_v24 = vpop.eup %9137  ;;  %v4169_v59 = vadd.f32 1.0, %v9136_v5  ;;  %9157 = vpow2.f32 %v7566_v40  ;;  %v3579_v49 = vpop.f32.mrb[200].mxu0  ;;  %v13307_v63 = vmul.f32 -1.442695, %v13298_v43 }
 0x3f3   :  { %v9140_v56 = vpop.eup %9139  ;;  %v4171_v23 = vadd.f32 1.0, %v9138_v24  ;;  %9159 = vpow2.f32 %v7567_v33  ;;  %v13310_v8 = vadd.f32 %v3579_v49, %v17450_v31  ;;  %v3692_v47 = vpop.f32.mrb[200].mxu1 }
 0x3f4   :  { %v3581_v58 = vpop.f32.mrb[201].mxu0  ;;  %v9142_v5 = vpop.eup %9141  ;;  %9161 = vrcp.f32 %v4169_v59  ;;  %v4170_v40 = vadd.f32 1.0, %v9140_v56  ;;  %v13313_v14 = vadd.f32 %v3692_v47, %v17453_v28 }
 0x3f5   :  { %v13316_v54 = vadd.f32 %v3581_v58, %v17454_v61  ;;  %v3694_v53 = vpop.f32.mrb[201].mxu1  ;;  %v3583_v24 = vpop.f32.mrb[202].mxu0  ;;  %9163 = vrcp.f32 %v4171_v23  ;;  %v4172_v20 = vadd.f32 1.0, %v9142_v5  ;;  %v13319_v26 = vmul.f32 -1.442695, %v13310_v8 }
 0x3f6   :  { %v9144_v33 = vpop.eup %9143  ;;  %v13322_v49 = vadd.f32 %v3694_v53, %v17455_v6  ;;  %v3696_v11 = vpop.f32.mrb[202].mxu1  ;;  %9165 = vrcp.f32 %v4170_v40  ;;  %v13325_v36 = vmul.f32 -1.442695, %v13313_v14  ;;  %v13334_v53 = vadd.f32 %v3583_v24, %v17450_v31 }
 0x3f7   :  { %v3585_v59 = vpop.f32.mrb[203].mxu0  ;;  %v9146_v56 = vpop.eup %9145  ;;  %v4173_v47 = vadd.f32 1.0, %v9144_v33  ;;  %v13328_v58 = vmul.f32 -1.442695, %v13316_v54  ;;  %9167 = vrcp.f32 %v4172_v20  ;;  %v13337_v33 = vadd.f32 %v3696_v11, %v17453_v28 }
 0x3f8   :  { %v3698_v38 = vpop.f32.mrb[203].mxu1  ;;  %v9148_v23 = vpop.eup %9147  ;;  %v4175_v5 = vadd.f32 1.0, %v9146_v56  ;;  %v13331_v52 = vmul.f32 -1.442695, %v13322_v49  ;;  %v13340_v46 = vadd.f32 %v3585_v59, %v17454_v61  ;;  %v13343_v20 = vmul.f32 -1.442695, %v13334_v53 }
 0x3f9   :  { %v9150_v15 = vpop.eup %9149  ;;  %9169 = vrcp.f32 %v4173_v47  ;;  %v4174_v40 = vadd.f32 1.0, %v9148_v23  ;;  %v13346_v56 = vadd.f32 %v3698_v38, %v17455_v6  ;;  %v13349_v47 = vmul.f32 -1.442695, %v13337_v33 }
 0x3fa   :  { %v9152_v12 = vpop.eup %9151  ;;  %9171 = vrcp.f32 %v4175_v5  ;;  %v4176_v41 = vadd.f32 1.0, %v9150_v15  ;;  %v13352_v11 = vmul.f32 -1.442695, %v13340_v46  ;;  %v3589_v59 = vpop.f32.mrb[204].mxu0 }
 0x3fb   :  { %v9154_v24 = vpop.eup %9153  ;;  %9173 = vrcp.f32 %v4174_v40  ;;  %v4177_v57 = vadd.f32 1.0, %v9152_v12  ;;  %v13355_v15 = vmul.f32 -1.442695, %v13346_v56  ;;  %v13358_v29 = vadd.f32 %v3589_v59, %v17450_v31  ;;  %v3702_v38 = vpop.f32.mrb[204].mxu1 }
 0x3fc   :  { %v9156_v23 = vpop.eup %9155  ;;  %9175 = vrcp.f32 %v4176_v41  ;;  %v4179_v5 = vadd.f32 1.0, %v9154_v24  ;;  %v3591_v27 = vpop.f32.mrb[205].mxu0  ;;  %v13361_v4 = vadd.f32 %v3702_v38, %v17453_v28 }
 0x3fd   :  { %v9158_v40 = vpop.eup %9157  ;;  %9177 = vrcp.f32 %v4177_v57  ;;  %v4178_v12 = vadd.f32 1.0, %v9156_v23  ;;  %v13364_v51 = vadd.f32 %v3591_v27, %v17454_v61  ;;  %v3704_v32 = vpop.f32.mrb[205].mxu1  ;;  %v13367_v39 = vmul.f32 -1.442695, %v13358_v29 }
 0x3fe   :  { %17456 = vst [vmem:[#allocation87_spill] sm:$0xff] %v13361_v4  ;;  %v3593_v41 = vpop.f32.mrb[206].mxu0  ;;  %v9160_v24 = vpop.eup %9159  ;;  %9179 = vrcp.f32 %v4179_v5  ;;  %v4180_v16 = vadd.f32 1.0, %v9158_v40  ;;  %v13370_v59 = vadd.f32 %v3704_v32, %v17455_v6  ;;  %v13373_v19 = vmul.f32 -1.442695, %v13361_v4 }
 0x3ff   :  { %17457 = vst [vmem:[#allocation120_spill] sm:$0xff] %v13364_v51  ;;  %v3706_v9 = vpop.f32.mrb[206].mxu1  ;;  %v3595_v57 = vpop.f32.mrb[207].mxu0  ;;  %9181 = vrcp.f32 %v4178_v12  ;;  %v4181_v38 = vadd.f32 1.0, %v9160_v24  ;;  %v13376_v27 = vmul.f32 -1.442695, %v13364_v51  ;;  %v13382_v32 = vadd.f32 %v3593_v41, %v17450_v31 }
 0x400   :  { %17458 = vst [vmem:[#allocation113_spill] sm:$0xff] %v13370_v59  ;;  %v9162_v23 = vpop.eup %9161  ;;  %v3708_v62 = vpop.f32.mrb[207].mxu1  ;;  %9183 = vrcp.f32 %v4180_v16  ;;  %v13379_v40 = vmul.f32 -1.442695, %v13370_v59  ;;  %v13385_v55 = vadd.f32 %v3706_v9, %v17453_v28  ;;  %v13388_v24 = vadd.f32 %v3595_v57, %v17454_v61 }
 0x401   :  { %v9164_v5 = vpop.eup %9163  ;;  %17459 = vst [vmem:[#allocation121_spill] sm:$0xff] %v13382_v32  ;;  %9185 = vrcp.f32 %v4181_v38  ;;  %v13391_v25 = vadd.f32 %v3708_v62, %v17455_v6  ;;  %v13394_v51 = vmul.f32 %v9162_v23, %v13237_v2  ;;  %v13398_v41 = vmul.f32 -1.442695, %v13382_v32 }
 0x402   :  { %17460 = vst [vmem:[#allocation88_spill] sm:$0xff] %v13385_v55  ;;  %v9166_v12 = vpop.eup %9165  ;;  %17461 = vst [vmem:[#allocation122_spill] sm:$0xff] %v13388_v24  ;;  %9187 = vpow2.f32 %v13301_v37  ;;  %v13401_v9 = vmul.f32 -1.442695, %v13385_v55  ;;  %v13404_v38 = vmul.f32 %v9164_v5, %v13243_v45  ;;  %v13408_v62 = vmul.f32 -1.442695, %v13388_v24 }
 0x403   :  { %17462 = vst [vmem:[#allocation92_spill] sm:$0xff] %v13391_v25  ;;  %v9168_v16 = vpop.eup %9167  ;;  %9189 = vpow2.f32 %v13304_v48  ;;  %v13411_v2 = vmul.f32 -1.442695, %v13391_v25  ;;  %v3599_v23 = vpop.f32.mrb[208].mxu0  ;;  %v13414_v37 = vmul.f32 %v9166_v12, %v13246_v1 }
 0x404   :  { %v9170_v57 = vpop.eup %9169  ;;  %9191 = vpow2.f32 %v13307_v63  ;;  %v13418_v55 = vadd.f32 %v3599_v23, %v17450_v31  ;;  %v3712_v45 = vpop.f32.mrb[208].mxu1  ;;  %v13421_v48 = vmul.f32 %v9168_v16, %v13250_v42 }
 0x405   :  { %v9172_v32 = vpop.eup %9171  ;;  %v3601_v5 = vpop.f32.mrb[209].mxu0  ;;  %v13424_v24 = vmul.f32 %v9170_v57, %v13253_v44  ;;  %9193 = vpow2.f32 %v13319_v26  ;;  %v13428_v1 = vadd.f32 %v3712_v45, %v17453_v28 }
 0x406   :  { %17463 = vst [vmem:[#allocation127_spill] sm:$0xff] %v13418_v55  ;;  %v9174_v25 = vpop.eup %9173  ;;  %v13431_v12 = vadd.f32 %v3601_v5, %v17454_v61  ;;  %v3714_v63 = vpop.f32.mrb[209].mxu1  ;;  %v13434_v59 = vmul.f32 %v9172_v32, %v13258_v35  ;;  %9195 = vpow2.f32 %v13325_v36  ;;  %v13438_v42 = vmul.f32 -1.442695, %v13418_v55 }
 0x407   :  { %17464 = vst [vmem:[#allocation93_spill] sm:$0xff] %v13428_v1  ;;  %v3603_v23 = vpop.f32.mrb[210].mxu0  ;;  %v9176_v4 = vpop.eup %9175  ;;  %v13441_v44 = vadd.f32 %v3714_v63, %v17455_v6  ;;  %9197 = vpow2.f32 %v13328_v58  ;;  %v13448_v35 = vmul.f32 -1.442695, %v13428_v1 }
 0x408   :  { %17465 = vst [vmem:[#allocation129_spill] sm:$0xff] %v13431_v12  ;;  %v13444_v26 = vadd.f32 %v3603_v23, %v17450_v31  ;;  %v3716_v16 = vpop.f32.mrb[210].mxu1  ;;  %v3605_v57 = vpop.f32.mrb[211].mxu0  ;;  %v13451_v32 = vmul.f32 -1.442695, %v13431_v12  ;;  %9199 = vpow2.f32 %v13331_v52  ;;  %v13474_v52 = vmul.f32 %v9174_v25, %v13261_v30 }
 0x409   :  { %17466 = vst [vmem:[#allocation94_spill] sm:$0xff] %v13441_v44  ;;  %v9178_v45 = vpop.eup %9177  ;;  %v13454_v36 = vadd.f32 %v3716_v16, %v17453_v28  ;;  %v3718_v5 = vpop.f32.mrb[211].mxu1  ;;  %v13458_v23 = vmul.f32 -1.442695, %v13441_v44  ;;  %v13464_v58 = vadd.f32 %v3605_v57, %v17454_v61  ;;  %9201 = vpow2.f32 %v13343_v20 }
 0x40a   :  { %17467 = vst [vmem:[#allocation102_spill] sm:$0xff] %v13444_v26  ;;  %v9180_v63 = vpop.eup %9179  ;;  %v13461_v55 = vmul.f32 -1.442695, %v13444_v26  ;;  %v13471_v16 = vadd.f32 %v3718_v5, %v17455_v6  ;;  %9203 = vpow2.f32 %v13349_v47  ;;  %v13481_v57 = vmul.f32 %v9176_v4, %v13266_v22  ;;  %v3609_v25 = vpop.f32.mrb[212].mxu0 }
 0x40b   :  { %17468 = vst [vmem:[#allocation104_spill] sm:$0xff] %v13454_v36  ;;  %17469 = vst [vmem:[#allocation108_spill] sm:$0xff] %v13464_v58  ;;  %v9182_v1 = vpop.eup %9181  ;;  %v13468_v12 = vmul.f32 -1.442695, %v13454_v36  ;;  %v13478_v26 = vmul.f32 -1.442695, %v13464_v58  ;;  %v13484_v20 = vmul.f32 %v9178_v45, %v13272_v0  ;;  %9205 = vpow2.f32 %v13352_v11 }
 0x40c   :  { %17470 = vst [vmem:[#allocation110_spill] sm:$0xff] %v13471_v16  ;;  %v9184_v44 = vpop.eup %9183  ;;  %v13488_v5 = vmul.f32 -1.442695, %v13471_v16  ;;  %v13491_v30 = vmul.f32 %v9180_v63, %v13275_v7  ;;  %v13494_v47 = vmul.f32 %v9182_v1, %v13278_v13  ;;  %9207 = vpow2.f32 %v13355_v15  ;;  %v3722_v22 = vpop.f32.mrb[212].mxu1 }
 0x40d   :  { %v9186_v36 = vpop.eup %9185  ;;  %v13498_v4 = vadd.f32 %v3609_v25, %v17450_v31  ;;  %v3611_v0 = vpop.f32.mrb[213].mxu0  ;;  %v13501_v11 = vmul.f32 %v9184_v44, %v13282_v21  ;;  %9209 = vpow2.f32 %v13367_v39  ;;  %v13508_v13 = vadd.f32 %v3722_v22, %v17453_v28 }
 0x40e   :  { %17471 = vst [vmem:[#allocation115_spill] sm:$0xff] %v13488_v5  ;;  %v9188_v58 = vpop.eup %9187  ;;  %v13504_v45 = vmul.f32 %v9186_v36, %v13285_v10  ;;  %v13511_v15 = vadd.f32 %v3611_v0, %v17454_v61  ;;  %v3724_v1 = vpop.f32.mrb[213].mxu1  ;;  %9211 = vpow2.f32 %v13373_v19 }
 0x40f   :  { %17472 = vst [vmem:[#allocation116_spill] sm:$0xff] %v13498_v4  ;;  %v9190_v16 = vpop.eup %9189  ;;  %v4183_v7 = vadd.f32 1.0, %v9188_v58  ;;  %17474 = vst [vmem:[#allocation119_spill] sm:$0xff] %v13508_v13  ;;  %v3613_v63 = vpop.f32.mrb[214].mxu0  ;;  %v13515_v21 = vmul.f32 -1.442695, %v13498_v4  ;;  %v13518_v10 = vadd.f32 %v3724_v1, %v17455_v6 }
 0x410   :  { %17473 = vst [vmem:[#allocation117_spill] sm:$0xff] %v13504_v45  ;;  %17475 = vst [vmem:[#allocation123_spill] sm:$0xff] %v13511_v15  ;;  %v9192_v25 = vpop.eup %9191  ;;  %v4182_v5 = vadd.f32 1.0, %v9190_v16  ;;  %v3726_v44 = vpop.f32.mrb[214].mxu1  ;;  %v13521_v22 = vmul.f32 -1.442695, %v13508_v13  ;;  %v13530_v1 = vadd.f32 %v3613_v63, %v17450_v31 }
 0x411   :  { %17476 = vst [vmem:[#allocation124_spill] sm:$0xff] %v13515_v21  ;;  %17477 = vst [vmem:[#allocation125_spill] sm:$0xff] %v13518_v10  ;;  %v3615_v39 = vpop.f32.mrb[215].mxu0  ;;  %v9194_v36 = vpop.eup %9193  ;;  %9213 = vrcp.f32 %v4183_v7  ;;  %v4184_v58 = vadd.f32 1.0, %v9192_v25  ;;  %v13524_v0 = vmul.f32 -1.442695, %v13511_v15  ;;  %v13533_v25 = vadd.f32 %v3726_v44, %v17453_v28 }
 0x412   :  { %17478 = vst [vmem:[#allocation128_spill] sm:$0xff] %v13521_v22  ;;  %v3728_v16 = vpop.f32.mrb[215].mxu1  ;;  %v9196_v45 = vpop.eup %9195  ;;  %9215 = vrcp.f32 %v4182_v5  ;;  %v4185_v19 = vadd.f32 1.0, %v9194_v36  ;;  %v13527_v4 = vmul.f32 -1.442695, %v13518_v10  ;;  %17481 = vst [vmem:[#allocation131_spill] sm:$0xff] %v13530_v1  ;;  %v13536_v13 = vadd.f32 %v3615_v39, %v17454_v61 }
 0x413   :  { %17479 = vst [vmem:[#allocation142_spill] sm:$0xff] %v13524_v0  ;;  %v9198_v21 = vpop.eup %9197  ;;  %9217 = vrcp.f32 %v4184_v58  ;;  %v4187_v7 = vadd.f32 1.0, %v9196_v45  ;;  %17482 = vst [vmem:[#allocation132_spill] sm:$0xff] %v13533_v25  ;;  %v13539_v5 = vmul.f32 -1.442695, %v13530_v1  ;;  %v13542_v36 = vadd.f32 %v3728_v16, %v17455_v6  ;;  %v3619_v39 = vpop.f32.mrb[216].mxu0 }
 0x414   :  { %17480 = vst [vmem:[#allocation130_spill] sm:$0xff] %v13527_v4  ;;  %17483 = vst [vmem:[#allocation133_spill] sm:$0xff] %v13536_v13  ;;  %v9200_v15 = vpop.eup %9199  ;;  %9219 = vrcp.f32 %v4185_v19  ;;  %v4186_v0 = vadd.f32 1.0, %v9198_v21  ;;  %v13545_v45 = vmul.f32 -1.442695, %v13533_v25  ;;  %v13554_v1 = vadd.f32 %v3619_v39, %v17450_v31  ;;  %v3732_v16 = vpop.f32.mrb[216].mxu1 }
 0x415   :  { %17484 = vst [vmem:[#allocation134_spill] sm:$0xff] %v13539_v5  ;;  %17485 = vst [vmem:[#allocation135_spill] sm:$0xff] %v13542_v36  ;;  %v9202_v63 = vpop.eup %9201  ;;  %9221 = vrcp.f32 %v4187_v7  ;;  %v4188_v10 = vadd.f32 1.0, %v9200_v15  ;;  %v13548_v44 = vmul.f32 -1.442695, %v13536_v13  ;;  %v3621_v5 = vpop.f32.mrb[217].mxu0  ;;  %v13557_v25 = vadd.f32 %v3732_v16, %v17453_v28 }
 0x416   :  { %17486 = vst [vmem:[#allocation136_spill] sm:$0xff] %v13545_v45  ;;  %v9204_v58 = vpop.eup %9203  ;;  %9223 = vrcp.f32 %v4186_v0  ;;  %v4189_v19 = vadd.f32 1.0, %v9202_v63  ;;  %v13551_v21 = vmul.f32 -1.442695, %v13542_v36  ;;  %17489 = vst [vmem:[#allocation139_spill] sm:$0xff] %v13554_v1  ;;  %v13560_v13 = vadd.f32 %v3621_v5, %v17454_v61  ;;  %v3623_v0 = vpop.f32.mrb[218].mxu0 }
 0x417   :  { %17487 = vst [vmem:[#allocation137_spill] sm:$0xff] %v13548_v44  ;;  %v9206_v7 = vpop.eup %9205  ;;  %9225 = vrcp.f32 %v4188_v10  ;;  %v4191_v15 = vadd.f32 1.0, %v9204_v58  ;;  %17490 = vst [vmem:[#allocation140_spill] sm:$0xff] %v13557_v25  ;;  %v3734_v44 = vpop.f32.mrb[217].mxu1  ;;  %v13569_v4 = vmul.f32 -1.442695, %v13557_v25 }
 0x418   :  { %17488 = vst [vmem:[#allocation138_spill] sm:$0xff] %v13551_v21  ;;  %17491 = vst [vmem:[#allocation141_spill] sm:$0xff] %v13560_v13  ;;  %v9208_v63 = vpop.eup %9207  ;;  %9227 = vrcp.f32 %v4189_v19  ;;  %v4190_v36 = vadd.f32 1.0, %v9206_v7  ;;  %v13563_v21 = vmul.f32 -1.442695, %v13554_v1  ;;  %v13566_v39 = vadd.f32 %v3734_v44, %v17455_v6  ;;  %v3736_v45 = vpop.f32.mrb[218].mxu1 }
 0x419   :  { %v3625_v10 = vpop.f32.mrb[219].mxu0  ;;  %v9210_v58 = vpop.eup %9209  ;;  %9229 = vrcp.f32 %v4191_v15  ;;  %v4192_v16 = vadd.f32 1.0, %v9208_v63  ;;  %v13572_v5 = vmul.f32 -1.442695, %v13560_v13  ;;  %v13578_v44 = vadd.f32 %v3623_v0, %v17450_v31 }
 0x41a   :  { %17492 = vst [vmem:[#allocation89_spill] sm:$0xff] %v13563_v21  ;;  %17493 = vst [vmem:[#allocation90_spill] sm:$0xff] %v13566_v39  ;;  %v3738_v22 = vpop.f32.mrb[219].mxu1  ;;  %v9212_v19 = vpop.eup %9211  ;;  %9231 = vrcp.f32 %v4190_v36  ;;  %v4193_v7 = vadd.f32 1.0, %v9210_v58  ;;  %v13575_v1 = vmul.f32 -1.442695, %v13566_v39  ;;  %v13581_v63 = vadd.f32 %v3736_v45, %v17453_v28 }
 0x41b   :  { %17494 = vst [vmem:[#allocation75_spill] sm:$0xff] %v13578_v44  ;;  %v9214_v21 = vpop.eup %9213  ;;  %9233 = vrcp.f32 %v4192_v16  ;;  %v4195_v15 = vadd.f32 1.0, %v9212_v19  ;;  %v13584_v25 = vadd.f32 %v3625_v10, %v17454_v61  ;;  %v13587_v36 = vmul.f32 -1.442695, %v13578_v44  ;;  %v3629_v10 = vpop.f32.mrb[220].mxu0 }
 0x41c   :  { %17495 = vst [vmem:[#allocation76_spill] sm:$0xff] %v13581_v63  ;;  %v9216_v13 = vpop.eup %9215  ;;  %9235 = vrcp.f32 %v4193_v7  ;;  %v13590_v58 = vadd.f32 %v3738_v22, %v17455_v6  ;;  %v13593_v0 = vmul.f32 %v9214_v21, %v13290_v50  ;;  %v13596_v16 = vmul.f32 -1.442695, %v13581_v63  ;;  %v3742_v21 = vpop.f32.mrb[220].mxu1 }
 0x41d   :  { %17496 = vst [vmem:[#allocation77_spill] sm:$0xff] %v13584_v25  ;;  %v9218_v39 = vpop.eup %9217  ;;  %9237 = vrcp.f32 %v4195_v15  ;;  %v13599_v45 = vmul.f32 -1.442695, %v13584_v25  ;;  %v13602_v19 = vmul.f32 %v9216_v13, %v13295_v60  ;;  %v13609_v50 = vadd.f32 %v3629_v10, %v17450_v31  ;;  %v3631_v15 = vpop.f32.mrb[221].mxu0 }
 0x41e   :  { %17497 = vst [vmem:[#allocation91_spill] sm:$0xff] %v13590_v58  ;;  %v9220_v7 = vpop.eup %9219  ;;  %9239 = vpow2.f32 %v13376_v27  ;;  %v13606_v22 = vmul.f32 -1.442695, %v13590_v58  ;;  %v13612_v63 = vmul.f32 %v9218_v39, %v13298_v43  ;;  %v13616_v60 = vadd.f32 %v3742_v21, %v17453_v28  ;;  %v3744_v27 = vpop.f32.mrb[221].mxu1 }
 0x41f   :  { %17499 = vst [vmem:[#allocation95_spill] sm:$0xff] %v13609_v50  ;;  %v9222_v25 = vpop.eup %9221  ;;  %9241 = vpow2.f32 %v13379_v40  ;;  %v13619_v13 = vadd.f32 %v3631_v15, %v17454_v61  ;;  %v3633_v58 = vpop.f32.mrb[222].mxu0  ;;  %v13622_v44 = vmul.f32 %v9220_v7, %v13310_v8  ;;  %v13626_v43 = vmul.f32 -1.442695, %v13609_v50 }
 0x420   :  { %17498 = vst [vmem:[#allocation78_spill] sm:$0xff] %v13606_v22  ;;  %17500 = vst [vmem:[#allocation79_spill] sm:$0xff] %v13616_v60  ;;  %v9224_v10 = vpop.eup %9223  ;;  %9243 = vpow2.f32 %v13398_v41  ;;  %v13629_v39 = vadd.f32 %v3744_v27, %v17455_v6  ;;  %v13632_v40 = vadd.f32 %v3633_v58, %v17450_v31  ;;  %v3746_v21 = vpop.f32.mrb[222].mxu1  ;;  %v13636_v8 = vmul.f32 -1.442695, %v13616_v60 }
 0x421   :  { %17501 = vst [vmem:[#allocation97_spill] sm:$0xff] %v13619_v13  ;;  %v3635_v15 = vpop.f32.mrb[223].mxu0  ;;  %v9226_v22 = vpop.eup %9225  ;;  %9245 = vpow2.f32 %v13401_v9  ;;  %v13639_v7 = vmul.f32 -1.442695, %v13619_v13  ;;  %v13642_v41 = vadd.f32 %v3746_v21, %v17453_v28 }
 0x422   :  { %17502 = vst [vmem:[#allocation80_spill] sm:$0xff] %v13632_v40  ;;  %v3748_v50 = vpop.f32.mrb[223].mxu1  ;;  %v9228_v27 = vpop.eup %9227  ;;  %9247 = vpow2.f32 %v13408_v62  ;;  %v13646_v58 = vmul.f32 -1.442695, %v13629_v39  ;;  %v13649_v31 = vmul.f32 -1.442695, %v13632_v40  ;;  %v13652_v9 = vadd.f32 %v3635_v15, %v17454_v61 }
 0x423   :  { %17503 = vst [vmem:[#allocation98_spill] sm:$0xff] %v13642_v41  ;;  %v9230_v60 = vpop.eup %9229  ;;  %9249 = vpow2.f32 %v13411_v2  ;;  %v13656_v13 = vmul.f32 -1.442695, %v13642_v41  ;;  %v13659_v21 = vadd.f32 %v3748_v50, %v17455_v6  ;;  %v13662_v62 = vmul.f32 %v9222_v25, %v13313_v14  ;;  %v3785_v14 = vpop.f32.mrb[224].mxu0 }
 0x424   :  { %17504 = vst [vmem:[#allocation81_spill] sm:$0xff] %v13652_v9  ;;  %v9232_v28 = vpop.eup %9231  ;;  %9251 = vpow2.f32 %v13438_v42  ;;  %v13666_v40 = vmul.f32 -1.442695, %v13652_v9  ;;  %v13669_v15 = vmul.f32 %v9224_v10, %v13316_v54  ;;  %v13672_v2 = vmul.f32 %v9226_v22, %v13322_v49  ;;  %v3898_v49 = vpop.f32.mrb[224].mxu1 }
 0x425   :  { %17505 = vst [vmem:[#allocation99_spill] sm:$0xff] %v13659_v21  ;;  %v9234_v61 = vpop.eup %9233  ;;  %9253 = vpow2.f32 %v13448_v35  ;;  %v13676_v50 = vmul.f32 -1.442695, %v13659_v21  ;;  %v13679_v25 = vmul.f32 %v9228_v27, %v13334_v53  ;;  %v13682_v42 = vmul.f32 %v9230_v60, %v13337_v33  ;;  %v3787_v22 = vpop.f32.mrb[225].mxu0 }
 0x426   :  { %v9236_v6 = vpop.eup %9235  ;;  %9255 = vpow2.f32 %v13451_v32  ;;  %v3786_v54 = vadd.f32 %v3785_v14, %v10857_v18  ;;  %v13687_v10 = vmul.f32 %v9232_v28, %v13340_v46  ;;  %v13690_v35 = vmul.f32 %v9234_v61, %v13346_v56  ;;  %v3900_v60 = vpop.f32.mrb[225].mxu1 }
 0x427   :  { %v13692_v21 = vpop.eup %9237  ;;  %9257 = vpow2.f32 %v13458_v23  ;;  %v3899_v53 = vadd.f32 %v3898_v49, %v10860_v34  ;;  %v3788_v33 = vadd.f32 %v3787_v22, %v10863_v3  ;;  %v3789_v32 = vpop.f32.mrb[226].mxu0  ;;  %v13698_v27 = vmul.f32 %v9236_v6, %v13358_v29 }
 0x428   :  { %v9240_v14 = vpop.eup %9239  ;;  %9259 = vpow2.f32 %v13461_v55  ;;  %v13702_v46 = vadd.f32 %v13394_v51, %v3786_v54  ;;  %v3901_v28 = vadd.f32 %v3900_v60, %v10866_v17  ;;  %v3790_v61 = vadd.f32 %v3789_v32, %v10857_v18  ;;  %v3902_v56 = vpop.f32.mrb[226].mxu1 }
 0x429   :  { %v3791_v23 = vpop.f32.mrb[227].mxu0  ;;  %v9242_v49 = vpop.eup %9241  ;;  %v4194_v9 = vadd.f32 1.0, %v9240_v14  ;;  %9261 = vpow2.f32 %v13468_v12  ;;  %v13708_v22 = vadd.f32 %v13404_v38, %v3899_v53  ;;  %v13711_v29 = vadd.f32 %v13414_v37, %v3788_v33 }
 0x42a   :  { %v3904_v55 = vpop.f32.mrb[227].mxu1  ;;  %v9244_v6 = vpop.eup %9243  ;;  %v4196_v51 = vadd.f32 1.0, %v9242_v49  ;;  %9263 = vpow2.f32 %v13478_v26  ;;  %v13715_v54 = vadd.f32 %v13421_v48, %v3901_v28  ;;  %v13718_v60 = vadd.f32 %v13424_v24, %v3790_v61 }
 0x42b   :  { %v9246_v32 = vpop.eup %9245  ;;  %9265 = vrcp.f32 %v4194_v9  ;;  %v4197_v12 = vadd.f32 1.0, %v9244_v6  ;;  %v3903_v38 = vadd.f32 %v3902_v56, %v10860_v34  ;;  %v3792_v53 = vadd.f32 %v3791_v23, %v10863_v3  ;;  %v3795_v61 = vpop.f32.mrb[228].mxu0 }
 0x42c   :  { %v9248_v37 = vpop.eup %9247  ;;  %9267 = vrcp.f32 %v4196_v51  ;;  %v4199_v33 = vadd.f32 1.0, %v9246_v32  ;;  %v3905_v26 = vadd.f32 %v3904_v55, %v10866_v17  ;;  %v3796_v6 = vadd.f32 %v3795_v61, %v10857_v18  ;;  %v3908_v51 = vpop.f32.mrb[228].mxu1 }
 0x42d   :  { %v9250_v48 = vpop.eup %9249  ;;  %9269 = vrcp.f32 %v4197_v12  ;;  %v4198_v28 = vadd.f32 1.0, %v9248_v37  ;;  %v13726_v24 = vadd.f32 %v13434_v59, %v3903_v38  ;;  %v4430_v9 = vadd.f32 %v13474_v52, %v3792_v53  ;;  %v3797_v32 = vpop.f32.mrb[229].mxu0 }
 0x42e   :  { %v9252_v56 = vpop.eup %9251  ;;  %9271 = vrcp.f32 %v4199_v33  ;;  %v4200_v23 = vadd.f32 1.0, %v9250_v48  ;;  %v4432_v49 = vadd.f32 %v13481_v57, %v3905_v26  ;;  %v3909_v59 = vadd.f32 %v3908_v51, %v10860_v34  ;;  %v3910_v38 = vpop.f32.mrb[229].mxu1 }
 0x42f   :  { %v9254_v14 = vpop.eup %9253  ;;  %9273 = vrcp.f32 %v4198_v28  ;;  %v4201_v55 = vadd.f32 1.0, %v9252_v56  ;;  %v4491_v12 = vpack.c.bf16 %v13726_v24, %v13708_v22  ;;  %v3799_v52 = vpop.f32.mrb[230].mxu0  ;;  %v13735_v33 = vadd.f32 %v13484_v20, %v3796_v6 }
 0x430   :  { %v9256_v53 = vpop.eup %9255  ;;  %9275 = vrcp.f32 %v4200_v23  ;;  %v4203_v37 = vadd.f32 1.0, %v9254_v14  ;;  %v3798_v57 = vadd.f32 %v3797_v32, %v10863_v3  ;;  %v3912_v26 = vpop.f32.mrb[230].mxu1  ;;  %v13739_v56 = vadd.f32 %v13491_v30, %v3909_v59 }
 0x431   :  { %v3801_v48 = vpop.f32.mrb[231].mxu0  ;;  %v9258_v61 = vpop.eup %9257  ;;  %9277 = vrcp.f32 %v4201_v55  ;;  %v4202_v28 = vadd.f32 1.0, %v9256_v53  ;;  %v3911_v22 = vadd.f32 %v3910_v38, %v10866_v17  ;;  %v3800_v20 = vadd.f32 %v3799_v52, %v10857_v18  ;;  %v17506_v53 = vld [vmem:[#allocation117_spill] sm:$0xff] }
 0x432   :  { %v3914_v24 = vpop.f32.mrb[231].mxu1  ;;  %v9260_v51 = vpop.eup %9259  ;;  %9279 = vrcp.f32 %v4203_v37  ;;  %v4204_v23 = vadd.f32 1.0, %v9258_v61  ;;  %v13743_v14 = vadd.f32 %v13494_v47, %v3798_v57  ;;  %v3913_v30 = vadd.f32 %v3912_v26, %v10860_v34 }
 0x433   :  { %v9262_v6 = vpop.eup %9261  ;;  %9281 = vrcp.f32 %v4202_v28  ;;  %v4205_v32 = vadd.f32 1.0, %v9260_v51  ;;  %v13747_v55 = vadd.f32 %v13501_v11, %v3911_v22  ;;  %v13751_v41 = vadd.f32 %v17506_v53, %v3800_v20  ;;  %v3805_v61 = vpop.f32.mrb[232].mxu0 }
 0x434   :  { %v9264_v59 = vpop.eup %9263  ;;  %9283 = vrcp.f32 %v4204_v23  ;;  %v4207_v38 = vadd.f32 1.0, %v9262_v6  ;;  %v4490_v37 = vpack.c.bf16 %v4430_v9, %v13711_v29  ;;  %v13757_v57 = vadd.f32 %v13593_v0, %v3913_v30  ;;  %v3918_v9 = vpop.f32.mrb[232].mxu1 }
 0x435   :  { %v13754_v47 = vpop.eup %9265  ;;  %9285 = vrcp.f32 %v4205_v32  ;;  %v4206_v52 = vadd.f32 1.0, %v9264_v59  ;;  %v4492_v11 = vpack.c.bf16 %v4432_v49, %v13715_v54  ;;  %v4493_v26 = vpack.c.bf16 %v13751_v41, %v13735_v33  ;;  %v3807_v51 = vpop.f32.mrb[233].mxu0  ;;  %v17508_v32 = vld [vmem:[#allocation115_spill] sm:$0xff]  ;;  %v17528_v33 = vld [vmem:[#allocation113_spill] sm:$0xff] }
 0x436   :  { %v13760_v28 = vpop.eup %9267  ;;  %9287 = vrcp.f32 %v4207_v38  ;;  %4553 = vmatprep.mubr.bf16.mxu0 %v4490_v37  ;;  %v3802_v22 = vadd.f32 %v3801_v48, %v10863_v3  ;;  %v3915_v29 = vadd.f32 %v3914_v24, %v10866_v17  ;;  %v17507_v54 = vpack.c.bf16 %v13718_v60, %v13702_v46  ;;  %v3920_v48 = vpop.f32.mrb[233].mxu1  ;;  %v17509_v38 = vld [vmem:[#allocation8_spill] sm:$0xff] }
 0x437   :  { %v13766_v23 = vpop.eup %9269  ;;  %9289 = vrcp.f32 %v4206_v52  ;;  %4650 = vmatprep.mubr.bf16.mxu1 %v4492_v11  ;;  %v3806_v49 = vadd.f32 %v3805_v61, %v10857_v18  ;;  %v3919_v20 = vadd.f32 %v3918_v9, %v10860_v34  ;;  %v3809_v6 = vpop.f32.mrb[234].mxu0  ;;  %v3808_v46 = vadd.f32 %v3807_v51, %v10863_v3  ;;  %v17510_v52 = vld [vmem:[#allocation124_spill] sm:$0xff]  ;;  %v17511_v11 = vld [vmem:[#allocation10_spill] sm:$0xff] }
 0x438   :  { %4554 = vmatmul.mubr.bf16.vlgmr.msra.gmra.mrb[0].mxu0 %v17507_v54  ;;  %v13775_v24 = vpop.eup %9271  ;;  %9291 = vpow2.f32 %v17508_v32  ;;  %v4438_v30 = vadd.f32 %v13602_v19, %v3802_v22  ;;  %v4440_v59 = vadd.f32 %v13612_v63, %v3915_v29  ;;  %4651 = vmatmul.mubr.bf16.vlgmr.msra.gmra.mrb[0].mxu1 %v4491_v12  ;;  %v3922_v60 = vpop.f32.mrb[234].mxu1  ;;  %v3921_v63 = vadd.f32 %v3920_v48, %v10866_v17  ;;  %v17512_v22 = vld [vmem:[#allocation11_spill] sm:$0xff]  ;;  %v17513_v9 = vld [vmem:[#allocation128_spill] sm:$0xff] }
 0x439   :  { %4741 = vmatpush1.bf16.msra.mxu0 %v17509_v38  ;;  %v3811_v53 = vpop.f32.mrb[235].mxu0  ;;  %v13782_v37 = vpop.eup %9273  ;;  %9293 = vpow2.f32 %v17510_v52  ;;  %4854 = vmatpush1.bf16.msra.mxu1 %v17511_v11  ;;  %v13787_v61 = vadd.f32 %v13622_v44, %v3806_v49  ;;  %v13790_v19 = vadd.f32 %v13662_v62, %v3919_v20  ;;  %v13798_v51 = vadd.f32 %v13669_v15, %v3808_v46  ;;  %v17514_v49 = vld [vmem:[#allocation12_spill] sm:$0xff]  ;;  %v17515_v20 = vld [vmem:[#allocation142_spill] sm:$0xff] }
 0x43a   :  { %v3924_v12 = vpop.f32.mrb[235].mxu1  ;;  %4742 = vmatprep.subr.bf16.mxu0 %v17512_v22  ;;  %v13794_v29 = vpop.eup %9275  ;;  %9295 = vpow2.f32 %v17513_v9  ;;  %v3810_v54 = vadd.f32 %v3809_v6, %v10857_v18  ;;  %v3923_v44 = vadd.f32 %v3922_v60, %v10860_v34  ;;  %4855 = vmatprep.subr.bf16.mxu1 %v17514_v49  ;;  %v13807_v48 = vadd.f32 %v13672_v2, %v3921_v63  ;;  %v17516_v15 = vld [vmem:[#allocation130_spill] sm:$0xff] }
 0x43b   :  { %v13803_v62 = vpop.eup %9277  ;;  %9297 = vpow2.f32 %v17515_v20  ;;  %v4494_v32 = vpack.c.bf16 %v4438_v30, %v13743_v14  ;;  %v4496_v52 = vpack.c.bf16 %v4440_v59, %v13747_v55  ;;  %v3812_v60 = vadd.f32 %v3811_v53, %v10863_v3  ;;  %v17517_v20 = vld [vmem:[#allocation13_spill] sm:$0xff]  ;;  %v17518_v63 = vld [vmem:[#allocation134_spill] sm:$0xff]  ;;  %v3815_v55 = vpop.f32.mrb[236].mxu0  ;;  %v17519_v30 = vld [vmem:[#allocation87_spill] sm:$0xff] }
 0x43c   :  { %v13811_v9 = vpop.eup %9279  ;;  %9299 = vpow2.f32 %v17516_v15  ;;  %v13815_v6 = vadd.f32 %v13679_v25, %v3810_v54  ;;  %v13818_v46 = vadd.f32 %v13682_v42, %v3923_v44  ;;  %v3925_v14 = vadd.f32 %v3924_v12, %v10866_v17  ;;  %v17520_v59 = vld [vmem:[#allocation120_spill] sm:$0xff]  ;;  %v17522_v12 = vld [vmem:[#allocation14_spill] sm:$0xff]  ;;  %v3928_v15 = vpop.f32.mrb[236].mxu1 }
 0x43d   :  { %4743 = vmatpush1.bf16.msra.mxu0 %v17517_v20  ;;  %v13822_v2 = vpop.eup %9281  ;;  %9301 = vpow2.f32 %v17518_v63  ;;  %4561 = vmatprep.mubr.bf16.mxu0 %v4494_v32  ;;  %v4387_v25 = vmul.f32 %v13692_v21, %v17519_v30  ;;  %v4386_v42 = vmul.f32 %v13754_v47, %v17520_v59  ;;  %v17521_v53 = vld [vmem:[#allocation136_spill] sm:$0xff]  ;;  %v3817_v63 = vpop.f32.mrb[237].mxu0  ;;  %v17523_v21 = vld [vmem:[#allocation15_spill] sm:$0xff]  ;;  %v17524_v47 = vld [vmem:[#allocation137_spill] sm:$0xff] }
 0x43e   :  { %4658 = vmatprep.mubr.bf16.mxu1 %v4496_v52  ;;  %v13830_v54 = vpop.eup %9283  ;;  %9303 = vpow2.f32 %v17521_v53  ;;  %v4446_v52 = vadd.f32 %v13687_v10, %v3812_v60  ;;  %4856 = vmatpush1.bf16.msra.mxu1 %v17522_v12  ;;  %v4448_v59 = vadd.f32 %v13690_v35, %v3925_v14  ;;  %v3816_v53 = vadd.f32 %v3815_v55, %v10857_v18  ;;  %v3930_v60 = vpop.f32.mrb[237].mxu1  ;;  %v17525_v44 = vld [vmem:[#allocation16_spill] sm:$0xff]  ;;  %v17530_v12 = vld [vmem:[#allocation89_spill] sm:$0xff]  ;;  %v17533_v20 = vld [vmem:[#allocation18_spill] sm:$0xff] }
 0x43f   :  { %4744 = vmatprep.subr.bf16.mxu0 %v17523_v21  ;;  %v13840_v30 = vpop.eup %9285  ;;  %9305 = vpow2.f32 %v17524_v47  ;;  %v3929_v10 = vadd.f32 %v3928_v15, %v10860_v34  ;;  %v3819_v32 = vpop.f32.mrb[238].mxu0  ;;  %4857 = vmatprep.subr.bf16.mxu1 %v17525_v44  ;;  %v17526_v21 = vld [vmem:[#allocation138_spill] sm:$0xff]  ;;  %v17527_v47 = vpack.c.bf16 %v13757_v57, %v13739_v56  ;;  %v3818_v35 = vadd.f32 %v3817_v63, %v10863_v3  ;;  %v17529_v15 = vld [vmem:[#allocation17_spill] sm:$0xff] }
 0x440   :  { %4562 = vmatmul.mubr.bf16.gmra.mrb[4].mxu0 %v4493_v26  ;;  %v13850_v0 = vpop.eup %9287  ;;  %9307 = vpow2.f32 %v17526_v21  ;;  %v3931_v41 = vadd.f32 %v3930_v60, %v10866_v17  ;;  %v4388_v26 = vmul.f32 %v13760_v28, %v17528_v33  ;;  %v3932_v14 = vpop.f32.mrb[238].mxu1  ;;  %v13865_v21 = vadd.f32 %v13698_v27, %v3816_v53  ;;  %v17531_v60 = vld [vmem:[#allocation19_spill] sm:$0xff]  ;;  %v17534_v53 = vld [vmem:[#allocation88_spill] sm:$0xff] }
 0x441   :  { %4659 = vmatmul.mubr.bf16.gmra.mrb[4].mxu1 %v17527_v47  ;;  %v3821_v55 = vpop.f32.mrb[239].mxu0  ;;  %4745 = vmatpush1.bf16.msra.mxu0 %v17529_v15  ;;  %v13861_v44 = vpop.eup %9289  ;;  %9309 = vpow2.f32 %v17530_v12  ;;  %v13867_v56 = vadd.f32 %v4387_v25, %v3929_v10  ;;  %v3820_v57 = vadd.f32 %v3819_v32, %v10857_v18  ;;  %v13872_v28 = vadd.f32 %v4386_v42, %v3818_v35  ;;  %v17532_v15 = vld [vmem:[#allocation121_spill] sm:$0xff] }
 0x442   :  { %v3934_v63 = vpop.f32.mrb[239].mxu1  ;;  %4746 = vmatprep.subr.bf16.mxu0 %v17531_v60  ;;  %v9292_v47 = vpop.eup %9291  ;;  %9311 = vpow2.f32 %v13569_v4  ;;  %v13874_v33 = vadd.f32 %v4388_v26, %v3931_v41  ;;  %v4389_v12 = vmul.f32 %v13766_v23, %v17532_v15  ;;  %4858 = vmatpush1.bf16.msra.mxu1 %v17533_v20  ;;  %v3933_v32 = vadd.f32 %v3932_v14, %v10860_v34  ;;  %v17535_v60 = vld [vmem:[#allocation20_spill] sm:$0xff]  ;;  %v17536_v41 = vld [vmem:[#allocation21_spill] sm:$0xff] }
 0x443   :  { %v9294_v27 = vpop.eup %9293  ;;  %v4208_v25 = vadd.f32 1.0, %v9292_v47  ;;  %9313 = vpow2.f32 %v13572_v5  ;;  %v4391_v10 = vmul.f32 %v13775_v24, %v17534_v53  ;;  %4859 = vmatprep.subr.bf16.mxu1 %v17535_v60  ;;  %v4498_v23 = vpack.c.bf16 %v4446_v52, %v13798_v51  ;;  %v3825_v24 = vpop.f32.mrb[240].mxu0  ;;  %v17537_v47 = vld [vmem:[#allocation23_spill] sm:$0xff] }
 0x444   :  { %v9296_v4 = vpop.eup %9295  ;;  %v4209_v42 = vadd.f32 1.0, %v9294_v27  ;;  %9315 = vpow2.f32 %v13575_v1  ;;  %v13885_v35 = vadd.f32 %v4389_v12, %v3820_v57  ;;  %v4500_v14 = vpack.c.bf16 %v4448_v59, %v13807_v48  ;;  %v3938_v52 = vpop.f32.mrb[240].mxu1  ;;  %v17538_v12 = vld [vmem:[#allocation22_spill] sm:$0xff] }
 0x445   :  { %4747 = vmatpush1.bf16.msra.mxu0 %v17536_v41  ;;  %v9298_v26 = vpop.eup %9297  ;;  %9317 = vrcp.f32 %v4208_v25  ;;  %v4211_v5 = vadd.f32 1.0, %v9296_v4  ;;  %v13889_v15 = vadd.f32 %v4391_v10, %v3933_v32  ;;  %4569 = vmatprep.mubr.bf16.mxu0 %v4498_v23  ;;  %v3822_v51 = vadd.f32 %v3821_v55, %v10863_v3  ;;  %v3827_v57 = vpop.f32.mrb[241].mxu0  ;;  %v17539_v59 = vld [vmem:[#allocation122_spill] sm:$0xff] }
 0x446   :  { %4748 = vmatprep.subr.bf16.mxu0 %v17537_v47  ;;  %v9300_v53 = vpop.eup %9299  ;;  %9319 = vrcp.f32 %v4209_v42  ;;  %v4210_v27 = vadd.f32 1.0, %v9298_v26  ;;  %4860 = vmatpush1.bf16.msra.mxu1 %v17538_v12  ;;  %v4390_v10 = vmul.f32 %v13782_v37, %v17539_v59  ;;  %v17540_v4 = vpack.c.bf16 %v13815_v6, %v13787_v61  ;;  %v3940_v42 = vpop.f32.mrb[241].mxu1  ;;  %v17543_v59 = vld [vmem:[#allocation24_spill] sm:$0xff] }
 0x447   :  { %v9302_v25 = vpop.eup %9301  ;;  %9321 = vrcp.f32 %v4211_v5  ;;  %v4212_v32 = vadd.f32 1.0, %v9300_v53  ;;  %4666 = vmatprep.mubr.bf16.mxu1 %v4500_v14  ;;  %v3829_v55 = vpop.f32.mrb[242].mxu0  ;;  %v3935_v1 = vadd.f32 %v3934_v63, %v10866_v17  ;;  %v17541_v5 = vld [vmem:[#allocation92_spill] sm:$0xff]  ;;  %v17542_v14 = vpack.c.bf16 %v13818_v46, %v13790_v19  ;;  %4861 = vmatprep.subr.bf16.mxu1 %v17543_v59  ;;  %v17546_v59 = vld [vmem:[#allocation26_spill] sm:$0xff] }
 0x448   :  { %4570 = vmatmul.mubr.bf16.gmra.mrb[8].mxu0 %v17540_v4  ;;  %v9304_v23 = vpop.eup %9303  ;;  %9323 = vrcp.f32 %v4210_v27  ;;  %v4213_v26 = vadd.f32 1.0, %v9302_v25  ;;  %v4392_v53 = vmul.f32 %v13794_v29, %v17541_v5  ;;  %v3942_v48 = vpop.f32.mrb[242].mxu1  ;;  %v13913_v4 = vadd.f32 %v4390_v10, %v3822_v51  ;;  %v17544_v25 = vld [vmem:[#allocation25_spill] sm:$0xff]  ;;  %v17545_v5 = vld [vmem:[#allocation127_spill] sm:$0xff]  ;;  %v17549_v12 = vld [vmem:[#allocation28_spill] sm:$0xff] }
 0x449   :  { %4667 = vmatmul.mubr.bf16.gmra.mrb[8].mxu1 %v17542_v14  ;;  %v13910_v37 = vpop.f32.mrb[243].mxu0  ;;  %v9306_v61 = vpop.eup %9305  ;;  %9325 = vrcp.f32 %v4212_v32  ;;  %v4215_v6 = vadd.f32 1.0, %v9304_v23  ;;  %v3826_v27 = vadd.f32 %v3825_v24, %v10857_v18  ;;  %4749 = vmatpush1.bf16.msra.mxu0 %v17544_v25  ;;  %v4393_v14 = vmul.f32 %v13803_v62, %v17545_v5  ;;  %v17547_v32 = vld [vmem:[#allocation27_spill] sm:$0xff]  ;;  %v17548_v23 = vld [vmem:[#allocation93_spill] sm:$0xff] }
 0x44a   :  { %v13916_v63 = vpop.f32.mrb[243].mxu1  ;;  %v9308_v29 = vpop.eup %9307  ;;  %9327 = vrcp.f32 %v4213_v26  ;;  %v4214_v19 = vadd.f32 1.0, %v9306_v61  ;;  %v13919_v46 = vadd.f32 %v4392_v53, %v3935_v1  ;;  %4862 = vmatpush1.bf16.msra.mxu1 %v17546_v59  ;;  %4750 = vmatprep.subr.bf16.mxu0 %v17547_v32  ;;  %v3939_v24 = vadd.f32 %v3938_v52, %v10860_v34  ;;  %v17551_v32 = vld [vmem:[#allocation29_spill] sm:$0xff] }
 0x44b   :  { %v9310_v51 = vpop.eup %9309  ;;  %9329 = vrcp.f32 %v4215_v6  ;;  %v4216_v10 = vadd.f32 1.0, %v9308_v29  ;;  %v4395_v25 = vmul.f32 %v13811_v9, %v17548_v23  ;;  %4863 = vmatprep.subr.bf16.mxu1 %v17549_v12  ;;  %v13929_v53 = vadd.f32 %v4393_v14, %v3826_v27  ;;  %v17550_v6 = vld [vmem:[#allocation129_spill] sm:$0xff]  ;;  %v3835_v29 = vpop.f32.mrb[244].mxu0  ;;  %v17552_v27 = vld [vmem:[#allocation94_spill] sm:$0xff] }
 0x44c   :  { %v9312_v26 = vpop.eup %9311  ;;  %9331 = vrcp.f32 %v4214_v19  ;;  %v4217_v1 = vadd.f32 1.0, %v9310_v51  ;;  %v3828_v62 = vadd.f32 %v3827_v57, %v10863_v3  ;;  %v4394_v52 = vmul.f32 %v13822_v2, %v17550_v6  ;;  %v3948_v57 = vpop.f32.mrb[244].mxu1 }
 0x44d   :  { %v9314_v61 = vpop.eup %9313  ;;  %9333 = vrcp.f32 %v4216_v10  ;;  %v4219_v5 = vadd.f32 1.0, %v9312_v26  ;;  %v13932_v59 = vadd.f32 %v4395_v25, %v3939_v24  ;;  %4751 = vmatpush1.bf16.msra.mxu0 %v17551_v32  ;;  %v3941_v19 = vadd.f32 %v3940_v42, %v10866_v17  ;;  %v3837_v51 = vpop.f32.mrb[245].mxu0  ;;  %v17553_v10 = vld [vmem:[#allocation30_spill] sm:$0xff]  ;;  %v17554_v25 = vld [vmem:[#allocation31_spill] sm:$0xff]  ;;  %v17555_v42 = vld [vmem:[#allocation32_spill] sm:$0xff] }
 0x44e   :  { %v9316_v9 = vpop.eup %9315  ;;  %9335 = vrcp.f32 %v4217_v1  ;;  %v4218_v23 = vadd.f32 1.0, %v9314_v61  ;;  %v4396_v14 = vmul.f32 %v13830_v54, %v17552_v27  ;;  %4864 = vmatpush1.bf16.msra.mxu1 %v17553_v10  ;;  %4752 = vmatprep.subr.bf16.mxu0 %v17554_v25  ;;  %v13942_v26 = vadd.f32 %v4394_v52, %v3828_v62  ;;  %v3950_v1 = vpop.f32.mrb[245].mxu1  ;;  %v17556_v27 = vld [vmem:[#allocation102_spill] sm:$0xff] }
 0x44f   :  { %v9318_v24 = vpop.eup %9317  ;;  %9337 = vrcp.f32 %v4219_v5  ;;  %v4220_v2 = vadd.f32 1.0, %v9316_v9  ;;  %v3830_v6 = vadd.f32 %v3829_v55, %v10857_v18  ;;  %v13945_v61 = vpop.f32.mrb[246].mxu0  ;;  %4865 = vmatprep.subr.bf16.mxu1 %v17555_v42  ;;  %v4397_v10 = vmul.f32 %v13840_v30, %v17556_v27  ;;  %v17557_v55 = vld [vmem:[#allocation104_spill] sm:$0xff]  ;;  %v17558_v30 = vld [vmem:[#allocation33_spill] sm:$0xff] }
 0x450   :  { %v9320_v12 = vpop.eup %9319  ;;  %9339 = vrcp.f32 %v4218_v23  ;;  %v13948_v54 = vadd.f32 %v4396_v14, %v3941_v19  ;;  %v3943_v25 = vadd.f32 %v3942_v48, %v10860_v34  ;;  %v13953_v5 = vpop.f32.mrb[246].mxu1  ;;  %v4399_v9 = vmul.f32 %v13850_v0, %v17557_v55  ;;  %v17559_v27 = vld [vmem:[#allocation108_spill] sm:$0xff]  ;;  %v17560_v55 = vld [vmem:[#allocation34_spill] sm:$0xff] }
 0x451   :  { %v13955_v62 = vpop.f32.mrb[247].mxu0  ;;  %v9322_v52 = vpop.eup %9321  ;;  %9341 = vrcp.f32 %v4220_v2  ;;  %v4502_v42 = vpack.c.bf16 %v13913_v4, %v13872_v28  ;;  %v4504_v23 = vpack.c.bf16 %v13919_v46, %v13874_v33  ;;  %4753 = vmatpush1.bf16.msra.mxu0 %v17558_v30  ;;  %v13967_v14 = vadd.f32 %v4397_v10, %v3830_v6  ;;  %v17561_v28 = vld [vmem:[#allocation35_spill] sm:$0xff]  ;;  %v17562_v46 = vld [vmem:[#allocation110_spill] sm:$0xff] }
 0x452   :  { %v13963_v19 = vpop.f32.mrb[247].mxu1  ;;  %v9324_v48 = vpop.eup %9323  ;;  %9343 = vpow2.f32 %v13587_v36  ;;  %v3832_v2 = vadd.f32 %v13910_v37, %v10863_v3  ;;  %v4398_v0 = vmul.f32 %v13861_v44, %v17559_v27  ;;  %4866 = vmatpush1.bf16.msra.mxu1 %v17560_v55  ;;  %4754 = vmatprep.subr.bf16.mxu0 %v17561_v28  ;;  %v13976_v4 = vadd.f32 %v4399_v9, %v3943_v25  ;;  %v17566_v9 = vld [vmem:[#allocation116_spill] sm:$0xff] }
 0x453   :  { %v9326_v33 = vpop.eup %9325  ;;  %9345 = vpow2.f32 %v13596_v16  ;;  %4577 = vmatprep.mubr.bf16.mxu0 %v4502_v42  ;;  %4674 = vmatprep.mubr.bf16.mxu1 %v4504_v23  ;;  %v3945_v36 = vadd.f32 %v13916_v63, %v10866_v17  ;;  %v4400_v10 = vmul.f32 %v9318_v24, %v17562_v46  ;;  %v17563_v27 = vpack.c.bf16 %v13885_v35, %v13865_v21  ;;  %v17565_v42 = vld [vmem:[#allocation78_spill] sm:$0xff]  ;;  %v17568_v21 = vld [vmem:[#allocation37_spill] sm:$0xff] }
 0x454   :  { %v9328_v37 = vpop.eup %9327  ;;  %9347 = vpow2.f32 %v13599_v45  ;;  %v4462_v6 = vadd.f32 %v4398_v0, %v3832_v2  ;;  %v17564_v16 = vpack.c.bf16 %v13889_v15, %v13867_v56  ;;  %v3836_v25 = vadd.f32 %v3835_v29, %v10857_v18  ;;  %v3845_v2 = vpop.f32.mrb[248].mxu0  ;;  %v17567_v0 = vld [vmem:[#allocation36_spill] sm:$0xff]  ;;  %v17569_v15 = vld [vmem:[#allocation119_spill] sm:$0xff] }
 0x455   :  { %4578 = vmatmul.mubr.bf16.gmra.mrb[12].mxu0 %v17563_v27  ;;  %v9330_v63 = vpop.eup %9329  ;;  %9349 = vpow2.f32 %v17565_v42  ;;  %v4464_v24 = vadd.f32 %v4400_v10, %v3945_v36  ;;  %v4401_v23 = vmul.f32 %v9320_v12, %v17566_v9  ;;  %4867 = vmatprep.subr.bf16.mxu1 %v17567_v0  ;;  %v3949_v56 = vadd.f32 %v3948_v57, %v10860_v34  ;;  %v14001_v27 = vpop.f32.mrb[248].mxu1  ;;  %v17570_v36 = vld [vmem:[#allocation38_spill] sm:$0xff]  ;;  %v17571_v12 = vld [vmem:[#allocation39_spill] sm:$0xff] }
 0x456   :  { %4675 = vmatmul.mubr.bf16.gmra.mrb[12].mxu1 %v17564_v16  ;;  %4755 = vmatpush1.bf16.msra.mxu0 %v17568_v21  ;;  %v9332_v35 = vpop.eup %9331  ;;  %9351 = vpow2.f32 %v13626_v43  ;;  %v4403_v29 = vmul.f32 %v9322_v52, %v17569_v15  ;;  %v3838_v46 = vadd.f32 %v3837_v51, %v10863_v3  ;;  %v14003_v16 = vpop.f32.mrb[249].mxu0  ;;  %v17572_v43 = vld [vmem:[#allocation123_spill] sm:$0xff]  ;;  %v3951_v57 = vadd.f32 %v3950_v1, %v10866_v17  ;;  %v17573_v15 = vld [vmem:[#allocation40_spill] sm:$0xff] }
 0x457   :  { %4868 = vmatpush1.bf16.msra.mxu1 %v17570_v36  ;;  %4966 = vmatprep.subr.bf16.mxu0 %v17571_v12  ;;  %v9334_v10 = vpop.eup %9333  ;;  %9353 = vpow2.f32 %v13636_v8  ;;  %v14008_v42 = vadd.f32 %v4401_v23, %v3836_v25  ;;  %v4402_v9 = vmul.f32 %v9324_v48, %v17572_v43  ;;  %v14012_v52 = vpop.f32.mrb[249].mxu1  ;;  %v17574_v36 = vld [vmem:[#allocation125_spill] sm:$0xff]  ;;  %v3840_v8 = vadd.f32 %v13945_v61, %v10857_v18  ;;  %v17575_v43 = vld [vmem:[#allocation131_spill] sm:$0xff] }
 0x458   :  { %v14014_v51 = vpop.f32.mrb[250].mxu0  ;;  %5079 = vmatprep.subr.bf16.mxu1 %v17573_v15  ;;  %v9336_v45 = vpop.eup %9335  ;;  %9355 = vpow2.f32 %v13639_v7  ;;  %v14018_v44 = vadd.f32 %v4403_v29, %v3949_v56  ;;  %v4404_v0 = vmul.f32 %v9326_v33, %v17574_v36  ;;  %v4405_v15 = vmul.f32 %v9328_v37, %v17575_v43  ;;  %v17576_v29 = vld [vmem:[#allocation132_spill] sm:$0xff] }
 0x459   :  { %v14023_v25 = vpop.f32.mrb[250].mxu1  ;;  %v14025_v48 = vpop.f32.mrb[251].mxu0  ;;  %9357 = vpow2.f32 %v13646_v58  ;;  %v14028_v23 = vadd.f32 %v4402_v9, %v3838_v46  ;;  %v3953_v7 = vadd.f32 %v13953_v5, %v10860_v34  ;;  %v4407_v36 = vmul.f32 %v9330_v63, %v17576_v29 }
 0x45a   :  { %v9338_v1 = vpop.eup %9337  ;;  %v14033_v56 = vpop.f32.mrb[251].mxu1  ;;  %9359 = vpow2.f32 %v13649_v31  ;;  %v14036_v61 = vadd.f32 %v4404_v0, %v3951_v57  ;;  %v4506_v55 = vpack.c.bf16 %v4462_v6, %v13942_v26  ;;  %v14041_v58 = vadd.f32 %v4405_v15, %v3840_v8  ;;  %v17577_v0 = vld [vmem:[#allocation133_spill] sm:$0xff] }
 0x45b   :  { %v9340_v33 = vpop.eup %9339  ;;  %9361 = vpow2.f32 %v13656_v13  ;;  %v4508_v37 = vpack.c.bf16 %v4464_v24, %v13948_v54  ;;  %v3842_v5 = vadd.f32 %v13955_v62, %v10863_v3  ;;  %v14047_v31 = vadd.f32 %v4407_v36, %v3953_v7  ;;  %v17578_v62 = vld [vmem:[#allocation135_spill] sm:$0xff]  ;;  %v14067_v8 = vpop.f32.mrb[252].mxu1 }
 0x45c   :  { %v9342_v12 = vpop.eup %9341  ;;  %9363 = vpow2.f32 %v13666_v40  ;;  %4585 = vmatprep.mubr.bf16.mxu0 %v4506_v55  ;;  %v4406_v63 = vmul.f32 %v9332_v35, %v17577_v0  ;;  %v3955_v26 = vadd.f32 %v13963_v19, %v10866_v17  ;;  %v4509_v54 = vpack.c.bf16 %v14041_v58, %v14008_v42  ;;  %v14059_v55 = vpop.f32.mrb[252].mxu0  ;;  %v17581_v7 = vld [vmem:[#allocation139_spill] sm:$0xff] }
 0x45d   :  { %v9344_v46 = vpop.eup %9343  ;;  %9365 = vpow2.f32 %v13676_v50  ;;  %4682 = vmatprep.mubr.bf16.mxu1 %v4508_v37  ;;  %v4408_v24 = vmul.f32 %v9334_v10, %v17578_v62  ;;  %v17579_v40 = vpack.c.bf16 %v13967_v14, %v13929_v53  ;;  %v4511_v19 = vpack.c.bf16 %v14047_v31, %v14018_v44  ;;  %v14069_v10 = vpop.f32.mrb[253].mxu0 }
 0x45e   :  { %v9346_v6 = vpop.eup %9345  ;;  %v4221_v13 = vadd.f32 1.0, %v9344_v46  ;;  %v4470_v57 = vadd.f32 %v4406_v63, %v3842_v5  ;;  %v17580_v50 = vpack.c.bf16 %v13976_v4, %v13932_v59  ;;  %v3846_v15 = vadd.f32 %v3845_v2, %v10857_v18  ;;  %v14072_v36 = vpop.f32.mrb[253].mxu1  ;;  %v17582_v2 = vld [vmem:[#allocation140_spill] sm:$0xff] }
 0x45f   :  { %4586 = vmatmul.mubr.bf16.gmra.mrb[16].mxu0 %v17579_v40  ;;  %v9348_v35 = vpop.eup %9347  ;;  %v4223_v9 = vadd.f32 1.0, %v9346_v6  ;;  %v4472_v43 = vadd.f32 %v4408_v24, %v3955_v26  ;;  %v4409_v29 = vmul.f32 %v9336_v45, %v17581_v7  ;;  %v14074_v44 = vpop.f32.mrb[254].mxu0  ;;  %v3959_v4 = vadd.f32 %v14001_v27, %v10860_v34 }
 0x460   :  { %4683 = vmatmul.mubr.bf16.gmra.mrb[16].mxu1 %v17580_v50  ;;  %v9350_v53 = vpop.eup %9349  ;;  %9367 = vrcp.f32 %v4221_v13  ;;  %v4222_v14 = vadd.f32 1.0, %v9348_v35  ;;  %v4411_v5 = vmul.f32 %v9338_v1, %v17582_v2  ;;  %v14079_v46 = vpop.f32.mrb[254].mxu1  ;;  %v3848_v26 = vadd.f32 %v14003_v16, %v10863_v3  ;;  %v17583_v1 = vld [vmem:[#allocation141_spill] sm:$0xff]  ;;  %v17584_v50 = vld [vmem:[#allocation90_spill] sm:$0xff] }
 0x461   :  { %v9352_v37 = vpop.eup %9351  ;;  %9369 = vrcp.f32 %v4223_v9  ;;  %v4224_v59 = vadd.f32 1.0, %v9350_v53  ;;  %v14081_v31 = vpop.f32.mrb[255].mxu0  ;;  %v14083_v45 = vadd.f32 %v4409_v29, %v3846_v15  ;;  %v4410_v24 = vmul.f32 %v9340_v33, %v17583_v1 }
 0x462   :  { %v9354_v0 = vpop.eup %9353  ;;  %9371 = vrcp.f32 %v4222_v14  ;;  %v4225_v63 = vadd.f32 1.0, %v9352_v37  ;;  %v14087_v6 = vpop.f32.mrb[255].mxu1  ;;  %v14089_v27 = vadd.f32 %v4411_v5, %v3959_v4  ;;  %v3961_v9 = vadd.f32 %v14012_v52, %v10866_v17 }
 0x463   :  { %v9356_v13 = vpop.eup %9355  ;;  %9373 = vrcp.f32 %v4224_v59  ;;  %v4227_v62 = vadd.f32 1.0, %v9354_v0  ;;  %v4412_v15 = vmul.f32 %v9342_v12, %v17584_v50  ;;  %v4474_v14 = vadd.f32 %v4410_v24, %v3848_v26 }
 0x464   :  { %v9358_v40 = vpop.eup %9357  ;;  %9375 = vrcp.f32 %v4225_v63  ;;  %v4226_v35 = vadd.f32 1.0, %v9356_v13  ;;  %v4510_v33 = vpack.c.bf16 %v4470_v57, %v14028_v23  ;;  %v4512_v2 = vpack.c.bf16 %v4472_v43, %v14036_v61  ;;  %v17585_v61 = vld [vmem:[#allocation75_spill] sm:$0xff]  ;;  %v17586_v13 = vld [vmem:[#allocation76_spill] sm:$0xff] }
 0x465   :  { %v9360_v53 = vpop.eup %9359  ;;  %9377 = vrcp.f32 %v4227_v62  ;;  %v4228_v16 = vadd.f32 1.0, %v9358_v40  ;;  %v4476_v37 = vadd.f32 %v4412_v15, %v3961_v9  ;;  %v3850_v0 = vadd.f32 %v14014_v51, %v10857_v18  ;;  %v17587_v40 = vld [vmem:[#allocation77_spill] sm:$0xff] }
 0x466   :  { %v9362_v7 = vpop.eup %9361  ;;  %9379 = vrcp.f32 %v4226_v35  ;;  %v4229_v29 = vadd.f32 1.0, %v9360_v53  ;;  %4593 = vmatprep.mubr.bf16.mxu0 %v4510_v33  ;;  %4690 = vmatprep.mubr.bf16.mxu1 %v4512_v2  ;;  %v3963_v26 = vadd.f32 %v14023_v25, %v10860_v34  ;;  %v3852_v43 = vadd.f32 %v14025_v48, %v10863_v3 }
 0x467   :  { %v9364_v59 = vpop.eup %9363  ;;  %9381 = vrcp.f32 %v4228_v16  ;;  %v4231_v4 = vadd.f32 1.0, %v9362_v7  ;;  %4594 = vmatmul.mubr.bf16.gmra.mrb[20].mxu0 %v4509_v54  ;;  %v3965_v1 = vadd.f32 %v14033_v56, %v10866_v17  ;;  %v3856_v42 = vadd.f32 %v14059_v55, %v10857_v18  ;;  %v17589_v16 = vld [vmem:[#allocation95_spill] sm:$0xff] }
 0x468   :  { %v9366_v5 = vpop.eup %9365  ;;  %9383 = vrcp.f32 %v4229_v29  ;;  %v4230_v52 = vadd.f32 1.0, %v9364_v59  ;;  %4691 = vmatmul.mubr.bf16.gmra.mrb[20].mxu1 %v4511_v19  ;;  %v17588_v19 = vld [vmem:[#allocation91_spill] sm:$0xff]  ;;  %v3969_v48 = vadd.f32 %v14067_v8, %v10860_v34  ;;  %v3858_v7 = vadd.f32 %v14069_v10, %v10863_v3 }
 0x469   :  { %9385 = vrcp.f32 %v4231_v4  ;;  %v4232_v12 = vadd.f32 1.0, %v9366_v5  ;;  %v17590_v4 = vld [vmem:[#allocation79_spill] sm:$0xff]  ;;  %v3971_v2 = vadd.f32 %v14072_v36, %v10866_v17 }
 0x46a   :  { %v9368_v63 = vpop.eup %9367  ;;  %9387 = vrcp.f32 %v4230_v52  ;;  %v17591_v52 = vld [vmem:[#allocation97_spill] sm:$0xff] }
 0x46b   :  { %v9370_v23 = vpop.eup %9369  ;;  %9389 = vrcp.f32 %v4232_v12  ;;  %v4413_v57 = vmul.f32 %v9368_v63, %v17585_v61 }
 0x46c   :  { %v9372_v51 = vpop.eup %9371  ;;  %v4415_v62 = vmul.f32 %v9370_v23, %v17586_v13 }
 0x46d   :  { %v9374_v24 = vpop.eup %9373  ;;  %v4477_v25 = vadd.f32 %v4413_v57, %v3850_v0  ;;  %v4414_v35 = vmul.f32 %v9372_v51, %v17587_v40  ;;  %v3862_v51 = vadd.f32 %v14081_v31, %v10863_v3  ;;  %v17595_v31 = vld [vmem:[#allocation99_spill] sm:$0xff] }
 0x46e   :  { %v9376_v58 = vpop.eup %9375  ;;  %v4479_v54 = vadd.f32 %v4415_v62, %v3963_v26  ;;  %v4416_v9 = vmul.f32 %v9374_v24, %v17588_v19  ;;  %v17594_v24 = vld [vmem:[#allocation81_spill] sm:$0xff] }
 0x46f   :  { %v9378_v50 = vpop.eup %9377  ;;  %v4513_v15 = vpack.c.bf16 %v4477_v25, %v14083_v45  ;;  %v4478_v53 = vadd.f32 %v4414_v35, %v3852_v43  ;;  %v4417_v56 = vmul.f32 %v9376_v58, %v17589_v16  ;;  %v3860_v45 = vadd.f32 %v14074_v44, %v10857_v18  ;;  %v17592_v43 = vld [vmem:[#allocation80_spill] sm:$0xff]  ;;  %v17593_v44 = vld [vmem:[#allocation98_spill] sm:$0xff] }
 0x470   :  { %v9380_v29 = vpop.eup %9379  ;;  %v4515_v59 = vpack.c.bf16 %v4479_v54, %v14089_v27  ;;  %v4480_v55 = vadd.f32 %v4416_v9, %v3965_v1  ;;  %v4419_v33 = vmul.f32 %v9378_v50, %v17590_v4  ;;  %v3973_v27 = vadd.f32 %v14079_v46, %v10860_v34  ;;  %v7931_v46 = vld [vmem:[%s16641_s1 + $0xc0] sm:$0xff]   ;;  %v10000_v16 = vld [vmem:[%s16640_s0 + $0x8] sm:$0xff] }
 0x471   :  { %v9382_v5 = vpop.eup %9381  ;;  %v4481_v8 = vadd.f32 %v4417_v56, %v3856_v42  ;;  %v4418_v12 = vmul.f32 %v9380_v29, %v17591_v52  ;;  %v4514_v0 = vpack.c.bf16 %v4478_v53, %v4474_v14  ;;  %v7846_v54 = vunpack.c.l.bf16 %v7931_v46  ;;  %v7933_v52 = vld [vmem:[%s16641_s1 + $0xd0] sm:$0xff]  }
 0x472   :  { %v9384_v63 = vpop.eup %9383  ;;  %v4483_v26 = vadd.f32 %v4419_v33, %v3969_v48  ;;  %v4420_v10 = vmul.f32 %v9382_v5, %v13629_v39  ;;  %v4516_v23 = vpack.c.bf16 %v4480_v55, %v4476_v37  ;;  %v3975_v39 = vadd.f32 %v14087_v6, %v10866_v17  ;;  %v10001_v33 = vld [vmem:[%s16640_s0 + $0x10] sm:$0xff]  ;;  %v10002_v5 = vld [vmem:[%s16640_s0 + $0x18] sm:$0xff] }
 0x473   :  { %v9386_v61 = vpop.eup %9385  ;;  %v4482_v57 = vadd.f32 %v4418_v12, %v3858_v7  ;;  %v4421_v36 = vmul.f32 %v9384_v63, %v17592_v43  ;;  %4601 = vmatprep.mubr.bf16.mxu0 %v4514_v0  ;;  %v7847_v19 = vunpack.c.h.bf16 %v7931_v46  ;;  %v7932_v7 = vld [vmem:[%s16641_s1 + $0xc8] sm:$0xff]   ;;  %v17596_v29 = vmov 0   ;;  %v17597_v12 = vld [vmem:[#allocation41_spill] sm:$0xff]  ;;  %v17599_v0 = vld [vmem:[#allocation43_spill] sm:$0xff] }
 0x474   :  { %v9388_v13 = vpop.eup %9387  ;;  %v4484_v62 = vadd.f32 %v4420_v10, %v3971_v2  ;;  %v4423_v14 = vmul.f32 %v9386_v61, %v17593_v44  ;;  %4698 = vmatprep.mubr.bf16.mxu1 %v4516_v23  ;;  %4602 = vmatmul.mubr.bf16.gmra.mrb[24].mxu0 %v4513_v15  ;;  %v9999_v15 = vld [vmem:[%s16640_s0] sm:$0xff]  ;;  %v7850_v55 = vunpack.c.l.bf16 %v7932_v7  ;;  %v7851_v4 = vunpack.c.h.bf16 %v7932_v7  ;;  %v17601_v23 = vld [vmem:[#allocation45_spill] sm:$0xff]  ;;  %v17602_v61 = vld [vmem:[#allocation46_spill] sm:$0xff] }
 0x475   :  { %v9390_v1 = vpop.eup %9389  ;;  %v4485_v37 = vadd.f32 %v4421_v36, %v3860_v45  ;;  %v4422_v25 = vmul.f32 %v9388_v13, %v17594_v24  ;;  %4699 = vmatmul.mubr.bf16.gmra.mrb[24].mxu1 %v4515_v59  ;;  %v290_v53 = vmul.f32 %v9999_v15, %v7846_v54  ;;  %v291_v56 = vmul.f32 %v10000_v16, %v7847_v19  ;;  %v17598_v45 = vld [vmem:[#allocation42_spill] sm:$0xff]  ;;  %v17604_v43 = vld [vmem:[#allocation48_spill] sm:$0xff]  ;;  %v10003_v36 = vld [vmem:[%s16640_s0 + $0x20] sm:$0xff] }
 0x476   :  { %v4487_v40 = vadd.f32 %v4423_v14, %v3973_v27  ;;  %v4424_v35 = vmul.f32 %v9390_v1, %v17595_v31  ;;  %v292_v2 = vmul.f32 %v10001_v33, %v7850_v55  ;;  %v7854_v63 = vunpack.c.l.bf16 %v7933_v52  ;;  %v17600_v27 = vld [vmem:[#allocation44_spill] sm:$0xff]  ;;  %v7934_v44 = vld [vmem:[%s16641_s1 + $0xd8] sm:$0xff]   ;;  %v17605_v14 = vld [vmem:[#allocation49_spill] sm:$0xff] }
 0x477   :  { %v4517_v42 = vpack.c.bf16 %v4485_v37, %v4481_v8  ;;  %v4486_v58 = vadd.f32 %v4422_v25, %v3862_v51  ;;  %v14152_v59 = vpack.c.bf16 %v291_v56, %v290_v53  ;;  %v293_v8 = vmul.f32 %v10002_v5, %v7851_v4  ;;  %v10004_v13 = vld [vmem:[%s16640_s0 + $0x28] sm:$0xff]  ;;  %v17607_v1 = vld [vmem:[#allocation51_spill] sm:$0xff]  ;;  %v17610_v31 = vld [vmem:[#allocation54_spill] sm:$0xff] }
 0x478   :  { %v4519_v9 = vpack.c.bf16 %v4487_v40, %v4483_v26  ;;  %v4488_v48 = vadd.f32 %v4424_v35, %v3975_v39  ;;  %v7855_v26 = vunpack.c.h.bf16 %v7933_v52  ;;  %v294_v51 = vmul.f32 %v10003_v36, %v7854_v63  ;;  %v17606_v39 = vld [vmem:[#allocation50_spill] sm:$0xff]  ;;  %v17608_v25 = vld [vmem:[#allocation52_spill] sm:$0xff]  ;;  %v17609_v40 = vld [vmem:[#allocation53_spill] sm:$0xff] }
 0x479   :  { %v4518_v6 = vpack.c.bf16 %v4486_v58, %v4482_v57  ;;  %v14170_v10 = vpack.c.bf16 %v293_v8, %v292_v2  ;;  %v17603_v57 = vld [vmem:[#allocation47_spill] sm:$0xff]  ;;  %v7858_v46 = vunpack.c.l.bf16 %v7934_v44  ;;  %v7859_v37 = vunpack.c.h.bf16 %v7934_v44  ;;  %v10006_v54 = vld [vmem:[%s16640_s0 + $0x38] sm:$0xff]  ;;  %v17616_v7 = vld [vmem:[#allocation60_spill] sm:$0xff] }
 0x47a   :  { %v4520_v50 = vpack.c.bf16 %v4488_v48, %v4484_v62  ;;  %v295_v62 = vmul.f32 %v10004_v13, %v7855_v26  ;;  %v17611_v35 = vld [vmem:[#allocation55_spill] sm:$0xff]  ;;  %v17617_v55 = vld [vmem:[#allocation61_spill] sm:$0xff]  ;;  %v17618_v4 = vld [vmem:[#allocation62_spill] sm:$0xff] }
 0x47b   :  { %4609 = vmatprep.mubr.bf16.mxu0 %v4518_v6  ;;  %v297_v19 = vmul.f32 %v10006_v54, %v7859_v37  ;;  %v7935_v48 = vld [vmem:[%s16641_s1 + $0xe0] sm:$0xff]   ;;  %v17613_v6 = vld [vmem:[#allocation57_spill] sm:$0xff]  ;;  %v10008_v8 = vld [vmem:[%s16640_s0 + $0x48] sm:$0xff] }
 0x47c   :  { %4706 = vmatprep.mubr.bf16.mxu1 %v4520_v50  ;;  %4610 = vmatmul.mubr.bf16.gmra.mrb[28].mxu0 %v4517_v42  ;;  %v14193_v24 = vpack.c.bf16 %v295_v62, %v294_v51  ;;  %v10005_v42 = vld [vmem:[%s16640_s0 + $0x30] sm:$0xff]  ;;  %v17614_v50 = vld [vmem:[#allocation58_spill] sm:$0xff]  ;;  %v17615_v15 = vld [vmem:[#allocation59_spill] sm:$0xff]  ;;  %v7862_v53 = vunpack.c.l.bf16 %v7935_v48  ;;  %v7863_v16 = vunpack.c.h.bf16 %v7935_v48 }
 0x47d   :  { %4707 = vmatmul.mubr.bf16.gmra.mrb[28].mxu1 %v4519_v9  ;;  %4772 = vmatprep.mubr.bf16.mxu0 %v17596_v29  ;;  %v296_v58 = vmul.f32 %v10005_v42, %v7858_v46  ;;  %v17612_v9 = vld [vmem:[#allocation56_spill] sm:$0xff]  ;;  %v17619_v33 = vld [vmem:[#allocation63_spill] sm:$0xff]  ;;  %v17621_v36 = vld [vmem:[#allocation65_spill] sm:$0xff] }
 0x47e   :  { %4885 = vmatprep.mubr.bf16.mxu1 %v17596_v29  ;;  %v10007_v2 = vld [vmem:[%s16640_s0 + $0x40] sm:$0xff]  ;;  %v299_v52 = vmul.f32 %v10008_v8, %v7863_v16  ;;  %v17620_v63 = vld [vmem:[#allocation64_spill] sm:$0xff]  ;;  %v17622_v51 = vld [vmem:[#allocation66_spill] sm:$0xff] }
 0x47f   :  { %v14216_v56 = vpack.c.bf16 %v297_v19, %v296_v58  ;;  %v298_v5 = vmul.f32 %v10007_v2, %v7862_v53  ;;  %v7936_v26 = vld [vmem:[%s16641_s1 + $0xe8] sm:$0xff]   ;;  %v17623_v13 = vld [vmem:[#allocation67_spill] sm:$0xff]  ;;  %v17625_v42 = vld [vmem:[#allocation69_spill] sm:$0xff] }
 0x480   :  { %v7866_v62 = vunpack.c.l.bf16 %v7936_v26  ;;  %v7867_v44 = vunpack.c.h.bf16 %v7936_v26  ;;  %v17624_v37 = vld [vmem:[#allocation68_spill] sm:$0xff]  ;;  %v17626_v58 = vld [vmem:[#allocation70_spill] sm:$0xff]  ;;  %v10009_v54 = vld [vmem:[%s16644_s4 + $0x40] sm:$0xff]  }
 0x481   :  { %v14239_v46 = vpack.c.bf16 %v299_v52, %v298_v5  ;;  %v10010_v19 = vld [vmem:[%s16640_s0 + $0x50] sm:$0xff]  ;;  %v10011_v53 = vld [vmem:[%s16640_s0 + $0x58] sm:$0xff]  ;;  %v10012_v2 = vld [vmem:[%s16644_s4 + $0xc0] sm:$0xff]  }
 0x482   :  { %v300_v48 = vmul.f32 %v10010_v19, %v7866_v62  ;;  %v301_v16 = vmul.f32 %v10011_v53, %v7867_v44  ;;  %v7937_v5 = vld [vmem:[%s16641_s1 + $0xf0] sm:$0xff]   ;;  %v10013_v62 = vld [vmem:[%s16640_s0 + $0x60] sm:$0xff]  ;;  %v7938_v53 = vld [vmem:[%s16641_s1 + $0xf8] sm:$0xff]  }
 0x483   :  { %v7870_v8 = vunpack.c.l.bf16 %v7937_v5  ;;  %v7871_v52 = vunpack.c.h.bf16 %v7937_v5  ;;  %v10015_v5 = vld [vmem:[%s16640_s0 + $0x70] sm:$0xff] }
 0x484   :  { %4773 = vmatmul.mubr.bf16.vlgmr.msra.gmra.mrb[32].mxu0 %v14152_v59  ;;  %v14263_v26 = vpack.c.bf16 %v301_v16, %v300_v48  ;;  %v7874_v48 = vunpack.c.l.bf16 %v7938_v53  ;;  %v7875_v16 = vunpack.c.h.bf16 %v7938_v53  ;;  %v10019_v53 = vld [vmem:[%s16644_s4 + $0x48] sm:$0xff]  }
 0x485   :  { %4886 = vmatmul.mubr.bf16.vlgmr.msra.gmra.mrb[32].mxu1 %v14152_v59  ;;  %4967 = vmatpush1.bf16.msra.mxu0 %v17597_v12  ;;  %v302_v44 = vmul.f32 %v10013_v62, %v7870_v8 }
 0x486   :  { %5080 = vmatpush1.bf16.msra.mxu1 %v17598_v45  ;;  %4782 = vmatprep.mubr.bf16.mxu0 %v17596_v29  ;;  %v304_v8 = vmul.f32 %v10015_v5, %v7874_v48  ;;  %v10021_v48 = vld [vmem:[%s16644_s4 + $0x8] sm:$0xff]   ;;  %v10023_v5 = vld [vmem:[%s16644_s4 + $0x50] sm:$0xff]  }
 0x487   :  { %4895 = vmatprep.mubr.bf16.mxu1 %v17596_v29  ;;  %4968 = vmatprep.subr.bf16.mxu0 %v17599_v0 }
 0x488   :  { %5081 = vmatprep.subr.bf16.mxu1 %v17600_v27 }
 0x489   :  { %4969 = vmatpush1.bf16.msra.mxu0 %v17601_v23 }
 0x48a   :  { %5082 = vmatpush1.bf16.msra.mxu1 %v17602_v61  ;;  %4970 = vmatprep.subr.bf16.mxu0 %v17603_v57 }
 0x48b   :  { %5083 = vmatprep.subr.bf16.mxu1 %v17604_v43 }
 0x48c   :  { %4783 = vmatmul.mubr.bf16.gmra.mrb[36].mxu0 %v14170_v10 }
 0x48d   :  { %4896 = vmatmul.mubr.bf16.gmra.mrb[36].mxu1 %v14170_v10  ;;  %4792 = vmatprep.mubr.bf16.mxu0 %v17596_v29 }
 0x48e   :  { %4905 = vmatprep.mubr.bf16.mxu1 %v17596_v29  ;;  %4971 = vmatpush1.bf16.msra.mxu0 %v17605_v14 }
 0x48f   :  { %5084 = vmatpush1.bf16.msra.mxu1 %v17606_v39  ;;  %4972 = vmatprep.subr.bf16.mxu0 %v17607_v1 }
 0x490   :  { %5085 = vmatprep.subr.bf16.mxu1 %v17608_v25 }
 0x492   :  { %4973 = vmatpush1.bf16.msra.mxu0 %v17609_v40 }
 0x493   :  { %5086 = vmatpush1.bf16.msra.mxu1 %v17610_v31  ;;  %4974 = vmatprep.subr.bf16.mxu0 %v17611_v35 }
 0x494   :  { %4793 = vmatmul.mubr.bf16.gmra.mrb[40].mxu0 %v14193_v24  ;;  %5087 = vmatprep.subr.bf16.mxu1 %v17612_v9 }
 0x495   :  { %4906 = vmatmul.mubr.bf16.gmra.mrb[40].mxu1 %v14193_v24  ;;  %4802 = vmatprep.mubr.bf16.mxu0 %v17596_v29 }
 0x496   :  { %4915 = vmatprep.mubr.bf16.mxu1 %v17596_v29  ;;  %4975 = vmatpush1.bf16.msra.mxu0 %v17613_v6 }
 0x497   :  { %5088 = vmatpush1.bf16.msra.mxu1 %v17614_v50  ;;  %4976 = vmatprep.subr.bf16.mxu0 %v17615_v15 }
 0x498   :  { %5089 = vmatprep.subr.bf16.mxu1 %v17616_v7 }
 0x49a   :  { %4977 = vmatpush1.bf16.msra.mxu0 %v17617_v55 }
 0x49b   :  { %5090 = vmatpush1.bf16.msra.mxu1 %v17618_v4  ;;  %4978 = vmatprep.subr.bf16.mxu0 %v17619_v33 }
 0x49c   :  { %4803 = vmatmul.mubr.bf16.gmra.mrb[44].mxu0 %v14216_v56  ;;  %5091 = vmatprep.subr.bf16.mxu1 %v17620_v63 }
 0x49d   :  { %4916 = vmatmul.mubr.bf16.gmra.mrb[44].mxu1 %v14216_v56  ;;  %4812 = vmatprep.mubr.bf16.mxu0 %v17596_v29 }
 0x49e   :  { %4925 = vmatprep.mubr.bf16.mxu1 %v17596_v29  ;;  %4979 = vmatpush1.bf16.msra.mxu0 %v17621_v36 }
 0x49f   :  { %5092 = vmatpush1.bf16.msra.mxu1 %v17622_v51  ;;  %4980 = vmatprep.subr.bf16.mxu0 %v17623_v13 }
 0x4a0   :  { %5093 = vmatprep.subr.bf16.mxu1 %v17624_v37 }
 0x4a2   :  { %4981 = vmatpush1.bf16.msra.mxu0 %v17625_v42  ;;  %v17631_v42 = vld [vmem:[#allocation100_spill] sm:$0xff] }
 0x4a3   :  { %5094 = vmatpush1.bf16.msra.mxu1 %v17626_v58  ;;  %8331 = vmatprep.subr.bf16.mxu0 %v10009_v54  ;;  %v10014_v54 = vld [vmem:[%s16640_s0 + $0x68] sm:$0xff] }
 0x4a4   :  { %4813 = vmatmul.mubr.bf16.gmra.mrb[48].mxu0 %v14239_v46  ;;  %8395 = vmatprep.subr.bf16.mxu1 %v10012_v2  ;;  %v303_v19 = vmul.f32 %v10014_v54, %v7871_v52  ;;  %v10016_v52 = vld [vmem:[%s16640_s0 + $0x78] sm:$0xff]  ;;  %v10017_v54 = vld [vmem:[%s16644_s4] sm:$0xff]  }
 0x4a5   :  { %4926 = vmatmul.mubr.bf16.gmra.mrb[48].mxu1 %v14239_v46  ;;  %4822 = vmatprep.mubr.bf16.mxu0 %v17596_v29  ;;  %v305_v62 = vmul.f32 %v10016_v52, %v7875_v16  ;;  %v10022_v16 = vld [vmem:[%s16644_s4 + $0x88] sm:$0xff]   ;;  %v10025_v52 = vld [vmem:[%s16644_s4 + $0x10] sm:$0xff]  }
 0x4a6   :  { %4935 = vmatprep.mubr.bf16.mxu1 %v17596_v29  ;;  %v14278_v2 = vpack.c.bf16 %v303_v19, %v302_v44  ;;  %v10018_v19 = vld [vmem:[%s16644_s4 + $0x80] sm:$0xff]  }
 0x4a7   :  { %v14290_v44 = vpack.c.bf16 %v305_v62, %v304_v8  ;;  %v10024_v8 = vld [vmem:[%s16644_s4 + $0xd0] sm:$0xff]  }
 0x4a8   :  { %v10026_v62 = vld [vmem:[%s16644_s4 + $0x90] sm:$0xff]  }
 0x4ac   :  { %4823 = vmatmul.mubr.bf16.gmra.mrb[52].mxu0 %v14263_v26 }
 0x4ad   :  { %4936 = vmatmul.mubr.bf16.gmra.mrb[52].mxu1 %v14263_v26  ;;  %4832 = vmatprep.mubr.bf16.mxu0 %v17596_v29 }
 0x4ae   :  { %4945 = vmatprep.mubr.bf16.mxu1 %v17596_v29 }
 0x4b4   :  { %4833 = vmatmul.mubr.bf16.gmra.mrb[56].mxu0 %v14278_v2 }
 0x4b5   :  { %4946 = vmatmul.mubr.bf16.gmra.mrb[56].mxu1 %v14278_v2  ;;  %4842 = vmatprep.mubr.bf16.mxu0 %v17596_v29 }
 0x4b6   :  { %4955 = vmatprep.mubr.bf16.mxu1 %v17596_v29 }
 0x4bc   :  { %4843 = vmatmul.mubr.bf16.gmra.mrb[60].mxu0 %v14290_v44 }
 0x4bd   :  { %4956 = vmatmul.mubr.bf16.gmra.mrb[60].mxu1 %v14290_v44  ;;  %4998 = vmatprep.mubr.bf16.mxu0 %v17596_v29 }
 0x4be   :  { %5111 = vmatprep.mubr.bf16.mxu1 %v17596_v29 }
 0x4c4   :  { %4999 = vmatmul.mubr.bf16.vlgmr.msra.gmra.mrb[64].mxu0 %v14152_v59 }
 0x4c5   :  { %5112 = vmatmul.mubr.bf16.vlgmr.msra.gmra.mrb[64].mxu1 %v14152_v59  ;;  %5008 = vmatprep.mubr.bf16.mxu0 %v17596_v29  ;;  %v10020_v59 = vld [vmem:[%s16644_s4 + $0xc8] sm:$0xff]  }
 0x4c6   :  { %5121 = vmatprep.mubr.bf16.mxu1 %v17596_v29  ;;  %8332 = vmatpush3.bf16.msra.mxu0 %v10017_v54  ;;  %v10027_v54 = vld [vmem:[%s16644_s4 + $0x58] sm:$0xff]  }
 0x4c7   :  { %8396 = vmatpush3.bf16.msra.mxu1 %v10018_v19  ;;  %8333 = vmatprep.subr.bf16.mxu0 %v10019_v53  ;;  %v10029_v19 = vld [vmem:[%s16644_s4 + $0x18] sm:$0xff]  }
 0x4c8   :  { %8397 = vmatprep.subr.bf16.mxu1 %v10020_v59  ;;  %v10030_v53 = vld [vmem:[%s16644_s4 + $0x98] sm:$0xff]   ;;  %v10031_v59 = vld [vmem:[%s16644_s4 + $0x60] sm:$0xff]  }
 0x4ca   :  { %8334 = vmatpush3.bf16.msra.mxu0 %v10021_v48  ;;  %v10032_v48 = vld [vmem:[%s16644_s4 + $0xe0] sm:$0xff]  }
 0x4cb   :  { %8398 = vmatpush3.bf16.msra.mxu1 %v10022_v16  ;;  %8335 = vmatprep.subr.bf16.mxu0 %v10023_v5  ;;  %v10033_v16 = vld [vmem:[%s16644_s4 + $0x20] sm:$0xff]  }
 0x4cc   :  { %5009 = vmatmul.mubr.bf16.gmra.mrb[68].mxu0 %v14170_v10  ;;  %8399 = vmatprep.subr.bf16.mxu1 %v10024_v8  ;;  %v10034_v5 = vld [vmem:[%s16644_s4 + $0xa0] sm:$0xff]   ;;  %v10035_v8 = vld [vmem:[%s16644_s4 + $0x68] sm:$0xff]  }
 0x4cd   :  { %5122 = vmatmul.mubr.bf16.gmra.mrb[68].mxu1 %v14170_v10  ;;  %5018 = vmatprep.mubr.bf16.mxu0 %v17596_v29  ;;  %v10028_v10 = vld [vmem:[%s16644_s4 + $0xd8] sm:$0xff]  }
 0x4ce   :  { %5131 = vmatprep.mubr.bf16.mxu1 %v17596_v29  ;;  %8336 = vmatpush3.bf16.msra.mxu0 %v10025_v52  ;;  %v10037_v52 = vld [vmem:[%s16644_s4 + $0x28] sm:$0xff]  }
 0x4cf   :  { %8400 = vmatpush3.bf16.msra.mxu1 %v10026_v62  ;;  %8337 = vmatprep.subr.bf16.mxu0 %v10027_v54  ;;  %v10038_v62 = vld [vmem:[%s16644_s4 + $0xa8] sm:$0xff]   ;;  %v10039_v54 = vld [vmem:[%s16644_s4 + $0x70] sm:$0xff]  }
 0x4d0   :  { %8401 = vmatprep.subr.bf16.mxu1 %v10028_v10  ;;  %v10040_v10 = vld [vmem:[%s16644_s4 + $0xf0] sm:$0xff]  }
 0x4d2   :  { %8338 = vmatpush3.bf16.msra.mxu0 %v10029_v19  ;;  %v10041_v19 = vld [vmem:[%s16644_s4 + $0x30] sm:$0xff]  }
 0x4d3   :  { %8402 = vmatpush3.bf16.msra.mxu1 %v10030_v53  ;;  %8339 = vmatprep.subr.bf16.mxu0 %v10031_v59  ;;  %v10042_v53 = vld [vmem:[%s16644_s4 + $0xb0] sm:$0xff]   ;;  %v10043_v59 = vld [vmem:[%s16644_s4 + $0x78] sm:$0xff]  }
 0x4d4   :  { %5019 = vmatmul.mubr.bf16.gmra.mrb[72].mxu0 %v14193_v24  ;;  %8403 = vmatprep.subr.bf16.mxu1 %v10032_v48  ;;  %v10045_v48 = vld [vmem:[%s16644_s4 + $0x38] sm:$0xff]  }
 0x4d5   :  { %5132 = vmatmul.mubr.bf16.gmra.mrb[72].mxu1 %v14193_v24  ;;  %5028 = vmatprep.mubr.bf16.mxu0 %v17596_v29  ;;  %v10036_v24 = vld [vmem:[%s16644_s4 + $0xe8] sm:$0xff]  }
 0x4d6   :  { %5141 = vmatprep.mubr.bf16.mxu1 %v17596_v29  ;;  %8340 = vmatpush3.bf16.msra.mxu0 %v10033_v16  ;;  %v10046_v16 = vld [vmem:[%s16644_s4 + $0xb8] sm:$0xff]  }
 0x4d7   :  { %8404 = vmatpush3.bf16.msra.mxu1 %v10034_v5  ;;  %8341 = vmatprep.subr.bf16.mxu0 %v10035_v8  ;;  %v17627_v5 = vld [vmem:[#allocation7_spill] sm:$0xff]  ;;  %v17628_v8 = vld [vmem:[#allocation9_spill] sm:$0xff] }
 0x4d8   :  { %8405 = vmatprep.subr.bf16.mxu1 %v10036_v24 }
 0x4da   :  { %8342 = vmatpush3.bf16.msra.mxu0 %v10037_v52 }
 0x4db   :  { %8406 = vmatpush3.bf16.msra.mxu1 %v10038_v62  ;;  %8343 = vmatprep.subr.bf16.mxu0 %v10039_v54 }
 0x4dc   :  { %5029 = vmatmul.mubr.bf16.gmra.mrb[76].mxu0 %v14216_v56  ;;  %8407 = vmatprep.subr.bf16.mxu1 %v10040_v10 }
 0x4dd   :  { %5142 = vmatmul.mubr.bf16.gmra.mrb[76].mxu1 %v14216_v56  ;;  %5038 = vmatprep.mubr.bf16.mxu0 %v17596_v29  ;;  %v10044_v56 = vld [vmem:[%s16644_s4 + $0xf8] sm:$0xff]  }
 0x4de   :  { %5151 = vmatprep.mubr.bf16.mxu1 %v17596_v29  ;;  %8344 = vmatpush3.bf16.msra.mxu0 %v10041_v19 }
 0x4df   :  { %8408 = vmatpush3.bf16.msra.mxu1 %v10042_v53  ;;  %8345 = vmatprep.subr.bf16.mxu0 %v10043_v59 }
 0x4e0   :  { %8409 = vmatprep.subr.bf16.mxu1 %v10044_v56 }
 0x4e2   :  { %8346 = vmatpush3.bf16.msra.mxu0 %v10045_v48 }
 0x4e3   :  { %8410 = vmatpush3.bf16.msra.mxu1 %v10046_v16  ;;  %5955 = vmatprep.subr.bf16.mxu0 %v17627_v5  ;;  %v17629_v16 = vld [vmem:[#allocation96_spill] sm:$0xff] }
 0x4e4   :  { %5039 = vmatmul.mubr.bf16.gmra.mrb[80].mxu0 %v14239_v46  ;;  %6068 = vmatprep.subr.bf16.mxu1 %v17628_v8 }
 0x4e5   :  { %5152 = vmatmul.mubr.bf16.gmra.mrb[80].mxu1 %v14239_v46  ;;  %5048 = vmatprep.mubr.bf16.mxu0 %v17596_v29 }
 0x4e6   :  { %5161 = vmatprep.mubr.bf16.mxu1 %v17596_v29 }
 0x4ec   :  { %5049 = vmatmul.mubr.bf16.gmra.mrb[84].mxu0 %v14263_v26 }
 0x4ed   :  { %5162 = vmatmul.mubr.bf16.gmra.mrb[84].mxu1 %v14263_v26  ;;  %5058 = vmatprep.mubr.bf16.mxu0 %v17596_v29 }
 0x4ee   :  { %5171 = vmatprep.mubr.bf16.mxu1 %v17596_v29 }
 0x4f4   :  { %5059 = vmatmul.mubr.bf16.gmra.mrb[88].mxu0 %v14278_v2 }
 0x4f5   :  { %5172 = vmatmul.mubr.bf16.gmra.mrb[88].mxu1 %v14278_v2  ;;  %5068 = vmatprep.mubr.bf16.mxu0 %v17596_v29 }
 0x4f6   :  { %5181 = vmatprep.mubr.bf16.mxu1 %v17596_v29 }
 0x4fc   :  { %5069 = vmatmul.mubr.bf16.gmra.mrb[92].mxu0 %v14290_v44 }
 0x4fd   :  { %5182 = vmatmul.mubr.bf16.gmra.mrb[92].mxu1 %v14290_v44 }
 0x50b   :  { %v8219_v46 = vpop.f32.mrb[0].mxu0  ;;  %v8283_v24 = vpop.f32.mrb[0].mxu1 }
 0x50c   :  { %v8220_v52 = vpop.f32.mrb[1].mxu0  ;;  %v8284_v62 = vpop.f32.mrb[1].mxu1 }
 0x50d   :  { %v8221_v26 = vadd.f32 %v8220_v52, %v8219_v46  ;;  %v8222_v54 = vpop.f32.mrb[2].mxu0  ;;  %v8285_v10 = vadd.f32 %v8284_v62, %v8283_v24  ;;  %v8286_v19 = vpop.f32.mrb[2].mxu1 }
 0x50e   :  { %v8223_v53 = vpop.f32.mrb[3].mxu0  ;;  %v8287_v56 = vpop.f32.mrb[3].mxu1 }
 0x50f   :  { %v8224_v59 = vadd.f32 %v8223_v53, %v8222_v54  ;;  %v4653_v2 = vadd.f32 %v8285_v10, %v8221_v26  ;;  %v8288_v48 = vadd.f32 %v8287_v56, %v8286_v19  ;;  %v17633_v19 = vld [vmem:[#allocation83_spill] sm:$0xff] }
 0x511   :  { %v14419_v5 = vadd.f32 %v4653_v2, %v17629_v16  ;;  %v4656_v8 = vadd.f32 %v8288_v48, %v8224_v59  ;;  %v17635_v48 = vld [vmem:[#allocation105_spill] sm:$0xff] }
 0x513   :  { %17630 = vst [vmem:[#allocation82_spill] sm:$0xff] %v14419_v5  ;;  %v8225_v58 = vpop.f32.mrb[4].mxu0  ;;  %v14422_v44 = vadd.f32 %v4656_v8, %v17631_v42 }
 0x514   :  { %v8289_v37 = vpop.f32.mrb[4].mxu1  ;;  %v8226_v13 = vpop.f32.mrb[5].mxu0 }
 0x515   :  { %17632 = vst [vmem:[#allocation103_spill] sm:$0xff] %v14422_v44  ;;  %v8227_v46 = vadd.f32 %v8226_v13, %v8225_v58  ;;  %v8290_v52 = vpop.f32.mrb[5].mxu1  ;;  %v8228_v51 = vpop.f32.mrb[6].mxu0 }
 0x516   :  { %v8291_v24 = vadd.f32 %v8290_v52, %v8289_v37  ;;  %v8292_v62 = vpop.f32.mrb[6].mxu1  ;;  %v8229_v36 = vpop.f32.mrb[7].mxu0 }
 0x517   :  { %v8230_v54 = vadd.f32 %v8229_v36, %v8228_v51  ;;  %v8293_v53 = vpop.f32.mrb[7].mxu1 }
 0x518   :  { %v4661_v26 = vadd.f32 %v8291_v24, %v8227_v46  ;;  %v8294_v10 = vadd.f32 %v8293_v53, %v8292_v62  ;;  %v17637_v62 = vld [vmem:[#allocation84_spill] sm:$0xff] }
 0x51a   :  { %v14425_v56 = vadd.f32 %v4661_v26, %v17633_v19  ;;  %v4664_v59 = vadd.f32 %v8294_v10, %v8230_v54  ;;  %v17639_v26 = vld [vmem:[#allocation101_spill] sm:$0xff] }
 0x51b   :  { %v8231_v2 = vpop.f32.mrb[8].mxu0 }
 0x51c   :  { %17634 = vst [vmem:[#allocation117_spill] sm:$0xff] %v14425_v56  ;;  %v14428_v42 = vadd.f32 %v4664_v59, %v17635_v48  ;;  %v8295_v16 = vpop.f32.mrb[8].mxu1  ;;  %v8232_v8 = vpop.f32.mrb[9].mxu0 }
 0x51d   :  { %v8233_v13 = vadd.f32 %v8232_v8, %v8231_v2  ;;  %v8296_v58 = vpop.f32.mrb[9].mxu1  ;;  %v8234_v44 = vpop.f32.mrb[10].mxu0 }
 0x51e   :  { %17636 = vst [vmem:[#allocation115_spill] sm:$0xff] %v14428_v42  ;;  %v8297_v37 = vadd.f32 %v8296_v58, %v8295_v16  ;;  %v8298_v52 = vpop.f32.mrb[10].mxu1  ;;  %v8235_v5 = vpop.f32.mrb[11].mxu0 }
 0x51f   :  { %v8236_v36 = vadd.f32 %v8235_v5, %v8234_v44  ;;  %v8299_v51 = vpop.f32.mrb[11].mxu1 }
 0x520   :  { %v4669_v46 = vadd.f32 %v8297_v37, %v8233_v13  ;;  %v8300_v24 = vadd.f32 %v8299_v51, %v8298_v52  ;;  %v17641_v52 = vld [vmem:[#allocation106_spill] sm:$0xff] }
 0x522   :  { %v14431_v53 = vadd.f32 %v4669_v46, %v17637_v62  ;;  %v4672_v54 = vadd.f32 %v8300_v24, %v8236_v36  ;;  %v17643_v46 = vld [vmem:[#allocation109_spill] sm:$0xff] }
 0x524   :  { %17638 = vst [vmem:[#allocation124_spill] sm:$0xff] %v14431_v53  ;;  %v14434_v10 = vadd.f32 %v4672_v54, %v17639_v26 }
 0x526   :  { %17640 = vst [vmem:[#allocation128_spill] sm:$0xff] %v14434_v10 }
 0x528   :  { %v8237_v19 = vpop.f32.mrb[12].mxu0 }
 0x529   :  { %v8301_v59 = vpop.f32.mrb[12].mxu1  ;;  %v8238_v48 = vpop.f32.mrb[13].mxu0 }
 0x52a   :  { %v8302_v2 = vpop.f32.mrb[13].mxu1  ;;  %v8239_v8 = vadd.f32 %v8238_v48, %v8237_v19  ;;  %v8240_v16 = vpop.f32.mrb[14].mxu0 }
 0x52b   :  { %v8303_v42 = vadd.f32 %v8302_v2, %v8301_v59  ;;  %v8304_v58 = vpop.f32.mrb[14].mxu1  ;;  %v8241_v56 = vpop.f32.mrb[15].mxu0 }
 0x52c   :  { %v8305_v5 = vpop.f32.mrb[15].mxu1  ;;  %v8242_v13 = vadd.f32 %v8241_v56, %v8240_v16  ;;  %v17645_v16 = vld [vmem:[#allocation85_spill] sm:$0xff] }
 0x52d   :  { %v4677_v44 = vadd.f32 %v8303_v42, %v8239_v8  ;;  %v8306_v37 = vadd.f32 %v8305_v5, %v8304_v58 }
 0x52f   :  { %v14437_v51 = vadd.f32 %v4677_v44, %v17641_v52  ;;  %v4680_v36 = vadd.f32 %v8306_v37, %v8242_v13  ;;  %v17647_v44 = vld [vmem:[#allocation112_spill] sm:$0xff] }
 0x531   :  { %17642 = vst [vmem:[#allocation142_spill] sm:$0xff] %v14437_v51  ;;  %v14440_v24 = vadd.f32 %v4680_v36, %v17643_v46 }
 0x532   :  { %v8243_v62 = vpop.f32.mrb[16].mxu0 }
 0x533   :  { %17644 = vst [vmem:[#allocation130_spill] sm:$0xff] %v14440_v24  ;;  %v8307_v54 = vpop.f32.mrb[16].mxu1  ;;  %v8244_v26 = vpop.f32.mrb[17].mxu0 }
 0x534   :  { %v8245_v10 = vadd.f32 %v8244_v26, %v8243_v62  ;;  %v8308_v19 = vpop.f32.mrb[17].mxu1  ;;  %v8246_v59 = vpop.f32.mrb[18].mxu0 }
 0x535   :  { %v8309_v48 = vadd.f32 %v8308_v19, %v8307_v54  ;;  %v8310_v2 = vpop.f32.mrb[18].mxu1  ;;  %v8247_v53 = vpop.f32.mrb[19].mxu0 }
 0x536   :  { %v8248_v63 = vadd.f32 %v8247_v53, %v8246_v59  ;;  %v8311_v42 = vpop.f32.mrb[19].mxu1 }
 0x537   :  { %v4685_v56 = vadd.f32 %v8309_v48, %v8245_v10  ;;  %v8312_v8 = vadd.f32 %v8311_v42, %v8310_v2  ;;  %v17649_v2 = vld [vmem:[#allocation107_spill] sm:$0xff] }
 0x539   :  { %v14443_v58 = vadd.f32 %v4685_v56, %v17645_v16  ;;  %v4688_v5 = vadd.f32 %v8312_v8, %v8248_v63  ;;  %v17651_v56 = vld [vmem:[#allocation126_spill] sm:$0xff] }
 0x53a   :  { %v8249_v37 = vpop.f32.mrb[20].mxu0 }
 0x53b   :  { %17646 = vst [vmem:[#allocation134_spill] sm:$0xff] %v14443_v58  ;;  %v14446_v13 = vadd.f32 %v4688_v5, %v17647_v44  ;;  %v8313_v52 = vpop.f32.mrb[20].mxu1  ;;  %v8250_v36 = vpop.f32.mrb[21].mxu0 }
 0x53c   :  { %v8314_v46 = vpop.f32.mrb[21].mxu1  ;;  %v8251_v62 = vadd.f32 %v8250_v36, %v8249_v37  ;;  %v8252_v54 = vpop.f32.mrb[22].mxu0 }
 0x53d   :  { %17648 = vst [vmem:[#allocation87_spill] sm:$0xff] %v14446_v13  ;;  %v8315_v26 = vadd.f32 %v8314_v46, %v8313_v52  ;;  %v8316_v19 = vpop.f32.mrb[22].mxu1  ;;  %v8253_v24 = vpop.f32.mrb[23].mxu0 }
 0x53e   :  { %v8317_v53 = vpop.f32.mrb[23].mxu1  ;;  %v8254_v10 = vadd.f32 %v8253_v24, %v8252_v54  ;;  %v17653_v54 = vld [vmem:[#allocation86_spill] sm:$0xff] }
 0x53f   :  { %v4693_v59 = vadd.f32 %v8315_v26, %v8251_v62  ;;  %v8318_v48 = vadd.f32 %v8317_v53, %v8316_v19 }
 0x541   :  { %v14449_v42 = vadd.f32 %v4693_v59, %v17649_v2  ;;  %v4696_v63 = vadd.f32 %v8318_v48, %v8254_v10  ;;  %v17655_v10 = vld [vmem:[#allocation114_spill] sm:$0xff] }
 0x543   :  { %17650 = vst [vmem:[#allocation120_spill] sm:$0xff] %v14449_v42  ;;  %v14452_v8 = vadd.f32 %v4696_v63, %v17651_v56 }
 0x545   :  { %17652 = vst [vmem:[#allocation136_spill] sm:$0xff] %v14452_v8 }
 0x547   :  { %v8255_v16 = vpop.f32.mrb[24].mxu0 }
 0x548   :  { %v8319_v5 = vpop.f32.mrb[24].mxu1  ;;  %v8256_v44 = vpop.f32.mrb[25].mxu0 }
 0x549   :  { %v8257_v13 = vadd.f32 %v8256_v44, %v8255_v16  ;;  %v8320_v37 = vpop.f32.mrb[25].mxu1  ;;  %v8258_v52 = vpop.f32.mrb[26].mxu0 }
 0x54a   :  { %v8321_v36 = vadd.f32 %v8320_v37, %v8319_v5  ;;  %v8322_v46 = vpop.f32.mrb[26].mxu1  ;;  %v8259_v58 = vpop.f32.mrb[27].mxu0 }
 0x54b   :  { %v8260_v51 = vadd.f32 %v8259_v58, %v8258_v52  ;;  %v8323_v62 = vpop.f32.mrb[27].mxu1 }
 0x54c   :  { %v4701_v24 = vadd.f32 %v8321_v36, %v8257_v13  ;;  %v8324_v26 = vadd.f32 %v8323_v62, %v8322_v46  ;;  %v17657_v46 = vld [vmem:[#allocation111_spill] sm:$0xff] }
 0x54e   :  { %v14455_v19 = vadd.f32 %v4701_v24, %v17653_v54  ;;  %v4704_v53 = vadd.f32 %v8324_v26, %v8260_v51  ;;  %v17659_v26 = vld [vmem:[#allocation118_spill] sm:$0xff] }
 0x54f   :  { %v8261_v59 = vpop.f32.mrb[28].mxu0 }
 0x550   :  { %17654 = vst [vmem:[#allocation137_spill] sm:$0xff] %v14455_v19  ;;  %v14458_v48 = vadd.f32 %v4704_v53, %v17655_v10  ;;  %v8325_v2 = vpop.f32.mrb[28].mxu1  ;;  %v8262_v63 = vpop.f32.mrb[29].mxu0  ;;  %v17661_v53 = vld [vmem:[#allocation71_spill] sm:$0xff] }
 0x551   :  { %v8263_v56 = vadd.f32 %v8262_v63, %v8261_v59  ;;  %v8326_v16 = vpop.f32.mrb[29].mxu1  ;;  %v8264_v44 = vpop.f32.mrb[30].mxu0 }
 0x552   :  { %17656 = vst [vmem:[#allocation138_spill] sm:$0xff] %v14458_v48  ;;  %v8327_v5 = vadd.f32 %v8326_v16, %v8325_v2  ;;  %v8328_v37 = vpop.f32.mrb[30].mxu1  ;;  %v8265_v8 = vpop.f32.mrb[31].mxu0  ;;  %v17662_v2 = vld [vmem:[#allocation72_spill] sm:$0xff] }
 0x553   :  { %v8266_v58 = vadd.f32 %v8265_v8, %v8264_v44  ;;  %v8329_v52 = vpop.f32.mrb[31].mxu1  ;;  %v17663_v8 = vld [vmem:[#allocation73_spill] sm:$0xff] }
 0x554   :  { %v4709_v13 = vadd.f32 %v8327_v5, %v8263_v56  ;;  %v8330_v36 = vadd.f32 %v8329_v52, %v8328_v37 }
 0x556   :  { %v14461_v62 = vadd.f32 %v4709_v13, %v17657_v46  ;;  %v4712_v51 = vadd.f32 %v8330_v36, %v8266_v58  ;;  %v17664_v58 = vld [vmem:[#allocation74_spill] sm:$0xff] }
 0x557   :  { %v4774_v24 = vpop.f32.mrb[32].mxu0 }
 0x558   :  { %17658 = vst [vmem:[#allocation113_spill] sm:$0xff] %v14461_v62  ;;  %v14464_v54 = vadd.f32 %v4712_v51, %v17659_v26  ;;  %v14467_v10 = vadd.f32 %v4774_v24, %v17661_v53  ;;  %v4887_v59 = vpop.f32.mrb[32].mxu1  ;;  %v4776_v63 = vpop.f32.mrb[33].mxu0 }
 0x559   :  { %v14470_v16 = vadd.f32 %v4887_v59, %v17662_v2  ;;  %v14473_v44 = vadd.f32 %v4776_v63, %v17663_v8  ;;  %v4889_v56 = vpop.f32.mrb[33].mxu1  ;;  %v4778_v5 = vpop.f32.mrb[34].mxu0 }
 0x55a   :  { %17660 = vst [vmem:[#allocation89_spill] sm:$0xff] %v14464_v54  ;;  %v7619_v37 = vmul.f32 -1.442695, %v14467_v10  ;;  %v14477_v52 = vadd.f32 %v4889_v56, %v17664_v58  ;;  %v14480_v13 = vadd.f32 %v4778_v5, %v17661_v53  ;;  %v4891_v36 = vpop.f32.mrb[34].mxu1  ;;  %v4780_v46 = vpop.f32.mrb[35].mxu0 }
 0x55b   :  { %v7621_v51 = vmul.f32 -1.442695, %v14470_v16  ;;  %v7620_v24 = vmul.f32 -1.442695, %v14473_v44  ;;  %v14485_v26 = vadd.f32 %v4891_v36, %v17662_v2  ;;  %v14488_v59 = vadd.f32 %v4780_v46, %v17663_v8  ;;  %v4893_v63 = vpop.f32.mrb[35].mxu1 }
 0x55c   :  { %9391 = vpow2.f32 %v7619_v37  ;;  %v7622_v56 = vmul.f32 -1.442695, %v14477_v52  ;;  %v7623_v54 = vmul.f32 -1.442695, %v14480_v13  ;;  %v14493_v5 = vadd.f32 %v4893_v63, %v17664_v58 }
 0x55d   :  { %9393 = vpow2.f32 %v7621_v51  ;;  %v7625_v62 = vmul.f32 -1.442695, %v14485_v26  ;;  %v7624_v48 = vmul.f32 -1.442695, %v14488_v59 }
 0x55e   :  { %9395 = vpow2.f32 %v7620_v24  ;;  %v7626_v36 = vmul.f32 -1.442695, %v14493_v5 }
 0x55f   :  { %9397 = vpow2.f32 %v7622_v56  ;;  %v4784_v46 = vpop.f32.mrb[36].mxu0 }
 0x560   :  { %9399 = vpow2.f32 %v7623_v54  ;;  %v14499_v37 = vadd.f32 %v4784_v46, %v17661_v53  ;;  %v4897_v19 = vpop.f32.mrb[36].mxu1  ;;  %v4786_v42 = vpop.f32.mrb[37].mxu0 }
 0x561   :  { %9401 = vpow2.f32 %v7625_v62  ;;  %v14502_v63 = vadd.f32 %v4897_v19, %v17662_v2  ;;  %v14505_v51 = vadd.f32 %v4786_v42, %v17663_v8  ;;  %v4899_v24 = vpop.f32.mrb[37].mxu1  ;;  %v4788_v33 = vpop.f32.mrb[38].mxu0 }
 0x562   :  { %9403 = vpow2.f32 %v7624_v48  ;;  %v7627_v56 = vmul.f32 -1.442695, %v14499_v37  ;;  %v14509_v4 = vadd.f32 %v4899_v24, %v17664_v58  ;;  %v14512_v54 = vadd.f32 %v4788_v33, %v17661_v53  ;;  %v4901_v46 = vpop.f32.mrb[38].mxu1  ;;  %v4790_v55 = vpop.f32.mrb[39].mxu0 }
 0x563   :  { %9405 = vpow2.f32 %v7626_v36  ;;  %v7629_v19 = vmul.f32 -1.442695, %v14502_v63  ;;  %v7628_v62 = vmul.f32 -1.442695, %v14505_v51  ;;  %v14517_v42 = vadd.f32 %v4901_v46, %v17662_v2  ;;  %v4903_v7 = vpop.f32.mrb[39].mxu1 }
 0x564   :  { %9407 = vpow2.f32 %v7627_v56  ;;  %v7630_v48 = vmul.f32 -1.442695, %v14509_v4  ;;  %v7631_v24 = vmul.f32 -1.442695, %v14512_v54  ;;  %v14522_v15 = vadd.f32 %v4790_v55, %v17663_v8 }
 0x565   :  { %9409 = vpow2.f32 %v7629_v19  ;;  %v14525_v36 = vadd.f32 %v4903_v7, %v17664_v58  ;;  %v14528_v46 = vmul.f32 -1.442695, %v14517_v42 }
 0x566   :  { %v9392_v33 = vpop.eup %9391  ;;  %9411 = vpow2.f32 %v7628_v62  ;;  %v14531_v31 = vmul.f32 -1.442695, %v14522_v15 }
 0x567   :  { %v9394_v50 = vpop.eup %9393  ;;  %v5384_v6 = vadd.f32 1.0, %v9392_v33  ;;  %9413 = vpow2.f32 %v7630_v48  ;;  %v4794_v56 = vpop.f32.mrb[40].mxu0  ;;  %v14543_v39 = vmul.f32 -1.442695, %v14525_v36 }
 0x568   :  { %v9396_v9 = vpop.eup %9395  ;;  %v5386_v35 = vadd.f32 1.0, %v9394_v50  ;;  %9415 = vpow2.f32 %v7631_v24  ;;  %v14534_v55 = vadd.f32 %v4794_v56, %v17661_v53  ;;  %v4907_v19 = vpop.f32.mrb[40].mxu1 }
 0x569   :  { %v4796_v62 = vpop.f32.mrb[41].mxu0  ;;  %v9398_v7 = vpop.eup %9397  ;;  %9417 = vrcp.f32 %v5384_v6  ;;  %v5385_v40 = vadd.f32 1.0, %v9396_v9  ;;  %v14537_v48 = vadd.f32 %v4907_v19, %v17662_v2 }
 0x56a   :  { %v14540_v33 = vadd.f32 %v4796_v62, %v17663_v8  ;;  %v4909_v25 = vpop.f32.mrb[41].mxu1  ;;  %v4798_v50 = vpop.f32.mrb[42].mxu0  ;;  %9419 = vrcp.f32 %v5386_v35  ;;  %v5387_v1 = vadd.f32 1.0, %v9398_v7  ;;  %v14549_v43 = vmul.f32 -1.442695, %v14534_v55 }
 0x56b   :  { %v9400_v24 = vpop.eup %9399  ;;  %v14546_v56 = vadd.f32 %v4909_v25, %v17664_v58  ;;  %v4911_v14 = vpop.f32.mrb[42].mxu1  ;;  %9421 = vrcp.f32 %v5385_v40  ;;  %v14552_v62 = vmul.f32 -1.442695, %v14537_v48  ;;  %v14558_v25 = vadd.f32 %v4798_v50, %v17661_v53 }
 0x56c   :  { %v4800_v6 = vpop.f32.mrb[43].mxu0  ;;  %v9402_v9 = vpop.eup %9401  ;;  %v5388_v19 = vadd.f32 1.0, %v9400_v24  ;;  %9423 = vrcp.f32 %v5387_v1  ;;  %v14555_v61 = vmul.f32 -1.442695, %v14540_v33  ;;  %v14561_v24 = vadd.f32 %v4911_v14, %v17662_v2 }
 0x56d   :  { %v4913_v57 = vpop.f32.mrb[43].mxu1  ;;  %v9404_v35 = vpop.eup %9403  ;;  %v5390_v7 = vadd.f32 1.0, %v9402_v9  ;;  %v14564_v27 = vadd.f32 %v4800_v6, %v17663_v8  ;;  %v14567_v1 = vmul.f32 -1.442695, %v14546_v56 }
 0x56e   :  { %v9406_v23 = vpop.eup %9405  ;;  %9425 = vrcp.f32 %v5388_v19  ;;  %v5389_v40 = vadd.f32 1.0, %v9404_v35  ;;  %v14570_v9 = vadd.f32 %v4913_v57, %v17664_v58  ;;  %v14573_v19 = vmul.f32 -1.442695, %v14558_v25 }
 0x56f   :  { %v9408_v0 = vpop.eup %9407  ;;  %9427 = vrcp.f32 %v5390_v7  ;;  %v5391_v45 = vadd.f32 1.0, %v9406_v23  ;;  %v14576_v14 = vmul.f32 -1.442695, %v14561_v24  ;;  %v4804_v6 = vpop.f32.mrb[44].mxu0  ;;  %v14579_v23 = vmul.f32 -1.442695, %v14564_v27 }
 0x570   :  { %v9410_v50 = vpop.eup %9409  ;;  %9429 = vrcp.f32 %v5389_v40  ;;  %v5392_v12 = vadd.f32 1.0, %v9408_v0  ;;  %v14582_v29 = vadd.f32 %v4804_v6, %v17661_v53  ;;  %v4917_v57 = vpop.f32.mrb[44].mxu1  ;;  %v14591_v41 = vmul.f32 -1.442695, %v14570_v9 }
 0x571   :  { %v9412_v35 = vpop.eup %9411  ;;  %9431 = vrcp.f32 %v5391_v45  ;;  %v5394_v7 = vadd.f32 1.0, %v9410_v50  ;;  %v4806_v21 = vpop.f32.mrb[45].mxu0  ;;  %v14585_v28 = vadd.f32 %v4917_v57, %v17662_v2 }
 0x572   :  { %v9414_v40 = vpop.eup %9413  ;;  %9433 = vrcp.f32 %v5392_v12  ;;  %v5393_v0 = vadd.f32 1.0, %v9412_v35  ;;  %v14588_v30 = vadd.f32 %v4806_v21, %v17663_v8  ;;  %v4919_v32 = vpop.f32.mrb[45].mxu1  ;;  %v14597_v20 = vmul.f32 -1.442695, %v14582_v29 }
 0x573   :  { %17665 = vst [vmem:[#allocation121_spill] sm:$0xff] %v14585_v28  ;;  %v4808_v45 = vpop.f32.mrb[46].mxu0  ;;  %v9416_v50 = vpop.eup %9415  ;;  %9435 = vrcp.f32 %v5394_v7  ;;  %v5395_v47 = vadd.f32 1.0, %v9414_v40  ;;  %v14594_v6 = vadd.f32 %v4919_v32, %v17664_v58  ;;  %v14600_v21 = vmul.f32 -1.442695, %v14585_v28 }
 0x574   :  { %17666 = vst [vmem:[#allocation88_spill] sm:$0xff] %v14588_v30  ;;  %v4921_v60 = vpop.f32.mrb[46].mxu1  ;;  %v4810_v12 = vpop.f32.mrb[47].mxu0  ;;  %9437 = vrcp.f32 %v5393_v0  ;;  %v5396_v57 = vadd.f32 1.0, %v9416_v50  ;;  %v14606_v32 = vmul.f32 -1.442695, %v14588_v30  ;;  %v14609_v22 = vadd.f32 %v4808_v45, %v17661_v53 }
 0x575   :  { %17667 = vst [vmem:[#allocation122_spill] sm:$0xff] %v14594_v6  ;;  %v9418_v35 = vpop.eup %9417  ;;  %v4923_v49 = vpop.f32.mrb[47].mxu1  ;;  %9439 = vrcp.f32 %v5395_v47  ;;  %v14612_v50 = vmul.f32 -1.442695, %v14594_v6  ;;  %v14615_v11 = vadd.f32 %v4921_v60, %v17662_v2  ;;  %v14618_v38 = vadd.f32 %v4810_v12, %v17663_v8 }
 0x576   :  { %v9420_v7 = vpop.eup %9419  ;;  %v14603_v40 = vmul.f32 %v9418_v35, %v14467_v10  ;;  %17668 = vst [vmem:[#allocation92_spill] sm:$0xff] %v14609_v22  ;;  %9441 = vrcp.f32 %v5396_v57  ;;  %v14628_v45 = vadd.f32 %v4923_v49, %v17664_v58  ;;  %v14635_v60 = vmul.f32 -1.442695, %v14609_v22 }
 0x577   :  { %v9422_v0 = vpop.eup %9421  ;;  %17669 = vst [vmem:[#allocation127_spill] sm:$0xff] %v14615_v11  ;;  %17670 = vst [vmem:[#allocation93_spill] sm:$0xff] %v14618_v38  ;;  %v14621_v47 = vmul.f32 %v9420_v7, %v14470_v16  ;;  %9443 = vpow2.f32 %v14528_v46  ;;  %v14638_v16 = vmul.f32 -1.442695, %v14615_v11  ;;  %v4814_v12 = vpop.f32.mrb[48].mxu0 }
 0x578   :  { %v9424_v10 = vpop.eup %9423  ;;  %v14624_v35 = vmul.f32 %v9422_v0, %v14473_v44  ;;  %17671 = vst [vmem:[#allocation129_spill] sm:$0xff] %v14628_v45  ;;  %9445 = vpow2.f32 %v14531_v31  ;;  %v14645_v49 = vmul.f32 -1.442695, %v14618_v38  ;;  %v4927_v31 = vpop.f32.mrb[48].mxu1 }
 0x579   :  { %v9426_v57 = vpop.eup %9425  ;;  %v14631_v6 = vmul.f32 %v9424_v10, %v14477_v52  ;;  %9447 = vpow2.f32 %v14543_v39  ;;  %v14648_v52 = vadd.f32 %v4814_v12, %v17661_v53  ;;  %v4816_v46 = vpop.f32.mrb[49].mxu0  ;;  %v14652_v10 = vmul.f32 -1.442695, %v14628_v45 }
 0x57a   :  { %v9428_v44 = vpop.eup %9427  ;;  %v14641_v7 = vmul.f32 %v9426_v57, %v14480_v13  ;;  %9449 = vpow2.f32 %v14549_v43  ;;  %v14655_v11 = vadd.f32 %v4927_v31, %v17662_v2  ;;  %v14658_v13 = vadd.f32 %v4816_v46, %v17663_v8  ;;  %v4929_v39 = vpop.f32.mrb[49].mxu1 }
 0x57b   :  { %17672 = vst [vmem:[#allocation94_spill] sm:$0xff] %v14648_v52  ;;  %v9430_v0 = vpop.eup %9429  ;;  %v4818_v57 = vpop.f32.mrb[50].mxu0  ;;  %v14661_v12 = vmul.f32 %v9428_v44, %v14485_v26  ;;  %9451 = vpow2.f32 %v14552_v62  ;;  %v14668_v43 = vadd.f32 %v4929_v39, %v17664_v58  ;;  %v14675_v28 = vmul.f32 -1.442695, %v14648_v52 }
 0x57c   :  { %17673 = vst [vmem:[#allocation102_spill] sm:$0xff] %v14655_v11  ;;  %17674 = vst [vmem:[#allocation104_spill] sm:$0xff] %v14658_v13  ;;  %v9432_v38 = vpop.eup %9431  ;;  %v14664_v22 = vmul.f32 %v9430_v0, %v14488_v59  ;;  %v4931_v45 = vpop.f32.mrb[50].mxu1  ;;  %9453 = vpow2.f32 %v14555_v61  ;;  %v14678_v26 = vmul.f32 -1.442695, %v14655_v11 }
 0x57d   :  { %17675 = vst [vmem:[#allocation108_spill] sm:$0xff] %v14668_v43  ;;  %v4820_v31 = vpop.f32.mrb[51].mxu0  ;;  %v9434_v30 = vpop.eup %9433  ;;  %v14671_v46 = vmul.f32 %v9432_v38, %v14493_v5  ;;  %9455 = vpow2.f32 %v14567_v1  ;;  %v14685_v0 = vmul.f32 -1.442695, %v14658_v13  ;;  %v14688_v38 = vadd.f32 %v4818_v57, %v17661_v53 }
 0x57e   :  { %v4933_v59 = vpop.f32.mrb[51].mxu1  ;;  %v9436_v44 = vpop.eup %9435  ;;  %v14681_v62 = vmul.f32 %v9434_v30, %v14499_v37  ;;  %9457 = vpow2.f32 %v14573_v19  ;;  %v14692_v5 = vmul.f32 -1.442695, %v14668_v43  ;;  %v14695_v39 = vadd.f32 %v4931_v45, %v17662_v2 }
 0x57f   :  { %17676 = vst [vmem:[#allocation110_spill] sm:$0xff] %v14688_v38  ;;  %v9438_v61 = vpop.eup %9437  ;;  %v14698_v30 = vadd.f32 %v4820_v31, %v17663_v8  ;;  %v14701_v1 = vmul.f32 %v9436_v44, %v14502_v63  ;;  %9459 = vpow2.f32 %v14576_v14  ;;  %v14708_v19 = vadd.f32 %v4933_v59, %v17664_v58  ;;  %v4824_v31 = vpop.f32.mrb[52].mxu0 }
 0x580   :  { %17677 = vst [vmem:[#allocation78_spill] sm:$0xff] %v14695_v39  ;;  %v9440_v37 = vpop.eup %9439  ;;  %v14704_v13 = vmul.f32 %v9438_v61, %v14505_v51  ;;  %9461 = vpow2.f32 %v14579_v23  ;;  %v14715_v45 = vmul.f32 -1.442695, %v14688_v38  ;;  %v14718_v63 = vmul.f32 -1.442695, %v14695_v39  ;;  %v4937_v23 = vpop.f32.mrb[52].mxu1 }
 0x581   :  { %17678 = vst [vmem:[#allocation116_spill] sm:$0xff] %v14698_v30  ;;  %17679 = vst [vmem:[#allocation119_spill] sm:$0xff] %v14708_v19  ;;  %v9442_v57 = vpop.eup %9441  ;;  %v14711_v43 = vmul.f32 %v9440_v37, %v14509_v4  ;;  %9463 = vpow2.f32 %v14591_v41  ;;  %v14725_v14 = vmul.f32 -1.442695, %v14698_v30  ;;  %v14728_v4 = vadd.f32 %v4824_v31, %v17661_v53  ;;  %v4826_v59 = vpop.f32.mrb[53].mxu0 }
 0x582   :  { %v9444_v51 = vpop.eup %9443  ;;  %v14721_v44 = vmul.f32 %v9442_v57, %v14512_v54  ;;  %9465 = vpow2.f32 %v14597_v20  ;;  %v14732_v39 = vadd.f32 %v4937_v23, %v17662_v2  ;;  %v14735_v54 = vadd.f32 %v4826_v59, %v17663_v8  ;;  %v4939_v57 = vpop.f32.mrb[53].mxu1 }
 0x583   :  { %17680 = vst [vmem:[#allocation123_spill] sm:$0xff] %v14711_v43  ;;  %17682 = vst [vmem:[#allocation131_spill] sm:$0xff] %v14728_v4  ;;  %v9446_v61 = vpop.eup %9445  ;;  %v5398_v37 = vadd.f32 1.0, %v9444_v51  ;;  %v4828_v41 = vpop.f32.mrb[54].mxu0  ;;  %9467 = vpow2.f32 %v14600_v21  ;;  %v14739_v31 = vmul.f32 -1.442695, %v14708_v19  ;;  %v14742_v11 = vadd.f32 %v4939_v57, %v17664_v58 }
 0x584   :  { %17681 = vst [vmem:[#allocation125_spill] sm:$0xff] %v14721_v44  ;;  %17683 = vst [vmem:[#allocation132_spill] sm:$0xff] %v14732_v39  ;;  %v9448_v38 = vpop.eup %9447  ;;  %v5397_v30 = vadd.f32 1.0, %v9446_v61  ;;  %v4941_v51 = vpop.f32.mrb[54].mxu1  ;;  %v14745_v59 = vmul.f32 -1.442695, %v14728_v4  ;;  %v14754_v57 = vadd.f32 %v4828_v41, %v17661_v53 }
 0x585   :  { %17684 = vst [vmem:[#allocation133_spill] sm:$0xff] %v14735_v54  ;;  %17685 = vst [vmem:[#allocation135_spill] sm:$0xff] %v14739_v31  ;;  %v4830_v20 = vpop.f32.mrb[55].mxu0  ;;  %v9450_v52 = vpop.eup %9449  ;;  %9469 = vrcp.f32 %v5398_v37  ;;  %v5399_v23 = vadd.f32 1.0, %v9448_v38  ;;  %v14748_v44 = vmul.f32 -1.442695, %v14732_v39  ;;  %v14757_v38 = vadd.f32 %v4941_v51, %v17662_v2 }
 0x586   :  { %17686 = vst [vmem:[#allocation139_spill] sm:$0xff] %v14742_v11  ;;  %17687 = vst [vmem:[#allocation140_spill] sm:$0xff] %v14745_v59  ;;  %v4943_v61 = vpop.f32.mrb[55].mxu1  ;;  %v9452_v43 = vpop.eup %9451  ;;  %9471 = vrcp.f32 %v5397_v30  ;;  %v5400_v21 = vadd.f32 1.0, %v9450_v52  ;;  %v14751_v19 = vmul.f32 -1.442695, %v14735_v54  ;;  %v14760_v4 = vadd.f32 %v4830_v20, %v17663_v8 }
 0x587   :  { %17688 = vst [vmem:[#allocation141_spill] sm:$0xff] %v14748_v44  ;;  %17690 = vst [vmem:[#allocation75_spill] sm:$0xff] %v14754_v57  ;;  %v9454_v31 = vpop.eup %9453  ;;  %9473 = vrcp.f32 %v5399_v23  ;;  %v5402_v37 = vadd.f32 1.0, %v9452_v43  ;;  %v14763_v52 = vmul.f32 -1.442695, %v14742_v11  ;;  %v14766_v30 = vadd.f32 %v4943_v61, %v17664_v58  ;;  %v4834_v20 = vpop.f32.mrb[56].mxu0 }
 0x588   :  { %17689 = vst [vmem:[#allocation90_spill] sm:$0xff] %v14751_v19  ;;  %17691 = vst [vmem:[#allocation76_spill] sm:$0xff] %v14757_v38  ;;  %v9456_v39 = vpop.eup %9455  ;;  %9475 = vrcp.f32 %v5400_v21  ;;  %v5401_v44 = vadd.f32 1.0, %v9454_v31  ;;  %v14769_v43 = vmul.f32 -1.442695, %v14754_v57  ;;  %v14778_v11 = vadd.f32 %v4834_v20, %v17661_v53  ;;  %v4947_v61 = vpop.f32.mrb[56].mxu1 }
 0x589   :  { %17692 = vst [vmem:[#allocation77_spill] sm:$0xff] %v14760_v4  ;;  %17693 = vst [vmem:[#allocation91_spill] sm:$0xff] %v14763_v52  ;;  %v9458_v41 = vpop.eup %9457  ;;  %9477 = vrcp.f32 %v5402_v37  ;;  %v5403_v54 = vadd.f32 1.0, %v9456_v39  ;;  %v14772_v51 = vmul.f32 -1.442695, %v14757_v38  ;;  %v4836_v52 = vpop.f32.mrb[57].mxu0  ;;  %v14781_v57 = vadd.f32 %v4947_v61, %v17662_v2 }
 0x58a   :  { %17694 = vst [vmem:[#allocation95_spill] sm:$0xff] %v14766_v30  ;;  %17695 = vst [vmem:[#allocation79_spill] sm:$0xff] %v14769_v43  ;;  %v9460_v23 = vpop.eup %9459  ;;  %9479 = vrcp.f32 %v5401_v44  ;;  %v5404_v21 = vadd.f32 1.0, %v9458_v41  ;;  %v14775_v31 = vmul.f32 -1.442695, %v14760_v4  ;;  %v14784_v38 = vadd.f32 %v4836_v52, %v17663_v8  ;;  %v4838_v44 = vpop.f32.mrb[58].mxu0 }
 0x58b   :  { %17696 = vst [vmem:[#allocation97_spill] sm:$0xff] %v14772_v51  ;;  %17698 = vst [vmem:[#allocation98_spill] sm:$0xff] %v14778_v11  ;;  %v9462_v37 = vpop.eup %9461  ;;  %9481 = vrcp.f32 %v5403_v54  ;;  %v5406_v39 = vadd.f32 1.0, %v9460_v23  ;;  %v4949_v51 = vpop.f32.mrb[57].mxu1  ;;  %v14793_v19 = vmul.f32 -1.442695, %v14778_v11 }
 0x58c   :  { %17697 = vst [vmem:[#allocation80_spill] sm:$0xff] %v14775_v31  ;;  %17699 = vst [vmem:[#allocation81_spill] sm:$0xff] %v14781_v57  ;;  %v9464_v41 = vpop.eup %9463  ;;  %9483 = vrcp.f32 %v5404_v21  ;;  %v5405_v4 = vadd.f32 1.0, %v9462_v37  ;;  %v14787_v31 = vmul.f32 -1.442695, %v14766_v30  ;;  %v14790_v20 = vadd.f32 %v4949_v51, %v17664_v58  ;;  %v4951_v43 = vpop.f32.mrb[58].mxu1 }
 0x58d   :  { %17700 = vst [vmem:[#allocation99_spill] sm:$0xff] %v14784_v38  ;;  %v4840_v54 = vpop.f32.mrb[59].mxu0  ;;  %v9466_v23 = vpop.eup %9465  ;;  %9485 = vrcp.f32 %v5406_v39  ;;  %v5407_v61 = vadd.f32 1.0, %v9464_v41  ;;  %v14796_v52 = vmul.f32 -1.442695, %v14781_v57  ;;  %v14802_v51 = vadd.f32 %v4838_v44, %v17661_v53 }
 0x58e   :  { %17701 = vst [vmem:[#allocation7_spill] sm:$0xff] %v14787_v31  ;;  %17702 = vst [vmem:[#allocation9_spill] sm:$0xff] %v14790_v20  ;;  %v4953_v59 = vpop.f32.mrb[59].mxu1  ;;  %v9468_v21 = vpop.eup %9467  ;;  %9487 = vrcp.f32 %v5405_v4  ;;  %v5408_v37 = vadd.f32 1.0, %v9466_v23  ;;  %v14799_v30 = vmul.f32 -1.442695, %v14784_v38  ;;  %v14805_v41 = vadd.f32 %v4951_v43, %v17662_v2 }
 0x58f   :  { %17703 = vst [vmem:[#allocation96_spill] sm:$0xff] %v14796_v52  ;;  %17704 = vst [vmem:[#allocation100_spill] sm:$0xff] %v14802_v51  ;;  %v9470_v31 = vpop.eup %9469  ;;  %9489 = vrcp.f32 %v5407_v61  ;;  %v5410_v39 = vadd.f32 1.0, %v9468_v21  ;;  %v14808_v11 = vadd.f32 %v4840_v54, %v17663_v8  ;;  %v14814_v4 = vmul.f32 -1.442695, %v14790_v20 }
 0x590   :  { %17705 = vst [vmem:[#allocation83_spill] sm:$0xff] %v14805_v41  ;;  %v9472_v57 = vpop.eup %9471  ;;  %v14811_v52 = vmul.f32 %v9470_v31, %v14517_v42  ;;  %9491 = vrcp.f32 %v5408_v37  ;;  %v14817_v44 = vadd.f32 %v4953_v59, %v17664_v58  ;;  %v14823_v43 = vmul.f32 -1.442695, %v14802_v51  ;;  %v4844_v42 = vpop.f32.mrb[60].mxu0 }
 0x591   :  { %17706 = vst [vmem:[#allocation105_spill] sm:$0xff] %v14808_v11  ;;  %v9474_v23 = vpop.eup %9473  ;;  %v14820_v61 = vmul.f32 %v9472_v57, %v14522_v15  ;;  %9493 = vrcp.f32 %v5410_v39  ;;  %v14826_v54 = vmul.f32 -1.442695, %v14805_v41  ;;  %v14833_v59 = vmul.f32 -1.442695, %v14808_v11  ;;  %v4957_v57 = vpop.f32.mrb[60].mxu1 }
 0x592   :  { %17707 = vst [vmem:[#allocation84_spill] sm:$0xff] %v14817_v44  ;;  %v9476_v31 = vpop.eup %9475  ;;  %v14829_v21 = vmul.f32 %v9474_v23, %v14525_v36  ;;  %9495 = vpow2.f32 %v14606_v32  ;;  %v14836_v15 = vadd.f32 %v4844_v42, %v17661_v53  ;;  %v4846_v37 = vpop.f32.mrb[61].mxu0  ;;  %v14840_v41 = vmul.f32 -1.442695, %v14817_v44 }
 0x593   :  { %v9478_v39 = vpop.eup %9477  ;;  %9497 = vpow2.f32 %v14612_v50  ;;  %v14843_v51 = vadd.f32 %v4957_v57, %v17662_v2  ;;  %v14846_v36 = vadd.f32 %v4846_v37, %v17663_v8  ;;  %v4959_v32 = vpop.f32.mrb[61].mxu1  ;;  %v14849_v42 = vmul.f32 %v9476_v31, %v14534_v55 }
 0x594   :  { %17708 = vst [vmem:[#allocation101_spill] sm:$0xff] %v14836_v15  ;;  %17709 = vst [vmem:[#allocation106_spill] sm:$0xff] %v14840_v41  ;;  %v4848_v23 = vpop.f32.mrb[62].mxu0  ;;  %v9480_v11 = vpop.eup %9479  ;;  %v14852_v20 = vmul.f32 %v9478_v39, %v14537_v48  ;;  %9499 = vpow2.f32 %v14635_v60  ;;  %v14856_v50 = vadd.f32 %v4959_v32, %v17664_v58  ;;  %v14863_v41 = vmul.f32 -1.442695, %v14836_v15  ;;  %v17745_v15 = vld [vmem:[#allocation80_spill] sm:$0xff] }
 0x595   :  { %17710 = vst [vmem:[#allocation109_spill] sm:$0xff] %v14843_v51  ;;  %17711 = vst [vmem:[#allocation85_spill] sm:$0xff] %v14846_v36  ;;  %v4961_v44 = vpop.f32.mrb[62].mxu1  ;;  %v4850_v57 = vpop.f32.mrb[63].mxu0  ;;  %v14859_v37 = vmul.f32 %v9480_v11, %v14540_v33  ;;  %9501 = vpow2.f32 %v14638_v16  ;;  %v14866_v55 = vmul.f32 -1.442695, %v14843_v51  ;;  %v14876_v11 = vadd.f32 %v4848_v23, %v17661_v53 }
 0x596   :  { %17712 = vst [vmem:[#allocation112_spill] sm:$0xff] %v14856_v50  ;;  %v9482_v38 = vpop.eup %9481  ;;  %v4963_v48 = vpop.f32.mrb[63].mxu1  ;;  %9503 = vpow2.f32 %v14645_v49  ;;  %v14873_v39 = vmul.f32 -1.442695, %v14846_v36  ;;  %v14880_v16 = vmul.f32 -1.442695, %v14856_v50  ;;  %v14883_v32 = vadd.f32 %v4961_v44, %v17662_v2 }
 0x597   :  { %v9484_v31 = vpop.eup %9483  ;;  %v14869_v60 = vmul.f32 %v9482_v38, %v14546_v56  ;;  %17713 = vst [vmem:[#allocation107_spill] sm:$0xff] %v14876_v11  ;;  %9505 = vpow2.f32 %v14652_v10  ;;  %v14886_v56 = vadd.f32 %v4850_v57, %v17663_v8  ;;  %v14896_v10 = vadd.f32 %v4963_v48, %v17664_v58  ;;  %v5000_v57 = vpop.f32.mrb[64].mxu0  ;;  %v17734_v50 = vld [vmem:[#allocation129_spill] sm:$0xff]  ;;  %v17744_v51 = vld [vmem:[#allocation104_spill] sm:$0xff] }
 0x598   :  { %v9486_v33 = vpop.eup %9485  ;;  %17714 = vst [vmem:[#allocation126_spill] sm:$0xff] %v14883_v32  ;;  %v14889_v49 = vmul.f32 %v9484_v31, %v14558_v25  ;;  %9507 = vpow2.f32 %v14675_v28  ;;  %v14903_v44 = vmul.f32 -1.442695, %v14876_v11  ;;  %v14906_v25 = vmul.f32 -1.442695, %v14883_v32  ;;  %v5113_v48 = vpop.f32.mrb[64].mxu1 }
 0x599   :  { %17715 = vst [vmem:[#allocation86_spill] sm:$0xff] %v14886_v56  ;;  %v9488_v38 = vpop.eup %9487  ;;  %v14892_v36 = vmul.f32 %v9486_v33, %v14561_v24  ;;  %17716 = vst [vmem:[#allocation114_spill] sm:$0xff] %v14896_v10  ;;  %9509 = vpow2.f32 %v14678_v26  ;;  %v14913_v28 = vmul.f32 -1.442695, %v14886_v56  ;;  %v5002_v26 = vpop.f32.mrb[65].mxu0  ;;  %v5114_v58 = vadd.f32 %v5113_v48, %v10860_v34 }
 0x59a   :  { %v9490_v23 = vpop.eup %9489  ;;  %v14899_v53 = vmul.f32 %v9488_v38, %v14564_v27  ;;  %9511 = vpow2.f32 %v14685_v0  ;;  %v5001_v27 = vadd.f32 %v5000_v57, %v10857_v18  ;;  %v14920_v38 = vmul.f32 -1.442695, %v14896_v10  ;;  %v5004_v0 = vpop.f32.mrb[66].mxu0 }
 0x59b   :  { %v9492_v24 = vpop.eup %9491  ;;  %v14909_v31 = vmul.f32 %v9490_v23, %v14570_v9  ;;  %9513 = vpow2.f32 %v14692_v5  ;;  %v5003_v9 = vadd.f32 %v5002_v26, %v10863_v3  ;;  %v5115_v23 = vpop.f32.mrb[65].mxu1  ;;  %v14934_v48 = vadd.f32 %v14621_v47, %v5114_v58 }
 0x59c   :  { %v14916_v33 = vpop.eup %9493  ;;  %17717 = vst [vmem:[#allocation111_spill] sm:$0xff] %v14920_v38  ;;  %v14925_v2 = vmul.f32 %v9492_v24, %v14582_v29  ;;  %9515 = vpow2.f32 %v14715_v45  ;;  %v14929_v57 = vadd.f32 %v14603_v40, %v5001_v27  ;;  %v5116_v5 = vadd.f32 %v5115_v23, %v10866_v17  ;;  %v5117_v56 = vpop.f32.mrb[66].mxu1  ;;  %v17746_v38 = vld [vmem:[#allocation108_spill] sm:$0xff] }
 0x59d   :  { %v9496_v8 = vpop.eup %9495  ;;  %v5006_v10 = vpop.f32.mrb[67].mxu0  ;;  %9517 = vpow2.f32 %v14718_v63  ;;  %v14937_v26 = vadd.f32 %v14624_v35, %v5003_v9  ;;  %v5005_v27 = vadd.f32 %v5004_v0, %v10857_v18  ;;  %v5118_v63 = vadd.f32 %v5117_v56, %v10860_v34 }
 0x59e   :  { %v9498_v32 = vpop.eup %9497  ;;  %v5409_v11 = vadd.f32 1.0, %v9496_v8  ;;  %v5119_v29 = vpop.f32.mrb[67].mxu1  ;;  %9519 = vpow2.f32 %v14725_v14  ;;  %v14941_v40 = vadd.f32 %v14631_v6, %v5116_v5  ;;  %v5007_v58 = vadd.f32 %v5006_v10, %v10863_v3 }
 0x59f   :  { %v9500_v24 = vpop.eup %9499  ;;  %v5411_v45 = vadd.f32 1.0, %v9498_v32  ;;  %v14947_v9 = vadd.f32 %v14641_v7, %v5005_v27  ;;  %v5120_v14 = vadd.f32 %v5119_v29, %v10866_v17  ;;  %v14951_v0 = vadd.f32 %v14661_v12, %v5118_v63  ;;  %v5010_v5 = vpop.f32.mrb[68].mxu0 }
 0x5a0   :  { %v9502_v23 = vpop.eup %9501  ;;  %9521 = vrcp.f32 %v5409_v11  ;;  %v5412_v8 = vadd.f32 1.0, %v9500_v24  ;;  %v5645_v11 = vadd.f32 %v14664_v22, %v5007_v58  ;;  %v5012_v27 = vpop.f32.mrb[69].mxu0 }
 0x5a1   :  { %v9504_v47 = vpop.eup %9503  ;;  %9523 = vrcp.f32 %v5411_v45  ;;  %v5414_v35 = vadd.f32 1.0, %v9502_v23  ;;  %v5704_v24 = vpack.c.bf16 %v14947_v9, %v14929_v57  ;;  %v5647_v7 = vadd.f32 %v14671_v46, %v5120_v14  ;;  %v5123_v45 = vpop.f32.mrb[68].mxu1 }
 0x5a2   :  { %v9506_v32 = vpop.eup %9505  ;;  %9525 = vrcp.f32 %v5412_v8  ;;  %v5413_v6 = vadd.f32 1.0, %v9504_v47  ;;  %v5706_v12 = vpack.c.bf16 %v14951_v0, %v14934_v48  ;;  %v5011_v8 = vadd.f32 %v5010_v5, %v10857_v18  ;;  %v5125_v22 = vpop.f32.mrb[69].mxu1 }
 0x5a3   :  { %v9508_v56 = vpop.eup %9507  ;;  %9527 = vrcp.f32 %v5414_v35  ;;  %v5415_v10 = vadd.f32 1.0, %v9506_v32  ;;  %v5014_v63 = vpop.f32.mrb[70].mxu0  ;;  %v5124_v35 = vadd.f32 %v5123_v45, %v10860_v34  ;;  %v5013_v57 = vadd.f32 %v5012_v27, %v10863_v3 }
 0x5a4   :  { %v9510_v29 = vpop.eup %9509  ;;  %9529 = vrcp.f32 %v5413_v6  ;;  %v5416_v23 = vadd.f32 1.0, %v9508_v56  ;;  %v5127_v46 = vpop.f32.mrb[70].mxu1  ;;  %v14963_v6 = vadd.f32 %v14681_v62, %v5011_v8  ;;  %v5126_v48 = vadd.f32 %v5125_v22, %v10866_v17 }
 0x5a5   :  { %v9512_v58 = vpop.eup %9511  ;;  %9531 = vrcp.f32 %v5415_v10  ;;  %v5418_v47 = vadd.f32 1.0, %v9510_v29  ;;  %v5016_v9 = vpop.f32.mrb[71].mxu0  ;;  %v14967_v10 = vadd.f32 %v14701_v1, %v5124_v35  ;;  %v14970_v45 = vadd.f32 %v14704_v13, %v5013_v57  ;;  %v17719_v13 = vld [vmem:[#allocation125_spill] sm:$0xff] }
 0x5a6   :  { %v9514_v14 = vpop.eup %9513  ;;  %9533 = vrcp.f32 %v5416_v23  ;;  %v5417_v32 = vadd.f32 1.0, %v9512_v58  ;;  %v5129_v0 = vpop.f32.mrb[71].mxu1  ;;  %v17718_v23 = vld [vmem:[#allocation123_spill] sm:$0xff]  ;;  %v5015_v62 = vadd.f32 %v5014_v63, %v10857_v18 }
 0x5a7   :  { %v9516_v5 = vpop.eup %9515  ;;  %9535 = vrcp.f32 %v5418_v47  ;;  %v5419_v56 = vadd.f32 1.0, %v9514_v14  ;;  %v14973_v58 = vadd.f32 %v17718_v23, %v5126_v48  ;;  %v5128_v47 = vadd.f32 %v5127_v46, %v10860_v34  ;;  %v17720_v23 = vld [vmem:[#allocation121_spill] sm:$0xff] }
 0x5a8   :  { %v9518_v27 = vpop.eup %9517  ;;  %9537 = vrcp.f32 %v5417_v32  ;;  %v5420_v29 = vadd.f32 1.0, %v9516_v5  ;;  %v5705_v14 = vpack.c.bf16 %v5645_v11, %v14937_v26  ;;  %v14979_v57 = vadd.f32 %v17719_v13, %v5015_v62  ;;  %v5020_v5 = vpop.f32.mrb[72].mxu0 }
 0x5a9   :  { %v9520_v8 = vpop.eup %9519  ;;  %9539 = vrcp.f32 %v5419_v56  ;;  %v5422_v22 = vadd.f32 1.0, %v9518_v27  ;;  %v5707_v32 = vpack.c.bf16 %v5647_v7, %v14941_v40  ;;  %v14984_v63 = vmul.f32 %v14916_v33, %v17720_v23  ;;  %v5133_v11 = vpop.f32.mrb[72].mxu1  ;;  %v17728_v40 = vld [vmem:[#allocation11_spill] sm:$0xff] }
 0x5aa   :  { %v9522_v1 = vpop.eup %9521  ;;  %9541 = vrcp.f32 %v5420_v29  ;;  %v5421_v35 = vadd.f32 1.0, %v9520_v8  ;;  %v14987_v56 = vadd.f32 %v14811_v52, %v5128_v47  ;;  %5768 = vmatprep.mubr.bf16.mxu0 %v5705_v14  ;;  %v5017_v26 = vadd.f32 %v5016_v9, %v10863_v3  ;;  %v5022_v46 = vpop.f32.mrb[73].mxu0  ;;  %v17721_v29 = vld [vmem:[#allocation88_spill] sm:$0xff]  ;;  %v17723_v9 = vld [vmem:[#allocation135_spill] sm:$0xff] }
 0x5ab   :  { %v9524_v48 = vpop.eup %9523  ;;  %9543 = vrcp.f32 %v5422_v22  ;;  %v14991_v62 = vmul.f32 %v9522_v1, %v17721_v29  ;;  %5865 = vmatprep.mubr.bf16.mxu1 %v5707_v32  ;;  %v5130_v33 = vadd.f32 %v5129_v0, %v10866_v17  ;;  %5769 = vmatmul.mubr.bf16.vlgmr.msra.gmra.mrb[96].mxu0 %v5704_v24  ;;  %v5135_v7 = vpop.f32.mrb[73].mxu1  ;;  %v17722_v22 = vld [vmem:[#allocation122_spill] sm:$0xff]  ;;  %v17725_v24 = vld [vmem:[#allocation92_spill] sm:$0xff] }
 0x5ac   :  { %v9526_v27 = vpop.eup %9525  ;;  %9545 = vrcp.f32 %v5421_v35  ;;  %v5024_v52 = vpop.f32.mrb[74].mxu0  ;;  %v14997_v47 = vmul.f32 %v9524_v48, %v17722_v22  ;;  %v5653_v1 = vadd.f32 %v14820_v61, %v5017_v26  ;;  %5866 = vmatmul.mubr.bf16.vlgmr.msra.gmra.mrb[96].mxu1 %v5706_v12  ;;  %v17724_v35 = vld [vmem:[#allocation8_spill] sm:$0xff]  ;;  %v17727_v22 = vld [vmem:[#allocation10_spill] sm:$0xff]  ;;  %v17729_v12 = vld [vmem:[#allocation127_spill] sm:$0xff] }
 0x5ad   :  { %v9528_v8 = vpop.eup %9527  ;;  %9547 = vpow2.f32 %v17723_v9  ;;  %5956 = vmatpush1.bf16.msra.mxu0 %v17724_v35  ;;  %v5137_v13 = vpop.f32.mrb[74].mxu1  ;;  %v15005_v23 = vmul.f32 %v9526_v27, %v17725_v24  ;;  %v17726_v29 = vld [vmem:[#allocation140_spill] sm:$0xff]  ;;  %v5655_v48 = vadd.f32 %v14829_v21, %v5130_v33  ;;  %6069 = vmatpush1.bf16.msra.mxu1 %v17727_v22  ;;  %v5021_v9 = vadd.f32 %v5020_v5, %v10857_v18  ;;  %v17730_v35 = vld [vmem:[#allocation141_spill] sm:$0xff]  ;;  %v17733_v5 = vld [vmem:[#allocation90_spill] sm:$0xff] }
 0x5ae   :  { %v5026_v32 = vpop.f32.mrb[75].mxu0  ;;  %v9530_v0 = vpop.eup %9529  ;;  %9549 = vpow2.f32 %v17726_v29  ;;  %5957 = vmatprep.subr.bf16.mxu0 %v17728_v40  ;;  %v15013_v26 = vmul.f32 %v9528_v8, %v17729_v12  ;;  %v5134_v27 = vadd.f32 %v5133_v11, %v10860_v34  ;;  %v5023_v24 = vadd.f32 %v5022_v46, %v10863_v3  ;;  %v17731_v29 = vld [vmem:[#allocation12_spill] sm:$0xff]  ;;  %v17732_v33 = vld [vmem:[#allocation93_spill] sm:$0xff]  ;;  %v17735_v11 = vld [vmem:[#allocation91_spill] sm:$0xff] }
 0x5af   :  { %v5139_v14 = vpop.f32.mrb[75].mxu1  ;;  %v9532_v61 = vpop.eup %9531  ;;  %9551 = vpow2.f32 %v17730_v35  ;;  %6070 = vmatprep.subr.bf16.mxu1 %v17731_v29  ;;  %v15020_v22 = vmul.f32 %v9530_v0, %v17732_v33  ;;  %v15024_v40 = vadd.f32 %v14849_v42, %v5021_v9  ;;  %v5136_v8 = vadd.f32 %v5135_v7, %v10866_v17  ;;  %v17736_v0 = vld [vmem:[#allocation13_spill] sm:$0xff]  ;;  %v17738_v9 = vld [vmem:[#allocation79_spill] sm:$0xff] }
 0x5b0   :  { %v9534_v21 = vpop.eup %9533  ;;  %9553 = vpow2.f32 %v17733_v5  ;;  %v15028_v35 = vmul.f32 %v9532_v61, %v17734_v50  ;;  %v15032_v46 = vadd.f32 %v14852_v20, %v5134_v27  ;;  %v15035_v29 = vadd.f32 %v14859_v37, %v5023_v24  ;;  %v17737_v5 = vld [vmem:[#allocation94_spill] sm:$0xff]  ;;  %v5030_v20 = vpop.f32.mrb[76].mxu0  ;;  %v17740_v27 = vld [vmem:[#allocation15_spill] sm:$0xff] }
 0x5b1   :  { %v9536_v12 = vpop.eup %9535  ;;  %9555 = vpow2.f32 %v17735_v11  ;;  %5958 = vmatpush1.bf16.msra.mxu0 %v17736_v0  ;;  %v15039_v42 = vmul.f32 %v9534_v21, %v17737_v5  ;;  %v15043_v7 = vadd.f32 %v14869_v60, %v5136_v8  ;;  %v5025_v50 = vadd.f32 %v5024_v52, %v10857_v18  ;;  %v17739_v61 = vld [vmem:[#allocation14_spill] sm:$0xff]  ;;  %v17742_v0 = vld [vmem:[#allocation97_spill] sm:$0xff]  ;;  %v5032_v60 = vpop.f32.mrb[77].mxu0  ;;  %v17743_v8 = vld [vmem:[#allocation16_spill] sm:$0xff] }
 0x5b2   :  { %v9538_v33 = vpop.eup %9537  ;;  %9557 = vpow2.f32 %v17738_v9  ;;  %6071 = vmatpush1.bf16.msra.mxu1 %v17739_v61  ;;  %5959 = vmatprep.subr.bf16.mxu0 %v17740_v27  ;;  %v17741_v24 = vld [vmem:[#allocation102_spill] sm:$0xff]  ;;  %v5138_v21 = vadd.f32 %v5137_v13, %v10860_v34  ;;  %v5709_v5 = vpack.c.bf16 %v5653_v1, %v14970_v45  ;;  %v5143_v9 = vpop.f32.mrb[76].mxu1  ;;  %v17747_v1 = vld [vmem:[#allocation7_spill] sm:$0xff] }
 0x5b3   :  { %v9540_v37 = vpop.eup %9539  ;;  %v15049_v11 = vmul.f32 %v9536_v12, %v17741_v24  ;;  %9559 = vpow2.f32 %v17742_v0  ;;  %6072 = vmatprep.subr.bf16.mxu1 %v17743_v8  ;;  %v15056_v61 = vmul.f32 %v9538_v33, %v17744_v51  ;;  %v15060_v27 = vadd.f32 %v14889_v49, %v5025_v50  ;;  %v5145_v24 = vpop.f32.mrb[77].mxu1  ;;  %v17748_v49 = vld [vmem:[#allocation17_spill] sm:$0xff] }
 0x5b4   :  { %v9542_v52 = vpop.eup %9541  ;;  %9561 = vpow2.f32 %v17745_v15  ;;  %v5711_v12 = vpack.c.bf16 %v5655_v48, %v14973_v58  ;;  %v5034_v0 = vpop.f32.mrb[78].mxu0  ;;  %v15064_v45 = vmul.f32 %v9540_v37, %v17746_v38  ;;  %v15068_v8 = vadd.f32 %v14892_v36, %v5138_v21  ;;  %5776 = vmatprep.mubr.bf16.mxu0 %v5709_v5  ;;  %v17749_v48 = vld [vmem:[#allocation110_spill] sm:$0xff] }
 0x5b5   :  { %v9544_v13 = vpop.eup %9543  ;;  %9563 = vpow2.f32 %v17747_v1  ;;  %v5027_v51 = vadd.f32 %v5026_v32, %v10863_v3  ;;  %v5147_v15 = vpop.f32.mrb[78].mxu1  ;;  %5960 = vmatpush1.bf16.msra.mxu0 %v17748_v49  ;;  %v15077_v50 = vmul.f32 %v9542_v52, %v17749_v48  ;;  %v5712_v38 = vpack.c.bf16 %v15060_v27, %v15024_v40  ;;  %v17751_v5 = vld [vmem:[#allocation78_spill] sm:$0xff]  ;;  %v17752_v52 = vld [vmem:[#allocation96_spill] sm:$0xff] }
 0x5b6   :  { %v15071_v33 = vpop.f32.mrb[79].mxu0  ;;  %v15074_v58 = vpop.eup %9545  ;;  %9565 = vpow2.f32 %v14793_v19  ;;  %5873 = vmatprep.mubr.bf16.mxu1 %v5711_v12  ;;  %v5140_v36 = vadd.f32 %v5139_v14, %v10866_v17  ;;  %v17750_v32 = vpack.c.bf16 %v14979_v57, %v14963_v6  ;;  %v15089_v1 = vmul.f32 %v9544_v13, %v17751_v5  ;;  %v17754_v12 = vld [vmem:[#allocation19_spill] sm:$0xff] }
 0x5b7   :  { %v15086_v37 = vpop.f32.mrb[79].mxu1  ;;  %v9548_v21 = vpop.eup %9547  ;;  %9567 = vpow2.f32 %v17752_v52  ;;  %v5714_v19 = vpack.c.bf16 %v15068_v8, %v15032_v46  ;;  %v5661_v49 = vadd.f32 %v14899_v53, %v5027_v51  ;;  %v17753_v14 = vpack.c.bf16 %v14987_v56, %v14967_v10  ;;  %5961 = vmatprep.subr.bf16.mxu0 %v17754_v12  ;;  %v17756_v56 = vld [vmem:[#allocation20_spill] sm:$0xff]  ;;  %v17757_v51 = vld [vmem:[#allocation21_spill] sm:$0xff] }
 0x5b8   :  { %5777 = vmatmul.mubr.bf16.gmra.mrb[100].mxu0 %v17750_v32  ;;  %v9550_v6 = vpop.eup %9549  ;;  %v5423_v57 = vadd.f32 1.0, %v9548_v21  ;;  %9569 = vpow2.f32 %v14799_v30  ;;  %v5663_v13 = vadd.f32 %v14909_v31, %v5140_v36  ;;  %v5031_v48 = vadd.f32 %v5030_v20, %v10857_v18  ;;  %v17755_v32 = vld [vmem:[#allocation18_spill] sm:$0xff]  ;;  %v5040_v36 = vpop.f32.mrb[80].mxu0 }
 0x5b9   :  { %5874 = vmatmul.mubr.bf16.gmra.mrb[100].mxu1 %v17753_v14  ;;  %v9552_v5 = vpop.eup %9551  ;;  %v5424_v52 = vadd.f32 1.0, %v9550_v6  ;;  %9571 = vpow2.f32 %v14814_v4  ;;  %v5144_v53 = vadd.f32 %v5143_v9, %v10860_v34  ;;  %v5033_v10 = vadd.f32 %v5032_v60, %v10863_v3  ;;  %5962 = vmatpush1.bf16.msra.mxu0 %v17757_v51  ;;  %v17758_v14 = vld [vmem:[#allocation23_spill] sm:$0xff]  ;;  %v5153_v6 = vpop.f32.mrb[80].mxu1 }
 0x5ba   :  { %6073 = vmatpush1.bf16.msra.mxu1 %v17755_v32  ;;  %v9554_v21 = vpop.eup %9553  ;;  %9573 = vrcp.f32 %v5423_v57  ;;  %v5426_v30 = vadd.f32 1.0, %v9552_v5  ;;  %v15109_v31 = vadd.f32 %v14925_v2, %v5031_v48  ;;  %v5146_v20 = vadd.f32 %v5145_v24, %v10866_v17  ;;  %5963 = vmatprep.subr.bf16.mxu0 %v17758_v14  ;;  %v5042_v57 = vpop.f32.mrb[81].mxu0 }
 0x5bb   :  { %6074 = vmatprep.subr.bf16.mxu1 %v17756_v56  ;;  %v9556_v4 = vpop.eup %9555  ;;  %9575 = vrcp.f32 %v5424_v52  ;;  %v5425_v9 = vadd.f32 1.0, %v9554_v21  ;;  %v15114_v60 = vadd.f32 %v14984_v63, %v5144_v53  ;;  %v15117_v12 = vadd.f32 %v14991_v62, %v5033_v10  ;;  %v5155_v5 = vpop.f32.mrb[81].mxu1  ;;  %v17759_v52 = vld [vmem:[#allocation22_spill] sm:$0xff] }
 0x5bc   :  { %v9558_v32 = vpop.eup %9557  ;;  %9577 = vrcp.f32 %v5426_v30  ;;  %v5427_v2 = vadd.f32 1.0, %v9556_v4  ;;  %v15120_v48 = vadd.f32 %v14997_v47, %v5146_v20  ;;  %v5035_v24 = vadd.f32 %v5034_v0, %v10857_v18  ;;  %v15123_v56 = vpop.f32.mrb[82].mxu0  ;;  %v17760_v47 = vld [vmem:[#allocation24_spill] sm:$0xff]  ;;  %v17761_v30 = vld [vmem:[#allocation25_spill] sm:$0xff] }
 0x5bd   :  { %v9560_v63 = vpop.eup %9559  ;;  %9579 = vrcp.f32 %v5425_v9  ;;  %v5428_v53 = vadd.f32 1.0, %v9558_v32  ;;  %v5148_v62 = vadd.f32 %v5147_v15, %v10860_v34  ;;  %v5713_v10 = vpack.c.bf16 %v5661_v49, %v15035_v29  ;;  %v15128_v51 = vpop.f32.mrb[82].mxu1  ;;  %5964 = vmatpush1.bf16.msra.mxu0 %v17761_v30  ;;  %v17762_v15 = vld [vmem:[#allocation27_spill] sm:$0xff] }
 0x5be   :  { %6075 = vmatpush1.bf16.msra.mxu1 %v17759_v52  ;;  %v15130_v21 = vpop.f32.mrb[83].mxu0  ;;  %v9562_v0 = vpop.eup %9561  ;;  %9581 = vrcp.f32 %v5427_v2  ;;  %v5430_v20 = vadd.f32 1.0, %v9560_v63  ;;  %v15135_v14 = vadd.f32 %v15005_v23, %v5035_v24  ;;  %v5715_v4 = vpack.c.bf16 %v5663_v13, %v15043_v7  ;;  %5965 = vmatprep.subr.bf16.mxu0 %v17762_v15 }
 0x5bf   :  { %6076 = vmatprep.subr.bf16.mxu1 %v17760_v47  ;;  %v15138_v9 = vpop.f32.mrb[83].mxu1  ;;  %v9564_v29 = vpop.eup %9563  ;;  %9583 = vrcp.f32 %v5428_v53  ;;  %v5429_v49 = vadd.f32 1.0, %v9562_v0  ;;  %v15142_v32 = vadd.f32 %v15013_v26, %v5148_v62  ;;  %5784 = vmatprep.mubr.bf16.mxu0 %v5713_v10  ;;  %v5037_v2 = vadd.f32 %v15071_v33, %v10863_v3  ;;  %v17763_v53 = vld [vmem:[#allocation29_spill] sm:$0xff]  ;;  %v17764_v10 = vld [vmem:[#allocation26_spill] sm:$0xff]  ;;  %v17765_v47 = vld [vmem:[#allocation31_spill] sm:$0xff] }
 0x5c0   :  { %v9566_v52 = vpop.eup %9565  ;;  %9585 = vrcp.f32 %v5430_v20  ;;  %v5431_v23 = vadd.f32 1.0, %v9564_v29  ;;  %v5716_v7 = vpack.c.bf16 %v15135_v14, %v15109_v31  ;;  %5881 = vmatprep.mubr.bf16.mxu1 %v5715_v4  ;;  %v5150_v13 = vadd.f32 %v15086_v37, %v10866_v17  ;;  %5785 = vmatmul.mubr.bf16.gmra.mrb[104].mxu0 %v5712_v38  ;;  %v15162_v38 = vpop.f32.mrb[84].mxu0  ;;  %v17780_v31 = vld [vmem:[#allocation39_spill] sm:$0xff] }
 0x5c1   :  { %v9568_v26 = vpop.eup %9567  ;;  %9587 = vrcp.f32 %v5429_v49  ;;  %v5432_v24 = vadd.f32 1.0, %v9566_v52  ;;  %v5718_v33 = vpack.c.bf16 %v15142_v32, %v15114_v60  ;;  %v5669_v63 = vadd.f32 %v15020_v22, %v5037_v2  ;;  %5882 = vmatmul.mubr.bf16.gmra.mrb[104].mxu1 %v5714_v19  ;;  %5966 = vmatpush1.bf16.msra.mxu0 %v17763_v53  ;;  %v15168_v19 = vpop.f32.mrb[84].mxu1  ;;  %v17782_v60 = vld [vmem:[#allocation34_spill] sm:$0xff] }
 0x5c2   :  { %v9570_v62 = vpop.eup %9569  ;;  %9589 = vrcp.f32 %v5431_v23  ;;  %v5434_v37 = vadd.f32 1.0, %v9568_v26  ;;  %v5671_v40 = vadd.f32 %v15028_v35, %v5150_v13  ;;  %v5041_v27 = vadd.f32 %v5040_v36, %v10857_v18  ;;  %6077 = vmatpush1.bf16.msra.mxu1 %v17764_v10  ;;  %5967 = vmatprep.subr.bf16.mxu0 %v17765_v47  ;;  %v15170_v0 = vpop.f32.mrb[85].mxu0  ;;  %v17766_v35 = vld [vmem:[#allocation28_spill] sm:$0xff]  ;;  %v17772_v10 = vld [vmem:[#allocation131_spill] sm:$0xff] }
 0x5c3   :  { %v9572_v22 = vpop.eup %9571  ;;  %9591 = vrcp.f32 %v5432_v24  ;;  %v5433_v30 = vadd.f32 1.0, %v9570_v62  ;;  %v5154_v46 = vadd.f32 %v5153_v6, %v10860_v34  ;;  %v5043_v8 = vadd.f32 %v5042_v57, %v10863_v3  ;;  %6078 = vmatprep.subr.bf16.mxu1 %v17766_v35  ;;  %v15177_v29 = vpop.f32.mrb[85].mxu1  ;;  %v17767_v57 = vld [vmem:[#allocation116_spill] sm:$0xff]  ;;  %v17769_v24 = vld [vmem:[#allocation119_spill] sm:$0xff] }
 0x5c4   :  { %v9574_v36 = vpop.eup %9573  ;;  %9593 = vrcp.f32 %v5434_v37  ;;  %v5435_v20 = vadd.f32 1.0, %v9572_v22  ;;  %v15174_v4 = vadd.f32 %v15039_v42, %v5041_v27  ;;  %v5156_v15 = vadd.f32 %v5155_v5, %v10866_v17  ;;  %v15179_v49 = vpop.f32.mrb[86].mxu0  ;;  %v17768_v5 = vld [vmem:[#allocation33_spill] sm:$0xff]  ;;  %v17771_v37 = vld [vmem:[#allocation35_spill] sm:$0xff] }
 0x5c5   :  { %v9576_v6 = vpop.eup %9575  ;;  %v5613_v2 = vmul.f32 %v15074_v58, %v17767_v57  ;;  %9595 = vrcp.f32 %v5433_v30  ;;  %v15184_v52 = vadd.f32 %v15049_v11, %v5154_v46  ;;  %v15187_v23 = vadd.f32 %v15056_v61, %v5043_v8  ;;  %v15189_v13 = vpop.f32.mrb[86].mxu1  ;;  %5968 = vmatpush1.bf16.msra.mxu0 %v17768_v5  ;;  %v17770_v61 = vld [vmem:[#allocation30_spill] sm:$0xff]  ;;  %v17773_v30 = vld [vmem:[#allocation32_spill] sm:$0xff] }
 0x5c6   :  { %v15191_v42 = vpop.f32.mrb[87].mxu0  ;;  %v9578_v26 = vpop.eup %9577  ;;  %v5615_v53 = vmul.f32 %v9574_v36, %v17769_v24  ;;  %9597 = vrcp.f32 %v5435_v20  ;;  %v15196_v62 = vadd.f32 %v15064_v45, %v5156_v15  ;;  %v5045_v11 = vadd.f32 %v15123_v56, %v10857_v18  ;;  %6079 = vmatpush1.bf16.msra.mxu1 %v17770_v61  ;;  %5969 = vmatprep.subr.bf16.mxu0 %v17771_v37  ;;  %v17774_v56 = vld [vmem:[#allocation132_spill] sm:$0xff]  ;;  %v17775_v15 = vld [vmem:[#allocation133_spill] sm:$0xff]  ;;  %v17778_v57 = vld [vmem:[#allocation106_spill] sm:$0xff] }
 0x5c7   :  { %v15200_v58 = vpop.f32.mrb[87].mxu1  ;;  %v9580_v27 = vpop.eup %9579  ;;  %v5616_v47 = vmul.f32 %v9576_v6, %v17772_v10  ;;  %9599 = vpow2.f32 %v14823_v43  ;;  %v5158_v22 = vadd.f32 %v15128_v51, %v10860_v34  ;;  %v5717_v45 = vpack.c.bf16 %v5669_v63, %v15117_v12  ;;  %6080 = vmatprep.subr.bf16.mxu1 %v17773_v30  ;;  %v17776_v63 = vld [vmem:[#allocation37_spill] sm:$0xff]  ;;  %v17777_v6 = vld [vmem:[#allocation139_spill] sm:$0xff] }
 0x5c8   :  { %v9582_v46 = vpop.eup %9581  ;;  %v5618_v8 = vmul.f32 %v9578_v26, %v17774_v56  ;;  %9601 = vpow2.f32 %v14826_v54  ;;  %v15213_v35 = vadd.f32 %v15077_v50, %v5045_v11  ;;  %v5719_v36 = vpack.c.bf16 %v5671_v40, %v15120_v48  ;;  %v17779_v40 = vld [vmem:[#allocation75_spill] sm:$0xff] }
 0x5c9   :  { %v9584_v20 = vpop.eup %9583  ;;  %v5617_v43 = vmul.f32 %v9580_v27, %v17775_v15  ;;  %9603 = vpow2.f32 %v14833_v59  ;;  %v15219_v51 = vadd.f32 %v15089_v1, %v5158_v22  ;;  %5792 = vmatprep.mubr.bf16.mxu0 %v5717_v45  ;;  %v5047_v12 = vadd.f32 %v15130_v21, %v10863_v3  ;;  %5970 = vmatpush1.bf16.msra.mxu0 %v17776_v63  ;;  %v15233_v1 = vpop.f32.mrb[88].mxu0  ;;  %v17784_v45 = vld [vmem:[#allocation36_spill] sm:$0xff] }
 0x5ca   :  { %v9586_v54 = vpop.eup %9585  ;;  %v5619_v50 = vmul.f32 %v9582_v46, %v17777_v6  ;;  %9605 = vpow2.f32 %v17778_v57  ;;  %v5720_v48 = vpack.c.bf16 %v15213_v35, %v15174_v4  ;;  %5889 = vmatprep.mubr.bf16.mxu1 %v5719_v36  ;;  %v5160_v59 = vadd.f32 %v15138_v9, %v10866_v17  ;;  %5793 = vmatmul.mubr.bf16.gmra.mrb[108].mxu0 %v5716_v7  ;;  %v15242_v9 = vpop.f32.mrb[88].mxu1  ;;  %v17781_v7 = vld [vmem:[#allocation76_spill] sm:$0xff]  ;;  %v17785_v46 = vld [vmem:[#allocation95_spill] sm:$0xff]  ;;  %v17787_v6 = vld [vmem:[#allocation81_spill] sm:$0xff] }
 0x5cb   :  { %v9588_v21 = vpop.eup %9587  ;;  %v5620_v5 = vmul.f32 %v9584_v20, %v17779_v40  ;;  %9607 = vpow2.f32 %v14863_v41  ;;  %v5722_v26 = vpack.c.bf16 %v15219_v51, %v15184_v52  ;;  %v5677_v24 = vadd.f32 %v5613_v2, %v5047_v12  ;;  %5890 = vmatmul.mubr.bf16.gmra.mrb[108].mxu1 %v5718_v33  ;;  %v15244_v11 = vpop.f32.mrb[89].mxu0  ;;  %6181 = vmatprep.subr.bf16.mxu0 %v17780_v31  ;;  %v17783_v33 = vld [vmem:[#allocation77_spill] sm:$0xff]  ;;  %v17791_v31 = vld [vmem:[#allocation111_spill] sm:$0xff] }
 0x5cc   :  { %v9590_v14 = vpop.eup %9589  ;;  %v5622_v61 = vmul.f32 %v9586_v54, %v17781_v7  ;;  %9609 = vpow2.f32 %v14866_v55  ;;  %v5679_v41 = vadd.f32 %v5615_v53, %v5160_v59  ;;  %v5051_v37 = vadd.f32 %v15162_v38, %v10857_v18  ;;  %v15251_v2 = vpop.f32.mrb[89].mxu1  ;;  %6081 = vmatpush1.bf16.msra.mxu1 %v17782_v60 }
 0x5cd   :  { %v15253_v27 = vpop.f32.mrb[90].mxu0  ;;  %v9592_v32 = vpop.eup %9591  ;;  %v5621_v10 = vmul.f32 %v9588_v21, %v17783_v33  ;;  %9611 = vpow2.f32 %v14873_v39  ;;  %v5164_v22 = vadd.f32 %v15168_v19, %v10860_v34  ;;  %v5053_v55 = vadd.f32 %v15170_v0, %v10863_v3  ;;  %6082 = vmatprep.subr.bf16.mxu1 %v17784_v45  ;;  %v17786_v0 = vld [vmem:[#allocation98_spill] sm:$0xff]  ;;  %v17789_v21 = vld [vmem:[#allocation99_spill] sm:$0xff] }
 0x5ce   :  { %v15262_v53 = vpop.f32.mrb[90].mxu1  ;;  %v15264_v38 = vpop.f32.mrb[91].mxu0  ;;  %v5623_v56 = vmul.f32 %v9590_v14, %v17785_v46  ;;  %9613 = vpow2.f32 %v14880_v16  ;;  %v15269_v36 = vadd.f32 %v5616_v47, %v5051_v37  ;;  %v5166_v39 = vadd.f32 %v15177_v29, %v10866_v17  ;;  %v17788_v47 = vld [vmem:[#allocation38_spill] sm:$0xff] }
 0x5cf   :  { %v9594_v30 = vpop.eup %9593  ;;  %v15273_v19 = vpop.f32.mrb[91].mxu1  ;;  %v5624_v15 = vmul.f32 %v9592_v32, %v17786_v0  ;;  %9615 = vpow2.f32 %v14903_v44  ;;  %v15277_v12 = vadd.f32 %v5618_v8, %v5164_v22  ;;  %v15279_v63 = vadd.f32 %v5617_v43, %v5053_v55  ;;  %v17790_v43 = vld [vmem:[#allocation40_spill] sm:$0xff] }
 0x5d0   :  { %v9596_v20 = vpop.eup %9595  ;;  %v5626_v57 = vmul.f32 %v9594_v30, %v17787_v6  ;;  %9617 = vpow2.f32 %v14906_v25  ;;  %v15283_v16 = vadd.f32 %v5619_v50, %v5166_v39  ;;  %v5055_v29 = vadd.f32 %v15179_v49, %v10857_v18  ;;  %6083 = vmatpush1.bf16.msra.mxu1 %v17788_v47  ;;  %v15298_v7 = vpop.f32.mrb[92].mxu0 }
 0x5d1   :  { %v9598_v54 = vpop.eup %9597  ;;  %v5625_v40 = vmul.f32 %v9596_v20, %v17789_v21  ;;  %9619 = vpow2.f32 %v14913_v28  ;;  %v5168_v44 = vadd.f32 %v15189_v13, %v10860_v34  ;;  %v5721_v8 = vpack.c.bf16 %v5677_v24, %v15187_v23  ;;  %6294 = vmatprep.subr.bf16.mxu1 %v17790_v43  ;;  %v15306_v24 = vpop.f32.mrb[92].mxu1 }
 0x5d2   :  { %v9600_v59 = vpop.eup %9599  ;;  %9621 = vpow2.f32 %v17791_v31  ;;  %v15295_v14 = vadd.f32 %v5620_v5, %v5055_v29  ;;  %v5723_v49 = vpack.c.bf16 %v5679_v41, %v15196_v62  ;;  %v5057_v23 = vadd.f32 %v15191_v42, %v10863_v3  ;;  %v15308_v32 = vpop.f32.mrb[93].mxu0  ;;  %v17793_v31 = vld [vmem:[#allocation100_spill] sm:$0xff] }
 0x5d3   :  { %v9602_v25 = vpop.eup %9601  ;;  %v5436_v50 = vadd.f32 1.0, %v9600_v59  ;;  %v15300_v28 = vadd.f32 %v5622_v61, %v5168_v44  ;;  %5800 = vmatprep.mubr.bf16.mxu0 %v5721_v8  ;;  %v5170_v13 = vadd.f32 %v15200_v58, %v10866_v17  ;;  %v5061_v42 = vadd.f32 %v15233_v1, %v10857_v18  ;;  %v15317_v61 = vpop.f32.mrb[93].mxu1 }
 0x5d4   :  { %v9604_v37 = vpop.eup %9603  ;;  %v5438_v60 = vadd.f32 1.0, %v9602_v25  ;;  %v5724_v41 = vpack.c.bf16 %v15295_v14, %v15269_v36  ;;  %5897 = vmatprep.mubr.bf16.mxu1 %v5723_v49  ;;  %5801 = vmatmul.mubr.bf16.gmra.mrb[112].mxu0 %v5720_v48  ;;  %v15319_v58 = vpop.f32.mrb[94].mxu0  ;;  %v5685_v45 = vadd.f32 %v5621_v10, %v5057_v23  ;;  %v5174_v10 = vadd.f32 %v15242_v9, %v10860_v34  ;;  %v17795_v23 = vld [vmem:[#allocation105_spill] sm:$0xff] }
 0x5d5   :  { %v9606_v5 = vpop.eup %9605  ;;  %9623 = vrcp.f32 %v5436_v50  ;;  %v5437_v62 = vadd.f32 1.0, %v9604_v37  ;;  %v5726_v55 = vpack.c.bf16 %v15300_v28, %v15277_v12  ;;  %5898 = vmatmul.mubr.bf16.gmra.mrb[112].mxu1 %v5722_v26  ;;  %v15326_v4 = vpop.f32.mrb[94].mxu1  ;;  %v5687_v30 = vadd.f32 %v5623_v56, %v5170_v13  ;;  %v17792_v26 = vld [vmem:[#allocation9_spill] sm:$0xff]  ;;  %v17794_v37 = vld [vmem:[#allocation83_spill] sm:$0xff] }
 0x5d6   :  { %v9608_v33 = vpop.eup %9607  ;;  %9625 = vrcp.f32 %v5438_v60  ;;  %v5439_v22 = vadd.f32 1.0, %v9606_v5  ;;  %v15328_v35 = vpop.f32.mrb[95].mxu0  ;;  %v15330_v46 = vadd.f32 %v5624_v15, %v5061_v42  ;;  %v5063_v52 = vadd.f32 %v15244_v11, %v10863_v3 }
 0x5d7   :  { %v9610_v48 = vpop.eup %9609  ;;  %9627 = vrcp.f32 %v5437_v62  ;;  %v5440_v1 = vadd.f32 1.0, %v9608_v33  ;;  %v15332_v36 = vpop.f32.mrb[95].mxu1  ;;  %v5627_v0 = vmul.f32 %v9598_v54, %v17792_v26  ;;  %v5176_v56 = vadd.f32 %v15251_v2, %v10866_v17 }
 0x5d8   :  { %v9612_v39 = vpop.eup %9611  ;;  %9629 = vrcp.f32 %v5439_v22  ;;  %v5442_v20 = vadd.f32 1.0, %v9610_v48  ;;  %v15341_v29 = vadd.f32 %v5626_v57, %v5174_v10  ;;  %v5689_v47 = vadd.f32 %v5625_v40, %v5063_v52 }
 0x5d9   :  { %v9614_v51 = vpop.eup %9613  ;;  %9631 = vrcp.f32 %v5440_v1  ;;  %v5441_v12 = vadd.f32 1.0, %v9612_v39  ;;  %v5691_v21 = vadd.f32 %v5627_v0, %v5176_v56  ;;  %v5725_v54 = vpack.c.bf16 %v5685_v45, %v15279_v63  ;;  %v17798_v39 = vld [vmem:[#allocation109_spill] sm:$0xff] }
 0x5da   :  { %v9616_v15 = vpop.eup %9615  ;;  %9633 = vrcp.f32 %v5442_v20  ;;  %v5443_v6 = vadd.f32 1.0, %v9614_v51  ;;  %v5727_v8 = vpack.c.bf16 %v5687_v30, %v15283_v16  ;;  %v5065_v57 = vadd.f32 %v15253_v27, %v10857_v18 }
 0x5db   :  { %v9618_v59 = vpop.eup %9617  ;;  %9635 = vrcp.f32 %v5441_v12  ;;  %v5444_v9 = vadd.f32 1.0, %v9616_v15  ;;  %5808 = vmatprep.mubr.bf16.mxu0 %v5725_v54  ;;  %v5178_v50 = vadd.f32 %v15262_v53, %v10860_v34  ;;  %v5067_v14 = vadd.f32 %v15264_v38, %v10863_v3  ;;  %v17800_v15 = vld [vmem:[#allocation112_spill] sm:$0xff] }
 0x5dc   :  { %v9620_v44 = vpop.eup %9619  ;;  %9637 = vrcp.f32 %v5443_v6  ;;  %v5446_v11 = vadd.f32 1.0, %v9618_v59  ;;  %5905 = vmatprep.mubr.bf16.mxu1 %v5727_v8  ;;  %5809 = vmatmul.mubr.bf16.gmra.mrb[116].mxu0 %v5724_v41  ;;  %v5180_v27 = vadd.f32 %v15273_v19, %v10866_v17  ;;  %v5071_v53 = vadd.f32 %v15298_v7, %v10857_v18  ;;  %v17796_v41 = vld [vmem:[#allocation84_spill] sm:$0xff] }
 0x5dd   :  { %v9622_v43 = vpop.eup %9621  ;;  %9639 = vrcp.f32 %v5444_v9  ;;  %v5445_v2 = vadd.f32 1.0, %v9620_v44  ;;  %5906 = vmatmul.mubr.bf16.gmra.mrb[116].mxu1 %v5726_v55  ;;  %v5184_v38 = vadd.f32 %v15306_v24, %v10860_v34  ;;  %v17797_v55 = vld [vmem:[#allocation101_spill] sm:$0xff]  ;;  %v5073_v1 = vadd.f32 %v15308_v32, %v10863_v3  ;;  %v17801_v44 = vld [vmem:[#allocation107_spill] sm:$0xff] }
 0x5de   :  { %9641 = vrcp.f32 %v5446_v11  ;;  %v5447_v25 = vadd.f32 1.0, %v9622_v43  ;;  %v5186_v52 = vadd.f32 %v15317_v61, %v10866_v17  ;;  %v17799_v24 = vld [vmem:[#allocation85_spill] sm:$0xff]  ;;  %v5188_v59 = vadd.f32 %v15326_v4, %v10860_v34  ;;  %v17802_v43 = vld [vmem:[#allocation126_spill] sm:$0xff]  ;;  %v7939_v4 = vld [vmem:[%s16641_s1 + $0x100] sm:$0xff]  }
 0x5df   :  { %v9624_v40 = vpop.eup %9623  ;;  %9643 = vrcp.f32 %v5445_v2  ;;  %v5077_v54 = vadd.f32 %v15328_v35, %v10863_v3  ;;  %v5190_v2 = vadd.f32 %v15332_v36, %v10866_v17 }
 0x5e0   :  { %v9626_v63 = vpop.eup %9625  ;;  %v5628_v16 = vmul.f32 %v9624_v40, %v17793_v31  ;;  %9645 = vrcp.f32 %v5447_v25 }
 0x5e1   :  { %v9628_v49 = vpop.eup %9627  ;;  %v5630_v60 = vmul.f32 %v9626_v63, %v17794_v37 }
 0x5e2   :  { %v9630_v28 = vpop.eup %9629  ;;  %v5629_v13 = vmul.f32 %v9628_v49, %v17795_v23  ;;  %v5692_v5 = vadd.f32 %v5628_v16, %v5065_v57  ;;  %v7879_v49 = vunpack.c.h.bf16 %v7939_v4 }
 0x5e3   :  { %v9632_v62 = vpop.eup %9631  ;;  %v5631_v42 = vmul.f32 %v9630_v28, %v17796_v41  ;;  %v5694_v33 = vadd.f32 %v5630_v60, %v5178_v50  ;;  %v17804_v50 = vld [vmem:[#allocation114_spill] sm:$0xff]  ;;  %v10047_v28 = vld [vmem:[%s16640_s0] sm:$0xff] }
 0x5e4   :  { %v9634_v22 = vpop.eup %9633  ;;  %v5632_v45 = vmul.f32 %v9632_v62, %v17797_v55  ;;  %v5728_v48 = vpack.c.bf16 %v5692_v5, %v15330_v46  ;;  %v5693_v19 = vadd.f32 %v5629_v13, %v5067_v14  ;;  %v5075_v46 = vadd.f32 %v15319_v58, %v10857_v18  ;;  %v10048_v13 = vld [vmem:[%s16640_s0 + $0x8] sm:$0xff]  ;;  %v10050_v55 = vld [vmem:[%s16640_s0 + $0x18] sm:$0xff] }
 0x5e5   :  { %v9636_v30 = vpop.eup %9635  ;;  %v5634_v20 = vmul.f32 %v9634_v22, %v17798_v39  ;;  %v5730_v7 = vpack.c.bf16 %v5694_v33, %v15341_v29  ;;  %v5695_v10 = vadd.f32 %v5631_v42, %v5180_v27  ;;  %v7878_v14 = vunpack.c.l.bf16 %v7939_v4  ;;  %v7943_v4 = vld [vmem:[%s16641_s1 + $0x120] sm:$0xff]  }
 0x5e6   :  { %v9638_v51 = vpop.eup %9637  ;;  %v5633_v26 = vmul.f32 %v9636_v30, %v17799_v24  ;;  %v5696_v0 = vadd.f32 %v5632_v45, %v5071_v53  ;;  %v5729_v12 = vpack.c.bf16 %v5693_v19, %v5689_v47  ;;  %v357_v5 = vmul.f32 %v10048_v13, %v7879_v49  ;;  %v7940_v53 = vld [vmem:[%s16641_s1 + $0x108] sm:$0xff]   ;;  %v17806_v19 = vld [vmem:[#allocation41_spill] sm:$0xff]  ;;  %v17808_v30 = vld [vmem:[#allocation43_spill] sm:$0xff] }
 0x5e7   :  { %v9640_v56 = vpop.eup %9639  ;;  %v5635_v32 = vmul.f32 %v9638_v51, %v17800_v15  ;;  %v5698_v6 = vadd.f32 %v5634_v20, %v5184_v38  ;;  %v5731_v29 = vpack.c.bf16 %v5695_v10, %v5691_v21  ;;  %v17803_v21 = vld [vmem:[#allocation86_spill] sm:$0xff]  ;;  %v356_v23 = vmul.f32 %v10047_v28, %v7878_v14  ;;  %v10049_v38 = vld [vmem:[%s16640_s0 + $0x10] sm:$0xff]  ;;  %v17809_v10 = vld [vmem:[#allocation44_spill] sm:$0xff] }
 0x5e8   :  { %v9642_v9 = vpop.eup %9641  ;;  %v5636_v11 = vmul.f32 %v9640_v56, %v17801_v44  ;;  %v5697_v61 = vadd.f32 %v5633_v26, %v5073_v1  ;;  %5816 = vmatprep.mubr.bf16.mxu0 %v5729_v12  ;;  %v17805_v62 = vmov 0   ;;  %v7882_v42 = vunpack.c.l.bf16 %v7940_v53  ;;  %v17807_v1 = vld [vmem:[#allocation42_spill] sm:$0xff]  ;;  %v17812_v24 = vld [vmem:[#allocation47_spill] sm:$0xff]  ;;  %v17813_v26 = vld [vmem:[#allocation48_spill] sm:$0xff] }
 0x5e9   :  { %v9644_v8 = vpop.eup %9643  ;;  %v5638_v58 = vmul.f32 %v9642_v9, %v17802_v43  ;;  %v5699_v47 = vadd.f32 %v5635_v32, %v5186_v52  ;;  %5913 = vmatprep.mubr.bf16.mxu1 %v5731_v29  ;;  %5817 = vmatmul.mubr.bf16.gmra.mrb[120].mxu0 %v5728_v48  ;;  %v15397_v41 = vpack.c.bf16 %v357_v5, %v356_v23  ;;  %v7883_v33 = vunpack.c.h.bf16 %v7940_v53  ;;  %v7941_v48 = vld [vmem:[%s16641_s1 + $0x110] sm:$0xff]   ;;  %v17811_v51 = vld [vmem:[#allocation46_spill] sm:$0xff]  ;;  %v10052_v12 = vld [vmem:[%s16640_s0 + $0x28] sm:$0xff] }
 0x5ea   :  { %v9646_v25 = vpop.eup %9645  ;;  %v5637_v57 = vmul.f32 %v9644_v8, %v17803_v21  ;;  %v5700_v40 = vadd.f32 %v5636_v11, %v5075_v46  ;;  %5914 = vmatmul.mubr.bf16.gmra.mrb[120].mxu1 %v5730_v7  ;;  %v358_v22 = vmul.f32 %v10049_v38, %v7882_v42  ;;  %v7886_v39 = vunpack.c.l.bf16 %v7941_v48  ;;  %v17810_v52 = vld [vmem:[#allocation45_spill] sm:$0xff]  ;;  %v7942_v15 = vld [vmem:[%s16641_s1 + $0x118] sm:$0xff]   ;;  %v17817_v11 = vld [vmem:[#allocation52_spill] sm:$0xff] }
 0x5eb   :  { %v5639_v35 = vmul.f32 %v9646_v25, %v17804_v50  ;;  %v5702_v63 = vadd.f32 %v5638_v58, %v5188_v59  ;;  %v359_v45 = vmul.f32 %v10050_v55, %v7883_v33  ;;  %v7887_v20 = vunpack.c.h.bf16 %v7941_v48  ;;  %v17814_v32 = vld [vmem:[#allocation49_spill] sm:$0xff]  ;;  %v17816_v59 = vld [vmem:[#allocation51_spill] sm:$0xff]  ;;  %v17821_v25 = vld [vmem:[#allocation56_spill] sm:$0xff] }
 0x5ec   :  { %v5732_v31 = vpack.c.bf16 %v5700_v40, %v5696_v0  ;;  %v5701_v16 = vadd.f32 %v5637_v57, %v5077_v54  ;;  %v10051_v0 = vld [vmem:[%s16640_s0 + $0x20] sm:$0xff]  ;;  %v7890_v29 = vunpack.c.l.bf16 %v7942_v15  ;;  %v7891_v9 = vunpack.c.h.bf16 %v7942_v15  ;;  %v17819_v54 = vld [vmem:[#allocation54_spill] sm:$0xff]  ;;  %v10053_v43 = vld [vmem:[%s16640_s0 + $0x30] sm:$0xff] }
 0x5ed   :  { %v5734_v37 = vpack.c.bf16 %v5702_v63, %v5698_v6  ;;  %v5703_v60 = vadd.f32 %v5639_v35, %v5190_v2  ;;  %v15415_v7 = vpack.c.bf16 %v359_v45, %v358_v22  ;;  %v360_v46 = vmul.f32 %v10051_v0, %v7886_v39  ;;  %v17815_v6 = vld [vmem:[#allocation50_spill] sm:$0xff]  ;;  %v17820_v8 = vld [vmem:[#allocation55_spill] sm:$0xff]  ;;  %v17822_v21 = vld [vmem:[#allocation57_spill] sm:$0xff] }
 0x5ee   :  { %v5733_v36 = vpack.c.bf16 %v5701_v16, %v5697_v61  ;;  %v361_v56 = vmul.f32 %v10052_v12, %v7887_v20  ;;  %v17818_v61 = vld [vmem:[#allocation53_spill] sm:$0xff]  ;;  %v362_v58 = vmul.f32 %v10053_v43, %v7890_v29  ;;  %v17823_v57 = vld [vmem:[#allocation58_spill] sm:$0xff]  ;;  %v17824_v40 = vld [vmem:[#allocation59_spill] sm:$0xff]  ;;  %v7894_v50 = vunpack.c.l.bf16 %v7943_v4 }
 0x5ef   :  { %v5735_v27 = vpack.c.bf16 %v5703_v60, %v5699_v47  ;;  %v10054_v47 = vld [vmem:[%s16640_s0 + $0x38] sm:$0xff]  ;;  %v7895_v35 = vunpack.c.h.bf16 %v7943_v4  ;;  %v17826_v16 = vld [vmem:[#allocation61_spill] sm:$0xff]  ;;  %v17828_v49 = vld [vmem:[#allocation63_spill] sm:$0xff] }
 0x5f0   :  { %5824 = vmatprep.mubr.bf16.mxu0 %v5733_v36  ;;  %v15438_v44 = vpack.c.bf16 %v361_v56, %v360_v46  ;;  %v363_v2 = vmul.f32 %v10054_v47, %v7891_v9  ;;  %v17827_v14 = vld [vmem:[#allocation62_spill] sm:$0xff]  ;;  %v10056_v36 = vld [vmem:[%s16640_s0 + $0x48] sm:$0xff]  ;;  %v17830_v13 = vld [vmem:[#allocation65_spill] sm:$0xff] }
 0x5f1   :  { %5921 = vmatprep.mubr.bf16.mxu1 %v5735_v27  ;;  %5825 = vmatmul.mubr.bf16.gmra.mrb[124].mxu0 %v5732_v31  ;;  %v17825_v31 = vld [vmem:[#allocation60_spill] sm:$0xff]  ;;  %v365_v27 = vmul.f32 %v10056_v36, %v7895_v35  ;;  %v17831_v5 = vld [vmem:[#allocation66_spill] sm:$0xff]  ;;  %v17832_v53 = vld [vmem:[#allocation67_spill] sm:$0xff] }
 0x5f2   :  { %5922 = vmatmul.mubr.bf16.gmra.mrb[124].mxu1 %v5734_v37  ;;  %5987 = vmatprep.mubr.bf16.mxu0 %v17805_v62  ;;  %v15461_v63 = vpack.c.bf16 %v363_v2, %v362_v58  ;;  %v10055_v37 = vld [vmem:[%s16640_s0 + $0x40] sm:$0xff]  ;;  %v17829_v28 = vld [vmem:[#allocation64_spill] sm:$0xff]  ;;  %v17834_v55 = vld [vmem:[#allocation69_spill] sm:$0xff] }
 0x5f3   :  { %6100 = vmatprep.mubr.bf16.mxu1 %v17805_v62  ;;  %v364_v60 = vmul.f32 %v10055_v37, %v7894_v50  ;;  %v7944_v23 = vld [vmem:[%s16641_s1 + $0x128] sm:$0xff]   ;;  %v17835_v45 = vld [vmem:[#allocation70_spill] sm:$0xff]  ;;  %v10057_v48 = vld [vmem:[%s16644_s4 + $0x40] sm:$0xff]  }
 0x5f4   :  { %v7898_v42 = vunpack.c.l.bf16 %v7944_v23  ;;  %v7899_v33 = vunpack.c.h.bf16 %v7944_v23  ;;  %v17833_v22 = vld [vmem:[#allocation68_spill] sm:$0xff]  ;;  %v10060_v20 = vld [vmem:[%s16644_s4 + $0xc0] sm:$0xff]   ;;  %v7946_v56 = vld [vmem:[%s16641_s1 + $0x138] sm:$0xff]  }
 0x5f5   :  { %v15484_v38 = vpack.c.bf16 %v365_v27, %v364_v60  ;;  %v10062_v46 = vld [vmem:[%s16640_s0 + $0x68] sm:$0xff]  ;;  %v7906_v15 = vunpack.c.l.bf16 %v7946_v56  ;;  %v10064_v9 = vld [vmem:[%s16640_s0 + $0x78] sm:$0xff]  ;;  %v10071_v2 = vld [vmem:[%s16644_s4 + $0x50] sm:$0xff]  }
 0x5f6   :  { %v10067_v43 = vld [vmem:[%s16644_s4 + $0x48] sm:$0xff]   ;;  %v10073_v4 = vld [vmem:[%s16644_s4 + $0x10] sm:$0xff]   ;;  %v10078_v50 = vld [vmem:[%s16644_s4 + $0x98] sm:$0xff]  }
 0x5f7   :  { %v10069_v58 = vld [vmem:[%s16644_s4 + $0x8] sm:$0xff]   ;;  %v10079_v35 = vld [vmem:[%s16644_s4 + $0x60] sm:$0xff]   ;;  %v10087_v36 = vld [vmem:[%s16644_s4 + $0x70] sm:$0xff]  }
 0x5f8   :  { %v10070_v47 = vld [vmem:[%s16644_s4 + $0x88] sm:$0xff]   ;;  %v10088_v27 = vld [vmem:[%s16644_s4 + $0xf0] sm:$0xff]  }
 0x5f9   :  { %5988 = vmatmul.mubr.bf16.vlgmr.msra.gmra.mrb[128].mxu0 %v15397_v41  ;;  %v10085_v37 = vld [vmem:[%s16644_s4 + $0x28] sm:$0xff]   ;;  %v10090_v23 = vld [vmem:[%s16644_s4 + $0xb0] sm:$0xff]  }
 0x5fa   :  { %6101 = vmatmul.mubr.bf16.vlgmr.msra.gmra.mrb[128].mxu1 %v15397_v41  ;;  %6182 = vmatpush1.bf16.msra.mxu0 %v17806_v19  ;;  %v10058_v19 = vld [vmem:[%s16640_s0 + $0x50] sm:$0xff]  ;;  %v10086_v60 = vld [vmem:[%s16644_s4 + $0xa8] sm:$0xff]  }
 0x5fb   :  { %6295 = vmatpush1.bf16.msra.mxu1 %v17807_v1  ;;  %5997 = vmatprep.mubr.bf16.mxu0 %v17805_v62  ;;  %v366_v1 = vmul.f32 %v10058_v19, %v7898_v42 }
 0x5fc   :  { %6110 = vmatprep.mubr.bf16.mxu1 %v17805_v62  ;;  %6183 = vmatprep.subr.bf16.mxu0 %v17808_v30  ;;  %v10059_v30 = vld [vmem:[%s16640_s0 + $0x58] sm:$0xff] }
 0x5fd   :  { %6296 = vmatprep.subr.bf16.mxu1 %v17809_v10  ;;  %v367_v39 = vmul.f32 %v10059_v30, %v7899_v33  ;;  %v7945_v10 = vld [vmem:[%s16641_s1 + $0x130] sm:$0xff]  }
 0x5fe   :  { %6184 = vmatpush1.bf16.msra.mxu0 %v17810_v52  ;;  %v7902_v52 = vunpack.c.l.bf16 %v7945_v10 }
 0x5ff   :  { %6297 = vmatpush1.bf16.msra.mxu1 %v17811_v51  ;;  %6185 = vmatprep.subr.bf16.mxu0 %v17812_v24  ;;  %v7903_v51 = vunpack.c.h.bf16 %v7945_v10  ;;  %v15508_v24 = vpack.c.bf16 %v367_v39, %v366_v1 }
 0x600   :  { %6298 = vmatprep.subr.bf16.mxu1 %v17813_v26  ;;  %v10061_v26 = vld [vmem:[%s16640_s0 + $0x60] sm:$0xff] }
 0x601   :  { %5998 = vmatmul.mubr.bf16.gmra.mrb[132].mxu0 %v15415_v7  ;;  %v368_v0 = vmul.f32 %v10061_v26, %v7902_v52  ;;  %v369_v12 = vmul.f32 %v10062_v46, %v7903_v51  ;;  %v17836_v52 = vld [vmem:[#allocation82_spill] sm:$0xff] }
 0x602   :  { %6111 = vmatmul.mubr.bf16.gmra.mrb[132].mxu1 %v15415_v7  ;;  %6007 = vmatprep.mubr.bf16.mxu0 %v17805_v62 }
 0x603   :  { %6120 = vmatprep.mubr.bf16.mxu1 %v17805_v62  ;;  %6186 = vmatpush1.bf16.msra.mxu0 %v17814_v32  ;;  %v7907_v32 = vunpack.c.h.bf16 %v7946_v56 }
 0x604   :  { %6299 = vmatpush1.bf16.msra.mxu1 %v17815_v6  ;;  %6187 = vmatprep.subr.bf16.mxu0 %v17816_v59  ;;  %v15523_v6 = vpack.c.bf16 %v369_v12, %v368_v0  ;;  %v10063_v59 = vld [vmem:[%s16640_s0 + $0x70] sm:$0xff] }
 0x605   :  { %6300 = vmatprep.subr.bf16.mxu1 %v17817_v11  ;;  %v370_v29 = vmul.f32 %v10063_v59, %v7906_v15  ;;  %v371_v11 = vmul.f32 %v10064_v9, %v7907_v32 }
 0x607   :  { %6188 = vmatpush1.bf16.msra.mxu0 %v17818_v61  ;;  %v15535_v61 = vpack.c.bf16 %v371_v11, %v370_v29 }
 0x608   :  { %6301 = vmatpush1.bf16.msra.mxu1 %v17819_v54  ;;  %6189 = vmatprep.subr.bf16.mxu0 %v17820_v8  ;;  %v10065_v54 = vld [vmem:[%s16644_s4] sm:$0xff]  }
 0x609   :  { %6008 = vmatmul.mubr.bf16.gmra.mrb[136].mxu0 %v15438_v44  ;;  %6302 = vmatprep.subr.bf16.mxu1 %v17821_v25  ;;  %v10066_v8 = vld [vmem:[%s16644_s4 + $0x80] sm:$0xff]   ;;  %v10072_v25 = vld [vmem:[%s16644_s4 + $0xd0] sm:$0xff]  }
 0x60a   :  { %6121 = vmatmul.mubr.bf16.gmra.mrb[136].mxu1 %v15438_v44  ;;  %6017 = vmatprep.mubr.bf16.mxu0 %v17805_v62 }
 0x60b   :  { %6130 = vmatprep.mubr.bf16.mxu1 %v17805_v62  ;;  %6190 = vmatpush1.bf16.msra.mxu0 %v17822_v21  ;;  %v10074_v21 = vld [vmem:[%s16644_s4 + $0x90] sm:$0xff]  }
 0x60c   :  { %6303 = vmatpush1.bf16.msra.mxu1 %v17823_v57  ;;  %6191 = vmatprep.subr.bf16.mxu0 %v17824_v40  ;;  %v10075_v57 = vld [vmem:[%s16644_s4 + $0x58] sm:$0xff]  }
 0x60d   :  { %6304 = vmatprep.subr.bf16.mxu1 %v17825_v31  ;;  %v10077_v40 = vld [vmem:[%s16644_s4 + $0x18] sm:$0xff]   ;;  %v10080_v31 = vld [vmem:[%s16644_s4 + $0xe0] sm:$0xff]  }
 0x60f   :  { %6192 = vmatpush1.bf16.msra.mxu0 %v17826_v16  ;;  %v10081_v16 = vld [vmem:[%s16644_s4 + $0x20] sm:$0xff]  }
 0x610   :  { %6305 = vmatpush1.bf16.msra.mxu1 %v17827_v14  ;;  %6193 = vmatprep.subr.bf16.mxu0 %v17828_v49  ;;  %v10082_v14 = vld [vmem:[%s16644_s4 + $0xa0] sm:$0xff]   ;;  %v10083_v49 = vld [vmem:[%s16644_s4 + $0x68] sm:$0xff]  }
 0x611   :  { %6018 = vmatmul.mubr.bf16.gmra.mrb[140].mxu0 %v15461_v63  ;;  %6306 = vmatprep.subr.bf16.mxu1 %v17829_v28  ;;  %v10089_v28 = vld [vmem:[%s16644_s4 + $0x30] sm:$0xff]  }
 0x612   :  { %6131 = vmatmul.mubr.bf16.gmra.mrb[140].mxu1 %v15461_v63  ;;  %6027 = vmatprep.mubr.bf16.mxu0 %v17805_v62 }
 0x613   :  { %6140 = vmatprep.mubr.bf16.mxu1 %v17805_v62  ;;  %6194 = vmatpush1.bf16.msra.mxu0 %v17830_v13  ;;  %v10091_v13 = vld [vmem:[%s16644_s4 + $0x78] sm:$0xff]  }
 0x614   :  { %6307 = vmatpush1.bf16.msra.mxu1 %v17831_v5  ;;  %6195 = vmatprep.subr.bf16.mxu0 %v17832_v53  ;;  %v10093_v5 = vld [vmem:[%s16644_s4 + $0x38] sm:$0xff]  }
 0x615   :  { %6308 = vmatprep.subr.bf16.mxu1 %v17833_v22  ;;  %v10094_v53 = vld [vmem:[%s16644_s4 + $0xb8] sm:$0xff]  }
 0x617   :  { %6196 = vmatpush1.bf16.msra.mxu0 %v17834_v55 }
 0x618   :  { %6309 = vmatpush1.bf16.msra.mxu1 %v17835_v45  ;;  %8459 = vmatprep.subr.bf16.mxu0 %v10057_v48 }
 0x619   :  { %6028 = vmatmul.mubr.bf16.gmra.mrb[144].mxu0 %v15484_v38  ;;  %8523 = vmatprep.subr.bf16.mxu1 %v10060_v20 }
 0x61a   :  { %6141 = vmatmul.mubr.bf16.gmra.mrb[144].mxu1 %v15484_v38  ;;  %6037 = vmatprep.mubr.bf16.mxu0 %v17805_v62 }
 0x61b   :  { %6150 = vmatprep.mubr.bf16.mxu1 %v17805_v62 }
 0x621   :  { %6038 = vmatmul.mubr.bf16.gmra.mrb[148].mxu0 %v15508_v24 }
 0x622   :  { %6151 = vmatmul.mubr.bf16.gmra.mrb[148].mxu1 %v15508_v24  ;;  %6047 = vmatprep.mubr.bf16.mxu0 %v17805_v62 }
 0x623   :  { %6160 = vmatprep.mubr.bf16.mxu1 %v17805_v62 }
 0x629   :  { %6048 = vmatmul.mubr.bf16.gmra.mrb[152].mxu0 %v15523_v6 }
 0x62a   :  { %6161 = vmatmul.mubr.bf16.gmra.mrb[152].mxu1 %v15523_v6  ;;  %6057 = vmatprep.mubr.bf16.mxu0 %v17805_v62 }
 0x62b   :  { %6170 = vmatprep.mubr.bf16.mxu1 %v17805_v62 }
 0x631   :  { %6058 = vmatmul.mubr.bf16.gmra.mrb[156].mxu0 %v15535_v61 }
 0x632   :  { %6171 = vmatmul.mubr.bf16.gmra.mrb[156].mxu1 %v15535_v61  ;;  %6213 = vmatprep.mubr.bf16.mxu0 %v17805_v62 }
 0x633   :  { %6326 = vmatprep.mubr.bf16.mxu1 %v17805_v62 }
 0x639   :  { %6214 = vmatmul.mubr.bf16.vlgmr.msra.gmra.mrb[160].mxu0 %v15397_v41 }
 0x63a   :  { %6327 = vmatmul.mubr.bf16.vlgmr.msra.gmra.mrb[160].mxu1 %v15397_v41  ;;  %6223 = vmatprep.mubr.bf16.mxu0 %v17805_v62  ;;  %v10068_v41 = vld [vmem:[%s16644_s4 + $0xc8] sm:$0xff]  }
 0x63b   :  { %6336 = vmatprep.mubr.bf16.mxu1 %v17805_v62  ;;  %8460 = vmatpush3.bf16.msra.mxu0 %v10065_v54 }
 0x63c   :  { %8524 = vmatpush3.bf16.msra.mxu1 %v10066_v8  ;;  %8461 = vmatprep.subr.bf16.mxu0 %v10067_v43  ;;  %v17840_v8 = vld [vmem:[#allocation117_spill] sm:$0xff] }
 0x63d   :  { %8525 = vmatprep.subr.bf16.mxu1 %v10068_v41 }
 0x63f   :  { %8462 = vmatpush3.bf16.msra.mxu0 %v10069_v58  ;;  %v17842_v58 = vld [vmem:[#allocation115_spill] sm:$0xff] }
 0x640   :  { %8526 = vmatpush3.bf16.msra.mxu1 %v10070_v47  ;;  %8463 = vmatprep.subr.bf16.mxu0 %v10071_v2 }
 0x641   :  { %6224 = vmatmul.mubr.bf16.gmra.mrb[164].mxu0 %v15415_v7  ;;  %8527 = vmatprep.subr.bf16.mxu1 %v10072_v25 }
 0x642   :  { %6337 = vmatmul.mubr.bf16.gmra.mrb[164].mxu1 %v15415_v7  ;;  %6233 = vmatprep.mubr.bf16.mxu0 %v17805_v62  ;;  %v10076_v7 = vld [vmem:[%s16644_s4 + $0xd8] sm:$0xff]  }
 0x643   :  { %6346 = vmatprep.mubr.bf16.mxu1 %v17805_v62  ;;  %8464 = vmatpush3.bf16.msra.mxu0 %v10073_v4 }
 0x644   :  { %8528 = vmatpush3.bf16.msra.mxu1 %v10074_v21  ;;  %8465 = vmatprep.subr.bf16.mxu0 %v10075_v57 }
 0x645   :  { %8529 = vmatprep.subr.bf16.mxu1 %v10076_v7 }
 0x647   :  { %8466 = vmatpush3.bf16.msra.mxu0 %v10077_v40 }
 0x648   :  { %8530 = vmatpush3.bf16.msra.mxu1 %v10078_v50  ;;  %8467 = vmatprep.subr.bf16.mxu0 %v10079_v35 }
 0x649   :  { %6234 = vmatmul.mubr.bf16.gmra.mrb[168].mxu0 %v15438_v44  ;;  %8531 = vmatprep.subr.bf16.mxu1 %v10080_v31 }
 0x64a   :  { %6347 = vmatmul.mubr.bf16.gmra.mrb[168].mxu1 %v15438_v44  ;;  %6243 = vmatprep.mubr.bf16.mxu0 %v17805_v62  ;;  %v10084_v44 = vld [vmem:[%s16644_s4 + $0xe8] sm:$0xff]  }
 0x64b   :  { %6356 = vmatprep.mubr.bf16.mxu1 %v17805_v62  ;;  %8468 = vmatpush3.bf16.msra.mxu0 %v10081_v16 }
 0x64c   :  { %8532 = vmatpush3.bf16.msra.mxu1 %v10082_v14  ;;  %8469 = vmatprep.subr.bf16.mxu0 %v10083_v49 }
 0x64d   :  { %8533 = vmatprep.subr.bf16.mxu1 %v10084_v44  ;;  %v17844_v44 = vld [vmem:[#allocation124_spill] sm:$0xff] }
 0x64f   :  { %8470 = vmatpush3.bf16.msra.mxu0 %v10085_v37 }
 0x650   :  { %8534 = vmatpush3.bf16.msra.mxu1 %v10086_v60  ;;  %8471 = vmatprep.subr.bf16.mxu0 %v10087_v36  ;;  %v17846_v36 = vld [vmem:[#allocation128_spill] sm:$0xff] }
 0x651   :  { %6244 = vmatmul.mubr.bf16.gmra.mrb[172].mxu0 %v15461_v63  ;;  %8535 = vmatprep.subr.bf16.mxu1 %v10088_v27 }
 0x652   :  { %6357 = vmatmul.mubr.bf16.gmra.mrb[172].mxu1 %v15461_v63  ;;  %6253 = vmatprep.mubr.bf16.mxu0 %v17805_v62  ;;  %v10092_v63 = vld [vmem:[%s16644_s4 + $0xf8] sm:$0xff]  }
 0x653   :  { %6366 = vmatprep.mubr.bf16.mxu1 %v17805_v62  ;;  %8472 = vmatpush3.bf16.msra.mxu0 %v10089_v28 }
 0x654   :  { %8536 = vmatpush3.bf16.msra.mxu1 %v10090_v23  ;;  %8473 = vmatprep.subr.bf16.mxu0 %v10091_v13 }
 0x655   :  { %8537 = vmatprep.subr.bf16.mxu1 %v10092_v63 }
 0x657   :  { %8474 = vmatpush3.bf16.msra.mxu0 %v10093_v5 }
 0x658   :  { %8538 = vmatpush3.bf16.msra.mxu1 %v10094_v53 }
 0x659   :  { %6254 = vmatmul.mubr.bf16.gmra.mrb[176].mxu0 %v15484_v38 }
 0x65a   :  { %6367 = vmatmul.mubr.bf16.gmra.mrb[176].mxu1 %v15484_v38  ;;  %6263 = vmatprep.mubr.bf16.mxu0 %v17805_v62 }
 0x65b   :  { %6376 = vmatprep.mubr.bf16.mxu1 %v17805_v62 }
 0x661   :  { %6264 = vmatmul.mubr.bf16.gmra.mrb[180].mxu0 %v15508_v24 }
 0x662   :  { %6377 = vmatmul.mubr.bf16.gmra.mrb[180].mxu1 %v15508_v24  ;;  %6273 = vmatprep.mubr.bf16.mxu0 %v17805_v62  ;;  %v17838_v24 = vld [vmem:[#allocation103_spill] sm:$0xff] }
 0x663   :  { %6386 = vmatprep.mubr.bf16.mxu1 %v17805_v62 }
 0x669   :  { %6274 = vmatmul.mubr.bf16.gmra.mrb[184].mxu0 %v15523_v6 }
 0x66a   :  { %6387 = vmatmul.mubr.bf16.gmra.mrb[184].mxu1 %v15523_v6  ;;  %6283 = vmatprep.mubr.bf16.mxu0 %v17805_v62 }
 0x66b   :  { %6396 = vmatprep.mubr.bf16.mxu1 %v17805_v62 }
 0x671   :  { %6284 = vmatmul.mubr.bf16.gmra.mrb[188].mxu0 %v15535_v61 }
 0x672   :  { %6397 = vmatmul.mubr.bf16.gmra.mrb[188].mxu1 %v15535_v61 }
 0x67e   :  { %v8347_v42 = vpop.f32.mrb[96].mxu0 }
 0x67f   :  { %v8411_v33 = vpop.f32.mrb[96].mxu1  ;;  %v8348_v38 = vpop.f32.mrb[97].mxu0 }
 0x680   :  { %v8349_v22 = vadd.f32 %v8348_v38, %v8347_v42  ;;  %v8412_v55 = vpop.f32.mrb[97].mxu1  ;;  %v8350_v45 = vpop.f32.mrb[98].mxu0 }
 0x681   :  { %v8413_v48 = vadd.f32 %v8412_v55, %v8411_v33  ;;  %v8414_v19 = vpop.f32.mrb[98].mxu1  ;;  %v8351_v1 = vpop.f32.mrb[99].mxu0 }
 0x682   :  { %v8352_v30 = vadd.f32 %v8351_v1, %v8350_v45  ;;  %v8415_v39 = vpop.f32.mrb[99].mxu1 }
 0x683   :  { %v5868_v20 = vadd.f32 %v8413_v48, %v8349_v22  ;;  %v8416_v10 = vadd.f32 %v8415_v39, %v8414_v19  ;;  %v17848_v19 = vld [vmem:[#allocation142_spill] sm:$0xff] }
 0x684   :  { %v17850_v39 = vld [vmem:[#allocation130_spill] sm:$0xff] }
 0x685   :  { %v15662_v51 = vadd.f32 %v5868_v20, %v17836_v52  ;;  %v5871_v62 = vadd.f32 %v8416_v10, %v8352_v30 }
 0x687   :  { %17837 = vst [vmem:[#allocation118_spill] sm:$0xff] %v15662_v51  ;;  %v15665_v26 = vadd.f32 %v5871_v62, %v17838_v24 }
 0x689   :  { %17839 = vst [vmem:[#allocation123_spill] sm:$0xff] %v15665_v26 }
 0x68b   :  { %v8353_v0 = vpop.f32.mrb[100].mxu0 }
 0x68c   :  { %v8417_v46 = vpop.f32.mrb[100].mxu1  ;;  %v8354_v12 = vpop.f32.mrb[101].mxu0 }
 0x68d   :  { %v8355_v56 = vadd.f32 %v8354_v12, %v8353_v0  ;;  %v8418_v15 = vpop.f32.mrb[101].mxu1  ;;  %v8356_v32 = vpop.f32.mrb[102].mxu0 }
 0x68e   :  { %v8419_v6 = vadd.f32 %v8418_v15, %v8417_v46  ;;  %v8420_v59 = vpop.f32.mrb[102].mxu1  ;;  %v8357_v29 = vpop.f32.mrb[103].mxu0 }
 0x68f   :  { %v8358_v9 = vadd.f32 %v8357_v29, %v8356_v32  ;;  %v8421_v11 = vpop.f32.mrb[103].mxu1 }
 0x690   :  { %v5876_v61 = vadd.f32 %v8419_v6, %v8355_v56  ;;  %v8422_v54 = vadd.f32 %v8421_v11, %v8420_v59 }
 0x692   :  { %v15668_v43 = vadd.f32 %v5876_v61, %v17840_v8  ;;  %v5879_v41 = vadd.f32 %v8422_v54, %v8358_v9  ;;  %v17852_v9 = vld [vmem:[#allocation134_spill] sm:$0xff]  ;;  %v17854_v54 = vld [vmem:[#allocation87_spill] sm:$0xff] }
 0x693   :  { %v8359_v2 = vpop.f32.mrb[104].mxu0 }
 0x694   :  { %17841 = vst [vmem:[#allocation125_spill] sm:$0xff] %v15668_v43  ;;  %v15671_v47 = vadd.f32 %v5879_v41, %v17842_v58  ;;  %v8423_v25 = vpop.f32.mrb[104].mxu1  ;;  %v8360_v4 = vpop.f32.mrb[105].mxu0 }
 0x695   :  { %v8361_v21 = vadd.f32 %v8360_v4, %v8359_v2  ;;  %v8424_v57 = vpop.f32.mrb[105].mxu1  ;;  %v8362_v7 = vpop.f32.mrb[106].mxu0 }
 0x696   :  { %17843 = vst [vmem:[#allocation121_spill] sm:$0xff] %v15671_v47  ;;  %v8425_v40 = vadd.f32 %v8424_v57, %v8423_v25  ;;  %v8426_v50 = vpop.f32.mrb[106].mxu1  ;;  %v8363_v35 = vpop.f32.mrb[107].mxu0 }
 0x697   :  { %v8364_v31 = vadd.f32 %v8363_v35, %v8362_v7  ;;  %v8427_v16 = vpop.f32.mrb[107].mxu1 }
 0x698   :  { %v5884_v14 = vadd.f32 %v8425_v40, %v8361_v21  ;;  %v8428_v49 = vadd.f32 %v8427_v16, %v8426_v50 }
 0x69a   :  { %v15674_v37 = vadd.f32 %v5884_v14, %v17844_v44  ;;  %v5887_v60 = vadd.f32 %v8428_v49, %v8364_v31  ;;  %v17856_v14 = vld [vmem:[#allocation120_spill] sm:$0xff] }
 0x69c   :  { %17845 = vst [vmem:[#allocation88_spill] sm:$0xff] %v15674_v37  ;;  %v15677_v27 = vadd.f32 %v5887_v60, %v17846_v36  ;;  %v17858_v60 = vld [vmem:[#allocation136_spill] sm:$0xff] }
 0x69d   :  { %v8365_v28 = vpop.f32.mrb[108].mxu0 }
 0x69e   :  { %17847 = vst [vmem:[#allocation122_spill] sm:$0xff] %v15677_v27  ;;  %v8429_v23 = vpop.f32.mrb[108].mxu1  ;;  %v8366_v13 = vpop.f32.mrb[109].mxu0 }
 0x69f   :  { %v8367_v63 = vadd.f32 %v8366_v13, %v8365_v28  ;;  %v8430_v5 = vpop.f32.mrb[109].mxu1  ;;  %v8368_v53 = vpop.f32.mrb[110].mxu0 }
 0x6a0   :  { %v8431_v42 = vadd.f32 %v8430_v5, %v8429_v23  ;;  %v8432_v33 = vpop.f32.mrb[110].mxu1  ;;  %v8369_v38 = vpop.f32.mrb[111].mxu0 }
 0x6a1   :  { %v8370_v22 = vadd.f32 %v8369_v38, %v8368_v53  ;;  %v8433_v55 = vpop.f32.mrb[111].mxu1 }
 0x6a2   :  { %v5892_v45 = vadd.f32 %v8431_v42, %v8367_v63  ;;  %v8434_v48 = vadd.f32 %v8433_v55, %v8432_v33 }
 0x6a4   :  { %v15680_v1 = vadd.f32 %v5892_v45, %v17848_v19  ;;  %v5895_v30 = vadd.f32 %v8434_v48, %v8370_v22  ;;  %v17860_v19 = vld [vmem:[#allocation137_spill] sm:$0xff] }
 0x6a6   :  { %17849 = vst [vmem:[#allocation135_spill] sm:$0xff] %v15680_v1  ;;  %v15683_v20 = vadd.f32 %v5895_v30, %v17850_v39 }
 0x6a7   :  { %v8371_v10 = vpop.f32.mrb[112].mxu0 }
 0x6a8   :  { %17851 = vst [vmem:[#allocation8_spill] sm:$0xff] %v15683_v20  ;;  %v8435_v52 = vpop.f32.mrb[112].mxu1  ;;  %v8372_v62 = vpop.f32.mrb[113].mxu0 }
 0x6a9   :  { %v8373_v24 = vadd.f32 %v8372_v62, %v8371_v10  ;;  %v8436_v0 = vpop.f32.mrb[113].mxu1  ;;  %v8374_v46 = vpop.f32.mrb[114].mxu0 }
 0x6aa   :  { %v8437_v12 = vadd.f32 %v8436_v0, %v8435_v52  ;;  %v8438_v56 = vpop.f32.mrb[114].mxu1  ;;  %v8375_v15 = vpop.f32.mrb[115].mxu0  ;;  %v17862_v52 = vld [vmem:[#allocation138_spill] sm:$0xff] }
 0x6ab   :  { %v8376_v32 = vadd.f32 %v8375_v15, %v8374_v46  ;;  %v8439_v6 = vpop.f32.mrb[115].mxu1 }
 0x6ac   :  { %v5900_v59 = vadd.f32 %v8437_v12, %v8373_v24  ;;  %v8440_v29 = vadd.f32 %v8439_v6, %v8438_v56 }
 0x6ae   :  { %v15686_v11 = vadd.f32 %v5900_v59, %v17852_v9  ;;  %v5903_v61 = vadd.f32 %v8440_v29, %v8376_v32 }
 0x6af   :  { %v8377_v41 = vpop.f32.mrb[116].mxu0 }
 0x6b0   :  { %17853 = vst [vmem:[#allocation92_spill] sm:$0xff] %v15686_v11  ;;  %v15689_v8 = vadd.f32 %v5903_v61, %v17854_v54  ;;  %v8441_v58 = vpop.f32.mrb[116].mxu1  ;;  %v8378_v2 = vpop.f32.mrb[117].mxu0  ;;  %v17864_v54 = vld [vmem:[#allocation113_spill] sm:$0xff] }
 0x6b1   :  { %v8442_v25 = vpop.f32.mrb[117].mxu1  ;;  %v8379_v4 = vadd.f32 %v8378_v2, %v8377_v41  ;;  %v8380_v57 = vpop.f32.mrb[118].mxu0 }
 0x6b2   :  { %17855 = vst [vmem:[#allocation140_spill] sm:$0xff] %v15689_v8  ;;  %v8443_v21 = vadd.f32 %v8442_v25, %v8441_v58  ;;  %v8444_v7 = vpop.f32.mrb[118].mxu1  ;;  %v8381_v40 = vpop.f32.mrb[119].mxu0  ;;  %v17866_v25 = vld [vmem:[#allocation89_spill] sm:$0xff] }
 0x6b3   :  { %v8445_v50 = vpop.f32.mrb[119].mxu1  ;;  %v8382_v31 = vadd.f32 %v8381_v40, %v8380_v57 }
 0x6b4   :  { %v5908_v35 = vadd.f32 %v8443_v21, %v8379_v4  ;;  %v8446_v16 = vadd.f32 %v8445_v50, %v8444_v7  ;;  %v17868_v21 = vld [vmem:[#allocation71_spill] sm:$0xff]  ;;  %v17869_v50 = vld [vmem:[#allocation72_spill] sm:$0xff] }
 0x6b6   :  { %v15692_v49 = vadd.f32 %v5908_v35, %v17856_v14  ;;  %v5911_v44 = vadd.f32 %v8446_v16, %v8382_v31  ;;  %v17870_v31 = vld [vmem:[#allocation73_spill] sm:$0xff] }
 0x6b8   :  { %17857 = vst [vmem:[#allocation10_spill] sm:$0xff] %v15692_v49  ;;  %v15695_v36 = vadd.f32 %v5911_v44, %v17858_v60 }
 0x6ba   :  { %17859 = vst [vmem:[#allocation11_spill] sm:$0xff] %v15695_v36 }
 0x6bc   :  { %v8383_v28 = vpop.f32.mrb[120].mxu0 }
 0x6bd   :  { %v8447_v23 = vpop.f32.mrb[120].mxu1  ;;  %v8384_v13 = vpop.f32.mrb[121].mxu0 }
 0x6be   :  { %v8385_v63 = vadd.f32 %v8384_v13, %v8383_v28  ;;  %v8448_v5 = vpop.f32.mrb[121].mxu1  ;;  %v8386_v53 = vpop.f32.mrb[122].mxu0  ;;  %v17871_v28 = vld [vmem:[#allocation74_spill] sm:$0xff] }
 0x6bf   :  { %v8449_v42 = vadd.f32 %v8448_v5, %v8447_v23  ;;  %v8450_v33 = vpop.f32.mrb[122].mxu1  ;;  %v8387_v38 = vpop.f32.mrb[123].mxu0 }
 0x6c0   :  { %v8388_v22 = vadd.f32 %v8387_v38, %v8386_v53  ;;  %v8451_v55 = vpop.f32.mrb[123].mxu1 }
 0x6c1   :  { %v5916_v45 = vadd.f32 %v8449_v42, %v8385_v63  ;;  %v8452_v48 = vadd.f32 %v8451_v55, %v8450_v33 }
 0x6c3   :  { %v15698_v30 = vadd.f32 %v5916_v45, %v17860_v19  ;;  %v5919_v39 = vadd.f32 %v8452_v48, %v8388_v22 }
 0x6c4   :  { %v8389_v10 = vpop.f32.mrb[124].mxu0 }
 0x6c5   :  { %17861 = vst [vmem:[#allocation127_spill] sm:$0xff] %v15698_v30  ;;  %v15701_v62 = vadd.f32 %v5919_v39, %v17862_v52  ;;  %v8453_v24 = vpop.f32.mrb[124].mxu1  ;;  %v8390_v0 = vpop.f32.mrb[125].mxu0 }
 0x6c6   :  { %v8391_v46 = vadd.f32 %v8390_v0, %v8389_v10  ;;  %v8454_v12 = vpop.f32.mrb[125].mxu1  ;;  %v8392_v56 = vpop.f32.mrb[126].mxu0 }
 0x6c7   :  { %17863 = vst [vmem:[#allocation141_spill] sm:$0xff] %v15701_v62  ;;  %v8455_v15 = vadd.f32 %v8454_v12, %v8453_v24  ;;  %v8456_v32 = vpop.f32.mrb[126].mxu1  ;;  %v8393_v6 = vpop.f32.mrb[127].mxu0 }
 0x6c8   :  { %v8394_v59 = vadd.f32 %v8393_v6, %v8392_v56  ;;  %v8457_v29 = vpop.f32.mrb[127].mxu1 }
 0x6c9   :  { %v5924_v9 = vadd.f32 %v8455_v15, %v8391_v46  ;;  %v8458_v61 = vadd.f32 %v8457_v29, %v8456_v32 }
 0x6cb   :  { %v15704_v41 = vadd.f32 %v5924_v9, %v17864_v54  ;;  %v5927_v58 = vadd.f32 %v8458_v61, %v8394_v59 }
 0x6cc   :  { %v5989_v2 = vpop.f32.mrb[128].mxu0 }
 0x6cd   :  { %17865 = vst [vmem:[#allocation12_spill] sm:$0xff] %v15704_v41  ;;  %v15707_v4 = vadd.f32 %v5927_v58, %v17866_v25  ;;  %v15710_v57 = vadd.f32 %v5989_v2, %v17868_v21  ;;  %v6102_v7 = vpop.f32.mrb[128].mxu1  ;;  %v5991_v40 = vpop.f32.mrb[129].mxu0 }
 0x6ce   :  { %v15713_v35 = vadd.f32 %v6102_v7, %v17869_v50  ;;  %v15716_v16 = vadd.f32 %v5991_v40, %v17870_v31  ;;  %v6104_v14 = vpop.f32.mrb[129].mxu1  ;;  %v5993_v44 = vpop.f32.mrb[130].mxu0 }
 0x6cf   :  { %17867 = vst [vmem:[#allocation93_spill] sm:$0xff] %v15707_v4  ;;  %v7683_v60 = vmul.f32 -1.442695, %v15710_v57  ;;  %v15720_v23 = vadd.f32 %v6104_v14, %v17871_v28  ;;  %v15723_v13 = vadd.f32 %v5993_v44, %v17868_v21  ;;  %v6106_v63 = vpop.f32.mrb[130].mxu1  ;;  %v5995_v5 = vpop.f32.mrb[131].mxu0 }
 0x6d0   :  { %v7685_v53 = vmul.f32 -1.442695, %v15713_v35  ;;  %v7684_v42 = vmul.f32 -1.442695, %v15716_v16  ;;  %v15728_v33 = vadd.f32 %v6106_v63, %v17869_v50  ;;  %v15731_v38 = vadd.f32 %v5995_v5, %v17870_v31  ;;  %v6108_v22 = vpop.f32.mrb[131].mxu1 }
 0x6d1   :  { %9647 = vpow2.f32 %v7683_v60  ;;  %v7686_v55 = vmul.f32 -1.442695, %v15720_v23  ;;  %v7687_v45 = vmul.f32 -1.442695, %v15723_v13  ;;  %v15736_v48 = vadd.f32 %v6108_v22, %v17871_v28 }
 0x6d2   :  { %9649 = vpow2.f32 %v7685_v53  ;;  %v7689_v19 = vmul.f32 -1.442695, %v15728_v33  ;;  %v7688_v39 = vmul.f32 -1.442695, %v15731_v38 }
 0x6d3   :  { %9651 = vpow2.f32 %v7684_v42  ;;  %v7690_v10 = vmul.f32 -1.442695, %v15736_v48 }
 0x6d4   :  { %9653 = vpow2.f32 %v7686_v55  ;;  %v5999_v52 = vpop.f32.mrb[132].mxu0 }
 0x6d5   :  { %9655 = vpow2.f32 %v7687_v45  ;;  %v15742_v24 = vadd.f32 %v5999_v52, %v17868_v21  ;;  %v6112_v0 = vpop.f32.mrb[132].mxu1  ;;  %v6001_v46 = vpop.f32.mrb[133].mxu0 }
 0x6d6   :  { %9657 = vpow2.f32 %v7689_v19  ;;  %v15745_v12 = vadd.f32 %v6112_v0, %v17869_v50  ;;  %v15748_v56 = vadd.f32 %v6001_v46, %v17870_v31  ;;  %v6114_v15 = vpop.f32.mrb[133].mxu1  ;;  %v6003_v32 = vpop.f32.mrb[134].mxu0 }
 0x6d7   :  { %9659 = vpow2.f32 %v7688_v39  ;;  %v7691_v6 = vmul.f32 -1.442695, %v15742_v24  ;;  %v15752_v59 = vadd.f32 %v6114_v15, %v17871_v28  ;;  %v15755_v29 = vadd.f32 %v6003_v32, %v17868_v21  ;;  %v6116_v9 = vpop.f32.mrb[134].mxu1  ;;  %v6005_v61 = vpop.f32.mrb[135].mxu0 }
 0x6d8   :  { %9661 = vpow2.f32 %v7690_v10  ;;  %v7693_v54 = vmul.f32 -1.442695, %v15745_v12  ;;  %v7692_v58 = vmul.f32 -1.442695, %v15748_v56  ;;  %v15760_v2 = vadd.f32 %v6116_v9, %v17869_v50  ;;  %v6118_v25 = vpop.f32.mrb[135].mxu1 }
 0x6d9   :  { %9663 = vpow2.f32 %v7691_v6  ;;  %v7694_v7 = vmul.f32 -1.442695, %v15752_v59  ;;  %v7695_v40 = vmul.f32 -1.442695, %v15755_v29  ;;  %v15765_v14 = vadd.f32 %v6005_v61, %v17870_v31 }
 0x6da   :  { %9665 = vpow2.f32 %v7693_v54  ;;  %v15768_v60 = vadd.f32 %v6118_v25, %v17871_v28  ;;  %v15771_v53 = vmul.f32 -1.442695, %v15760_v2 }
 0x6db   :  { %v9648_v44 = vpop.eup %9647  ;;  %9667 = vpow2.f32 %v7692_v58  ;;  %v15774_v45 = vmul.f32 -1.442695, %v15765_v14 }
 0x6dc   :  { %v9650_v63 = vpop.eup %9649  ;;  %v6599_v5 = vadd.f32 1.0, %v9648_v44  ;;  %9669 = vpow2.f32 %v7694_v7  ;;  %v6009_v42 = vpop.f32.mrb[136].mxu0  ;;  %v15786_v54 = vmul.f32 -1.442695, %v15768_v60 }
 0x6dd   :  { %v9652_v22 = vpop.eup %9651  ;;  %v6601_v55 = vadd.f32 1.0, %v9650_v63  ;;  %9671 = vpow2.f32 %v7695_v40  ;;  %v15777_v19 = vadd.f32 %v6009_v42, %v17868_v21  ;;  %v6122_v39 = vpop.f32.mrb[136].mxu1 }
 0x6de   :  { %v6011_v10 = vpop.f32.mrb[137].mxu0  ;;  %v9654_v52 = vpop.eup %9653  ;;  %9673 = vrcp.f32 %v6599_v5  ;;  %v6600_v0 = vadd.f32 1.0, %v9652_v22  ;;  %v15780_v46 = vadd.f32 %v6122_v39, %v17869_v50 }
 0x6df   :  { %v15783_v15 = vadd.f32 %v6011_v10, %v17870_v31  ;;  %v6124_v32 = vpop.f32.mrb[137].mxu1  ;;  %v6013_v6 = vpop.f32.mrb[138].mxu0  ;;  %9675 = vrcp.f32 %v6601_v55  ;;  %v6602_v61 = vadd.f32 1.0, %v9654_v52  ;;  %v15792_v63 = vmul.f32 -1.442695, %v15777_v19 }
 0x6e0   :  { %v9656_v9 = vpop.eup %9655  ;;  %v15789_v58 = vadd.f32 %v6124_v32, %v17871_v28  ;;  %v6126_v25 = vpop.f32.mrb[138].mxu1  ;;  %9677 = vrcp.f32 %v6600_v0  ;;  %v15795_v5 = vmul.f32 -1.442695, %v15780_v46  ;;  %v15801_v10 = vadd.f32 %v6013_v6, %v17868_v21 }
 0x6e1   :  { %v6015_v7 = vpop.f32.mrb[139].mxu0  ;;  %v9658_v40 = vpop.eup %9657  ;;  %v6603_v44 = vadd.f32 1.0, %v9656_v9  ;;  %9679 = vrcp.f32 %v6602_v61  ;;  %v15798_v39 = vmul.f32 -1.442695, %v15783_v15  ;;  %v15804_v32 = vadd.f32 %v6126_v25, %v17869_v50 }
 0x6e2   :  { %v6128_v42 = vpop.f32.mrb[139].mxu1  ;;  %v9660_v22 = vpop.eup %9659  ;;  %v6605_v55 = vadd.f32 1.0, %v9658_v40  ;;  %v15807_v9 = vadd.f32 %v6015_v7, %v17870_v31  ;;  %v15810_v61 = vmul.f32 -1.442695, %v15789_v58 }
 0x6e3   :  { %v9662_v52 = vpop.eup %9661  ;;  %9681 = vrcp.f32 %v6603_v44  ;;  %v6604_v0 = vadd.f32 1.0, %v9660_v22  ;;  %v15813_v40 = vadd.f32 %v6128_v42, %v17871_v28  ;;  %v15816_v44 = vmul.f32 -1.442695, %v15801_v10 }
 0x6e4   :  { %v9664_v4 = vpop.eup %9663  ;;  %9683 = vrcp.f32 %v6605_v55  ;;  %v6606_v41 = vadd.f32 1.0, %v9662_v52  ;;  %v15819_v25 = vmul.f32 -1.442695, %v15804_v32  ;;  %v6019_v7 = vpop.f32.mrb[140].mxu0  ;;  %v15822_v52 = vmul.f32 -1.442695, %v15807_v9 }
 0x6e5   :  { %v9666_v6 = vpop.eup %9665  ;;  %9685 = vrcp.f32 %v6604_v0  ;;  %v6607_v62 = vadd.f32 1.0, %v9664_v4  ;;  %v15825_v30 = vadd.f32 %v6019_v7, %v17868_v21  ;;  %v6132_v42 = vpop.f32.mrb[140].mxu1  ;;  %v15834_v1 = vmul.f32 -1.442695, %v15813_v40 }
 0x6e6   :  { %v9668_v22 = vpop.eup %9667  ;;  %9687 = vrcp.f32 %v6606_v41  ;;  %v6609_v55 = vadd.f32 1.0, %v9666_v6  ;;  %v6021_v36 = vpop.f32.mrb[141].mxu0  ;;  %v15828_v49 = vadd.f32 %v6132_v42, %v17869_v50 }
 0x6e7   :  { %v9670_v0 = vpop.eup %9669  ;;  %9689 = vrcp.f32 %v6607_v62  ;;  %v6608_v4 = vadd.f32 1.0, %v9668_v22  ;;  %v15831_v8 = vadd.f32 %v6021_v36, %v17870_v31  ;;  %v6134_v11 = vpop.f32.mrb[141].mxu1  ;;  %v15840_v37 = vmul.f32 -1.442695, %v15825_v30 }
 0x6e8   :  { %17872 = vst [vmem:[#allocation90_spill] sm:$0xff] %v15828_v49  ;;  %v6023_v41 = vpop.f32.mrb[142].mxu0  ;;  %v9672_v6 = vpop.eup %9671  ;;  %9691 = vrcp.f32 %v6609_v55  ;;  %v6610_v20 = vadd.f32 1.0, %v9670_v0  ;;  %v15837_v7 = vadd.f32 %v6134_v11, %v17871_v28  ;;  %v15843_v36 = vmul.f32 -1.442695, %v15828_v49 }
 0x6e9   :  { %17873 = vst [vmem:[#allocation129_spill] sm:$0xff] %v15831_v8  ;;  %v6136_v27 = vpop.f32.mrb[142].mxu1  ;;  %v6025_v62 = vpop.f32.mrb[143].mxu0  ;;  %9693 = vrcp.f32 %v6608_v4  ;;  %v6611_v42 = vadd.f32 1.0, %v9672_v6  ;;  %v15849_v11 = vmul.f32 -1.442695, %v15831_v8  ;;  %v15852_v43 = vadd.f32 %v6023_v41, %v17868_v21 }
 0x6ea   :  { %17874 = vst [vmem:[#allocation91_spill] sm:$0xff] %v15837_v7  ;;  %v9674_v22 = vpop.eup %9673  ;;  %v6138_v47 = vpop.f32.mrb[143].mxu1  ;;  %9695 = vrcp.f32 %v6610_v20  ;;  %v15855_v6 = vmul.f32 -1.442695, %v15837_v7  ;;  %v15858_v26 = vadd.f32 %v6136_v27, %v17869_v50  ;;  %v15861_v51 = vadd.f32 %v6025_v62, %v17870_v31 }
 0x6eb   :  { %v9676_v55 = vpop.eup %9675  ;;  %v15846_v0 = vmul.f32 %v9674_v22, %v15710_v57  ;;  %17875 = vst [vmem:[#allocation13_spill] sm:$0xff] %v15852_v43  ;;  %9697 = vrcp.f32 %v6611_v42  ;;  %v15871_v41 = vadd.f32 %v6138_v47, %v17871_v28  ;;  %v15878_v27 = vmul.f32 -1.442695, %v15852_v43 }
 0x6ec   :  { %v9678_v4 = vpop.eup %9677  ;;  %17876 = vst [vmem:[#allocation94_spill] sm:$0xff] %v15858_v26  ;;  %17877 = vst [vmem:[#allocation79_spill] sm:$0xff] %v15861_v51  ;;  %v15864_v20 = vmul.f32 %v9676_v55, %v15713_v35  ;;  %9699 = vpow2.f32 %v15771_v53  ;;  %v15881_v35 = vmul.f32 -1.442695, %v15858_v26  ;;  %v6029_v62 = vpop.f32.mrb[144].mxu0 }
 0x6ed   :  { %v9680_v57 = vpop.eup %9679  ;;  %v15867_v22 = vmul.f32 %v9678_v4, %v15716_v16  ;;  %17878 = vst [vmem:[#allocation14_spill] sm:$0xff] %v15871_v41  ;;  %9701 = vpow2.f32 %v15774_v45  ;;  %v15888_v47 = vmul.f32 -1.442695, %v15861_v51  ;;  %v6142_v53 = vpop.f32.mrb[144].mxu1 }
 0x6ee   :  { %v9682_v42 = vpop.eup %9681  ;;  %v15874_v7 = vmul.f32 %v9680_v57, %v15720_v23  ;;  %9703 = vpow2.f32 %v15786_v54  ;;  %v15891_v23 = vadd.f32 %v6029_v62, %v17868_v21  ;;  %v6031_v45 = vpop.f32.mrb[145].mxu0  ;;  %v15895_v57 = vmul.f32 -1.442695, %v15871_v41 }
 0x6ef   :  { %v9684_v16 = vpop.eup %9683  ;;  %v15884_v55 = vmul.f32 %v9682_v42, %v15723_v13  ;;  %9705 = vpow2.f32 %v15792_v63  ;;  %v15898_v26 = vadd.f32 %v6142_v53, %v17869_v50  ;;  %v15901_v13 = vadd.f32 %v6031_v45, %v17870_v31  ;;  %v6144_v54 = vpop.f32.mrb[145].mxu1 }
 0x6f0   :  { %17879 = vst [vmem:[#allocation15_spill] sm:$0xff] %v15891_v23  ;;  %v9686_v4 = vpop.eup %9685  ;;  %v6033_v42 = vpop.f32.mrb[146].mxu0  ;;  %v15904_v62 = vmul.f32 %v9684_v16, %v15728_v33  ;;  %9707 = vpow2.f32 %v15795_v5  ;;  %v15911_v63 = vadd.f32 %v6144_v54, %v17871_v28  ;;  %v15918_v49 = vmul.f32 -1.442695, %v15891_v23 }
 0x6f1   :  { %17880 = vst [vmem:[#allocation102_spill] sm:$0xff] %v15898_v26  ;;  %17881 = vst [vmem:[#allocation97_spill] sm:$0xff] %v15901_v13  ;;  %v9688_v51 = vpop.eup %9687  ;;  %v15907_v43 = vmul.f32 %v9686_v4, %v15731_v38  ;;  %v6146_v41 = vpop.f32.mrb[146].mxu1  ;;  %9709 = vpow2.f32 %v15798_v39  ;;  %v15921_v33 = vmul.f32 -1.442695, %v15898_v26 }
 0x6f2   :  { %17882 = vst [vmem:[#allocation16_spill] sm:$0xff] %v15911_v63  ;;  %v6035_v53 = vpop.f32.mrb[147].mxu0  ;;  %v9690_v8 = vpop.eup %9689  ;;  %v15914_v45 = vmul.f32 %v9688_v51, %v15736_v48  ;;  %9711 = vpow2.f32 %v15810_v61  ;;  %v15928_v4 = vmul.f32 -1.442695, %v15901_v13  ;;  %v15931_v51 = vadd.f32 %v6033_v42, %v17868_v21 }
 0x6f3   :  { %v6148_v38 = vpop.f32.mrb[147].mxu1  ;;  %v9692_v16 = vpop.eup %9691  ;;  %v15924_v5 = vmul.f32 %v9690_v8, %v15742_v24  ;;  %9713 = vpow2.f32 %v15816_v44  ;;  %v15935_v39 = vmul.f32 -1.442695, %v15911_v63  ;;  %v15938_v54 = vadd.f32 %v6146_v41, %v17869_v50 }
 0x6f4   :  { %17883 = vst [vmem:[#allocation104_spill] sm:$0xff] %v15931_v51  ;;  %v9694_v48 = vpop.eup %9693  ;;  %v15941_v8 = vadd.f32 %v6035_v53, %v17870_v31  ;;  %v15944_v61 = vmul.f32 %v9692_v16, %v15745_v12  ;;  %9715 = vpow2.f32 %v15819_v25  ;;  %v15951_v44 = vadd.f32 %v6148_v38, %v17871_v28  ;;  %v6039_v53 = vpop.f32.mrb[148].mxu0 }
 0x6f5   :  { %17884 = vst [vmem:[#allocation80_spill] sm:$0xff] %v15938_v54  ;;  %v9696_v24 = vpop.eup %9695  ;;  %v15947_v13 = vmul.f32 %v9694_v48, %v15748_v56  ;;  %9717 = vpow2.f32 %v15822_v52  ;;  %v15958_v41 = vmul.f32 -1.442695, %v15931_v51  ;;  %v15961_v12 = vmul.f32 -1.442695, %v15938_v54  ;;  %v6152_v52 = vpop.f32.mrb[148].mxu1 }
 0x6f6   :  { %17885 = vst [vmem:[#allocation108_spill] sm:$0xff] %v15941_v8  ;;  %17886 = vst [vmem:[#allocation7_spill] sm:$0xff] %v15951_v44  ;;  %v9698_v42 = vpop.eup %9697  ;;  %v15954_v63 = vmul.f32 %v9696_v24, %v15752_v59  ;;  %9719 = vpow2.f32 %v15834_v1  ;;  %v15968_v25 = vmul.f32 -1.442695, %v15941_v8  ;;  %v15971_v59 = vadd.f32 %v6039_v53, %v17868_v21  ;;  %v6041_v38 = vpop.f32.mrb[149].mxu0 }
 0x6f7   :  { %v9700_v56 = vpop.eup %9699  ;;  %v15964_v16 = vmul.f32 %v9698_v42, %v15755_v29  ;;  %9721 = vpow2.f32 %v15840_v37  ;;  %v15975_v54 = vadd.f32 %v6152_v52, %v17869_v50  ;;  %v15978_v29 = vadd.f32 %v6041_v38, %v17870_v31  ;;  %v6154_v42 = vpop.f32.mrb[149].mxu1 }
 0x6f8   :  { %17887 = vst [vmem:[#allocation17_spill] sm:$0xff] %v15954_v63  ;;  %17889 = vst [vmem:[#allocation78_spill] sm:$0xff] %v15971_v59  ;;  %v9702_v48 = vpop.eup %9701  ;;  %v6613_v24 = vadd.f32 1.0, %v9700_v56  ;;  %v6043_v1 = vpop.f32.mrb[150].mxu0  ;;  %9723 = vpow2.f32 %v15843_v36  ;;  %v15982_v53 = vmul.f32 -1.442695, %v15951_v44  ;;  %v15985_v26 = vadd.f32 %v6154_v42, %v17871_v28 }
 0x6f9   :  { %17888 = vst [vmem:[#allocation110_spill] sm:$0xff] %v15964_v16  ;;  %17890 = vst [vmem:[#allocation96_spill] sm:$0xff] %v15975_v54  ;;  %v9704_v51 = vpop.eup %9703  ;;  %v6612_v8 = vadd.f32 1.0, %v9702_v48  ;;  %v6156_v56 = vpop.f32.mrb[150].mxu1  ;;  %v15988_v38 = vmul.f32 -1.442695, %v15971_v59  ;;  %v15997_v42 = vadd.f32 %v6043_v1, %v17868_v21 }
 0x6fa   :  { %17891 = vst [vmem:[#allocation19_spill] sm:$0xff] %v15978_v29  ;;  %17892 = vst [vmem:[#allocation18_spill] sm:$0xff] %v15982_v53  ;;  %v6045_v37 = vpop.f32.mrb[151].mxu0  ;;  %v9706_v23 = vpop.eup %9705  ;;  %9725 = vrcp.f32 %v6613_v24  ;;  %v6614_v52 = vadd.f32 1.0, %v9704_v51  ;;  %v15991_v16 = vmul.f32 -1.442695, %v15975_v54  ;;  %v16000_v51 = vadd.f32 %v6156_v56, %v17869_v50 }
 0x6fb   :  { %17893 = vst [vmem:[#allocation20_spill] sm:$0xff] %v15985_v26  ;;  %17894 = vst [vmem:[#allocation21_spill] sm:$0xff] %v15988_v38  ;;  %v6158_v48 = vpop.f32.mrb[151].mxu1  ;;  %v9708_v63 = vpop.eup %9707  ;;  %9727 = vrcp.f32 %v6612_v8  ;;  %v6615_v36 = vadd.f32 1.0, %v9706_v23  ;;  %v15994_v44 = vmul.f32 -1.442695, %v15978_v29  ;;  %v16003_v59 = vadd.f32 %v6045_v37, %v17870_v31 }
 0x6fc   :  { %17895 = vst [vmem:[#allocation23_spill] sm:$0xff] %v15991_v16  ;;  %17897 = vst [vmem:[#allocation24_spill] sm:$0xff] %v15997_v42  ;;  %v9710_v53 = vpop.eup %9709  ;;  %9729 = vrcp.f32 %v6614_v52  ;;  %v6617_v24 = vadd.f32 1.0, %v9708_v63  ;;  %v16006_v23 = vmul.f32 -1.442695, %v15985_v26  ;;  %v16009_v8 = vadd.f32 %v6158_v48, %v17871_v28  ;;  %v6049_v37 = vpop.f32.mrb[152].mxu0 }
 0x6fd   :  { %17896 = vst [vmem:[#allocation22_spill] sm:$0xff] %v15994_v44  ;;  %17898 = vst [vmem:[#allocation25_spill] sm:$0xff] %v16000_v51  ;;  %v9712_v54 = vpop.eup %9711  ;;  %9731 = vrcp.f32 %v6615_v36  ;;  %v6616_v16 = vadd.f32 1.0, %v9710_v53  ;;  %v16012_v63 = vmul.f32 -1.442695, %v15997_v42  ;;  %v16021_v26 = vadd.f32 %v6049_v37, %v17868_v21  ;;  %v6162_v48 = vpop.f32.mrb[152].mxu1 }
 0x6fe   :  { %17899 = vst [vmem:[#allocation27_spill] sm:$0xff] %v16003_v59  ;;  %17900 = vst [vmem:[#allocation29_spill] sm:$0xff] %v16006_v23  ;;  %v9714_v1 = vpop.eup %9713  ;;  %9733 = vrcp.f32 %v6617_v24  ;;  %v6618_v29 = vadd.f32 1.0, %v9712_v54  ;;  %v16015_v56 = vmul.f32 -1.442695, %v16000_v51  ;;  %v6051_v23 = vpop.f32.mrb[153].mxu0  ;;  %v16024_v42 = vadd.f32 %v6162_v48, %v17869_v50 }
 0x6ff   :  { %17901 = vst [vmem:[#allocation26_spill] sm:$0xff] %v16009_v8  ;;  %17902 = vst [vmem:[#allocation31_spill] sm:$0xff] %v16012_v63  ;;  %v9716_v52 = vpop.eup %9715  ;;  %9735 = vrcp.f32 %v6616_v16  ;;  %v6619_v36 = vadd.f32 1.0, %v9714_v1  ;;  %v16018_v53 = vmul.f32 -1.442695, %v16003_v59  ;;  %v16027_v51 = vadd.f32 %v6051_v23, %v17870_v31  ;;  %v6053_v16 = vpop.f32.mrb[154].mxu0 }
 0x700   :  { %17903 = vst [vmem:[#allocation28_spill] sm:$0xff] %v16015_v56  ;;  %17905 = vst [vmem:[#allocation33_spill] sm:$0xff] %v16021_v26  ;;  %v9718_v24 = vpop.eup %9717  ;;  %9737 = vrcp.f32 %v6618_v29  ;;  %v6621_v54 = vadd.f32 1.0, %v9716_v52  ;;  %v6164_v56 = vpop.f32.mrb[153].mxu1  ;;  %v16036_v44 = vmul.f32 -1.442695, %v16021_v26 }
 0x701   :  { %17904 = vst [vmem:[#allocation116_spill] sm:$0xff] %v16018_v53  ;;  %17906 = vst [vmem:[#allocation119_spill] sm:$0xff] %v16024_v42  ;;  %v9720_v1 = vpop.eup %9719  ;;  %9739 = vrcp.f32 %v6619_v36  ;;  %v6620_v59 = vadd.f32 1.0, %v9718_v24  ;;  %v16030_v53 = vmul.f32 -1.442695, %v16009_v8  ;;  %v16033_v37 = vadd.f32 %v6164_v56, %v17871_v28  ;;  %v6166_v63 = vpop.f32.mrb[154].mxu1 }
 0x702   :  { %17907 = vst [vmem:[#allocation30_spill] sm:$0xff] %v16027_v51  ;;  %v6055_v29 = vpop.f32.mrb[155].mxu0  ;;  %v9722_v52 = vpop.eup %9721  ;;  %9741 = vrcp.f32 %v6621_v54  ;;  %v6622_v48 = vadd.f32 1.0, %v9720_v1  ;;  %v16039_v23 = vmul.f32 -1.442695, %v16024_v42  ;;  %v16045_v56 = vadd.f32 %v6053_v16, %v17868_v21 }
 0x703   :  { %17908 = vst [vmem:[#allocation35_spill] sm:$0xff] %v16030_v53  ;;  %17909 = vst [vmem:[#allocation131_spill] sm:$0xff] %v16033_v37  ;;  %v6168_v38 = vpop.f32.mrb[155].mxu1  ;;  %v9724_v36 = vpop.eup %9723  ;;  %9743 = vrcp.f32 %v6620_v59  ;;  %v6623_v24 = vadd.f32 1.0, %v9722_v52  ;;  %v16042_v8 = vmul.f32 -1.442695, %v16027_v51  ;;  %v16048_v1 = vadd.f32 %v6166_v63, %v17869_v50 }
 0x704   :  { %17910 = vst [vmem:[#allocation32_spill] sm:$0xff] %v16039_v23  ;;  %17911 = vst [vmem:[#allocation132_spill] sm:$0xff] %v16045_v56  ;;  %v9726_v53 = vpop.eup %9725  ;;  %9745 = vrcp.f32 %v6622_v48  ;;  %v6625_v54 = vadd.f32 1.0, %v9724_v36  ;;  %v16051_v26 = vadd.f32 %v6055_v29, %v17870_v31  ;;  %v16057_v59 = vmul.f32 -1.442695, %v16033_v37 }
 0x705   :  { %17912 = vst [vmem:[#allocation133_spill] sm:$0xff] %v16048_v1  ;;  %v9728_v42 = vpop.eup %9727  ;;  %v16054_v23 = vmul.f32 %v9726_v53, %v15760_v2  ;;  %9747 = vrcp.f32 %v6623_v24  ;;  %v16060_v16 = vadd.f32 %v6168_v38, %v17871_v28  ;;  %v16066_v63 = vmul.f32 -1.442695, %v16045_v56  ;;  %v6059_v2 = vpop.f32.mrb[156].mxu0 }
 0x706   :  { %17913 = vst [vmem:[#allocation37_spill] sm:$0xff] %v16051_v26  ;;  %v9730_v52 = vpop.eup %9729  ;;  %v16063_v48 = vmul.f32 %v9728_v42, %v15765_v14  ;;  %9749 = vrcp.f32 %v6625_v54  ;;  %v16069_v29 = vmul.f32 -1.442695, %v16048_v1  ;;  %v16076_v38 = vmul.f32 -1.442695, %v16051_v26  ;;  %v6172_v42 = vpop.f32.mrb[156].mxu1 }
 0x707   :  { %17914 = vst [vmem:[#allocation139_spill] sm:$0xff] %v16060_v16  ;;  %v9732_v53 = vpop.eup %9731  ;;  %v16072_v36 = vmul.f32 %v9730_v52, %v15768_v60  ;;  %9751 = vpow2.f32 %v15849_v11  ;;  %v16079_v14 = vadd.f32 %v6059_v2, %v17868_v21  ;;  %v6061_v24 = vpop.f32.mrb[157].mxu0  ;;  %v16083_v1 = vmul.f32 -1.442695, %v16060_v16 }
 0x708   :  { %v9734_v54 = vpop.eup %9733  ;;  %9753 = vpow2.f32 %v15855_v6  ;;  %v16086_v56 = vadd.f32 %v6172_v42, %v17869_v50  ;;  %v16089_v60 = vadd.f32 %v6061_v24, %v17870_v31  ;;  %v6174_v11 = vpop.f32.mrb[157].mxu1  ;;  %v16092_v2 = vmul.f32 %v9732_v53, %v15777_v19 }
 0x709   :  { %17915 = vst [vmem:[#allocation106_spill] sm:$0xff] %v16079_v14  ;;  %17916 = vst [vmem:[#allocation75_spill] sm:$0xff] %v16083_v1  ;;  %v6063_v52 = vpop.f32.mrb[158].mxu0  ;;  %v9736_v26 = vpop.eup %9735  ;;  %v16095_v37 = vmul.f32 %v9734_v54, %v15780_v46  ;;  %9755 = vpow2.f32 %v15878_v27  ;;  %v16099_v6 = vadd.f32 %v6174_v11, %v17871_v28  ;;  %v16106_v1 = vmul.f32 -1.442695, %v16079_v14 }
 0x70a   :  { %17917 = vst [vmem:[#allocation39_spill] sm:$0xff] %v16086_v56  ;;  %17918 = vst [vmem:[#allocation76_spill] sm:$0xff] %v16089_v60  ;;  %v6176_v16 = vpop.f32.mrb[158].mxu1  ;;  %v6065_v42 = vpop.f32.mrb[159].mxu0  ;;  %v16102_v24 = vmul.f32 %v9736_v26, %v15783_v15  ;;  %9757 = vpow2.f32 %v15881_v35  ;;  %v16109_v19 = vmul.f32 -1.442695, %v16086_v56  ;;  %v16119_v26 = vadd.f32 %v6063_v52, %v17868_v21 }
 0x70b   :  { %17919 = vst [vmem:[#allocation34_spill] sm:$0xff] %v16099_v6  ;;  %v9738_v51 = vpop.eup %9737  ;;  %v6178_v46 = vpop.f32.mrb[159].mxu1  ;;  %9759 = vpow2.f32 %v15888_v47  ;;  %v16116_v54 = vmul.f32 -1.442695, %v16089_v60  ;;  %v16123_v35 = vmul.f32 -1.442695, %v16099_v6  ;;  %v16126_v11 = vadd.f32 %v6176_v16, %v17869_v50 }
 0x70c   :  { %v9740_v53 = vpop.eup %9739  ;;  %v16112_v27 = vmul.f32 %v9738_v51, %v15789_v58  ;;  %17920 = vst [vmem:[#allocation77_spill] sm:$0xff] %v16119_v26  ;;  %9761 = vpow2.f32 %v15895_v57  ;;  %v16129_v58 = vadd.f32 %v6065_v42, %v17870_v31  ;;  %v16139_v21 = vadd.f32 %v6178_v46, %v17871_v28 }
 0x70d   :  { %v9742_v15 = vpop.eup %9741  ;;  %17921 = vst [vmem:[#allocation36_spill] sm:$0xff] %v16126_v11  ;;  %v16132_v47 = vmul.f32 %v9740_v53, %v15801_v10  ;;  %9763 = vpow2.f32 %v15918_v49  ;;  %v16146_v50 = vmul.f32 -1.442695, %v16119_v26  ;;  %v16149_v31 = vmul.f32 -1.442695, %v16126_v11  ;;  %v6215_v10 = vpop.f32.mrb[160].mxu0 }
 0x70e   :  { %17922 = vst [vmem:[#allocation95_spill] sm:$0xff] %v16129_v58  ;;  %v9744_v51 = vpop.eup %9743  ;;  %v16135_v60 = vmul.f32 %v9742_v15, %v15804_v32  ;;  %17923 = vst [vmem:[#allocation98_spill] sm:$0xff] %v16139_v21  ;;  %9765 = vpow2.f32 %v15921_v33  ;;  %v16156_v49 = vmul.f32 -1.442695, %v16129_v58  ;;  %v6216_v28 = vadd.f32 %v6215_v10, %v10857_v18  ;;  %v6217_v33 = vpop.f32.mrb[161].mxu0 }
 0x70f   :  { %v9746_v57 = vpop.eup %9745  ;;  %v16142_v52 = vmul.f32 %v9744_v51, %v15807_v9  ;;  %9767 = vpow2.f32 %v15928_v4  ;;  %v6328_v9 = vpop.f32.mrb[160].mxu1  ;;  %v16163_v46 = vmul.f32 -1.442695, %v16139_v21 }
 0x710   :  { %v9748_v32 = vpop.eup %9747  ;;  %v16152_v16 = vmul.f32 %v9746_v57, %v15813_v40  ;;  %9769 = vpow2.f32 %v15935_v39  ;;  %v6329_v53 = vadd.f32 %v6328_v9, %v10860_v34  ;;  %v6218_v40 = vadd.f32 %v6217_v33, %v10863_v3  ;;  %v6330_v15 = vpop.f32.mrb[161].mxu1 }
 0x711   :  { %v16159_v42 = vpop.eup %9749  ;;  %17924 = vst [vmem:[#allocation81_spill] sm:$0xff] %v16163_v46  ;;  %v6219_v4 = vpop.f32.mrb[162].mxu0  ;;  %v16168_v57 = vmul.f32 %v9748_v32, %v15825_v30  ;;  %9771 = vpow2.f32 %v15958_v41  ;;  %v16172_v10 = vadd.f32 %v15846_v0, %v6216_v28  ;;  %v6331_v39 = vadd.f32 %v6330_v15, %v10866_v17  ;;  %v17945_v46 = vld [vmem:[#allocation16_spill] sm:$0xff] }
 0x712   :  { %v9752_v51 = vpop.eup %9751  ;;  %v6332_v58 = vpop.f32.mrb[162].mxu1  ;;  %9773 = vpow2.f32 %v15961_v12  ;;  %v16177_v9 = vadd.f32 %v15864_v20, %v6329_v53  ;;  %v16180_v33 = vadd.f32 %v15867_v22, %v6218_v40  ;;  %v6220_v28 = vadd.f32 %v6219_v4, %v10857_v18 }
 0x713   :  { %v6221_v21 = vpop.f32.mrb[163].mxu0  ;;  %v9754_v11 = vpop.eup %9753  ;;  %v6624_v26 = vadd.f32 1.0, %v9752_v51  ;;  %9775 = vpow2.f32 %v15968_v25  ;;  %v16184_v0 = vadd.f32 %v15874_v7, %v6331_v39  ;;  %v6333_v12 = vadd.f32 %v6332_v58, %v10860_v34 }
 0x714   :  { %v6334_v30 = vpop.f32.mrb[163].mxu1  ;;  %v9756_v32 = vpop.eup %9755  ;;  %v6626_v41 = vadd.f32 1.0, %v9754_v11  ;;  %v6222_v20 = vadd.f32 %v6221_v21, %v10863_v3  ;;  %v16190_v40 = vadd.f32 %v15884_v55, %v6220_v28 }
 0x715   :  { %v9758_v15 = vpop.eup %9757  ;;  %9777 = vrcp.f32 %v6624_v26  ;;  %v6627_v51 = vadd.f32 1.0, %v9756_v32  ;;  %v6335_v25 = vadd.f32 %v6334_v30, %v10866_v17  ;;  %v16194_v4 = vadd.f32 %v15904_v62, %v6333_v12  ;;  %v6225_v39 = vpop.f32.mrb[164].mxu0 }
 0x716   :  { %v9760_v53 = vpop.eup %9759  ;;  %9779 = vrcp.f32 %v6626_v41  ;;  %v6629_v22 = vadd.f32 1.0, %v9758_v15  ;;  %v6860_v26 = vadd.f32 %v15907_v43, %v6222_v20  ;;  %v6919_v32 = vpack.c.bf16 %v16190_v40, %v16172_v10  ;;  %v6338_v41 = vpop.f32.mrb[164].mxu1 }
 0x717   :  { %v9762_v11 = vpop.eup %9761  ;;  %9781 = vrcp.f32 %v6627_v51  ;;  %v6628_v7 = vadd.f32 1.0, %v9760_v53  ;;  %v6862_v55 = vadd.f32 %v15914_v45, %v6335_v25  ;;  %v6227_v28 = vpop.f32.mrb[165].mxu0  ;;  %v6921_v62 = vpack.c.bf16 %v16194_v4, %v16177_v9 }
 0x718   :  { %v9764_v58 = vpop.eup %9763  ;;  %9783 = vrcp.f32 %v6629_v22  ;;  %v6630_v21 = vadd.f32 1.0, %v9762_v11  ;;  %v6226_v51 = vadd.f32 %v6225_v39, %v10857_v18  ;;  %v6340_v43 = vpop.f32.mrb[165].mxu1  ;;  %v6339_v22 = vadd.f32 %v6338_v41, %v10860_v34 }
 0x719   :  { %v9766_v30 = vpop.eup %9765  ;;  %9785 = vrcp.f32 %v6628_v7  ;;  %v6631_v15 = vadd.f32 1.0, %v9764_v58  ;;  %v6229_v12 = vpop.f32.mrb[166].mxu0  ;;  %v6228_v10 = vadd.f32 %v6227_v28, %v10863_v3  ;;  %v6341_v9 = vadd.f32 %v6340_v43, %v10866_v17 }
 0x71a   :  { %v9768_v20 = vpop.eup %9767  ;;  %9787 = vrcp.f32 %v6630_v21  ;;  %v6633_v53 = vadd.f32 1.0, %v9766_v30  ;;  %v6342_v45 = vpop.f32.mrb[166].mxu1  ;;  %v16206_v7 = vadd.f32 %v15924_v5, %v6226_v51  ;;  %v16210_v21 = vadd.f32 %v15944_v61, %v6339_v22 }
 0x71b   :  { %v6231_v40 = vpop.f32.mrb[167].mxu0  ;;  %v9770_v25 = vpop.eup %9769  ;;  %9789 = vrcp.f32 %v6631_v15  ;;  %v6632_v11 = vadd.f32 1.0, %v9768_v20  ;;  %v16213_v41 = vadd.f32 %v15947_v13, %v6228_v10  ;;  %v17925_v15 = vld [vmem:[#allocation17_spill] sm:$0xff]  ;;  %v6230_v5 = vadd.f32 %v6229_v12, %v10857_v18  ;;  %v17926_v13 = vld [vmem:[#allocation110_spill] sm:$0xff] }
 0x71c   :  { %v6344_v4 = vpop.f32.mrb[167].mxu1  ;;  %v9772_v39 = vpop.eup %9771  ;;  %9791 = vrcp.f32 %v6633_v53  ;;  %v6634_v58 = vadd.f32 1.0, %v9770_v25  ;;  %v16216_v20 = vadd.f32 %v17925_v15, %v6341_v9  ;;  %v6343_v53 = vadd.f32 %v6342_v45, %v10860_v34  ;;  %v17927_v15 = vld [vmem:[#allocation90_spill] sm:$0xff] }
 0x71d   :  { %v9774_v28 = vpop.eup %9773  ;;  %9793 = vrcp.f32 %v6632_v11  ;;  %v6635_v30 = vadd.f32 1.0, %v9772_v39  ;;  %v6920_v25 = vpack.c.bf16 %v6860_v26, %v16180_v33  ;;  %v16222_v10 = vadd.f32 %v17926_v13, %v6230_v5  ;;  %v6235_v39 = vpop.f32.mrb[168].mxu0 }
 0x71e   :  { %v9776_v51 = vpop.eup %9775  ;;  %9795 = vrcp.f32 %v6634_v58  ;;  %v6637_v43 = vadd.f32 1.0, %v9774_v28  ;;  %v6922_v11 = vpack.c.bf16 %v6862_v55, %v16184_v0  ;;  %v16227_v12 = vmul.f32 %v16159_v42, %v17927_v15  ;;  %v6348_v26 = vpop.f32.mrb[168].mxu1  ;;  %v17931_v15 = vld [vmem:[#allocation13_spill] sm:$0xff]  ;;  %v17933_v0 = vld [vmem:[#allocation94_spill] sm:$0xff] }
 0x71f   :  { %v9778_v61 = vpop.eup %9777  ;;  %9797 = vrcp.f32 %v6635_v30  ;;  %v6636_v22 = vadd.f32 1.0, %v9776_v51  ;;  %v16230_v58 = vadd.f32 %v16054_v23, %v6343_v53  ;;  %6983 = vmatprep.mubr.bf16.mxu0 %v6920_v25  ;;  %v6232_v33 = vadd.f32 %v6231_v40, %v10863_v3  ;;  %v6237_v45 = vpop.f32.mrb[169].mxu0  ;;  %v17928_v30 = vld [vmem:[#allocation129_spill] sm:$0xff]  ;;  %v17930_v40 = vld [vmem:[#allocation18_spill] sm:$0xff]  ;;  %v17934_v25 = vld [vmem:[#allocation23_spill] sm:$0xff] }
 0x720   :  { %v9780_v9 = vpop.eup %9779  ;;  %9799 = vrcp.f32 %v6637_v43  ;;  %v16234_v5 = vmul.f32 %v9778_v61, %v17928_v30  ;;  %7080 = vmatprep.mubr.bf16.mxu1 %v6922_v11  ;;  %v6345_v42 = vadd.f32 %v6344_v4, %v10866_v17  ;;  %6984 = vmatmul.mubr.bf16.vlgmr.msra.gmra.mrb[192].mxu0 %v6919_v32  ;;  %v6350_v55 = vpop.f32.mrb[169].mxu1  ;;  %v17929_v43 = vld [vmem:[#allocation91_spill] sm:$0xff]  ;;  %v17932_v32 = vld [vmem:[#allocation21_spill] sm:$0xff] }
 0x721   :  { %v9782_v28 = vpop.eup %9781  ;;  %9801 = vrcp.f32 %v6636_v22  ;;  %v6239_v23 = vpop.f32.mrb[170].mxu0  ;;  %v16240_v53 = vmul.f32 %v9780_v9, %v17929_v43  ;;  %v6868_v61 = vadd.f32 %v16063_v48, %v6232_v33  ;;  %7081 = vmatmul.mubr.bf16.vlgmr.msra.gmra.mrb[192].mxu1 %v6921_v62  ;;  %v6236_v9 = vadd.f32 %v6235_v39, %v10857_v18 }
 0x722   :  { %v9784_v51 = vpop.eup %9783  ;;  %9803 = vpow2.f32 %v17930_v40  ;;  %v6352_v22 = vpop.f32.mrb[170].mxu1  ;;  %v16247_v4 = vmul.f32 %v9782_v28, %v17931_v15  ;;  %v6870_v30 = vadd.f32 %v16072_v36, %v6345_v42  ;;  %v6349_v48 = vadd.f32 %v6348_v26, %v10860_v34  ;;  %v17935_v28 = vld [vmem:[#allocation79_spill] sm:$0xff] }
 0x723   :  { %v6241_v13 = vpop.f32.mrb[171].mxu0  ;;  %v9786_v11 = vpop.eup %9785  ;;  %9805 = vpow2.f32 %v17932_v32  ;;  %v16253_v6 = vmul.f32 %v9784_v51, %v17933_v0  ;;  %v6238_v62 = vadd.f32 %v6237_v45, %v10863_v3  ;;  %v17936_v32 = vld [vmem:[#allocation22_spill] sm:$0xff]  ;;  %v16263_v36 = vadd.f32 %v16092_v2, %v6236_v9  ;;  %v17940_v2 = vld [vmem:[#allocation31_spill] sm:$0xff] }
 0x724   :  { %v6354_v43 = vpop.f32.mrb[171].mxu1  ;;  %v9788_v40 = vpop.eup %9787  ;;  %9807 = vpow2.f32 %v17934_v25  ;;  %v16259_v15 = vmul.f32 %v9786_v11, %v17935_v28  ;;  %v6351_v39 = vadd.f32 %v6350_v55, %v10866_v17  ;;  %v17937_v0 = vld [vmem:[#allocation14_spill] sm:$0xff]  ;;  %v17938_v25 = vld [vmem:[#allocation29_spill] sm:$0xff]  ;;  %v16271_v26 = vadd.f32 %v16095_v37, %v6349_v48  ;;  %v17939_v28 = vld [vmem:[#allocation15_spill] sm:$0xff] }
 0x725   :  { %v9790_v33 = vpop.eup %9789  ;;  %9809 = vpow2.f32 %v17936_v32  ;;  %v16267_v51 = vmul.f32 %v9788_v40, %v17937_v0  ;;  %v16274_v45 = vadd.f32 %v16102_v24, %v6238_v62  ;;  %v6240_v9 = vadd.f32 %v6239_v23, %v10857_v18  ;;  %v6245_v40 = vpop.f32.mrb[172].mxu0  ;;  %v17942_v37 = vld [vmem:[#allocation28_spill] sm:$0xff] }
 0x726   :  { %v9792_v42 = vpop.eup %9791  ;;  %9811 = vpow2.f32 %v17938_v25  ;;  %v16277_v32 = vmul.f32 %v9790_v33, %v17939_v28  ;;  %v16281_v55 = vadd.f32 %v16112_v27, %v6351_v39  ;;  %v17941_v25 = vld [vmem:[#allocation102_spill] sm:$0xff]  ;;  %v6353_v24 = vadd.f32 %v6352_v22, %v10860_v34  ;;  %v6358_v62 = vpop.f32.mrb[172].mxu1  ;;  %v17944_v27 = vld [vmem:[#allocation116_spill] sm:$0xff] }
 0x727   :  { %v9794_v11 = vpop.eup %9793  ;;  %9813 = vpow2.f32 %v17940_v2  ;;  %v16285_v56 = vmul.f32 %v9792_v42, %v17941_v25  ;;  %v6924_v48 = vpack.c.bf16 %v6868_v61, %v16213_v41  ;;  %v6247_v33 = vpop.f32.mrb[173].mxu0  ;;  %v17943_v2 = vld [vmem:[#allocation97_spill] sm:$0xff]  ;;  %v16295_v23 = vadd.f32 %v16132_v47, %v6240_v9  ;;  %v17946_v41 = vld [vmem:[#allocation35_spill] sm:$0xff] }
 0x728   :  { %v9796_v0 = vpop.eup %9795  ;;  %9815 = vpow2.f32 %v17942_v37  ;;  %v16291_v14 = vmul.f32 %v9794_v11, %v17943_v2  ;;  %v6926_v39 = vpack.c.bf16 %v6870_v30, %v16216_v20  ;;  %v6360_v42 = vpop.f32.mrb[173].mxu1  ;;  %v16303_v61 = vadd.f32 %v16135_v60, %v6353_v24  ;;  %v17947_v20 = vld [vmem:[#allocation104_spill] sm:$0xff] }
 0x729   :  { %v9798_v28 = vpop.eup %9797  ;;  %9817 = vpow2.f32 %v17944_v27  ;;  %v6249_v25 = vpop.f32.mrb[174].mxu0  ;;  %v16299_v22 = vmul.f32 %v9796_v0, %v17945_v46  ;;  %6991 = vmatprep.mubr.bf16.mxu0 %v6924_v48  ;;  %v6242_v11 = vadd.f32 %v6241_v13, %v10863_v3  ;;  %v6927_v46 = vpack.c.bf16 %v16295_v23, %v16263_v36  ;;  %v17949_v24 = vld [vmem:[#allocation80_spill] sm:$0xff] }
 0x72a   :  { %v9800_v37 = vpop.eup %9799  ;;  %9819 = vpow2.f32 %v17946_v41  ;;  %v6362_v2 = vpop.f32.mrb[174].mxu1  ;;  %v16311_v30 = vmul.f32 %v9798_v28, %v17947_v20  ;;  %7088 = vmatprep.mubr.bf16.mxu1 %v6926_v39  ;;  %v6355_v60 = vadd.f32 %v6354_v43, %v10866_v17  ;;  %v17948_v9 = vpack.c.bf16 %v16222_v10, %v16206_v7  ;;  %v17950_v41 = vld [vmem:[#allocation32_spill] sm:$0xff] }
 0x72b   :  { %v16306_v27 = vpop.f32.mrb[175].mxu0  ;;  %v16308_v47 = vpop.eup %9801  ;;  %9821 = vpow2.f32 %v16036_v44  ;;  %v16321_v48 = vmul.f32 %v9800_v37, %v17949_v24  ;;  %v6929_v44 = vpack.c.bf16 %v16303_v61, %v16271_v26  ;;  %v6876_v28 = vadd.f32 %v16142_v52, %v6242_v11 }
 0x72c   :  { %6992 = vmatmul.mubr.bf16.gmra.mrb[196].mxu0 %v17948_v9  ;;  %v6364_v13 = vpop.f32.mrb[175].mxu1  ;;  %v9804_v0 = vpop.eup %9803  ;;  %9823 = vpow2.f32 %v17950_v41  ;;  %v17951_v39 = vpack.c.bf16 %v16230_v58, %v16210_v21  ;;  %v6878_v7 = vadd.f32 %v16152_v16, %v6355_v60  ;;  %v6246_v10 = vadd.f32 %v6245_v40, %v10857_v18 }
 0x72d   :  { %v9806_v43 = vpop.eup %9805  ;;  %v6638_v20 = vadd.f32 1.0, %v9804_v0  ;;  %9825 = vpow2.f32 %v16042_v8  ;;  %v6359_v24 = vadd.f32 %v6358_v62, %v10860_v34  ;;  %v6248_v52 = vadd.f32 %v6247_v33, %v10863_v3  ;;  %v6255_v0 = vpop.f32.mrb[176].mxu0 }
 0x72e   :  { %7089 = vmatmul.mubr.bf16.gmra.mrb[196].mxu1 %v17951_v39  ;;  %v9808_v37 = vpop.eup %9807  ;;  %v6639_v9 = vadd.f32 1.0, %v9806_v43  ;;  %9827 = vpow2.f32 %v16057_v59  ;;  %v16337_v58 = vadd.f32 %v16168_v57, %v6246_v10  ;;  %v6361_v8 = vadd.f32 %v6360_v42, %v10866_v17  ;;  %v6368_v62 = vpop.f32.mrb[176].mxu1 }
 0x72f   :  { %v9810_v11 = vpop.eup %9809  ;;  %9829 = vrcp.f32 %v6638_v20  ;;  %v6641_v21 = vadd.f32 1.0, %v9808_v37  ;;  %v16341_v60 = vadd.f32 %v16227_v12, %v6359_v24  ;;  %v16344_v59 = vadd.f32 %v16234_v5, %v6248_v52  ;;  %v6257_v33 = vpop.f32.mrb[177].mxu0 }
 0x730   :  { %v9812_v16 = vpop.eup %9811  ;;  %9831 = vrcp.f32 %v6639_v9  ;;  %v6640_v40 = vadd.f32 1.0, %v9810_v11  ;;  %v16347_v57 = vadd.f32 %v16240_v53, %v6361_v8  ;;  %v6250_v42 = vadd.f32 %v6249_v25, %v10857_v18  ;;  %v6370_v43 = vpop.f32.mrb[177].mxu1 }
 0x731   :  { %v9814_v41 = vpop.eup %9813  ;;  %9833 = vrcp.f32 %v6641_v21  ;;  %v6642_v39 = vadd.f32 1.0, %v9812_v16  ;;  %v16350_v20 = vpop.f32.mrb[178].mxu0  ;;  %v6363_v37 = vadd.f32 %v6362_v2, %v10860_v34  ;;  %v6928_v5 = vpack.c.bf16 %v6876_v28, %v16274_v45 }
 0x732   :  { %v9816_v10 = vpop.eup %9815  ;;  %9835 = vrcp.f32 %v6640_v40  ;;  %v6643_v12 = vadd.f32 1.0, %v9814_v41  ;;  %v16354_v9 = vpop.f32.mrb[178].mxu1  ;;  %v16359_v11 = vadd.f32 %v16247_v4, %v6250_v42  ;;  %v6930_v25 = vpack.c.bf16 %v6878_v7, %v16281_v55 }
 0x733   :  { %v16356_v24 = vpop.f32.mrb[179].mxu0  ;;  %v9818_v52 = vpop.eup %9817  ;;  %9837 = vrcp.f32 %v6642_v39  ;;  %v6645_v53 = vadd.f32 1.0, %v9816_v10  ;;  %v16365_v2 = vadd.f32 %v16253_v6, %v6363_v37  ;;  %6999 = vmatprep.mubr.bf16.mxu0 %v6928_v5  ;;  %v6252_v45 = vadd.f32 %v16306_v27, %v10863_v3 }
 0x734   :  { %v16362_v21 = vpop.f32.mrb[179].mxu1  ;;  %v9820_v8 = vpop.eup %9819  ;;  %9839 = vrcp.f32 %v6643_v12  ;;  %v6644_v16 = vadd.f32 1.0, %v9818_v52  ;;  %v6931_v4 = vpack.c.bf16 %v16359_v11, %v16337_v58  ;;  %7096 = vmatprep.mubr.bf16.mxu1 %v6930_v25  ;;  %v6365_v55 = vadd.f32 %v6364_v13, %v10866_v17  ;;  %7000 = vmatmul.mubr.bf16.gmra.mrb[200].mxu0 %v6927_v46  ;;  %v17960_v11 = vld [vmem:[#allocation25_spill] sm:$0xff] }
 0x735   :  { %v9822_v28 = vpop.eup %9821  ;;  %9841 = vrcp.f32 %v6645_v53  ;;  %v6646_v40 = vadd.f32 1.0, %v9820_v8  ;;  %v6933_v41 = vpack.c.bf16 %v16365_v2, %v16341_v60  ;;  %v6884_v27 = vadd.f32 %v16259_v15, %v6252_v45  ;;  %v16383_v23 = vpop.f32.mrb[180].mxu0  ;;  %v17953_v45 = vld [vmem:[#allocation7_spill] sm:$0xff] }
 0x736   :  { %v9824_v7 = vpop.eup %9823  ;;  %9843 = vrcp.f32 %v6644_v16  ;;  %v6647_v6 = vadd.f32 1.0, %v9822_v28  ;;  %7097 = vmatmul.mubr.bf16.gmra.mrb[200].mxu1 %v6929_v44  ;;  %v6886_v13 = vadd.f32 %v16267_v51, %v6365_v55  ;;  %v6256_v36 = vadd.f32 %v6255_v0, %v10857_v18  ;;  %v16387_v37 = vpop.f32.mrb[180].mxu1  ;;  %v17961_v60 = vld [vmem:[#allocation27_spill] sm:$0xff] }
 0x737   :  { %v9826_v39 = vpop.eup %9825  ;;  %9845 = vrcp.f32 %v6646_v40  ;;  %v6649_v42 = vadd.f32 1.0, %v9824_v7  ;;  %v6369_v12 = vadd.f32 %v6368_v62, %v10860_v34  ;;  %v6258_v15 = vadd.f32 %v6257_v33, %v10863_v3  ;;  %v16389_v26 = vpop.f32.mrb[181].mxu0  ;;  %v17952_v62 = vld [vmem:[#allocation108_spill] sm:$0xff]  ;;  %v17954_v7 = vld [vmem:[#allocation78_spill] sm:$0xff] }
 0x738   :  { %v9828_v46 = vpop.eup %9827  ;;  %9847 = vrcp.f32 %v6647_v6  ;;  %v6648_v10 = vadd.f32 1.0, %v9826_v39  ;;  %v16392_v51 = vadd.f32 %v16277_v32, %v6256_v36  ;;  %v6371_v0 = vadd.f32 %v6370_v43, %v10866_v17  ;;  %v16395_v5 = vpop.f32.mrb[181].mxu1  ;;  %v17955_v36 = vld [vmem:[#allocation96_spill] sm:$0xff] }
 0x739   :  { %v9830_v61 = vpop.eup %9829  ;;  %9849 = vrcp.f32 %v6649_v42  ;;  %v6650_v44 = vadd.f32 1.0, %v9828_v46  ;;  %v16397_v52 = vpop.f32.mrb[182].mxu0  ;;  %v6828_v33 = vmul.f32 %v16308_v47, %v17952_v62  ;;  %v16402_v25 = vadd.f32 %v16285_v56, %v6369_v12  ;;  %v17956_v12 = vld [vmem:[#allocation19_spill] sm:$0xff] }
 0x73a   :  { %v9832_v53 = vpop.eup %9831  ;;  %9851 = vrcp.f32 %v6648_v10  ;;  %v16405_v8 = vadd.f32 %v16291_v14, %v6258_v15  ;;  %v16407_v16 = vpop.f32.mrb[182].mxu1  ;;  %v6830_v28 = vmul.f32 %v9830_v61, %v17953_v45  ;;  %v16413_v40 = vadd.f32 %v16299_v22, %v6371_v0  ;;  %v17958_v61 = vld [vmem:[#allocation75_spill] sm:$0xff] }
 0x73b   :  { %v16409_v32 = vpop.f32.mrb[183].mxu0  ;;  %v9834_v43 = vpop.eup %9833  ;;  %9853 = vrcp.f32 %v6650_v44  ;;  %v6260_v47 = vadd.f32 %v16350_v20, %v10857_v18  ;;  %v6831_v14 = vmul.f32 %v9832_v53, %v17954_v7  ;;  %v6373_v6 = vadd.f32 %v16354_v9, %v10860_v34 }
 0x73c   :  { %v16417_v55 = vpop.f32.mrb[183].mxu1  ;;  %v9836_v56 = vpop.eup %9835  ;;  %9855 = vpow2.f32 %v16066_v63  ;;  %v6932_v39 = vpack.c.bf16 %v6884_v27, %v16344_v59  ;;  %v6833_v46 = vmul.f32 %v9834_v43, %v17955_v36  ;;  %v6934_v20 = vpack.c.bf16 %v6886_v13, %v16347_v57  ;;  %v17957_v27 = vld [vmem:[#allocation20_spill] sm:$0xff] }
 0x73d   :  { %v9838_v42 = vpop.eup %9837  ;;  %9857 = vpow2.f32 %v16069_v29  ;;  %v16427_v22 = vadd.f32 %v16311_v30, %v6260_v47  ;;  %v6832_v15 = vmul.f32 %v9836_v56, %v17956_v12  ;;  %v16433_v63 = vadd.f32 %v16321_v48, %v6373_v6  ;;  %v17962_v56 = vld [vmem:[#allocation26_spill] sm:$0xff]  ;;  %v17964_v12 = vld [vmem:[#allocation119_spill] sm:$0xff] }
 0x73e   :  { %v9840_v10 = vpop.eup %9839  ;;  %9859 = vpow2.f32 %v16076_v38  ;;  %7007 = vmatprep.mubr.bf16.mxu0 %v6932_v39  ;;  %v6262_v59 = vadd.f32 %v16356_v24, %v10863_v3  ;;  %v6834_v29 = vmul.f32 %v9838_v42, %v17957_v27  ;;  %7104 = vmatprep.mubr.bf16.mxu1 %v6934_v20  ;;  %v6375_v57 = vadd.f32 %v16362_v21, %v10866_v17  ;;  %v16446_v38 = vpop.f32.mrb[184].mxu0  ;;  %v17959_v24 = vld [vmem:[#allocation24_spill] sm:$0xff]  ;;  %v17963_v42 = vld [vmem:[#allocation33_spill] sm:$0xff] }
 0x73f   :  { %v9842_v9 = vpop.eup %9841  ;;  %9861 = vpow2.f32 %v17958_v61  ;;  %v6935_v30 = vpack.c.bf16 %v16427_v22, %v16392_v51  ;;  %7008 = vmatmul.mubr.bf16.gmra.mrb[204].mxu0 %v6931_v4  ;;  %v6835_v13 = vmul.f32 %v9840_v10, %v17959_v24  ;;  %v6937_v44 = vpack.c.bf16 %v16433_v63, %v16402_v25  ;;  %7105 = vmatmul.mubr.bf16.gmra.mrb[204].mxu1 %v6933_v41  ;;  %v16455_v21 = vpop.f32.mrb[184].mxu1 }
 0x740   :  { %v9844_v48 = vpop.eup %9843  ;;  %9863 = vpow2.f32 %v16106_v1  ;;  %v6892_v0 = vadd.f32 %v6828_v33, %v6262_v59  ;;  %v16457_v53 = vpop.f32.mrb[185].mxu0  ;;  %v6837_v4 = vmul.f32 %v9842_v9, %v17960_v11  ;;  %v6894_v62 = vadd.f32 %v6830_v28, %v6375_v57  ;;  %v17965_v9 = vld [vmem:[#allocation30_spill] sm:$0xff]  ;;  %v17966_v57 = vld [vmem:[#allocation81_spill] sm:$0xff] }
 0x741   :  { %v9846_v58 = vpop.eup %9845  ;;  %9865 = vpow2.f32 %v16109_v19  ;;  %v6266_v1 = vadd.f32 %v16383_v23, %v10857_v18  ;;  %v16463_v43 = vpop.f32.mrb[185].mxu1  ;;  %v6836_v2 = vmul.f32 %v9844_v48, %v17961_v60  ;;  %v6379_v41 = vadd.f32 %v16387_v37, %v10860_v34 }
 0x742   :  { %v16465_v33 = vpop.f32.mrb[186].mxu0  ;;  %v9848_v45 = vpop.eup %9847  ;;  %9867 = vpow2.f32 %v16116_v54  ;;  %v6268_v47 = vadd.f32 %v16389_v26, %v10863_v3  ;;  %v6838_v7 = vmul.f32 %v9846_v58, %v17962_v56  ;;  %v6381_v54 = vadd.f32 %v16395_v5, %v10866_v17 }
 0x743   :  { %v16473_v19 = vpop.f32.mrb[186].mxu1  ;;  %v16475_v28 = vpop.f32.mrb[187].mxu0  ;;  %9869 = vpow2.f32 %v16123_v35  ;;  %v16479_v6 = vadd.f32 %v6831_v14, %v6266_v1  ;;  %v6839_v36 = vmul.f32 %v9848_v45, %v17963_v42  ;;  %v16487_v26 = vadd.f32 %v6833_v46, %v6379_v41 }
 0x744   :  { %v9850_v23 = vpop.eup %9849  ;;  %v16483_v39 = vpop.f32.mrb[187].mxu1  ;;  %9871 = vpow2.f32 %v16146_v50  ;;  %v16489_v20 = vadd.f32 %v6832_v15, %v6268_v47  ;;  %v16493_v35 = vadd.f32 %v6834_v29, %v6381_v54  ;;  %v6270_v5 = vadd.f32 %v16397_v52, %v10857_v18 }
 0x745   :  { %v9852_v37 = vpop.eup %9851  ;;  %v6841_v59 = vmul.f32 %v9850_v23, %v17964_v12  ;;  %9873 = vpow2.f32 %v16149_v31  ;;  %v6383_v50 = vadd.f32 %v16407_v16, %v10860_v34  ;;  %v6936_v46 = vpack.c.bf16 %v6892_v0, %v16405_v8  ;;  %v16506_v48 = vpop.f32.mrb[188].mxu0 }
 0x746   :  { %v9854_v10 = vpop.eup %9853  ;;  %v6840_v27 = vmul.f32 %v9852_v37, %v17965_v9  ;;  %9875 = vpow2.f32 %v16156_v49  ;;  %v16503_v31 = vadd.f32 %v6835_v13, %v6270_v5  ;;  %v6938_v29 = vpack.c.bf16 %v6894_v62, %v16413_v40  ;;  %v16514_v16 = vpop.f32.mrb[188].mxu1 }
 0x747   :  { %v9856_v14 = vpop.eup %9855  ;;  %9877 = vpow2.f32 %v17966_v57  ;;  %v16508_v58 = vadd.f32 %v6837_v4, %v6383_v50  ;;  %7015 = vmatprep.mubr.bf16.mxu0 %v6936_v46  ;;  %v6272_v49 = vadd.f32 %v16409_v32, %v10863_v3  ;;  %v6385_v8 = vadd.f32 %v16417_v55, %v10866_v17  ;;  %v16516_v0 = vpop.f32.mrb[189].mxu0  ;;  %v17968_v57 = vld [vmem:[#allocation132_spill] sm:$0xff] }
 0x748   :  { %v9858_v15 = vpop.eup %9857  ;;  %v6651_v61 = vadd.f32 1.0, %v9856_v14  ;;  %v6939_v11 = vpack.c.bf16 %v16503_v31, %v16479_v6  ;;  %7112 = vmatprep.mubr.bf16.mxu1 %v6938_v29  ;;  %7016 = vmatmul.mubr.bf16.gmra.mrb[208].mxu0 %v6935_v30  ;;  %v6276_v32 = vadd.f32 %v16446_v38, %v10857_v18  ;;  %v16525_v4 = vpop.f32.mrb[189].mxu1  ;;  %v6278_v25 = vadd.f32 %v16457_v53, %v10863_v3 }
 0x749   :  { %v9860_v52 = vpop.eup %9859  ;;  %v6653_v24 = vadd.f32 1.0, %v9858_v15  ;;  %v16527_v55 = vpop.f32.mrb[190].mxu0  ;;  %v6941_v45 = vpack.c.bf16 %v16508_v58, %v16487_v26  ;;  %v6900_v60 = vadd.f32 %v6836_v2, %v6272_v49  ;;  %7113 = vmatmul.mubr.bf16.gmra.mrb[208].mxu1 %v6937_v44  ;;  %v6902_v41 = vadd.f32 %v6838_v7, %v6385_v8  ;;  %v17967_v44 = vld [vmem:[#allocation131_spill] sm:$0xff]  ;;  %v17970_v49 = vld [vmem:[#allocation37_spill] sm:$0xff] }
 0x74a   :  { %v9862_v13 = vpop.eup %9861  ;;  %9879 = vrcp.f32 %v6651_v61  ;;  %v6652_v40 = vadd.f32 1.0, %v9860_v52  ;;  %v16534_v51 = vpop.f32.mrb[190].mxu1  ;;  %v16538_v47 = vadd.f32 %v6839_v36, %v6276_v32  ;;  %v6389_v2 = vadd.f32 %v16455_v21, %v10860_v34  ;;  %v17969_v52 = vld [vmem:[#allocation133_spill] sm:$0xff] }
 0x74b   :  { %v9864_v62 = vpop.eup %9863  ;;  %9881 = vrcp.f32 %v6653_v24  ;;  %v6654_v1 = vadd.f32 1.0, %v9862_v13  ;;  %v16536_v22 = vpop.f32.mrb[191].mxu0  ;;  %v6842_v54 = vmul.f32 %v9854_v10, %v17967_v44  ;;  %v6391_v7 = vadd.f32 %v16463_v43, %v10866_v17 }
 0x74c   :  { %v9866_v30 = vpop.eup %9865  ;;  %9883 = vrcp.f32 %v6652_v40  ;;  %v6655_v38 = vadd.f32 1.0, %v9864_v62  ;;  %v16540_v23 = vpop.f32.mrb[191].mxu1  ;;  %v16549_v26 = vadd.f32 %v6841_v59, %v6389_v2  ;;  %v6904_v12 = vadd.f32 %v6840_v27, %v6278_v25 }
 0x74d   :  { %v9868_v56 = vpop.eup %9867  ;;  %9885 = vrcp.f32 %v6654_v1  ;;  %v6657_v6 = vadd.f32 1.0, %v9866_v30  ;;  %v6906_v14 = vadd.f32 %v6842_v54, %v6391_v7  ;;  %v6940_v10 = vpack.c.bf16 %v6900_v60, %v16489_v20 }
 0x74e   :  { %v9870_v63 = vpop.eup %9869  ;;  %9887 = vrcp.f32 %v6655_v38  ;;  %v6656_v37 = vadd.f32 1.0, %v9868_v56  ;;  %v6942_v50 = vpack.c.bf16 %v6902_v41, %v16493_v35  ;;  %v6280_v59 = vadd.f32 %v16465_v33, %v10857_v18  ;;  %v17973_v56 = vld [vmem:[#allocation39_spill] sm:$0xff] }
 0x74f   :  { %v9872_v42 = vpop.eup %9871  ;;  %9889 = vrcp.f32 %v6657_v6  ;;  %v6658_v36 = vadd.f32 1.0, %v9870_v63  ;;  %7023 = vmatprep.mubr.bf16.mxu0 %v6940_v10  ;;  %v6393_v61 = vadd.f32 %v16473_v19, %v10860_v34  ;;  %v6282_v31 = vadd.f32 %v16475_v28, %v10863_v3 }
 0x750   :  { %v9874_v5 = vpop.eup %9873  ;;  %9891 = vrcp.f32 %v6656_v37  ;;  %v6659_v21 = vadd.f32 1.0, %v9872_v42  ;;  %7120 = vmatprep.mubr.bf16.mxu1 %v6942_v50  ;;  %7024 = vmatmul.mubr.bf16.gmra.mrb[212].mxu0 %v6939_v11  ;;  %v6395_v33 = vadd.f32 %v16483_v39, %v10866_v17  ;;  %v6286_v19 = vadd.f32 %v16506_v48, %v10857_v18  ;;  %v17971_v11 = vld [vmem:[#allocation139_spill] sm:$0xff]  ;;  %v17975_v42 = vld [vmem:[#allocation34_spill] sm:$0xff] }
 0x751   :  { %v9876_v9 = vpop.eup %9875  ;;  %9893 = vrcp.f32 %v6658_v36  ;;  %v6661_v53 = vadd.f32 1.0, %v9874_v5  ;;  %7121 = vmatmul.mubr.bf16.gmra.mrb[212].mxu1 %v6941_v45  ;;  %v6399_v28 = vadd.f32 %v16514_v16, %v10860_v34  ;;  %v17972_v45 = vld [vmem:[#allocation106_spill] sm:$0xff]  ;;  %v6288_v38 = vadd.f32 %v16516_v0, %v10863_v3  ;;  %v17974_v16 = vld [vmem:[#allocation76_spill] sm:$0xff] }
 0x752   :  { %v9878_v46 = vpop.eup %9877  ;;  %9895 = vrcp.f32 %v6659_v21  ;;  %v6660_v43 = vadd.f32 1.0, %v9876_v9  ;;  %v6401_v25 = vadd.f32 %v16525_v4, %v10866_v17  ;;  %v6403_v5 = vadd.f32 %v16534_v51, %v10860_v34  ;;  %v17976_v9 = vld [vmem:[#allocation77_spill] sm:$0xff]  ;;  %v17978_v34 = vld [vmem:[#allocation95_spill] sm:$0xff] }
 0x753   :  { %9897 = vrcp.f32 %v6661_v53  ;;  %v6662_v15 = vadd.f32 1.0, %v9878_v46  ;;  %v6292_v10 = vadd.f32 %v16536_v22, %v10863_v3  ;;  %v17977_v46 = vld [vmem:[#allocation36_spill] sm:$0xff] }
 0x754   :  { %v9880_v27 = vpop.eup %9879  ;;  %9899 = vrcp.f32 %v6660_v43 }
 0x755   :  { %v9882_v20 = vpop.eup %9881  ;;  %v6843_v35 = vmul.f32 %v9880_v27, %v17968_v57  ;;  %9901 = vrcp.f32 %v6662_v15  ;;  %v17979_v15 = vld [vmem:[#allocation98_spill] sm:$0xff] }
 0x756   :  { %v9884_v29 = vpop.eup %9883  ;;  %v6845_v24 = vmul.f32 %v9882_v20, %v17969_v52 }
 0x757   :  { %v9886_v58 = vpop.eup %9885  ;;  %v6844_v8 = vmul.f32 %v9884_v29, %v17970_v49  ;;  %v6907_v13 = vadd.f32 %v6843_v35, %v6280_v59 }
 0x758   :  { %v9888_v40 = vpop.eup %9887  ;;  %v6846_v32 = vmul.f32 %v9886_v58, %v17971_v11  ;;  %v6909_v62 = vadd.f32 %v6845_v24, %v6393_v61  ;;  %v17980_v11 = vld [vmem:[#allocation118_spill] sm:$0xff] }
 0x759   :  { %v9890_v1 = vpop.eup %9889  ;;  %v6847_v60 = vmul.f32 %v9888_v40, %v17972_v45  ;;  %v6943_v30 = vpack.c.bf16 %v6907_v13, %v16538_v47  ;;  %v6908_v39 = vadd.f32 %v6844_v8, %v6282_v31  ;;  %v6290_v47 = vadd.f32 %v16527_v55, %v10857_v18  ;;  %v17981_v45 = vld [vmem:[#allocation123_spill] sm:$0xff] }
 0x75a   :  { %v9892_v41 = vpop.eup %9891  ;;  %v6849_v6 = vmul.f32 %v9890_v1, %v17973_v56  ;;  %v6945_v48 = vpack.c.bf16 %v6909_v62, %v16549_v26  ;;  %v6910_v2 = vadd.f32 %v6846_v32, %v6395_v33 }
 0x75b   :  { %v9894_v63 = vpop.eup %9893  ;;  %v6848_v44 = vmul.f32 %v9892_v41, %v17974_v16  ;;  %v6911_v54 = vadd.f32 %v6847_v60, %v6286_v19  ;;  %v6944_v37 = vpack.c.bf16 %v6908_v39, %v6904_v12  ;;  %v6405_v12 = vadd.f32 %v16540_v23, %v10866_v17 }
 0x75c   :  { %v9896_v7 = vpop.eup %9895  ;;  %v6850_v0 = vmul.f32 %v9894_v63, %v17975_v42  ;;  %v6913_v36 = vadd.f32 %v6849_v6, %v6399_v28  ;;  %v6946_v26 = vpack.c.bf16 %v6910_v2, %v6906_v14  ;;  %v16595_v28 = vld [vmem:[%s16645_s5] ss:$0 sm:$0xff]  ;;  %v17982_v42 = vld [vmem:[#allocation125_spill] sm:$0xff]  ;;  %s10120_s5 = smov [#allocation4]  }
 0x75d   :  { %v9898_v21 = vpop.eup %9897  ;;  %v6851_v53 = vmul.f32 %v9896_v7, %v17976_v9  ;;  %v6912_v4 = vadd.f32 %v6848_v44, %v6288_v38  ;;  %7031 = vmatprep.mubr.bf16.mxu0 %v6944_v37  ;;  %s7256_s19 = sshll.u32 %s10120_s5, 4  ;;  %s7257_s19 = int_to_ptr.vmem [resolvable:$true] %s7256_s19 }
 0x75e   :  { %v9900_v50 = vpop.eup %9899  ;;  %v6853_v18 = vmul.f32 %v9898_v21, %v17977_v46  ;;  %v6914_v55 = vadd.f32 %v6850_v0, %v6401_v25  ;;  %7128 = vmatprep.mubr.bf16.mxu1 %v6946_v26  ;;  %7032 = vmatmul.mubr.bf16.gmra.mrb[216].mxu0 %v6943_v30  ;;  %v17983_v26 = vld [vmem:[#allocation121_spill] sm:$0xff]  ;;  %s10095_s20 = scalar_lea.vmem %s7257_s19, 2048  ;;  %p10100_p1 = scmp.lt.s32.totalorder %s7257_s19, %s7257_s19 }
 0x75f   :  { %v9902_v43 = vpop.eup %9901  ;;  %v6852_v51 = vmul.f32 %v9900_v50, %v17978_v34  ;;  %v6915_v14 = vadd.f32 %v6851_v53, %v6290_v47  ;;  %7129 = vmatmul.mubr.bf16.gmra.mrb[216].mxu1 %v6945_v48  ;;  %p10096_p0 = scmp.ne.s32.totalorder %s7257_s19, %s10095_s20  ;;  %p10101_p2 = scmp.lt.s32.totalorder %s10095_s20, %s10095_s20 }
 0x760   :  { %v6854_v59 = vmul.f32 %v9902_v43, %v17979_v15  ;;  %v6917_v27 = vadd.f32 %v6853_v18, %v6403_v5 }
 0x761   :  { %v6947_v61 = vpack.c.bf16 %v6915_v14, %v6911_v54  ;;  %v6916_v20 = vadd.f32 %v6852_v51, %v6292_v10  ;;  %p10102_p3 = por %p10101_p2, %p10100_p1 }
 0x762   :  { %v6949_v3 = vpack.c.bf16 %v6917_v27, %v6913_v36  ;;  %v6918_v22 = vadd.f32 %v6854_v59, %v6405_v12 }
 0x763   :  { %v6948_v57 = vpack.c.bf16 %v6916_v20, %v6912_v4  ;;  %p10103_p4 = pnand %p10102_p3, %p10096_p0 }
 0x764   :  { %v6950_v35 = vpack.c.bf16 %v6918_v22, %v6914_v55 }
 0x765   :  { %7039 = vmatprep.mubr.bf16.mxu0 %v6948_v57  ;;  %v17985_v57 = vld [vmem:[#allocation122_spill] sm:$0xff] }
 0x766   :  { %7136 = vmatprep.mubr.bf16.mxu1 %v6950_v35  ;;  %7040 = vmatmul.mubr.bf16.gmra.mrb[220].mxu0 %v6947_v61  ;;  %v17984_v61 = vld [vmem:[#allocation88_spill] sm:$0xff] }
 0x767   :  { %7137 = vmatmul.mubr.bf16.gmra.mrb[220].mxu1 %v6949_v3 }
 0x7f3   :  { %v8475_v17 = vpop.f32.mrb[192].mxu0 }
 0x7f4   :  { %v8539_v23 = vpop.f32.mrb[192].mxu1  ;;  %v8476_v31 = vpop.f32.mrb[193].mxu0 }
 0x7f5   :  { %v8477_v29 = vadd.f32 %v8476_v31, %v8475_v17  ;;  %v8540_v52 = vpop.f32.mrb[193].mxu1  ;;  %v8478_v24 = vpop.f32.mrb[194].mxu0 }
 0x7f6   :  { %v8541_v33 = vadd.f32 %v8540_v52, %v8539_v23  ;;  %v8542_v58 = vpop.f32.mrb[194].mxu1  ;;  %v8479_v49 = vpop.f32.mrb[195].mxu0 }
 0x7f7   :  { %v8480_v8 = vadd.f32 %v8479_v49, %v8478_v24  ;;  %v8543_v13 = vpop.f32.mrb[195].mxu1 }
 0x7f8   :  { %v7083_v19 = vadd.f32 %v8541_v33, %v8477_v29  ;;  %v8544_v40 = vadd.f32 %v8543_v13, %v8542_v58 }
 0x7fa   :  { %v7145_v32 = vadd.f32 %v7083_v19, %v17980_v11  ;;  %v7086_v62 = vadd.f32 %v8544_v40, %v8480_v8 }
 0x7fc   :  { %v7196_v1 = vmul.f32 0.2, %v7145_v32  ;;  %v7146_v60 = vadd.f32 %v7086_v62, %v17981_v45 }
 0x7fe   :  { %v7219_v39 = vadd.f32 %v16595_v28, %v7196_v1  ;;  %v7197_v38 = vmul.f32 0.2, %v7146_v60  ;;  %v17986_v1 = vld [vmem:[#allocation135_spill] sm:$0xff] }
 0x7ff   :  { %v8481_v30 = vpop.f32.mrb[196].mxu0 }
 0x800   :  { %v8482_v56 = vpop.f32.mrb[197].mxu0  ;;  %7235 = vst [vmem:[#allocation4] sm:$0xff] %v7219_v39  ;;  %v7220_v25 = vadd.f32 %v16595_v28, %v7197_v38  ;;  %v17987_v39 = vld [vmem:[#allocation8_spill] sm:$0xff] }
 0x801   :  { %v8545_v41 = vpop.f32.mrb[196].mxu1  ;;  %v8483_v6 = vadd.f32 %v8482_v56, %v8481_v30  ;;  %v8484_v2 = vpop.f32.mrb[198].mxu0 }
 0x802   :  { %v8546_v48 = vpop.f32.mrb[197].mxu1  ;;  %v8485_v44 = vpop.f32.mrb[199].mxu0  ;;  %7236 = vst [vmem:[#allocation4 + $0x8] sm:$0xff] %v7220_v25 }
 0x803   :  { %v8547_v63 = vadd.f32 %v8546_v48, %v8545_v41  ;;  %v8548_v16 = vpop.f32.mrb[198].mxu1  ;;  %v8486_v54 = vadd.f32 %v8485_v44, %v8484_v2 }
 0x804   :  { %v8549_v47 = vpop.f32.mrb[199].mxu1 }
 0x805   :  { %v7091_v37 = vadd.f32 %v8547_v63, %v8483_v6  ;;  %v8550_v7 = vadd.f32 %v8549_v47, %v8548_v16 }
 0x807   :  { %v7147_v0 = vadd.f32 %v7091_v37, %v17982_v42  ;;  %v7094_v36 = vadd.f32 %v8550_v7, %v8486_v54  ;;  %v8487_v9 = vpop.f32.mrb[200].mxu0 }
 0x808   :  { %v8488_v50 = vpop.f32.mrb[201].mxu0 }
 0x809   :  { %v7198_v5 = vmul.f32 0.2, %v7147_v0  ;;  %v7148_v21 = vadd.f32 %v7094_v36, %v17983_v26  ;;  %v8551_v10 = vpop.f32.mrb[200].mxu1  ;;  %v8489_v46 = vadd.f32 %v8488_v50, %v8487_v9  ;;  %v8490_v55 = vpop.f32.mrb[202].mxu0 }
 0x80a   :  { %v8552_v18 = vpop.f32.mrb[201].mxu1  ;;  %v8491_v51 = vpop.f32.mrb[203].mxu0 }
 0x80b   :  { %v7221_v53 = vadd.f32 %v16595_v28, %v7198_v5  ;;  %v7199_v4 = vmul.f32 0.2, %v7148_v21  ;;  %v8553_v43 = vadd.f32 %v8552_v18, %v8551_v10  ;;  %v8554_v34 = vpop.f32.mrb[202].mxu1  ;;  %v8492_v14 = vadd.f32 %v8491_v51, %v8490_v55  ;;  %v17988_v5 = vld [vmem:[#allocation92_spill] sm:$0xff] }
 0x80c   :  { %v8555_v15 = vpop.f32.mrb[203].mxu1 }
 0x80d   :  { %7237 = vst [vmem:[#allocation4 + $0x10] sm:$0xff] %v7221_v53  ;;  %v7222_v12 = vadd.f32 %v16595_v28, %v7199_v4  ;;  %v7099_v59 = vadd.f32 %v8553_v43, %v8489_v46  ;;  %v8556_v27 = vadd.f32 %v8555_v15, %v8554_v34  ;;  %v17989_v53 = vld [vmem:[#allocation140_spill] sm:$0xff] }
 0x80f   :  { %7238 = vst [vmem:[#allocation4 + $0x18] sm:$0xff] %v7222_v12  ;;  %v7149_v20 = vadd.f32 %v7099_v59, %v17984_v61  ;;  %v7102_v3 = vadd.f32 %v8556_v27, %v8492_v14 }
 0x811   :  { %v7200_v22 = vmul.f32 0.2, %v7149_v20  ;;  %v7150_v35 = vadd.f32 %v7102_v3, %v17985_v57 }
 0x812   :  { %v8493_v17 = vpop.f32.mrb[204].mxu0  ;;  %v8557_v29 = vpop.f32.mrb[204].mxu1 }
 0x813   :  { %v7223_v23 = vadd.f32 %v16595_v28, %v7200_v22  ;;  %v7201_v31 = vmul.f32 0.2, %v7150_v35  ;;  %v8494_v52 = vpop.f32.mrb[205].mxu0  ;;  %v8558_v33 = vpop.f32.mrb[205].mxu1  ;;  %v17990_v22 = vld [vmem:[#allocation10_spill] sm:$0xff] }
 0x814   :  { %v8495_v24 = vadd.f32 %v8494_v52, %v8493_v17  ;;  %v8496_v58 = vpop.f32.mrb[206].mxu0  ;;  %v8559_v8 = vadd.f32 %v8558_v33, %v8557_v29  ;;  %v8560_v13 = vpop.f32.mrb[206].mxu1 }
 0x815   :  { %7239 = vst [vmem:[#allocation4 + $0x20] sm:$0xff] %v7223_v23  ;;  %v7224_v49 = vadd.f32 %v16595_v28, %v7201_v31  ;;  %v8497_v19 = vpop.f32.mrb[207].mxu0  ;;  %v8561_v11 = vpop.f32.mrb[207].mxu1  ;;  %v17991_v23 = vld [vmem:[#allocation11_spill] sm:$0xff] }
 0x816   :  { %v8498_v40 = vadd.f32 %v8497_v19, %v8496_v58  ;;  %v7107_v32 = vadd.f32 %v8559_v8, %v8495_v24  ;;  %v8562_v62 = vadd.f32 %v8561_v11, %v8560_v13 }
 0x817   :  { %7240 = vst [vmem:[#allocation4 + $0x28] sm:$0xff] %v7224_v49 }
 0x818   :  { %v7151_v45 = vadd.f32 %v7107_v32, %v17986_v1  ;;  %v7110_v60 = vadd.f32 %v8562_v62, %v8498_v40 }
 0x81a   :  { %v7202_v30 = vmul.f32 0.2, %v7151_v45  ;;  %v7152_v38 = vadd.f32 %v7110_v60, %v17987_v39 }
 0x81b   :  { %v8499_v41 = vpop.f32.mrb[208].mxu0 }
 0x81c   :  { %v7225_v56 = vadd.f32 %v16595_v28, %v7202_v30  ;;  %v7203_v6 = vmul.f32 0.2, %v7152_v38  ;;  %v8563_v48 = vpop.f32.mrb[208].mxu1  ;;  %v8500_v2 = vpop.f32.mrb[209].mxu0  ;;  %v17992_v30 = vld [vmem:[#allocation127_spill] sm:$0xff] }
 0x81d   :  { %v8501_v25 = vadd.f32 %v8500_v2, %v8499_v41  ;;  %v8564_v63 = vpop.f32.mrb[209].mxu1  ;;  %v8502_v16 = vpop.f32.mrb[210].mxu0 }
 0x81e   :  { %7241 = vst [vmem:[#allocation4 + $0x30] sm:$0xff] %v7225_v56  ;;  %v7226_v44 = vadd.f32 %v16595_v28, %v7203_v6  ;;  %v8565_v54 = vadd.f32 %v8564_v63, %v8563_v48  ;;  %v8566_v47 = vpop.f32.mrb[210].mxu1  ;;  %v8503_v37 = vpop.f32.mrb[211].mxu0  ;;  %v17993_v6 = vld [vmem:[#allocation141_spill] sm:$0xff] }
 0x81f   :  { %v8504_v7 = vadd.f32 %v8503_v37, %v8502_v16  ;;  %v8567_v42 = vpop.f32.mrb[211].mxu1 }
 0x820   :  { %7242 = vst [vmem:[#allocation4 + $0x38] sm:$0xff] %v7226_v44  ;;  %v7115_v0 = vadd.f32 %v8565_v54, %v8501_v25  ;;  %v8568_v36 = vadd.f32 %v8567_v42, %v8566_v47 }
 0x822   :  { %v7153_v26 = vadd.f32 %v7115_v0, %v17988_v5  ;;  %v7118_v21 = vadd.f32 %v8568_v36, %v8504_v7 }
 0x823   :  { %v8505_v10 = vpop.f32.mrb[212].mxu0 }
 0x824   :  { %v7204_v9 = vmul.f32 0.2, %v7153_v26  ;;  %v7154_v4 = vadd.f32 %v7118_v21, %v17989_v53  ;;  %v8569_v50 = vpop.f32.mrb[212].mxu1  ;;  %v8506_v55 = vpop.f32.mrb[213].mxu0 }
 0x825   :  { %v8570_v12 = vpop.f32.mrb[213].mxu1  ;;  %v8507_v43 = vadd.f32 %v8506_v55, %v8505_v10  ;;  %v8508_v51 = vpop.f32.mrb[214].mxu0 }
 0x826   :  { %v7227_v46 = vadd.f32 %v16595_v28, %v7204_v9  ;;  %v7205_v18 = vmul.f32 0.2, %v7154_v4  ;;  %v8571_v34 = vadd.f32 %v8570_v12, %v8569_v50  ;;  %v8572_v14 = vpop.f32.mrb[214].mxu1  ;;  %v8509_v59 = vpop.f32.mrb[215].mxu0  ;;  %v17994_v9 = vld [vmem:[#allocation12_spill] sm:$0xff]  ;;  %v17995_v50 = vld [vmem:[#allocation93_spill] sm:$0xff] }
 0x827   :  { %v8573_v27 = vpop.f32.mrb[215].mxu1  ;;  %v8510_v20 = vadd.f32 %v8509_v59, %v8508_v51 }
 0x828   :  { %7243 = vst [vmem:[#allocation4 + $0x40] sm:$0xff] %v7227_v46  ;;  %v7228_v15 = vadd.f32 %v16595_v28, %v7205_v18  ;;  %v7123_v61 = vadd.f32 %v8571_v34, %v8507_v43  ;;  %v8574_v3 = vadd.f32 %v8573_v27, %v8572_v14 }
 0x82a   :  { %7244 = vst [vmem:[#allocation4 + $0x48] sm:$0xff] %v7228_v15  ;;  %v7155_v57 = vadd.f32 %v7123_v61, %v17990_v22  ;;  %v7126_v35 = vadd.f32 %v8574_v3, %v8510_v20 }
 0x82c   :  { %v7206_v17 = vmul.f32 0.2, %v7155_v57  ;;  %v7156_v31 = vadd.f32 %v7126_v35, %v17991_v23 }
 0x82e   :  { %v7229_v29 = vadd.f32 %v16595_v28, %v7206_v17  ;;  %v7207_v52 = vmul.f32 0.2, %v7156_v31 }
 0x830   :  { %7245 = vst [vmem:[#allocation4 + $0x50] sm:$0xff] %v7229_v29  ;;  %v7230_v49 = vadd.f32 %v16595_v28, %v7207_v52 }
 0x831   :  { %v8511_v24 = vpop.f32.mrb[216].mxu0 }
 0x832   :  { %v8575_v33 = vpop.f32.mrb[216].mxu1  ;;  %v8512_v58 = vpop.f32.mrb[217].mxu0  ;;  %7246 = vst [vmem:[#allocation4 + $0x58] sm:$0xff] %v7230_v49 }
 0x833   :  { %v8513_v8 = vadd.f32 %v8512_v58, %v8511_v24  ;;  %v8576_v13 = vpop.f32.mrb[217].mxu1  ;;  %v8514_v19 = vpop.f32.mrb[218].mxu0 }
 0x834   :  { %v8577_v40 = vadd.f32 %v8576_v13, %v8575_v33  ;;  %v8578_v11 = vpop.f32.mrb[218].mxu1  ;;  %v8515_v32 = vpop.f32.mrb[219].mxu0 }
 0x835   :  { %v8516_v62 = vadd.f32 %v8515_v32, %v8514_v19  ;;  %v8579_v1 = vpop.f32.mrb[219].mxu1 }
 0x836   :  { %v7131_v45 = vadd.f32 %v8577_v40, %v8513_v8  ;;  %v8580_v60 = vadd.f32 %v8579_v1, %v8578_v11 }
 0x838   :  { %v7157_v39 = vadd.f32 %v7131_v45, %v17992_v30  ;;  %v7134_v38 = vadd.f32 %v8580_v60, %v8516_v62 }
 0x839   :  { %v8517_v41 = vpop.f32.mrb[220].mxu0 }
 0x83a   :  { %v7208_v56 = vmul.f32 0.2, %v7157_v39  ;;  %v7158_v48 = vadd.f32 %v7134_v38, %v17993_v6  ;;  %v8581_v2 = vpop.f32.mrb[220].mxu1  ;;  %v8518_v25 = vpop.f32.mrb[221].mxu0 }
 0x83b   :  { %v8519_v63 = vadd.f32 %v8518_v25, %v8517_v41  ;;  %v8582_v16 = vpop.f32.mrb[221].mxu1  ;;  %v8520_v44 = vpop.f32.mrb[222].mxu0 }
 0x83c   :  { %v7231_v54 = vadd.f32 %v16595_v28, %v7208_v56  ;;  %v7209_v47 = vmul.f32 0.2, %v7158_v48  ;;  %v8583_v37 = vadd.f32 %v8582_v16, %v8581_v2  ;;  %v8584_v7 = vpop.f32.mrb[222].mxu1  ;;  %v8521_v42 = vpop.f32.mrb[223].mxu0 }
 0x83d   :  { %v8522_v0 = vadd.f32 %v8521_v42, %v8520_v44  ;;  %v8585_v36 = vpop.f32.mrb[223].mxu1 }
 0x83e   :  { %7247 = vst [vmem:[#allocation4 + $0x60] sm:$0xff] %v7231_v54  ;;  %v7232_v5 = vadd.f32 %v16595_v28, %v7209_v47  ;;  %v7139_v26 = vadd.f32 %v8583_v37, %v8519_v63  ;;  %v8586_v21 = vadd.f32 %v8585_v36, %v8584_v7 }
 0x840   :  { %7248 = vst [vmem:[#allocation4 + $0x68] sm:$0xff] %v7232_v5  ;;  %v7159_v53 = vadd.f32 %v7139_v26, %v17994_v9  ;;  %v7142_v4 = vadd.f32 %v8586_v21, %v8522_v0 }
 0x842   :  { %v7210_v10 = vmul.f32 0.2, %v7159_v53  ;;  %v7160_v46 = vadd.f32 %v7142_v4, %v17995_v50 }
 0x844   :  { %v7233_v18 = vadd.f32 %v16595_v28, %v7210_v10  ;;  %v7211_v55 = vmul.f32 0.2, %v7160_v46 }
 0x846   :  { %7249 = vst [vmem:[#allocation4 + $0x70] sm:$0xff] %v7233_v18  ;;  %v7234_v12 = vadd.f32 %v16595_v28, %v7211_v55 }
 0x848   :  { %7250 = vst [vmem:[#allocation4 + $0x78] sm:$0xff] %v7234_v12 }
 0x849   :  { %10106 = shalt.err (!%p10103_p4)
}
 0x84a   :  { %s10107_s23 = scalar_lea.hbm %s16646_s6, 2048 }
 0x84b   :  { %p10108_p5 = scmp.ne.s32.totalorder %s16646_s6, %s10107_s23  ;;  %p10111_p6 = scmp.lt.u32.totalorder %s10107_s23, %s16646_s6 }
 0x84d   :  { %p10113_p7 = pnand %p10111_p6, %p10108_p5 }
 0x84f   :  { %10116 = shalt.err (!%p10113_p7)
}
 0x850   :  { %s10121_s28 = smov 128   ;;  %s10122_s29 = smov 8  }
 0x851   :  { %7262 = dma.vmem_to_hbm [thread:$0]  %s7257_s19, 2048, %s16646_s6, [#allocation5], %s10121_s28, %s10121_s28, %s10122_s29  }
 0x852   :  { %10117 = dma.done.wait [#allocation5], 2048  }
 0x853   :  { %10118 = vsyncadd [#allocation5], 4294965248 }
 0x854   :  { %7266 = vsyncpa [#allocation5], 1 }

</bundles_post_ra>
